<compile_context>
chip_gen: v6e
topology: v6e:2x2x1
jax: 0.10.0
libtpu: 0.0.40
codegen_flags: <defaults>
</compile_context>

<pallas_src>
import jax
import jax.numpy as jnp
from jax import lax
from jax.experimental import pallas as pl
from jax.experimental.pallas import tpu as pltpu


# ----------------------------------------------------------------------------
# Wrapper-side layout plumbing (plain XLA): pool-phase-split im2col.
# col[b, phase(dh,dw), (kh*3+kw)*Cin + ci, h'*Wp + w'] =
#     xpad[b, ci, 2*h' + dh + kh, 2*w' + dw + kw]
# ----------------------------------------------------------------------------
def _pooled_im2col(x):
    """(B, C, H, W) -> (B, 4, 9*C, (H//2)*(W//2)) for a 3x3 SAME conv + 2x2 pool."""
    B, C, H, W = x.shape
    assert H % 2 == 0 and W % 2 == 0, "conv+pool stage needs even spatial dims"
    Hp, Wp = H // 2, W // 2
    xp = jnp.pad(x, ((0, 0), (0, 0), (1, 1), (1, 1)))
    phases = []
    for dh in range(2):
        for dw in range(2):
            taps = []
            for kh in range(3):
                for kw in range(3):
                    r0, c0 = dh + kh, dw + kw
                    s = xp[:, :, r0:r0 + 2 * Hp:2, c0:c0 + 2 * Wp:2]  # (B,C,Hp,Wp)
                    taps.append(s.reshape(B, C, Hp * Wp))
            phases.append(jnp.concatenate(taps, axis=1))               # (B,9C,HpWp)
    return jnp.stack(phases, axis=1)                                    # (B,4,9C,HpWp)


def _flatten_conv_w(w):
    """PyTorch (Cout, Cin, 3, 3) -> (Cout, 9*Cin) matching _pooled_im2col rows."""
    co, ci, kh, kw = w.shape
    return jnp.transpose(w, (0, 2, 3, 1)).reshape(co, kh * kw * ci)


# ----------------------------------------------------------------------------
# Kernel 1: conv1 + 2x2 maxpool + ReLU.  One image per grid step.
# Pool = elementwise max of the 4 phase-dots (no reshapes, no XLU reductions).
# ----------------------------------------------------------------------------
def conv_pool_relu_kernel(col_ref, w_ref, b_ref, o_ref):
    # col_ref: (1, 4, 9*Cin, Hp*Wp)   w_ref: (Cout, 9*Cin)
    # b_ref:   (Cout, 1)              o_ref: (1, Cout, Hp*Wp)
    acc = jnp.dot(w_ref[...], col_ref[0, 0], preferred_element_type=jnp.float32)
    for p in range(1, 4):
        acc = jnp.maximum(
            acc, jnp.dot(w_ref[...], col_ref[0, p],
                         preferred_element_type=jnp.float32))
    o_ref[0] = jnp.maximum(acc + b_ref[...], 0.0).astype(o_ref.dtype)


def conv_pool_relu(col, w_flat, b):
    B, P, KKC, HWp = col.shape
    Cout = w_flat.shape[0]
    return pl.pallas_call(
        conv_pool_relu_kernel,
        out_shape=jax.ShapeDtypeStruct((B, Cout, HWp), jnp.float32),
        grid=(B,),
        in_specs=[
            pl.BlockSpec((1, P, KKC, HWp), lambda i: (i, 0, 0, 0)),
            pl.BlockSpec((Cout, KKC), lambda i: (0, 0)),
            pl.BlockSpec((Cout, 1), lambda i: (0, 0)),
        ],
        out_specs=pl.BlockSpec((1, Cout, HWp), lambda i: (i, 0, 0)),
        compiler_params=pltpu.CompilerParams(
            dimension_semantics=("parallel",)),
    )(col, w_flat, b.reshape(Cout, 1))


# ----------------------------------------------------------------------------
# Kernel 2: conv2 + maxpool + ReLU + flatten + fc1 + ReLU + fc2 + ReLU, fused.
# conv2 output (Cout2, Hp*Wp) is already in torch NCHW-flatten order, so fc1 is
# applied directly by contracting over (c, h*w) with fc1_w viewed as
# (Cout2, Hp*Wp, 64) — no transpose, no reshape, no extra HBM round trip.
# ----------------------------------------------------------------------------
def conv2_mlp_kernel(col_ref, w2_ref, b2_ref, w_fc1_ref, b_fc1_ref,
                     w_fc2_ref, b_fc2_ref, o_ref):
    # col_ref: (1, 4, 144, 625)   w2_ref: (8, 144)    b2_ref: (8, 1)
    # w_fc1_ref: (8, 625, 64)     b_fc1_ref: (1, 64)
    # w_fc2_ref: (64, 2)          b_fc2_ref: (1, 2)   o_ref: (1, 1, 2)
    acc = jnp.dot(w2_ref[...], col_ref[0, 0], preferred_element_type=jnp.float32)
    for p in range(1, 4):
        acc = jnp.maximum(
            acc, jnp.dot(w2_ref[...], col_ref[0, p],
                         preferred_element_type=jnp.float32))
    feat = jnp.maximum(acc + b2_ref[...], 0.0)          # (8, 625), torch flatten order

    h = b_fc1_ref[...]                                  # (1, 64)
    for c in range(feat.shape[0]):                      # fc1 as 8 accumulated dots
        h = h + jnp.dot(feat[c:c + 1, :], w_fc1_ref[c],
                        preferred_element_type=jnp.float32)
    h = jnp.maximum(h, 0.0)                             # (1, 64)

    y = jnp.dot(h, w_fc2_ref[...], preferred_element_type=jnp.float32) + b_fc2_ref[...]
    o_ref[0] = jnp.maximum(y, 0.0).astype(o_ref.dtype)  # (1, 2)


def conv2_mlp(col, w2_flat, b2, w_fc1, b_fc1, w_fc2, b_fc2):
    B, P, KKC, HWp = col.shape
    Cout = w2_flat.shape[0]
    F, H1 = w_fc1.shape
    O = w_fc2.shape[1]
    assert Cout * HWp == F
    w_fc1_3d = w_fc1.reshape(Cout, HWp, H1)             # rows already in (c,h,w) order
    out = pl.pallas_call(
        conv2_mlp_kernel,
        out_shape=jax.ShapeDtypeStruct((B, 1, O), jnp.float32),
        grid=(B,),
        in_specs=[
            pl.BlockSpec((1, P, KKC, HWp), lambda i: (i, 0, 0, 0)),
            pl.BlockSpec((Cout, KKC), lambda i: (0, 0)),
            pl.BlockSpec((Cout, 1), lambda i: (0, 0)),
            pl.BlockSpec((Cout, HWp, H1), lambda i: (0, 0, 0)),
            pl.BlockSpec((1, H1), lambda i: (0, 0)),
            pl.BlockSpec((H1, O), lambda i: (0, 0)),
            pl.BlockSpec((1, O), lambda i: (0, 0)),
        ],
        out_specs=pl.BlockSpec((1, 1, O), lambda i: (i, 0, 0)),
        compiler_params=pltpu.CompilerParams(
            dimension_semantics=("parallel",)),
    )(col, w2_flat, b2.reshape(Cout, 1), w_fc1_3d,
      b_fc1.reshape(1, H1), w_fc2, b_fc2.reshape(1, O))
    return out.reshape(B, O)


# ----------------------------------------------------------------------------
# Full forward pass.  Input stays in PyTorch NCHW layout end-to-end.
# ----------------------------------------------------------------------------
def cnn_forward(x_nchw, p):
    B, _, H, W = x_nchw.shape
    col1 = _pooled_im2col(x_nchw)                                   # (B,4,27,2500)
    y1 = conv_pool_relu(col1, _flatten_conv_w(p["conv1_w"]), p["conv1_b"])
    x2 = y1.reshape(B, y1.shape[1], H // 2, W // 2)                 # (B,16,50,50)
    col2 = _pooled_im2col(x2)                                       # (B,4,144,625)
    return conv2_mlp(col2, _flatten_conv_w(p["conv2_w"]), p["conv2_b"],
                     p["fc1_w"], p["fc1_b"], p["fc2_w"], p["fc2_b"])


# Pure-JAX reference (NCHW, exactly the torch ops) for numerical verification.
def reference_forward(x, p):
    def block(x, w, b):
        y = lax.conv_general_dilated(
            x, w, (1, 1), [(1, 1), (1, 1)],
            dimension_numbers=("NCHW", "OIHW", "NCHW"))
        y = y + b.reshape(1, -1, 1, 1)
        y = lax.reduce_window(y, -jnp.inf, lax.max,
                              (1, 1, 2, 2), (1, 1, 2, 2), "VALID")
        return jnp.maximum(y, 0.0)

    x = block(x, p["conv1_w"], p["conv1_b"])
    x = block(x, p["conv2_w"], p["conv2_b"])
    x = x.reshape(x.shape[0], -1)                      # torch flatten (B, C*H*W)
    h = jnp.maximum(x @ p["fc1_w"] + p["fc1_b"], 0.0)
    return jnp.maximum(h @ p["fc2_w"] + p["fc2_b"], 0.0)


def init_params(key):
    ks = jax.random.split(key, 8)
    s = 0.05
    return {
        # conv weights in PyTorch OIHW layout
        "conv1_w": jax.random.normal(ks[0], (16, 3, 3, 3), jnp.float32) * s,
        "conv1_b": jax.random.normal(ks[1], (16,), jnp.float32) * s,
        "conv2_w": jax.random.normal(ks[2], (8, 16, 3, 3), jnp.float32) * s,
        "conv2_b": jax.random.normal(ks[3], (8,), jnp.float32) * s,
        # fc1 rows indexed in torch NCHW-flatten order (c, h, w)
        "fc1_w": jax.random.normal(ks[4], (25 * 25 * 8, 64), jnp.float32) * s,
        "fc1_b": jax.random.normal(ks[5], (64,), jnp.float32) * s,
        "fc2_w": jax.random.normal(ks[6], (64, 2), jnp.float32) * s,
        "fc2_b": jax.random.normal(ks[7], (2,), jnp.float32) * s,
    }


if __name__ == "__main__":
    key = jax.random.PRNGKey(0)
    pkey, xkey = jax.random.split(key)
    params = init_params(pkey)

    # batch=2, channels=3, spatial=100x100 (forced by fc1 = 25*25*8)
    x = jax.random.normal(xkey, (2, 3, 100, 100), jnp.float32)

    out = jax.block_until_ready(jax.jit(cnn_forward)(x, params))
    ref = jax.block_until_ready(jax.jit(reference_forward)(x, params))

    assert out.shape == (2, 2) and out.dtype == jnp.float32
    assert jnp.allclose(out, ref, rtol=1e-4, atol=1e-4), (out, ref)

    print("KERNEL_OK")
</pallas_src>

<mosaic_0001>
module attributes {stable_mosaic.version = 11 : i64} {
  func.func @conv_pool_relu_kernel(%arg0: i32, %arg1: memref<1x4x27x2500xf32, #tpu.memory_space<vmem>>, %arg2: memref<16x27xf32, #tpu.memory_space<vmem>>, %arg3: memref<16x1xf32, #tpu.memory_space<vmem>>, %arg4: memref<1x16x2500xf32, #tpu.memory_space<vmem>>) attributes {dimension_semantics = [#tpu.dimension_semantics<parallel>], iteration_bounds = array<i64: 2>, scalar_prefetch = 0 : i64, scratch_operands = 0 : i64, tpu.core_type = #tpu.core_type<tc>, window_params = [{transform_indices = @transform_0, window_bounds = array<i64: 1, 4, 27, 2500>}, {pipeline_mode = #tpu.pipeline_mode<synchronous>, transform_indices = @transform_1, window_bounds = array<i64: 16, 27>}, {pipeline_mode = #tpu.pipeline_mode<synchronous>, transform_indices = @transform_2, window_bounds = array<i64: 16, 1>}, {transform_indices = @transform_3, window_bounds = array<i64: 1, 16, 2500>}]} {
    %c0 = arith.constant 0 : index
    %c0_0 = arith.constant 0 : index
    %0 = vector.load %arg2[%c0, %c0_0] : memref<16x27xf32, #tpu.memory_space<vmem>>, vector<16x27xf32>
    %c0_1 = arith.constant 0 : index
    %c0_2 = arith.constant 0 : index
    %c0_3 = arith.constant 0 : index
    %c0_4 = arith.constant 0 : index
    %1 = vector.load %arg1[%c0_1, %c0_2, %c0_3, %c0_4] : memref<1x4x27x2500xf32, #tpu.memory_space<vmem>>, vector<1x1x27x2500xf32>
    %2 = vector.shape_cast %1 : vector<1x1x27x2500xf32> to vector<27x2500xf32>
    %cst = arith.constant dense<0.000000e+00> : vector<16x2500xf32>
    %3 = tpu.matmul %0, %2, %cst {dimension_numbers = #tpu.dot_dimension_numbers<[1], [0], [0], [1], [0, 0, 1, 1], [], []>} : vector<16x27xf32>, vector<27x2500xf32>, vector<16x2500xf32> -> vector<16x2500xf32>
    %c0_5 = arith.constant 0 : index
    %c0_6 = arith.constant 0 : index
    %4 = vector.load %arg2[%c0_5, %c0_6] : memref<16x27xf32, #tpu.memory_space<vmem>>, vector<16x27xf32>
    %c0_7 = arith.constant 0 : index
    %c1 = arith.constant 1 : index
    %c0_8 = arith.constant 0 : index
    %c0_9 = arith.constant 0 : index
    %5 = vector.load %arg1[%c0_7, %c1, %c0_8, %c0_9] : memref<1x4x27x2500xf32, #tpu.memory_space<vmem>>, vector<1x1x27x2500xf32>
    %6 = vector.shape_cast %5 : vector<1x1x27x2500xf32> to vector<27x2500xf32>
    %cst_10 = arith.constant dense<0.000000e+00> : vector<16x2500xf32>
    %7 = tpu.matmul %4, %6, %cst_10 {dimension_numbers = #tpu.dot_dimension_numbers<[1], [0], [0], [1], [0, 0, 1, 1], [], []>} : vector<16x27xf32>, vector<27x2500xf32>, vector<16x2500xf32> -> vector<16x2500xf32>
    %8 = arith.maximumf %3, %7 : vector<16x2500xf32>
    %c0_11 = arith.constant 0 : index
    %c0_12 = arith.constant 0 : index
    %9 = vector.load %arg2[%c0_11, %c0_12] : memref<16x27xf32, #tpu.memory_space<vmem>>, vector<16x27xf32>
    %c0_13 = arith.constant 0 : index
    %c2 = arith.constant 2 : index
    %c0_14 = arith.constant 0 : index
    %c0_15 = arith.constant 0 : index
    %10 = vector.load %arg1[%c0_13, %c2, %c0_14, %c0_15] : memref<1x4x27x2500xf32, #tpu.memory_space<vmem>>, vector<1x1x27x2500xf32>
    %11 = vector.shape_cast %10 : vector<1x1x27x2500xf32> to vector<27x2500xf32>
    %cst_16 = arith.constant dense<0.000000e+00> : vector<16x2500xf32>
    %12 = tpu.matmul %9, %11, %cst_16 {dimension_numbers = #tpu.dot_dimension_numbers<[1], [0], [0], [1], [0, 0, 1, 1], [], []>} : vector<16x27xf32>, vector<27x2500xf32>, vector<16x2500xf32> -> vector<16x2500xf32>
    %13 = arith.maximumf %8, %12 : vector<16x2500xf32>
    %c0_17 = arith.constant 0 : index
    %c0_18 = arith.constant 0 : index
    %14 = vector.load %arg2[%c0_17, %c0_18] : memref<16x27xf32, #tpu.memory_space<vmem>>, vector<16x27xf32>
    %c0_19 = arith.constant 0 : index
    %c3 = arith.constant 3 : index
    %c0_20 = arith.constant 0 : index
    %c0_21 = arith.constant 0 : index
    %15 = vector.load %arg1[%c0_19, %c3, %c0_20, %c0_21] : memref<1x4x27x2500xf32, #tpu.memory_space<vmem>>, vector<1x1x27x2500xf32>
    %16 = vector.shape_cast %15 : vector<1x1x27x2500xf32> to vector<27x2500xf32>
    %cst_22 = arith.constant dense<0.000000e+00> : vector<16x2500xf32>
    %17 = tpu.matmul %14, %16, %cst_22 {dimension_numbers = #tpu.dot_dimension_numbers<[1], [0], [0], [1], [0, 0, 1, 1], [], []>} : vector<16x27xf32>, vector<27x2500xf32>, vector<16x2500xf32> -> vector<16x2500xf32>
    %18 = arith.maximumf %13, %17 : vector<16x2500xf32>
    %c0_23 = arith.constant 0 : index
    %c0_24 = arith.constant 0 : index
    %19 = vector.load %arg3[%c0_23, %c0_24] : memref<16x1xf32, #tpu.memory_space<vmem>>, vector<16x1xf32>
    %20 = vector.broadcast %19 : vector<16x1xf32> to vector<16x2500xf32>
    %21 = arith.addf %18, %20 : vector<16x2500xf32>
    %cst_25 = arith.constant 0.000000e+00 : f32
    %22 = vector.broadcast %cst_25 : f32 to vector<16x2500xf32>
    %23 = arith.maximumf %21, %22 : vector<16x2500xf32>
    %c0_26 = arith.constant 0 : index
    %c0_27 = arith.constant 0 : index
    %c0_28 = arith.constant 0 : index
    %24 = vector.load %arg4[%c0_26, %c0_27, %c0_28] : memref<1x16x2500xf32, #tpu.memory_space<vmem>>, vector<1x16x2500xf32>
    %25 = vector.shape_cast %24 : vector<1x16x2500xf32> to vector<16x2500xf32>
    %26 = vector.shape_cast %23 : vector<16x2500xf32> to vector<1x16x2500xf32>
    tpu.vector_store %arg4[%c0_26, %c0_27, %c0_28], %26 {strides = array<i32>} : memref<1x16x2500xf32, #tpu.memory_space<vmem>>, vector<1x16x2500xf32>,
    return
  }
  func.func @transform_0(%arg0: i32) -> (i32, i32, i32, i32) {
    %c0_i32 = arith.constant 0 : i32
    %c0_i32_0 = arith.constant 0 : i32
    %c0_i32_1 = arith.constant 0 : i32
    %c0_i32_2 = arith.constant 0 : i32
    return %arg0, %c0_i32, %c0_i32_0, %c0_i32_1 : i32, i32, i32, i32
  }
  func.func @transform_1(%arg0: i32) -> (i32, i32) {
    %c0_i32 = arith.constant 0 : i32
    %c0_i32_0 = arith.constant 0 : i32
    %c0_i32_1 = arith.constant 0 : i32
    return %c0_i32, %c0_i32_0 : i32, i32
  }
  func.func @transform_2(%arg0: i32) -> (i32, i32) {
    %c0_i32 = arith.constant 0 : i32
    %c0_i32_0 = arith.constant 0 : i32
    %c0_i32_1 = arith.constant 0 : i32
    return %c0_i32, %c0_i32_0 : i32, i32
  }
  func.func @transform_3(%arg0: i32) -> (i32, i32, i32) {
    %c0_i32 = arith.constant 0 : i32
    %c0_i32_0 = arith.constant 0 : i32
    %c0_i32_1 = arith.constant 0 : i32
    return %arg0, %c0_i32, %c0_i32_0 : i32, i32, i32
  }
}

module attributes {stable_mosaic.version = 11 : i64} {
  func.func @conv2_mlp_kernel(%arg0: i32, %arg1: memref<1x4x144x625xf32, #tpu.memory_space<vmem>>, %arg2: memref<8x144xf32, #tpu.memory_space<vmem>>, %arg3: memref<8x1xf32, #tpu.memory_space<vmem>>, %arg4: memref<8x625x64xf32, #tpu.memory_space<vmem>>, %arg5: memref<1x64xf32, #tpu.memory_space<vmem>>, %arg6: memref<64x2xf32, #tpu.memory_space<vmem>>, %arg7: memref<1x2xf32, #tpu.memory_space<vmem>>, %arg8: memref<1x1x2xf32, #tpu.memory_space<vmem>>) attributes {dimension_semantics = [#tpu.dimension_semantics<parallel>], iteration_bounds = array<i64: 2>, scalar_prefetch = 0 : i64, scratch_operands = 0 : i64, tpu.core_type = #tpu.core_type<tc>, window_params = [{transform_indices = @transform_0, window_bounds = array<i64: 1, 4, 144, 625>}, {pipeline_mode = #tpu.pipeline_mode<synchronous>, transform_indices = @transform_1, window_bounds = array<i64: 8, 144>}, {pipeline_mode = #tpu.pipeline_mode<synchronous>, transform_indices = @transform_2, window_bounds = array<i64: 8, 1>}, {pipeline_mode = #tpu.pipeline_mode<synchronous>, transform_indices = @transform_3, window_bounds = array<i64: 8, 625, 64>}, {pipeline_mode = #tpu.pipeline_mode<synchronous>, transform_indices = @transform_4, window_bounds = array<i64: 1, 64>}, {pipeline_mode = #tpu.pipeline_mode<synchronous>, transform_indices = @transform_5, window_bounds = array<i64: 64, 2>}, {pipeline_mode = #tpu.pipeline_mode<synchronous>, transform_indices = @transform_6, window_bounds = array<i64: 1, 2>}, {transform_indices = @transform_7, window_bounds = array<i64: 1, 1, 2>}]} {
    %c0 = arith.constant 0 : index
    %c0_0 = arith.constant 0 : index
    %0 = vector.load %arg2[%c0, %c0_0] : memref<8x144xf32, #tpu.memory_space<vmem>>, vector<8x144xf32>
    %c0_1 = arith.constant 0 : index
    %c0_2 = arith.constant 0 : index
    %c0_3 = arith.constant 0 : index
    %c0_4 = arith.constant 0 : index
    %1 = vector.load %arg1[%c0_1, %c0_2, %c0_3, %c0_4] : memref<1x4x144x625xf32, #tpu.memory_space<vmem>>, vector<1x1x144x625xf32>
    %2 = vector.shape_cast %1 : vector<1x1x144x625xf32> to vector<144x625xf32>
    %cst = arith.constant dense<0.000000e+00> : vector<8x625xf32>
    %3 = tpu.matmul %0, %2, %cst {dimension_numbers = #tpu.dot_dimension_numbers<[1], [0], [0], [1], [0, 0, 1, 1], [], []>} : vector<8x144xf32>, vector<144x625xf32>, vector<8x625xf32> -> vector<8x625xf32>
    %c0_5 = arith.constant 0 : index
    %c0_6 = arith.constant 0 : index
    %4 = vector.load %arg2[%c0_5, %c0_6] : memref<8x144xf32, #tpu.memory_space<vmem>>, vector<8x144xf32>
    %c0_7 = arith.constant 0 : index
    %c1 = arith.constant 1 : index
    %c0_8 = arith.constant 0 : index
    %c0_9 = arith.constant 0 : index
    %5 = vector.load %arg1[%c0_7, %c1, %c0_8, %c0_9] : memref<1x4x144x625xf32, #tpu.memory_space<vmem>>, vector<1x1x144x625xf32>
    %6 = vector.shape_cast %5 : vector<1x1x144x625xf32> to vector<144x625xf32>
    %cst_10 = arith.constant dense<0.000000e+00> : vector<8x625xf32>
    %7 = tpu.matmul %4, %6, %cst_10 {dimension_numbers = #tpu.dot_dimension_numbers<[1], [0], [0], [1], [0, 0, 1, 1], [], []>} : vector<8x144xf32>, vector<144x625xf32>, vector<8x625xf32> -> vector<8x625xf32>
    %8 = arith.maximumf %3, %7 : vector<8x625xf32>
    %c0_11 = arith.constant 0 : index
    %c0_12 = arith.constant 0 : index
    %9 = vector.load %arg2[%c0_11, %c0_12] : memref<8x144xf32, #tpu.memory_space<vmem>>, vector<8x144xf32>
    %c0_13 = arith.constant 0 : index
    %c2 = arith.constant 2 : index
    %c0_14 = arith.constant 0 : index
    %c0_15 = arith.constant 0 : index
    %10 = vector.load %arg1[%c0_13, %c2, %c0_14, %c0_15] : memref<1x4x144x625xf32, #tpu.memory_space<vmem>>, vector<1x1x144x625xf32>
    %11 = vector.shape_cast %10 : vector<1x1x144x625xf32> to vector<144x625xf32>
    %cst_16 = arith.constant dense<0.000000e+00> : vector<8x625xf32>
    %12 = tpu.matmul %9, %11, %cst_16 {dimension_numbers = #tpu.dot_dimension_numbers<[1], [0], [0], [1], [0, 0, 1, 1], [], []>} : vector<8x144xf32>, vector<144x625xf32>, vector<8x625xf32> -> vector<8x625xf32>
    %13 = arith.maximumf %8, %12 : vector<8x625xf32>
    %c0_17 = arith.constant 0 : index
    %c0_18 = arith.constant 0 : index
    %14 = vector.load %arg2[%c0_17, %c0_18] : memref<8x144xf32, #tpu.memory_space<vmem>>, vector<8x144xf32>
    %c0_19 = arith.constant 0 : index
    %c3 = arith.constant 3 : index
    %c0_20 = arith.constant 0 : index
    %c0_21 = arith.constant 0 : index
    %15 = vector.load %arg1[%c0_19, %c3, %c0_20, %c0_21] : memref<1x4x144x625xf32, #tpu.memory_space<vmem>>, vector<1x1x144x625xf32>
    %16 = vector.shape_cast %15 : vector<1x1x144x625xf32> to vector<144x625xf32>
    %cst_22 = arith.constant dense<0.000000e+00> : vector<8x625xf32>
    %17 = tpu.matmul %14, %16, %cst_22 {dimension_numbers = #tpu.dot_dimension_numbers<[1], [0], [0], [1], [0, 0, 1, 1], [], []>} : vector<8x144xf32>, vector<144x625xf32>, vector<8x625xf32> -> vector<8x625xf32>
    %18 = arith.maximumf %13, %17 : vector<8x625xf32>
    %c0_23 = arith.constant 0 : index
    %c0_24 = arith.constant 0 : index
    %19 = vector.load %arg3[%c0_23, %c0_24] : memref<8x1xf32, #tpu.memory_space<vmem>>, vector<8x1xf32>
    %20 = vector.broadcast %19 : vector<8x1xf32> to vector<8x625xf32>
    %21 = arith.addf %18, %20 : vector<8x625xf32>
    %cst_25 = arith.constant 0.000000e+00 : f32
    %22 = vector.broadcast %cst_25 : f32 to vector<8x625xf32>
    %23 = arith.maximumf %21, %22 : vector<8x625xf32>
    %c0_26 = arith.constant 0 : index
    %c0_27 = arith.constant 0 : index
    %24 = vector.load %arg5[%c0_26, %c0_27] : memref<1x64xf32, #tpu.memory_space<vmem>>, vector<1x64xf32>
    %25 = vector.extract_strided_slice %23 {offsets = [0, 0], sizes = [1, 625], strides = [1, 1]} : vector<8x625xf32> to vector<1x625xf32>
    %c0_28 = arith.constant 0 : index
    %c0_29 = arith.constant 0 : index
    %c0_30 = arith.constant 0 : index
    %26 = vector.load %arg4[%c0_28, %c0_29, %c0_30] : memref<8x625x64xf32, #tpu.memory_space<vmem>>, vector<1x625x64xf32>
    %27 = vector.shape_cast %26 : vector<1x625x64xf32> to vector<625x64xf32>
    %cst_31 = arith.constant dense<0.000000e+00> : vector<1x64xf32>
    %28 = tpu.matmul %25, %27, %cst_31 {dimension_numbers = #tpu.dot_dimension_numbers<[1], [0], [0], [1], [0, 0, 1, 1], [], []>} : vector<1x625xf32>, vector<625x64xf32>, vector<1x64xf32> -> vector<1x64xf32>
    %29 = arith.addf %24, %28 : vector<1x64xf32>
    %30 = vector.extract_strided_slice %23 {offsets = [1, 0], sizes = [1, 625], strides = [1, 1]} : vector<8x625xf32> to vector<1x625xf32>
    %c1_32 = arith.constant 1 : index
    %c0_33 = arith.constant 0 : index
    %c0_34 = arith.constant 0 : index
    %31 = vector.load %arg4[%c1_32, %c0_33, %c0_34] : memref<8x625x64xf32, #tpu.memory_space<vmem>>, vector<1x625x64xf32>
    %32 = vector.shape_cast %31 : vector<1x625x64xf32> to vector<625x64xf32>
    %cst_35 = arith.constant dense<0.000000e+00> : vector<1x64xf32>
    %33 = tpu.matmul %30, %32, %cst_35 {dimension_numbers = #tpu.dot_dimension_numbers<[1], [0], [0], [1], [0, 0, 1, 1], [], []>} : vector<1x625xf32>, vector<625x64xf32>, vector<1x64xf32> -> vector<1x64xf32>
    %34 = arith.addf %29, %33 : vector<1x64xf32>
    %35 = vector.extract_strided_slice %23 {offsets = [2, 0], sizes = [1, 625], strides = [1, 1]} : vector<8x625xf32> to vector<1x625xf32>
    %c2_36 = arith.constant 2 : index
    %c0_37 = arith.constant 0 : index
    %c0_38 = arith.constant 0 : index
    %36 = vector.load %arg4[%c2_36, %c0_37, %c0_38] : memref<8x625x64xf32, #tpu.memory_space<vmem>>, vector<1x625x64xf32>
    %37 = vector.shape_cast %36 : vector<1x625x64xf32> to vector<625x64xf32>
    %cst_39 = arith.constant dense<0.000000e+00> : vector<1x64xf32>
    %38 = tpu.matmul %35, %37, %cst_39 {dimension_numbers = #tpu.dot_dimension_numbers<[1], [0], [0], [1], [0, 0, 1, 1], [], []>} : vector<1x625xf32>, vector<625x64xf32>, vector<1x64xf32> -> vector<1x64xf32>
    %39 = arith.addf %34, %38 : vector<1x64xf32>
    %40 = vector.extract_strided_slice %23 {offsets = [3, 0], sizes = [1, 625], strides = [1, 1]} : vector<8x625xf32> to vector<1x625xf32>
    %c3_40 = arith.constant 3 : index
    %c0_41 = arith.constant 0 : index
    %c0_42 = arith.constant 0 : index
    %41 = vector.load %arg4[%c3_40, %c0_41, %c0_42] : memref<8x625x64xf32, #tpu.memory_space<vmem>>, vector<1x625x64xf32>
    %42 = vector.shape_cast %41 : vector<1x625x64xf32> to vector<625x64xf32>
    %cst_43 = arith.constant dense<0.000000e+00> : vector<1x64xf32>
    %43 = tpu.matmul %40, %42, %cst_43 {dimension_numbers = #tpu.dot_dimension_numbers<[1], [0], [0], [1], [0, 0, 1, 1], [], []>} : vector<1x625xf32>, vector<625x64xf32>, vector<1x64xf32> -> vector<1x64xf32>
    %44 = arith.addf %39, %43 : vector<1x64xf32>
    %45 = vector.extract_strided_slice %23 {offsets = [4, 0], sizes = [1, 625], strides = [1, 1]} : vector<8x625xf32> to vector<1x625xf32>
    %c4 = arith.constant 4 : index
    %c0_44 = arith.constant 0 : index
    %c0_45 = arith.constant 0 : index
    %46 = vector.load %arg4[%c4, %c0_44, %c0_45] : memref<8x625x64xf32, #tpu.memory_space<vmem>>, vector<1x625x64xf32>
    %47 = vector.shape_cast %46 : vector<1x625x64xf32> to vector<625x64xf32>
    %cst_46 = arith.constant dense<0.000000e+00> : vector<1x64xf32>
    %48 = tpu.matmul %45, %47, %cst_46 {dimension_numbers = #tpu.dot_dimension_numbers<[1], [0], [0], [1], [0, 0, 1, 1], [], []>} : vector<1x625xf32>, vector<625x64xf32>, vector<1x64xf32> -> vector<1x64xf32>
    %49 = arith.addf %44, %48 : vector<1x64xf32>
    %50 = vector.extract_strided_slice %23 {offsets = [5, 0], sizes = [1, 625], strides = [1, 1]} : vector<8x625xf32> to vector<1x625xf32>
    %c5 = arith.constant 5 : index
    %c0_47 = arith.constant 0 : index
    %c0_48 = arith.constant 0 : index
    %51 = vector.load %arg4[%c5, %c0_47, %c0_48] : memref<8x625x64xf32, #tpu.memory_space<vmem>>, vector<1x625x64xf32>
    %52 = vector.shape_cast %51 : vector<1x625x64xf32> to vector<625x64xf32>
    %cst_49 = arith.constant dense<0.000000e+00> : vector<1x64xf32>
    %53 = tpu.matmul %50, %52, %cst_49 {dimension_numbers = #tpu.dot_dimension_numbers<[1], [0], [0], [1], [0, 0, 1, 1], [], []>} : vector<1x625xf32>, vector<625x64xf32>, vector<1x64xf32> -> vector<1x64xf32>
    %54 = arith.addf %49, %53 : vector<1x64xf32>
    %55 = vector.extract_strided_slice %23 {offsets = [6, 0], sizes = [1, 625], strides = [1, 1]} : vector<8x625xf32> to vector<1x625xf32>
    %c6 = arith.constant 6 : index
    %c0_50 = arith.constant 0 : index
    %c0_51 = arith.constant 0 : index
    %56 = vector.load %arg4[%c6, %c0_50, %c0_51] : memref<8x625x64xf32, #tpu.memory_space<vmem>>, vector<1x625x64xf32>
    %57 = vector.shape_cast %56 : vector<1x625x64xf32> to vector<625x64xf32>
    %cst_52 = arith.constant dense<0.000000e+00> : vector<1x64xf32>
    %58 = tpu.matmul %55, %57, %cst_52 {dimension_numbers = #tpu.dot_dimension_numbers<[1], [0], [0], [1], [0, 0, 1, 1], [], []>} : vector<1x625xf32>, vector<625x64xf32>, vector<1x64xf32> -> vector<1x64xf32>
    %59 = arith.addf %54, %58 : vector<1x64xf32>
    %60 = vector.extract_strided_slice %23 {offsets = [7, 0], sizes = [1, 625], strides = [1, 1]} : vector<8x625xf32> to vector<1x625xf32>
    %c7 = arith.constant 7 : index
    %c0_53 = arith.constant 0 : index
    %c0_54 = arith.constant 0 : index
    %61 = vector.load %arg4[%c7, %c0_53, %c0_54] : memref<8x625x64xf32, #tpu.memory_space<vmem>>, vector<1x625x64xf32>
    %62 = vector.shape_cast %61 : vector<1x625x64xf32> to vector<625x64xf32>
    %cst_55 = arith.constant dense<0.000000e+00> : vector<1x64xf32>
    %63 = tpu.matmul %60, %62, %cst_55 {dimension_numbers = #tpu.dot_dimension_numbers<[1], [0], [0], [1], [0, 0, 1, 1], [], []>} : vector<1x625xf32>, vector<625x64xf32>, vector<1x64xf32> -> vector<1x64xf32>
    %64 = arith.addf %59, %63 : vector<1x64xf32>
    %cst_56 = arith.constant 0.000000e+00 : f32
    %65 = vector.broadcast %cst_56 : f32 to vector<1x64xf32>
    %66 = arith.maximumf %64, %65 : vector<1x64xf32>
    %c0_57 = arith.constant 0 : index
    %c0_58 = arith.constant 0 : index
    %67 = vector.load %arg6[%c0_57, %c0_58] : memref<64x2xf32, #tpu.memory_space<vmem>>, vector<64x2xf32>
    %cst_59 = arith.constant dense<0.000000e+00> : vector<1x2xf32>
    %68 = tpu.matmul %66, %67, %cst_59 {dimension_numbers = #tpu.dot_dimension_numbers<[1], [0], [0], [1], [0, 0, 1, 1], [], []>} : vector<1x64xf32>, vector<64x2xf32>, vector<1x2xf32> -> vector<1x2xf32>
    %c0_60 = arith.constant 0 : index
    %c0_61 = arith.constant 0 : index
    %69 = vector.load %arg7[%c0_60, %c0_61] : memref<1x2xf32, #tpu.memory_space<vmem>>, vector<1x2xf32>
    %70 = arith.addf %68, %69 : vector<1x2xf32>
    %cst_62 = arith.constant 0.000000e+00 : f32
    %71 = vector.broadcast %cst_62 : f32 to vector<1x2xf32>
    %72 = arith.maximumf %70, %71 : vector<1x2xf32>
    %c0_63 = arith.constant 0 : index
    %c0_64 = arith.constant 0 : index
    %c0_65 = arith.constant 0 : index
    %73 = vector.load %arg8[%c0_63, %c0_64, %c0_65] : memref<1x1x2xf32, #tpu.memory_space<vmem>>, vector<1x1x2xf32>
    %74 = vector.shape_cast %73 : vector<1x1x2xf32> to vector<1x2xf32>
    %75 = vector.shape_cast %72 : vector<1x2xf32> to vector<1x1x2xf32>
    tpu.vector_store %arg8[%c0_63, %c0_64, %c0_65], %75 {strides = array<i32>} : memref<1x1x2xf32, #tpu.memory_space<vmem>>, vector<1x1x2xf32>,
    return
  }
  func.func @transform_0(%arg0: i32) -> (i32, i32, i32, i32) {
    %c0_i32 = arith.constant 0 : i32
    %c0_i32_0 = arith.constant 0 : i32
    %c0_i32_1 = arith.constant 0 : i32
    %c0_i32_2 = arith.constant 0 : i32
    return %arg0, %c0_i32, %c0_i32_0, %c0_i32_1 : i32, i32, i32, i32
  }
  func.func @transform_1(%arg0: i32) -> (i32, i32) {
    %c0_i32 = arith.constant 0 : i32
    %c0_i32_0 = arith.constant 0 : i32
    %c0_i32_1 = arith.constant 0 : i32
    return %c0_i32, %c0_i32_0 : i32, i32
  }
  func.func @transform_2(%arg0: i32) -> (i32, i32) {
    %c0_i32 = arith.constant 0 : i32
    %c0_i32_0 = arith.constant 0 : i32
    %c0_i32_1 = arith.constant 0 : i32
    return %c0_i32, %c0_i32_0 : i32, i32
  }
  func.func @transform_3(%arg0: i32) -> (i32, i32, i32) {
    %c0_i32 = arith.constant 0 : i32
    %c0_i32_0 = arith.constant 0 : i32
    %c0_i32_1 = arith.constant 0 : i32
    %c0_i32_2 = arith.constant 0 : i32
    return %c0_i32, %c0_i32_0, %c0_i32_1 : i32, i32, i32
  }
  func.func @transform_4(%arg0: i32) -> (i32, i32) {
    %c0_i32 = arith.constant 0 : i32
    %c0_i32_0 = arith.constant 0 : i32
    %c0_i32_1 = arith.constant 0 : i32
    return %c0_i32, %c0_i32_0 : i32, i32
  }
  func.func @transform_5(%arg0: i32) -> (i32, i32) {
    %c0_i32 = arith.constant 0 : i32
    %c0_i32_0 = arith.constant 0 : i32
    %c0_i32_1 = arith.constant 0 : i32
    return %c0_i32, %c0_i32_0 : i32, i32
  }
  func.func @transform_6(%arg0: i32) -> (i32, i32) {
    %c0_i32 = arith.constant 0 : i32
    %c0_i32_0 = arith.constant 0 : i32
    %c0_i32_1 = arith.constant 0 : i32
    return %c0_i32, %c0_i32_0 : i32, i32
  }
  func.func @transform_7(%arg0: i32) -> (i32, i32, i32) {
    %c0_i32 = arith.constant 0 : i32
    %c0_i32_0 = arith.constant 0 : i32
    %c0_i32_1 = arith.constant 0 : i32
    return %arg0, %c0_i32, %c0_i32_0 : i32, i32, i32
  }
}

</mosaic_0001>

<bundles_post_ra>
// kernel: cnn_forward.2
= control target key start
LH: loop header
LB: loop body
LE: loop exit
PB: predicated region body
PF: predicated region fallthrough
CT: control target
= control target key end

     0   :  { %s4586_s12 = smov 0   ;;  %s5819_s0 = inlined_call_operand.vmem [shape: f32[2,4,27,2500], index: 0, kind: input, shape index: {}]   ;;  %s5820_s1 = inlined_call_operand.vmem [shape: f32[16,27], index: 1, kind: input, shape index: {}]   ;;  %s5821_s2 = inlined_call_operand.vmem [shape: f32[16,1], index: 2, kind: input, shape index: {}]   ;;  %s5822_s3 = inlined_call_operand.vmem [shape: f32[2,16,2500], index: 3, kind: output, shape index: {}]  }
   0x1 LB: > { %s4132_s13 = sadd.s32 4294967295, %s4562_s12   ;;  %p4136_p0 = scmp.ge.s32.totalorder %s4562_s12, 1  ;;  %s4562_s12 = sphi %s4586_s12, %s13_s12  }
   0x2   : > { %p137_p1 = scmp.lt.s32.totalorder %s4562_s12, 3 }
   0x4   : > { %p138_p2 = pnand %p4136_p0, %p137_p1 }
   0x6   : > { %141 = sbr.rel (%p138_p2) target bundleno = 460 (0x1cc), region = 32 }
   0xb   : > { %p161_p3 = scmp.lt.s32.totalorder %s4132_s13, 1  ;;  %v4564_v0 = vmov 0.0   ;;  %vm260_vm0 = vcmask 1042432   ;;  %v4627_v17 = vld [vmem:[%s5820_s1] sm:$0xff]  ;;  %vm253_vm1 = vcmask 220160   ;;  %v4648_v26 = vld [vmem:[%s5820_s1 + $0x8] sm:$0xff] }
   0xc   : > { %385 = vmatprep.mubr.f32.mxu0 %v4564_v0  ;;  %462 = vmatprep.mubr.f32.mxu1 %v4564_v0  ;;  %vm4055_vm2 = vcmask 556032  }
   0xd   : > { %s6050_s13 = smov (!%p161_p3, %s4132_s13), 1 }
   0xe   : > { %s4541_s14 = smul.u32 2560, %s6050_s13 }
   0xf   : > { %s4542_s30 = smul.u32 320, %s6050_s13 }
  0x10   : > { %s4602_s17 = scalar_lea.vmem %s5819_s0, %s4541_s14 }
  0x11   : > { %v234_v1 = vld [vmem:[%s4602_s17 + $0x1e8] sm:$0x7]  ;;  %v236_v2 = vld [vmem:[%s4602_s17 + $0x1f8] sm:$0x7]  ;;  %v233_v3 = vld [vmem:[%s4602_s17 + $0x1e0] sm:$0x7]  ;;  %s5598_s6 = scalar_lea.vmem %s5822_s3, %s4542_s30 }
  0x12   : > { %4139 = vmatprep.subr.msk.mxu0 %vm260_vm0, %v234_v1  ;;  %4143 = vmatprep.subr.msk.mxu1 %vm260_vm0, %v236_v2  ;;  %v235_v4 = vld [vmem:[%s4602_s17 + $0x1f0] sm:$0x7]  ;;  %v214_v5 = vld [vmem:[%s4602_s17 + $0x148] sm:$0xff]  ;;  %v216_v6 = vld [vmem:[%s4602_s17 + $0x158] sm:$0xff] }
  0x13   : > { %4140 = vmatpush1.msk.msra.mxu0 %vm260_vm0, %v233_v3  ;;  %4144 = vmatpush1.msk.msra.mxu1 %vm260_vm0, %v235_v4  ;;  %v213_v7 = vld [vmem:[%s4602_s17 + $0x140] sm:$0xff]  ;;  %v215_v8 = vld [vmem:[%s4602_s17 + $0x150] sm:$0xff]  ;;  %v194_v9 = vld [vmem:[%s4602_s17 + $0xa8] sm:$0xff] }
  0x14   : > { %347 = vmatprep.subr.mxu0 %v214_v5  ;;  %424 = vmatprep.subr.mxu1 %v216_v6  ;;  %v196_v10 = vld [vmem:[%s4602_s17 + $0xb8] sm:$0xff]  ;;  %v193_v11 = vld [vmem:[%s4602_s17 + $0xa0] sm:$0xff]  ;;  %v195_v12 = vld [vmem:[%s4602_s17 + $0xb0] sm:$0xff] }
  0x15   : > { %348 = vmatpush1.msra.mxu0 %v213_v7  ;;  %425 = vmatpush1.msra.mxu1 %v215_v8  ;;  %v174_v13 = vld [vmem:[%s4602_s17 + $0x8] sm:$0xff]  ;;  %v176_v14 = vld [vmem:[%s4602_s17 + $0x18] sm:$0xff]  ;;  %v173_v15 = vld [vmem:[%s4602_s17] sm:$0xff] }
  0x16   : > { %349 = vmatprep.subr.mxu0 %v194_v9  ;;  %426 = vmatprep.subr.mxu1 %v196_v10  ;;  %v175_v16 = vld [vmem:[%s4602_s17 + $0x10] sm:$0xff]  ;;  %v238_v18 = vld [vmem:[%s4602_s17 + $0x208] sm:$0x7]  ;;  %v240_v19 = vld [vmem:[%s4602_s17 + $0x218] sm:$0x7] }
  0x17   : > { %350 = vmatpush1.msra.mxu0 %v193_v11  ;;  %427 = vmatpush1.msra.mxu1 %v195_v12  ;;  %v237_v20 = vld [vmem:[%s4602_s17 + $0x200] sm:$0x7]  ;;  %v239_v21 = vld [vmem:[%s4602_s17 + $0x210] sm:$0x7]  ;;  %v218_v22 = vld [vmem:[%s4602_s17 + $0x168] sm:$0xff] }
  0x18   : > { %351 = vmatprep.subr.mxu0 %v174_v13  ;;  %428 = vmatprep.subr.mxu1 %v176_v14  ;;  %v220_v23 = vld [vmem:[%s4602_s17 + $0x178] sm:$0xff]  ;;  %v217_v24 = vld [vmem:[%s4602_s17 + $0x160] sm:$0xff]  ;;  %v219_v25 = vld [vmem:[%s4602_s17 + $0x170] sm:$0xff] }
  0x19   : > { %352 = vmatpush1.msra.mxu0 %v173_v15  ;;  %429 = vmatpush1.msra.mxu1 %v175_v16  ;;  %v198_v27 = vld [vmem:[%s4602_s17 + $0xc8] sm:$0xff]  ;;  %v200_v28 = vld [vmem:[%s4602_s17 + $0xd8] sm:$0xff]  ;;  %v197_v29 = vld [vmem:[%s4602_s17 + $0xc0] sm:$0xff] }
  0x1a   : > { %4141 = vmatmul.mubr.msk.f32.vlgmr.msra.gmra.mxu0 %vm253_vm1, %v4627_v17  ;;  %4145 = vmatmul.mubr.msk.f32.vlgmr.msra.gmra.mxu1 %vm253_vm1, %v4627_v17  ;;  %v199_v30 = vld [vmem:[%s4602_s17 + $0xd0] sm:$0xff]  ;;  %v178_v31 = vld [vmem:[%s4602_s17 + $0x28] sm:$0xff]  ;;  %v180_v32 = vld [vmem:[%s4602_s17 + $0x38] sm:$0xff] }
  0x1b   : > { %4147 = vmatprep.subr.msk.mxu0 %vm260_vm0, %v238_v18  ;;  %4151 = vmatprep.subr.msk.mxu1 %vm260_vm0, %v240_v19  ;;  %v177_v33 = vld [vmem:[%s4602_s17 + $0x20] sm:$0xff]  ;;  %v179_v34 = vld [vmem:[%s4602_s17 + $0x30] sm:$0xff]  ;;  %v242_v35 = vld [vmem:[%s4602_s17 + $0x228] sm:$0x7] }
  0x1c   : > { %4148 = vmatpush1.msk.msra.mxu0 %vm260_vm0, %v237_v20  ;;  %4152 = vmatpush1.msk.msra.mxu1 %vm260_vm0, %v239_v21  ;;  %v244_v36 = vld [vmem:[%s4602_s17 + $0x238] sm:$0x7]  ;;  %v241_v37 = vld [vmem:[%s4602_s17 + $0x220] sm:$0x7]  ;;  %v243_v38 = vld [vmem:[%s4602_s17 + $0x230] sm:$0x7] }
  0x1d   : > { %501 = vmatprep.subr.mxu0 %v218_v22  ;;  %578 = vmatprep.subr.mxu1 %v220_v23  ;;  %v222_v39 = vld [vmem:[%s4602_s17 + $0x188] sm:$0xff]  ;;  %v224_v40 = vld [vmem:[%s4602_s17 + $0x198] sm:$0xff]  ;;  %v221_v41 = vld [vmem:[%s4602_s17 + $0x180] sm:$0xff] }
  0x1e   : > { %391 = vmatprep.mubr.f32.mxu0 %v4564_v0  ;;  %468 = vmatprep.mubr.f32.mxu1 %v4564_v0  ;;  %v223_v42 = vld [vmem:[%s4602_s17 + $0x190] sm:$0xff]  ;;  %v202_v43 = vld [vmem:[%s4602_s17 + $0xe8] sm:$0xff]  ;;  %v204_v44 = vld [vmem:[%s4602_s17 + $0xf8] sm:$0xff] }
  0x1f   : > { %502 = vmatpush1.msra.mxu0 %v217_v24  ;;  %579 = vmatpush1.msra.mxu1 %v219_v25  ;;  %v201_v45 = vld [vmem:[%s4602_s17 + $0xe0] sm:$0xff]  ;;  %v203_v46 = vld [vmem:[%s4602_s17 + $0xf0] sm:$0xff]  ;;  %v182_v47 = vld [vmem:[%s4602_s17 + $0x48] sm:$0xff] }
  0x20   : > { %4142 = vmatmul.mubr.msk.f32.gmra.mxu0 %vm253_vm1, %v4648_v26  ;;  %4146 = vmatmul.mubr.msk.f32.gmra.mxu1 %vm253_vm1, %v4648_v26  ;;  %v184_v48 = vld [vmem:[%s4602_s17 + $0x58] sm:$0xff]  ;;  %v181_v49 = vld [vmem:[%s4602_s17 + $0x40] sm:$0xff]  ;;  %v183_v50 = vld [vmem:[%s4602_s17 + $0x50] sm:$0xff] }
  0x21   : > { %503 = vmatprep.subr.mxu0 %v198_v27  ;;  %580 = vmatprep.subr.mxu1 %v200_v28  ;;  %v246_v51 = vld [vmem:[%s4602_s17 + $0x248] sm:$0x7]  ;;  %v248_v52 = vld [vmem:[%s4602_s17 + $0x258] sm:$0x7]  ;;  %v245_v53 = vld [vmem:[%s4602_s17 + $0x240] sm:$0x7] }
  0x22   : > { %504 = vmatpush1.msra.mxu0 %v197_v29  ;;  %581 = vmatpush1.msra.mxu1 %v199_v30  ;;  %v247_v54 = vld [vmem:[%s4602_s17 + $0x250] sm:$0x7]  ;;  %v226_v55 = vld [vmem:[%s4602_s17 + $0x1a8] sm:$0xff]  ;;  %v228_v56 = vld [vmem:[%s4602_s17 + $0x1b8] sm:$0xff] }
  0x23   : > { %505 = vmatprep.subr.mxu0 %v178_v31  ;;  %582 = vmatprep.subr.mxu1 %v180_v32  ;;  %v225_v57 = vld [vmem:[%s4602_s17 + $0x1a0] sm:$0xff]  ;;  %v227_v58 = vld [vmem:[%s4602_s17 + $0x1b0] sm:$0xff]  ;;  %v206_v59 = vld [vmem:[%s4602_s17 + $0x108] sm:$0xff] }
  0x24   : > { %506 = vmatpush1.msra.mxu0 %v177_v33  ;;  %539 = vmatprep.mubr.f32.mxu0 %v4564_v0  ;;  %v208_v60 = vld [vmem:[%s4602_s17 + $0x118] sm:$0xff]  ;;  %v205_v61 = vld [vmem:[%s4602_s17 + $0x100] sm:$0xff]  ;;  %v207_v62 = vld [vmem:[%s4602_s17 + $0x110] sm:$0xff] }
  0x25   : > { %583 = vmatpush1.msra.mxu1 %v179_v34  ;;  %616 = vmatprep.mubr.f32.mxu1 %v4564_v0  ;;  %v186_v63 = vld [vmem:[%s4602_s17 + $0x68] sm:$0xff]  ;;  %v188_v1 = vld [vmem:[%s4602_s17 + $0x78] sm:$0xff]  ;;  %v185_v2 = vld [vmem:[%s4602_s17 + $0x60] sm:$0xff] }
  0x26   : > { %4149 = vmatmul.mubr.msk.f32.vlgmr.msra.gmra.mxu0 %vm253_vm1, %v4627_v17  ;;  %4153 = vmatmul.mubr.msk.f32.vlgmr.msra.gmra.mxu1 %vm253_vm1, %v4627_v17  ;;  %v187_v3 = vld [vmem:[%s4602_s17 + $0x70] sm:$0xff]  ;;  %v250_v4 = vld [vmem:[%s4602_s17 + $0x268] sm:$0x7]  ;;  %v252_v5 = vld [vmem:[%s4602_s17 + $0x278] sm:$0x7] }
  0x27   : > { %4155 = vmatprep.subr.msk.mxu0 %vm260_vm0, %v242_v35  ;;  %4159 = vmatprep.subr.msk.mxu1 %vm260_vm0, %v244_v36  ;;  %v249_v6 = vld [vmem:[%s4602_s17 + $0x260] sm:$0x7]  ;;  %v251_v7 = vld [vmem:[%s4602_s17 + $0x270] sm:$0x7]  ;;  %v230_v8 = vld [vmem:[%s4602_s17 + $0x1c8] sm:$0xff] }
  0x28   : > { %4156 = vmatpush1.msk.msra.mxu0 %vm260_vm0, %v241_v37  ;;  %4160 = vmatpush1.msk.msra.mxu1 %vm260_vm0, %v243_v38  ;;  %v232_v9 = vld [vmem:[%s4602_s17 + $0x1d8] sm:$0xff]  ;;  %v229_v10 = vld [vmem:[%s4602_s17 + $0x1c0] sm:$0xff]  ;;  %v231_v11 = vld [vmem:[%s4602_s17 + $0x1d0] sm:$0xff] }
  0x29   : > { %655 = vmatprep.subr.mxu0 %v222_v39  ;;  %732 = vmatprep.subr.mxu1 %v224_v40  ;;  %v210_v12 = vld [vmem:[%s4602_s17 + $0x128] sm:$0xff]  ;;  %v212_v13 = vld [vmem:[%s4602_s17 + $0x138] sm:$0xff]  ;;  %v209_v14 = vld [vmem:[%s4602_s17 + $0x120] sm:$0xff] }
  0x2a   : > { %545 = vmatprep.mubr.f32.mxu0 %v4564_v0  ;;  %622 = vmatprep.mubr.f32.mxu1 %v4564_v0  ;;  %v211_v15 = vld [vmem:[%s4602_s17 + $0x130] sm:$0xff]  ;;  %v190_v16 = vld [vmem:[%s4602_s17 + $0x88] sm:$0xff]  ;;  %v192_v18 = vld [vmem:[%s4602_s17 + $0x98] sm:$0xff] }
  0x2b   : > { %656 = vmatpush1.msra.mxu0 %v221_v41  ;;  %733 = vmatpush1.msra.mxu1 %v223_v42  ;;  %v189_v19 = vld [vmem:[%s4602_s17 + $0x80] sm:$0xff]  ;;  %v191_v20 = vld [vmem:[%s4602_s17 + $0x90] sm:$0xff]  ;;  %v4240_v21 = vld [vmem:[%s4602_s17 + $0x468] sm:$0x7] }
  0x2c   : > { %4150 = vmatmul.mubr.msk.f32.gmra.mxu0 %vm253_vm1, %v4648_v26  ;;  %4154 = vmatmul.mubr.msk.f32.gmra.mxu1 %vm253_vm1, %v4648_v26  ;;  %v4242_v22 = vld [vmem:[%s4602_s17 + $0x478] sm:$0x7]  ;;  %v4239_v23 = vld [vmem:[%s4602_s17 + $0x460] sm:$0x7]  ;;  %v4241_v24 = vld [vmem:[%s4602_s17 + $0x470] sm:$0x7] }
  0x2d   : > { %657 = vmatprep.subr.mxu0 %v202_v43  ;;  %734 = vmatprep.subr.mxu1 %v204_v44  ;;  %v4220_v25 = vld [vmem:[%s4602_s17 + $0x3c8] sm:$0xff]  ;;  %v4222_v27 = vld [vmem:[%s4602_s17 + $0x3d8] sm:$0xff]  ;;  %v4219_v28 = vld [vmem:[%s4602_s17 + $0x3c0] sm:$0xff] }
  0x2e   : > { %658 = vmatpush1.msra.mxu0 %v201_v45  ;;  %735 = vmatpush1.msra.mxu1 %v203_v46  ;;  %v4221_v29 = vld [vmem:[%s4602_s17 + $0x3d0] sm:$0xff]  ;;  %v4200_v30 = vld [vmem:[%s4602_s17 + $0x328] sm:$0xff]  ;;  %v4202_v31 = vld [vmem:[%s4602_s17 + $0x338] sm:$0xff] }
  0x2f   : > { %659 = vmatprep.subr.mxu0 %v182_v47  ;;  %736 = vmatprep.subr.mxu1 %v184_v48  ;;  %v4199_v32 = vld [vmem:[%s4602_s17 + $0x320] sm:$0xff]  ;;  %v4201_v33 = vld [vmem:[%s4602_s17 + $0x330] sm:$0xff]  ;;  %v4180_v34 = vld [vmem:[%s4602_s17 + $0x288] sm:$0xff] }
  0x30   : > { %660 = vmatpush1.msra.mxu0 %v181_v49  ;;  %693 = vmatprep.mubr.f32.mxu0 %v4564_v0  ;;  %v4182_v35 = vld [vmem:[%s4602_s17 + $0x298] sm:$0xff]  ;;  %v4179_v36 = vld [vmem:[%s4602_s17 + $0x280] sm:$0xff]  ;;  %v4181_v37 = vld [vmem:[%s4602_s17 + $0x290] sm:$0xff] }
  0x31   : > { %737 = vmatpush1.msra.mxu1 %v183_v50  ;;  %770 = vmatprep.mubr.f32.mxu1 %v4564_v0  ;;  %v4244_v38 = vld [vmem:[%s4602_s17 + $0x488] sm:$0x7]  ;;  %v4246_v39 = vld [vmem:[%s4602_s17 + $0x498] sm:$0x7]  ;;  %v4243_v40 = vld [vmem:[%s4602_s17 + $0x480] sm:$0x7] }
  0x32   : > { %4157 = vmatmul.mubr.msk.f32.vlgmr.msra.gmra.mxu0 %vm253_vm1, %v4627_v17  ;;  %4161 = vmatmul.mubr.msk.f32.vlgmr.msra.gmra.mxu1 %vm253_vm1, %v4627_v17  ;;  %v4245_v41 = vld [vmem:[%s4602_s17 + $0x490] sm:$0x7]  ;;  %v4224_v42 = vld [vmem:[%s4602_s17 + $0x3e8] sm:$0xff]  ;;  %v4226_v43 = vld [vmem:[%s4602_s17 + $0x3f8] sm:$0xff] }
  0x33   : > { %4163 = vmatprep.subr.msk.mxu0 %vm260_vm0, %v246_v51  ;;  %4167 = vmatprep.subr.msk.mxu1 %vm260_vm0, %v248_v52  ;;  %v4223_v44 = vld [vmem:[%s4602_s17 + $0x3e0] sm:$0xff]  ;;  %v4225_v45 = vld [vmem:[%s4602_s17 + $0x3f0] sm:$0xff]  ;;  %v4204_v46 = vld [vmem:[%s4602_s17 + $0x348] sm:$0xff] }
  0x34   : > { %4164 = vmatpush1.msk.msra.mxu0 %vm260_vm0, %v245_v53  ;;  %4168 = vmatpush1.msk.msra.mxu1 %vm260_vm0, %v247_v54  ;;  %v4206_v47 = vld [vmem:[%s4602_s17 + $0x358] sm:$0xff]  ;;  %v4203_v48 = vld [vmem:[%s4602_s17 + $0x340] sm:$0xff]  ;;  %v4205_v49 = vld [vmem:[%s4602_s17 + $0x350] sm:$0xff] }
  0x35   : > { %809 = vmatprep.subr.mxu0 %v226_v55  ;;  %886 = vmatprep.subr.mxu1 %v228_v56  ;;  %v4184_v50 = vld [vmem:[%s4602_s17 + $0x2a8] sm:$0xff]  ;;  %v4186_v51 = vld [vmem:[%s4602_s17 + $0x2b8] sm:$0xff]  ;;  %v4183_v52 = vld [vmem:[%s4602_s17 + $0x2a0] sm:$0xff] }
  0x36   : > { %699 = vmatprep.mubr.f32.mxu0 %v4564_v0  ;;  %776 = vmatprep.mubr.f32.mxu1 %v4564_v0  ;;  %v4185_v53 = vld [vmem:[%s4602_s17 + $0x2b0] sm:$0xff]  ;;  %v4248_v54 = vld [vmem:[%s4602_s17 + $0x4a8] sm:$0x7]  ;;  %v4250_v55 = vld [vmem:[%s4602_s17 + $0x4b8] sm:$0x7] }
  0x37   : > { %810 = vmatpush1.msra.mxu0 %v225_v57  ;;  %887 = vmatpush1.msra.mxu1 %v227_v58  ;;  %v4247_v56 = vld [vmem:[%s4602_s17 + $0x4a0] sm:$0x7]  ;;  %v4249_v57 = vld [vmem:[%s4602_s17 + $0x4b0] sm:$0x7]  ;;  %v4228_v58 = vld [vmem:[%s4602_s17 + $0x408] sm:$0xff] }
  0x38   : > { %4158 = vmatmul.mubr.msk.f32.gmra.mxu0 %vm253_vm1, %v4648_v26  ;;  %4162 = vmatmul.mubr.msk.f32.gmra.mxu1 %vm253_vm1, %v4648_v26 }
  0x39   : > { %811 = vmatprep.subr.mxu0 %v206_v59  ;;  %888 = vmatprep.subr.mxu1 %v208_v60  ;;  %v4230_v59 = vld [vmem:[%s4602_s17 + $0x418] sm:$0xff]  ;;  %v4227_v60 = vld [vmem:[%s4602_s17 + $0x400] sm:$0xff] }
  0x3a   : > { %812 = vmatpush1.msra.mxu0 %v205_v61  ;;  %889 = vmatpush1.msra.mxu1 %v207_v62  ;;  %v4229_v61 = vld [vmem:[%s4602_s17 + $0x410] sm:$0xff]  ;;  %v4208_v62 = vld [vmem:[%s4602_s17 + $0x368] sm:$0xff] }
  0x3b   : > { %813 = vmatprep.subr.mxu0 %v186_v63  ;;  %890 = vmatprep.subr.mxu1 %v188_v1  ;;  %v4210_v63 = vld [vmem:[%s4602_s17 + $0x378] sm:$0xff]  ;;  %v4207_v1 = vld [vmem:[%s4602_s17 + $0x360] sm:$0xff] }
  0x3c   : > { %814 = vmatpush1.msra.mxu0 %v185_v2  ;;  %847 = vmatprep.mubr.f32.mxu0 %v4564_v0  ;;  %v4209_v2 = vld [vmem:[%s4602_s17 + $0x370] sm:$0xff] }
  0x3d   : > { %891 = vmatpush1.msra.mxu1 %v187_v3  ;;  %924 = vmatprep.mubr.f32.mxu1 %v4564_v0  ;;  %v4188_v3 = vld [vmem:[%s4602_s17 + $0x2c8] sm:$0xff] }
  0x3e   : > { %4165 = vmatmul.mubr.msk.f32.vlgmr.msra.gmra.mxu0 %vm253_vm1, %v4627_v17  ;;  %4169 = vmatmul.mubr.msk.f32.vlgmr.msra.gmra.mxu1 %vm253_vm1, %v4627_v17 }
  0x3f   : > { %4171 = vmatprep.subr.msk.mxu0 %vm260_vm0, %v250_v4  ;;  %4175 = vmatprep.subr.msk.mxu1 %vm260_vm0, %v252_v5  ;;  %v4190_v4 = vld [vmem:[%s4602_s17 + $0x2d8] sm:$0xff]  ;;  %v4187_v5 = vld [vmem:[%s4602_s17 + $0x2c0] sm:$0xff] }
  0x40   : > { %4172 = vmatpush1.msk.msra.mxu0 %vm260_vm0, %v249_v6  ;;  %4176 = vmatpush1.msk.msra.mxu1 %vm260_vm0, %v251_v7  ;;  %v4189_v6 = vld [vmem:[%s4602_s17 + $0x2d0] sm:$0xff]  ;;  %v4252_v7 = vld [vmem:[%s4602_s17 + $0x4c8] sm:$0x7] }
  0x41   : > { %963 = vmatprep.subr.mxu0 %v230_v8  ;;  %1040 = vmatprep.subr.mxu1 %v232_v9  ;;  %v4254_v8 = vld [vmem:[%s4602_s17 + $0x4d8] sm:$0x7]  ;;  %v4251_v9 = vld [vmem:[%s4602_s17 + $0x4c0] sm:$0x7] }
  0x42   : > { %853 = vmatprep.mubr.f32.mxu0 %v4564_v0  ;;  %930 = vmatprep.mubr.f32.mxu1 %v4564_v0 }
  0x43   : > { %964 = vmatpush1.msra.mxu0 %v229_v10  ;;  %1041 = vmatpush1.msra.mxu1 %v231_v11  ;;  %v4253_v10 = vld [vmem:[%s4602_s17 + $0x4d0] sm:$0x7]  ;;  %v4232_v11 = vld [vmem:[%s4602_s17 + $0x428] sm:$0xff] }
  0x44   : > { %4166 = vmatmul.mubr.msk.f32.gmra.mxu0 %vm253_vm1, %v4648_v26  ;;  %4170 = vmatmul.mubr.msk.f32.gmra.mxu1 %vm253_vm1, %v4648_v26 }
  0x45   : > { %965 = vmatprep.subr.mxu0 %v210_v12  ;;  %1042 = vmatprep.subr.mxu1 %v212_v13  ;;  %v4234_v12 = vld [vmem:[%s4602_s17 + $0x438] sm:$0xff]  ;;  %v4231_v13 = vld [vmem:[%s4602_s17 + $0x420] sm:$0xff] }
  0x46   : > { %966 = vmatpush1.msra.mxu0 %v209_v14  ;;  %1043 = vmatpush1.msra.mxu1 %v211_v15  ;;  %v4233_v14 = vld [vmem:[%s4602_s17 + $0x430] sm:$0xff]  ;;  %v4212_v15 = vld [vmem:[%s4602_s17 + $0x388] sm:$0xff] }
  0x47   : > { %967 = vmatprep.subr.mxu0 %v190_v16  ;;  %1044 = vmatprep.subr.mxu1 %v192_v18  ;;  %v4214_v16 = vld [vmem:[%s4602_s17 + $0x398] sm:$0xff]  ;;  %v4211_v18 = vld [vmem:[%s4602_s17 + $0x380] sm:$0xff] }
  0x48   : > { %968 = vmatpush1.msra.mxu0 %v189_v19  ;;  %1001 = vmatprep.mubr.f32.mxu0 %v4564_v0  ;;  %v4213_v19 = vld [vmem:[%s4602_s17 + $0x390] sm:$0xff] }
  0x49   : > { %1045 = vmatpush1.msra.mxu1 %v191_v20  ;;  %1078 = vmatprep.mubr.f32.mxu1 %v4564_v0  ;;  %v4192_v20 = vld [vmem:[%s4602_s17 + $0x2e8] sm:$0xff] }
  0x4a   : > { %4173 = vmatmul.mubr.msk.f32.vlgmr.msra.gmra.mxu0 %vm253_vm1, %v4627_v17  ;;  %4177 = vmatmul.mubr.msk.f32.vlgmr.msra.gmra.mxu1 %vm253_vm1, %v4627_v17 }
  0x4b   : > { %4259 = vmatprep.subr.msk.mxu0 %vm260_vm0, %v4240_v21  ;;  %4263 = vmatprep.subr.msk.mxu1 %vm260_vm0, %v4242_v22  ;;  %v4194_v21 = vld [vmem:[%s4602_s17 + $0x2f8] sm:$0xff]  ;;  %v4191_v22 = vld [vmem:[%s4602_s17 + $0x2e0] sm:$0xff] }
  0x4c   : > { %4260 = vmatpush1.msk.msra.mxu0 %vm260_vm0, %v4239_v23  ;;  %4264 = vmatpush1.msk.msra.mxu1 %vm260_vm0, %v4241_v24  ;;  %v4193_v23 = vld [vmem:[%s4602_s17 + $0x2f0] sm:$0xff]  ;;  %v4256_v24 = vld [vmem:[%s4602_s17 + $0x4e8] sm:$0x7] }
  0x4d   : > { %1258 = vmatprep.subr.mxu0 %v4220_v25  ;;  %1335 = vmatprep.subr.mxu1 %v4222_v27  ;;  %v4258_v25 = vld [vmem:[%s4602_s17 + $0x4f8] sm:$0x7]  ;;  %v4255_v27 = vld [vmem:[%s4602_s17 + $0x4e0] sm:$0x7] }
  0x4e   : > { %1007 = vmatprep.mubr.f32.mxu0 %v4564_v0  ;;  %1084 = vmatprep.mubr.f32.mxu1 %v4564_v0 }
  0x4f   : > { %1259 = vmatpush1.msra.mxu0 %v4219_v28  ;;  %1336 = vmatpush1.msra.mxu1 %v4221_v29  ;;  %v4257_v28 = vld [vmem:[%s4602_s17 + $0x4f0] sm:$0x7]  ;;  %v4236_v29 = vld [vmem:[%s4602_s17 + $0x448] sm:$0xff] }
  0x50   : > { %4174 = vmatmul.mubr.msk.f32.gmra.mxu0 %vm253_vm1, %v4648_v26  ;;  %4178 = vmatmul.mubr.msk.f32.gmra.mxu1 %vm253_vm1, %v4648_v26 }
  0x51   : > { %1260 = vmatprep.subr.mxu0 %v4200_v30  ;;  %1337 = vmatprep.subr.mxu1 %v4202_v31  ;;  %v4238_v30 = vld [vmem:[%s4602_s17 + $0x458] sm:$0xff]  ;;  %v4235_v31 = vld [vmem:[%s4602_s17 + $0x440] sm:$0xff] }
  0x52   : > { %1261 = vmatpush1.msra.mxu0 %v4199_v32  ;;  %1338 = vmatpush1.msra.mxu1 %v4201_v33  ;;  %v4237_v32 = vld [vmem:[%s4602_s17 + $0x450] sm:$0xff]  ;;  %v4216_v33 = vld [vmem:[%s4602_s17 + $0x3a8] sm:$0xff] }
  0x53   : > { %1262 = vmatprep.subr.mxu0 %v4180_v34  ;;  %1339 = vmatprep.subr.mxu1 %v4182_v35  ;;  %v4218_v34 = vld [vmem:[%s4602_s17 + $0x3b8] sm:$0xff]  ;;  %v4215_v35 = vld [vmem:[%s4602_s17 + $0x3a0] sm:$0xff] }
  0x54   : > { %1263 = vmatpush1.msra.mxu0 %v4179_v36  ;;  %1296 = vmatprep.mubr.f32.mxu0 %v4564_v0  ;;  %v4217_v36 = vld [vmem:[%s4602_s17 + $0x3b0] sm:$0xff] }
  0x55   : > { %1340 = vmatpush1.msra.mxu1 %v4181_v37  ;;  %1373 = vmatprep.mubr.f32.mxu1 %v4564_v0  ;;  %v4196_v37 = vld [vmem:[%s4602_s17 + $0x308] sm:$0xff] }
  0x56   : > { %4261 = vmatmul.mubr.msk.f32.vlgmr.msra.gmra.mxu0 %vm253_vm1, %v4627_v17  ;;  %4265 = vmatmul.mubr.msk.f32.vlgmr.msra.gmra.mxu1 %vm253_vm1, %v4627_v17 }
  0x57   : > { %4267 = vmatprep.subr.msk.mxu0 %vm260_vm0, %v4244_v38  ;;  %4271 = vmatprep.subr.msk.mxu1 %vm260_vm0, %v4246_v39  ;;  %v4198_v38 = vld [vmem:[%s4602_s17 + $0x318] sm:$0xff]  ;;  %v4195_v39 = vld [vmem:[%s4602_s17 + $0x300] sm:$0xff] }
  0x58   : > { %4268 = vmatpush1.msk.msra.mxu0 %vm260_vm0, %v4243_v40  ;;  %4272 = vmatpush1.msk.msra.mxu1 %vm260_vm0, %v4245_v41  ;;  %v4197_v40 = vld [vmem:[%s4602_s17 + $0x310] sm:$0xff]  ;;  %v4360_v41 = vld [vmem:[%s4602_s17 + $0x6e8] sm:$0x7] }
  0x59   : > { %1412 = vmatprep.subr.mxu0 %v4224_v42  ;;  %1489 = vmatprep.subr.mxu1 %v4226_v43  ;;  %v4362_v42 = vld [vmem:[%s4602_s17 + $0x6f8] sm:$0x7]  ;;  %v4359_v43 = vld [vmem:[%s4602_s17 + $0x6e0] sm:$0x7] }
  0x5a   : > { %1302 = vmatprep.mubr.f32.mxu0 %v4564_v0  ;;  %1379 = vmatprep.mubr.f32.mxu1 %v4564_v0 }
  0x5b   : > { %1413 = vmatpush1.msra.mxu0 %v4223_v44  ;;  %1490 = vmatpush1.msra.mxu1 %v4225_v45  ;;  %v4361_v44 = vld [vmem:[%s4602_s17 + $0x6f0] sm:$0x7]  ;;  %v4340_v45 = vld [vmem:[%s4602_s17 + $0x648] sm:$0xff] }
  0x5c   : > { %4262 = vmatmul.mubr.msk.f32.gmra.mxu0 %vm253_vm1, %v4648_v26  ;;  %4266 = vmatmul.mubr.msk.f32.gmra.mxu1 %vm253_vm1, %v4648_v26 }
  0x5d   : > { %1414 = vmatprep.subr.mxu0 %v4204_v46  ;;  %1491 = vmatprep.subr.mxu1 %v4206_v47  ;;  %v4342_v46 = vld [vmem:[%s4602_s17 + $0x658] sm:$0xff]  ;;  %v4339_v47 = vld [vmem:[%s4602_s17 + $0x640] sm:$0xff] }
  0x5e   : > { %1415 = vmatpush1.msra.mxu0 %v4203_v48  ;;  %1492 = vmatpush1.msra.mxu1 %v4205_v49  ;;  %v4341_v48 = vld [vmem:[%s4602_s17 + $0x650] sm:$0xff]  ;;  %v4320_v49 = vld [vmem:[%s4602_s17 + $0x5a8] sm:$0xff] }
  0x5f   : > { %1416 = vmatprep.subr.mxu0 %v4184_v50  ;;  %1493 = vmatprep.subr.mxu1 %v4186_v51  ;;  %v4322_v50 = vld [vmem:[%s4602_s17 + $0x5b8] sm:$0xff]  ;;  %v4319_v51 = vld [vmem:[%s4602_s17 + $0x5a0] sm:$0xff] }
  0x60   : > { %1417 = vmatpush1.msra.mxu0 %v4183_v52  ;;  %1450 = vmatprep.mubr.f32.mxu0 %v4564_v0  ;;  %v4321_v52 = vld [vmem:[%s4602_s17 + $0x5b0] sm:$0xff] }
  0x61   : > { %1494 = vmatpush1.msra.mxu1 %v4185_v53  ;;  %1527 = vmatprep.mubr.f32.mxu1 %v4564_v0  ;;  %v4300_v53 = vld [vmem:[%s4602_s17 + $0x508] sm:$0xff] }
  0x62   : > { %4269 = vmatmul.mubr.msk.f32.vlgmr.msra.gmra.mxu0 %vm253_vm1, %v4627_v17  ;;  %4273 = vmatmul.mubr.msk.f32.vlgmr.msra.gmra.mxu1 %vm253_vm1, %v4627_v17 }
  0x63   : > { %4275 = vmatprep.subr.msk.mxu0 %vm260_vm0, %v4248_v54  ;;  %4279 = vmatprep.subr.msk.mxu1 %vm260_vm0, %v4250_v55  ;;  %v4302_v54 = vld [vmem:[%s4602_s17 + $0x518] sm:$0xff]  ;;  %v4299_v55 = vld [vmem:[%s4602_s17 + $0x500] sm:$0xff] }
  0x64   : > { %4276 = vmatpush1.msk.msra.mxu0 %vm260_vm0, %v4247_v56  ;;  %4280 = vmatpush1.msk.msra.mxu1 %vm260_vm0, %v4249_v57  ;;  %v4301_v56 = vld [vmem:[%s4602_s17 + $0x510] sm:$0xff]  ;;  %v4364_v57 = vld [vmem:[%s4602_s17 + $0x708] sm:$0x7] }
  0x65   : > { %1566 = vmatprep.subr.mxu0 %v4228_v58  ;;  %1643 = vmatprep.subr.mxu1 %v4230_v59  ;;  %v4366_v58 = vld [vmem:[%s4602_s17 + $0x718] sm:$0x7]  ;;  %v4363_v59 = vld [vmem:[%s4602_s17 + $0x700] sm:$0x7] }
  0x66   : > { %1456 = vmatprep.mubr.f32.mxu0 %v4564_v0  ;;  %1533 = vmatprep.mubr.f32.mxu1 %v4564_v0 }
  0x67   : > { %1567 = vmatpush1.msra.mxu0 %v4227_v60  ;;  %1644 = vmatpush1.msra.mxu1 %v4229_v61  ;;  %v4365_v60 = vld [vmem:[%s4602_s17 + $0x710] sm:$0x7]  ;;  %v4344_v61 = vld [vmem:[%s4602_s17 + $0x668] sm:$0xff] }
  0x68   : > { %4270 = vmatmul.mubr.msk.f32.gmra.mxu0 %vm253_vm1, %v4648_v26  ;;  %4274 = vmatmul.mubr.msk.f32.gmra.mxu1 %vm253_vm1, %v4648_v26 }
  0x69   : > { %1568 = vmatprep.subr.mxu0 %v4208_v62  ;;  %1645 = vmatprep.subr.mxu1 %v4210_v63  ;;  %v4346_v62 = vld [vmem:[%s4602_s17 + $0x678] sm:$0xff]  ;;  %v4343_v63 = vld [vmem:[%s4602_s17 + $0x660] sm:$0xff] }
  0x6a   : > { %1569 = vmatpush1.msra.mxu0 %v4207_v1  ;;  %1646 = vmatpush1.msra.mxu1 %v4209_v2  ;;  %v4345_v1 = vld [vmem:[%s4602_s17 + $0x670] sm:$0xff]  ;;  %v4324_v2 = vld [vmem:[%s4602_s17 + $0x5c8] sm:$0xff] }
  0x6b   : > { %1570 = vmatprep.subr.mxu0 %v4188_v3  ;;  %1647 = vmatprep.subr.mxu1 %v4190_v4  ;;  %v4326_v3 = vld [vmem:[%s4602_s17 + $0x5d8] sm:$0xff]  ;;  %v4323_v4 = vld [vmem:[%s4602_s17 + $0x5c0] sm:$0xff] }
  0x6c   : > { %1571 = vmatpush1.msra.mxu0 %v4187_v5  ;;  %1604 = vmatprep.mubr.f32.mxu0 %v4564_v0  ;;  %v4325_v5 = vld [vmem:[%s4602_s17 + $0x5d0] sm:$0xff] }
  0x6d   : > { %1648 = vmatpush1.msra.mxu1 %v4189_v6  ;;  %1681 = vmatprep.mubr.f32.mxu1 %v4564_v0  ;;  %v4304_v6 = vld [vmem:[%s4602_s17 + $0x528] sm:$0xff] }
  0x6e   : > { %4277 = vmatmul.mubr.msk.f32.vlgmr.msra.gmra.mxu0 %vm253_vm1, %v4627_v17  ;;  %4281 = vmatmul.mubr.msk.f32.vlgmr.msra.gmra.mxu1 %vm253_vm1, %v4627_v17 }
  0x6f   : > { %4283 = vmatprep.subr.msk.mxu0 %vm260_vm0, %v4252_v7  ;;  %4287 = vmatprep.subr.msk.mxu1 %vm260_vm0, %v4254_v8  ;;  %v4306_v7 = vld [vmem:[%s4602_s17 + $0x538] sm:$0xff]  ;;  %v4303_v8 = vld [vmem:[%s4602_s17 + $0x520] sm:$0xff] }
  0x70   : > { %4284 = vmatpush1.msk.msra.mxu0 %vm260_vm0, %v4251_v9  ;;  %4288 = vmatpush1.msk.msra.mxu1 %vm260_vm0, %v4253_v10  ;;  %v4305_v9 = vld [vmem:[%s4602_s17 + $0x530] sm:$0xff]  ;;  %v4368_v10 = vld [vmem:[%s4602_s17 + $0x728] sm:$0x7] }
  0x71   : > { %1720 = vmatprep.subr.mxu0 %v4232_v11  ;;  %1797 = vmatprep.subr.mxu1 %v4234_v12  ;;  %v4370_v11 = vld [vmem:[%s4602_s17 + $0x738] sm:$0x7]  ;;  %v4367_v12 = vld [vmem:[%s4602_s17 + $0x720] sm:$0x7] }
  0x72   : > { %1610 = vmatprep.mubr.f32.mxu0 %v4564_v0  ;;  %1687 = vmatprep.mubr.f32.mxu1 %v4564_v0 }
  0x73   : > { %1721 = vmatpush1.msra.mxu0 %v4231_v13  ;;  %1798 = vmatpush1.msra.mxu1 %v4233_v14  ;;  %v4369_v13 = vld [vmem:[%s4602_s17 + $0x730] sm:$0x7]  ;;  %v4348_v14 = vld [vmem:[%s4602_s17 + $0x688] sm:$0xff] }
  0x74   : > { %4278 = vmatmul.mubr.msk.f32.gmra.mxu0 %vm253_vm1, %v4648_v26  ;;  %4282 = vmatmul.mubr.msk.f32.gmra.mxu1 %vm253_vm1, %v4648_v26 }
  0x75   : > { %1722 = vmatprep.subr.mxu0 %v4212_v15  ;;  %1799 = vmatprep.subr.mxu1 %v4214_v16  ;;  %v4350_v15 = vld [vmem:[%s4602_s17 + $0x698] sm:$0xff]  ;;  %v4347_v16 = vld [vmem:[%s4602_s17 + $0x680] sm:$0xff] }
  0x76   : > { %1723 = vmatpush1.msra.mxu0 %v4211_v18  ;;  %1800 = vmatpush1.msra.mxu1 %v4213_v19  ;;  %v4349_v18 = vld [vmem:[%s4602_s17 + $0x690] sm:$0xff]  ;;  %v4328_v19 = vld [vmem:[%s4602_s17 + $0x5e8] sm:$0xff] }
  0x77   : > { %1724 = vmatprep.subr.mxu0 %v4192_v20  ;;  %1801 = vmatprep.subr.mxu1 %v4194_v21  ;;  %v4330_v20 = vld [vmem:[%s4602_s17 + $0x5f8] sm:$0xff]  ;;  %v4327_v21 = vld [vmem:[%s4602_s17 + $0x5e0] sm:$0xff] }
  0x78   : > { %1725 = vmatpush1.msra.mxu0 %v4191_v22  ;;  %1758 = vmatprep.mubr.f32.mxu0 %v4564_v0  ;;  %v4329_v22 = vld [vmem:[%s4602_s17 + $0x5f0] sm:$0xff] }
  0x79   : > { %1802 = vmatpush1.msra.mxu1 %v4193_v23  ;;  %1835 = vmatprep.mubr.f32.mxu1 %v4564_v0  ;;  %v4308_v23 = vld [vmem:[%s4602_s17 + $0x548] sm:$0xff] }
  0x7a   : > { %4285 = vmatmul.mubr.msk.f32.vlgmr.msra.gmra.mxu0 %vm253_vm1, %v4627_v17  ;;  %4289 = vmatmul.mubr.msk.f32.vlgmr.msra.gmra.mxu1 %vm253_vm1, %v4627_v17 }
  0x7b   : > { %4291 = vmatprep.subr.msk.mxu0 %vm260_vm0, %v4256_v24  ;;  %4295 = vmatprep.subr.msk.mxu1 %vm260_vm0, %v4258_v25  ;;  %v4310_v24 = vld [vmem:[%s4602_s17 + $0x558] sm:$0xff]  ;;  %v4307_v25 = vld [vmem:[%s4602_s17 + $0x540] sm:$0xff] }
  0x7c   : > { %4292 = vmatpush1.msk.msra.mxu0 %vm260_vm0, %v4255_v27  ;;  %4296 = vmatpush1.msk.msra.mxu1 %vm260_vm0, %v4257_v28  ;;  %v4309_v27 = vld [vmem:[%s4602_s17 + $0x550] sm:$0xff]  ;;  %v4372_v28 = vld [vmem:[%s4602_s17 + $0x748] sm:$0x7] }
  0x7d   : > { %1874 = vmatprep.subr.mxu0 %v4236_v29  ;;  %1951 = vmatprep.subr.mxu1 %v4238_v30  ;;  %v4374_v29 = vld [vmem:[%s4602_s17 + $0x758] sm:$0x7]  ;;  %v4371_v30 = vld [vmem:[%s4602_s17 + $0x740] sm:$0x7] }
  0x7e   : > { %1764 = vmatprep.mubr.f32.mxu0 %v4564_v0  ;;  %1841 = vmatprep.mubr.f32.mxu1 %v4564_v0 }
  0x7f   : > { %1875 = vmatpush1.msra.mxu0 %v4235_v31  ;;  %1952 = vmatpush1.msra.mxu1 %v4237_v32  ;;  %v4373_v31 = vld [vmem:[%s4602_s17 + $0x750] sm:$0x7]  ;;  %v4352_v32 = vld [vmem:[%s4602_s17 + $0x6a8] sm:$0xff] }
  0x80   : > { %4286 = vmatmul.mubr.msk.f32.gmra.mxu0 %vm253_vm1, %v4648_v26  ;;  %4290 = vmatmul.mubr.msk.f32.gmra.mxu1 %vm253_vm1, %v4648_v26 }
  0x81   : > { %1876 = vmatprep.subr.mxu0 %v4216_v33  ;;  %1953 = vmatprep.subr.mxu1 %v4218_v34  ;;  %v4354_v33 = vld [vmem:[%s4602_s17 + $0x6b8] sm:$0xff]  ;;  %v4351_v34 = vld [vmem:[%s4602_s17 + $0x6a0] sm:$0xff] }
  0x82   : > { %1877 = vmatpush1.msra.mxu0 %v4215_v35  ;;  %1954 = vmatpush1.msra.mxu1 %v4217_v36  ;;  %v4353_v35 = vld [vmem:[%s4602_s17 + $0x6b0] sm:$0xff]  ;;  %v4334_v36 = vld [vmem:[%s4602_s17 + $0x618] sm:$0xff] }
  0x83   : > { %1878 = vmatprep.subr.mxu0 %v4196_v37  ;;  %1955 = vmatprep.subr.mxu1 %v4198_v38  ;;  %v4331_v37 = vld [vmem:[%s4602_s17 + $0x600] sm:$0xff]  ;;  %v4333_v38 = vld [vmem:[%s4602_s17 + $0x610] sm:$0xff] }
  0x84   : > { %1879 = vmatpush1.msra.mxu0 %v4195_v39  ;;  %1912 = vmatprep.mubr.f32.mxu0 %v4564_v0  ;;  %v4312_v39 = vld [vmem:[%s4602_s17 + $0x568] sm:$0xff] }
  0x85   : > { %1956 = vmatpush1.msra.mxu1 %v4197_v40  ;;  %1989 = vmatprep.mubr.f32.mxu1 %v4564_v0  ;;  %v4314_v40 = vld [vmem:[%s4602_s17 + $0x578] sm:$0xff] }
  0x86   : > { %4293 = vmatmul.mubr.msk.f32.vlgmr.msra.gmra.mxu0 %vm253_vm1, %v4627_v17  ;;  %4297 = vmatmul.mubr.msk.f32.vlgmr.msra.gmra.mxu1 %vm253_vm1, %v4627_v17 }
  0x87   : > { %4379 = vmatprep.subr.msk.mxu0 %vm260_vm0, %v4360_v41  ;;  %4383 = vmatprep.subr.msk.mxu1 %vm260_vm0, %v4362_v42  ;;  %v4311_v41 = vld [vmem:[%s4602_s17 + $0x560] sm:$0xff]  ;;  %v4313_v42 = vld [vmem:[%s4602_s17 + $0x570] sm:$0xff] }
  0x88   : > { %4380 = vmatpush1.msk.msra.mxu0 %vm260_vm0, %v4359_v43  ;;  %4384 = vmatpush1.msk.msra.mxu1 %vm260_vm0, %v4361_v44  ;;  %v4376_v43 = vld [vmem:[%s4602_s17 + $0x768] sm:$0x7]  ;;  %v4375_v44 = vld [vmem:[%s4602_s17 + $0x760] sm:$0x7] }
  0x89   : > { %2209 = vmatprep.subr.mxu0 %v4340_v45  ;;  %2286 = vmatprep.subr.mxu1 %v4342_v46  ;;  %v4377_v45 = vld [vmem:[%s4602_s17 + $0x770] sm:$0x7]  ;;  %v5057_v46 = vld [vmem:[%s5820_s1] sm:$0xff] }
  0x8a   : > { %1918 = vmatprep.mubr.f32.mxu0 %v4564_v0  ;;  %1995 = vmatprep.mubr.f32.mxu1 %v4564_v0 }
  0x8b   : > { %2210 = vmatpush1.msra.mxu0 %v4339_v47  ;;  %2287 = vmatpush1.msra.mxu1 %v4341_v48  ;;  %v4356_v47 = vld [vmem:[%s4602_s17 + $0x6c8] sm:$0xff]  ;;  %v4358_v48 = vld [vmem:[%s4602_s17 + $0x6d8] sm:$0xff] }
  0x8c   : > { %4294 = vmatmul.mubr.msk.f32.gmra.mxu0 %vm253_vm1, %v4648_v26  ;;  %4298 = vmatmul.mubr.msk.f32.gmra.mxu1 %vm253_vm1, %v4648_v26 }
  0x8d   : > { %2211 = vmatprep.subr.mxu0 %v4320_v49  ;;  %2288 = vmatprep.subr.mxu1 %v4322_v50  ;;  %v4355_v49 = vld [vmem:[%s4602_s17 + $0x6c0] sm:$0xff]  ;;  %v4357_v50 = vld [vmem:[%s4602_s17 + $0x6d0] sm:$0xff] }
  0x8e   : > { %2212 = vmatpush1.msra.mxu0 %v4319_v51  ;;  %2289 = vmatpush1.msra.mxu1 %v4321_v52  ;;  %v4336_v51 = vld [vmem:[%s4602_s17 + $0x628] sm:$0xff]  ;;  %v4338_v52 = vld [vmem:[%s4602_s17 + $0x638] sm:$0xff] }
  0x8f   : > { %2213 = vmatprep.subr.mxu0 %v4300_v53  ;;  %2290 = vmatprep.subr.mxu1 %v4302_v54  ;;  %v4335_v53 = vld [vmem:[%s4602_s17 + $0x620] sm:$0xff]  ;;  %v4337_v54 = vld [vmem:[%s4602_s17 + $0x630] sm:$0xff] }
  0x90   : > { %2214 = vmatpush1.msra.mxu0 %v4299_v55  ;;  %2247 = vmatprep.mubr.f32.mxu0 %v4564_v0  ;;  %v5080_v55 = vld [vmem:[%s5820_s1 + $0x8] sm:$0xff] }
  0x91   : > { %2291 = vmatpush1.msra.mxu1 %v4301_v56  ;;  %2324 = vmatprep.mubr.f32.mxu1 %v4564_v0  ;;  %v4316_v56 = vld [vmem:[%s4602_s17 + $0x588] sm:$0xff] }
  0x92   : > { %4381 = vmatmul.mubr.msk.f32.vlgmr.msra.gmra.mxu0 %vm253_vm1, %v4627_v17  ;;  %4385 = vmatmul.mubr.msk.f32.vlgmr.msra.gmra.mxu1 %vm253_vm1, %v4627_v17 }
  0x93   : > { %4387 = vmatprep.subr.msk.mxu0 %vm260_vm0, %v4364_v57  ;;  %4391 = vmatprep.subr.msk.mxu1 %vm260_vm0, %v4366_v58  ;;  %v4318_v57 = vld [vmem:[%s4602_s17 + $0x598] sm:$0xff]  ;;  %v4315_v58 = vld [vmem:[%s4602_s17 + $0x580] sm:$0xff] }
  0x94   : > { %4388 = vmatpush1.msk.msra.mxu0 %vm260_vm0, %v4363_v59  ;;  %4392 = vmatpush1.msk.msra.mxu1 %vm260_vm0, %v4365_v60  ;;  %v4317_v59 = vld [vmem:[%s4602_s17 + $0x590] sm:$0xff]  ;;  %v4480_v60 = vld [vmem:[%s4602_s17 + $0x968] sm:$0x7] }
  0x95   : > { %2363 = vmatprep.subr.mxu0 %v4344_v61  ;;  %2440 = vmatprep.subr.mxu1 %v4346_v62  ;;  %v4482_v61 = vld [vmem:[%s4602_s17 + $0x978] sm:$0x7]  ;;  %v4479_v62 = vld [vmem:[%s4602_s17 + $0x960] sm:$0x7] }
  0x96   : > { %2253 = vmatprep.mubr.f32.mxu0 %v4564_v0  ;;  %2330 = vmatprep.mubr.f32.mxu1 %v4564_v0 }
  0x97   : > { %2364 = vmatpush1.msra.mxu0 %v4343_v63  ;;  %2441 = vmatpush1.msra.mxu1 %v4345_v1  ;;  %v4481_v63 = vld [vmem:[%s4602_s17 + $0x970] sm:$0x7]  ;;  %v4460_v1 = vld [vmem:[%s4602_s17 + $0x8c8] sm:$0xff] }
  0x98   : > { %4382 = vmatmul.mubr.msk.f32.gmra.mxu0 %vm253_vm1, %v4648_v26  ;;  %4386 = vmatmul.mubr.msk.f32.gmra.mxu1 %vm253_vm1, %v4648_v26 }
  0x99   : > { %2365 = vmatprep.subr.mxu0 %v4324_v2  ;;  %2442 = vmatprep.subr.mxu1 %v4326_v3  ;;  %v4462_v2 = vld [vmem:[%s4602_s17 + $0x8d8] sm:$0xff]  ;;  %v4459_v3 = vld [vmem:[%s4602_s17 + $0x8c0] sm:$0xff] }
  0x9a   : > { %2366 = vmatpush1.msra.mxu0 %v4323_v4  ;;  %2443 = vmatpush1.msra.mxu1 %v4325_v5  ;;  %v4461_v4 = vld [vmem:[%s4602_s17 + $0x8d0] sm:$0xff]  ;;  %v4440_v5 = vld [vmem:[%s4602_s17 + $0x828] sm:$0xff] }
  0x9b   : > { %2367 = vmatprep.subr.mxu0 %v4304_v6  ;;  %2444 = vmatprep.subr.mxu1 %v4306_v7  ;;  %v4442_v6 = vld [vmem:[%s4602_s17 + $0x838] sm:$0xff]  ;;  %v4439_v7 = vld [vmem:[%s4602_s17 + $0x820] sm:$0xff] }
  0x9c   : > { %2368 = vmatpush1.msra.mxu0 %v4303_v8  ;;  %2401 = vmatprep.mubr.f32.mxu0 %v4564_v0  ;;  %v4441_v8 = vld [vmem:[%s4602_s17 + $0x830] sm:$0xff] }
  0x9d   : > { %2445 = vmatpush1.msra.mxu1 %v4305_v9  ;;  %2478 = vmatprep.mubr.f32.mxu1 %v4564_v0  ;;  %v4420_v9 = vld [vmem:[%s4602_s17 + $0x788] sm:$0xff] }
  0x9e   : > { %4389 = vmatmul.mubr.msk.f32.vlgmr.msra.gmra.mxu0 %vm253_vm1, %v4627_v17  ;;  %4393 = vmatmul.mubr.msk.f32.vlgmr.msra.gmra.mxu1 %vm253_vm1, %v4627_v17 }
  0x9f   : > { %4395 = vmatprep.subr.msk.mxu0 %vm260_vm0, %v4368_v10  ;;  %4399 = vmatprep.subr.msk.mxu1 %vm260_vm0, %v4370_v11  ;;  %v4422_v10 = vld [vmem:[%s4602_s17 + $0x798] sm:$0xff]  ;;  %v4419_v11 = vld [vmem:[%s4602_s17 + $0x780] sm:$0xff] }
  0xa0   : > { %4396 = vmatpush1.msk.msra.mxu0 %vm260_vm0, %v4367_v12  ;;  %4400 = vmatpush1.msk.msra.mxu1 %vm260_vm0, %v4369_v13  ;;  %v4421_v12 = vld [vmem:[%s4602_s17 + $0x790] sm:$0xff]  ;;  %v4484_v13 = vld [vmem:[%s4602_s17 + $0x988] sm:$0x7] }
  0xa1   : > { %2517 = vmatprep.subr.mxu0 %v4348_v14  ;;  %2594 = vmatprep.subr.mxu1 %v4350_v15  ;;  %v4486_v14 = vld [vmem:[%s4602_s17 + $0x998] sm:$0x7]  ;;  %v4483_v15 = vld [vmem:[%s4602_s17 + $0x980] sm:$0x7] }
  0xa2   : > { %2407 = vmatprep.mubr.f32.mxu0 %v4564_v0  ;;  %2484 = vmatprep.mubr.f32.mxu1 %v4564_v0 }
  0xa3   : > { %2518 = vmatpush1.msra.mxu0 %v4347_v16  ;;  %2595 = vmatpush1.msra.mxu1 %v4349_v18  ;;  %v4485_v16 = vld [vmem:[%s4602_s17 + $0x990] sm:$0x7]  ;;  %v4464_v18 = vld [vmem:[%s4602_s17 + $0x8e8] sm:$0xff] }
  0xa4   : > { %4390 = vmatmul.mubr.msk.f32.gmra.mxu0 %vm253_vm1, %v4648_v26  ;;  %4394 = vmatmul.mubr.msk.f32.gmra.mxu1 %vm253_vm1, %v4648_v26 }
  0xa5   : > { %2519 = vmatprep.subr.mxu0 %v4328_v19  ;;  %2596 = vmatprep.subr.mxu1 %v4330_v20  ;;  %v4466_v19 = vld [vmem:[%s4602_s17 + $0x8f8] sm:$0xff]  ;;  %v4463_v20 = vld [vmem:[%s4602_s17 + $0x8e0] sm:$0xff] }
  0xa6   : > { %2520 = vmatpush1.msra.mxu0 %v4327_v21  ;;  %2597 = vmatpush1.msra.mxu1 %v4329_v22  ;;  %v4465_v21 = vld [vmem:[%s4602_s17 + $0x8f0] sm:$0xff]  ;;  %v4444_v22 = vld [vmem:[%s4602_s17 + $0x848] sm:$0xff] }
  0xa7   : > { %2521 = vmatprep.subr.mxu0 %v4308_v23  ;;  %2598 = vmatprep.subr.mxu1 %v4310_v24  ;;  %v4446_v23 = vld [vmem:[%s4602_s17 + $0x858] sm:$0xff]  ;;  %v4443_v24 = vld [vmem:[%s4602_s17 + $0x840] sm:$0xff] }
  0xa8   : > { %2522 = vmatpush1.msra.mxu0 %v4307_v25  ;;  %2555 = vmatprep.mubr.f32.mxu0 %v4564_v0  ;;  %v4445_v25 = vld [vmem:[%s4602_s17 + $0x850] sm:$0xff] }
  0xa9   : > { %2599 = vmatpush1.msra.mxu1 %v4309_v27  ;;  %2632 = vmatprep.mubr.f32.mxu1 %v4564_v0  ;;  %v4424_v27 = vld [vmem:[%s4602_s17 + $0x7a8] sm:$0xff] }
  0xaa   : > { %4397 = vmatmul.mubr.msk.f32.vlgmr.msra.gmra.mxu0 %vm253_vm1, %v4627_v17  ;;  %4401 = vmatmul.mubr.msk.f32.vlgmr.msra.gmra.mxu1 %vm253_vm1, %v4627_v17  ;;  %v4332_v17 = vld [vmem:[%s4602_s17 + $0x608] sm:$0xff] }
  0xab   : > { %4403 = vmatprep.subr.msk.mxu0 %vm260_vm0, %v4372_v28  ;;  %4407 = vmatprep.subr.msk.mxu1 %vm260_vm0, %v4374_v29  ;;  %v4426_v28 = vld [vmem:[%s4602_s17 + $0x7b8] sm:$0xff]  ;;  %v4423_v29 = vld [vmem:[%s4602_s17 + $0x7a0] sm:$0xff] }
  0xac   : > { %4404 = vmatpush1.msk.msra.mxu0 %vm260_vm0, %v4371_v30  ;;  %4408 = vmatpush1.msk.msra.mxu1 %vm260_vm0, %v4373_v31  ;;  %v4425_v30 = vld [vmem:[%s4602_s17 + $0x7b0] sm:$0xff]  ;;  %v4488_v31 = vld [vmem:[%s4602_s17 + $0x9a8] sm:$0x7] }
  0xad   : > { %2671 = vmatprep.subr.mxu0 %v4352_v32  ;;  %2748 = vmatprep.subr.mxu1 %v4354_v33  ;;  %v4490_v32 = vld [vmem:[%s4602_s17 + $0x9b8] sm:$0x7]  ;;  %v4487_v33 = vld [vmem:[%s4602_s17 + $0x9a0] sm:$0x7] }
  0xae   : > { %2561 = vmatprep.mubr.f32.mxu0 %v4564_v0  ;;  %2638 = vmatprep.mubr.f32.mxu1 %v4564_v0 }
  0xaf   : > { %2672 = vmatpush1.msra.mxu0 %v4351_v34  ;;  %2749 = vmatpush1.msra.mxu1 %v4353_v35  ;;  %v4489_v34 = vld [vmem:[%s4602_s17 + $0x9b0] sm:$0x7]  ;;  %v4468_v35 = vld [vmem:[%s4602_s17 + $0x908] sm:$0xff] }
  0xb0   : > { %4398 = vmatmul.mubr.msk.f32.gmra.mxu0 %vm253_vm1, %v4648_v26  ;;  %4402 = vmatmul.mubr.msk.f32.gmra.mxu1 %vm253_vm1, %v4648_v26  ;;  %v4378_v26 = vld [vmem:[%s4602_s17 + $0x778] sm:$0x7] }
  0xb1   : > { %2673 = vmatprep.subr.mxu0 %v4332_v17  ;;  %2750 = vmatprep.subr.mxu1 %v4334_v36  ;;  %v4470_v17 = vld [vmem:[%s4602_s17 + $0x918] sm:$0xff] }
  0xb2   : > { %2674 = vmatpush1.msra.mxu0 %v4331_v37  ;;  %2751 = vmatpush1.msra.mxu1 %v4333_v38  ;;  %v4467_v38 = vld [vmem:[%s4602_s17 + $0x900] sm:$0xff] }
  0xb3   : > { %2675 = vmatprep.subr.mxu0 %v4312_v39  ;;  %2752 = vmatprep.subr.mxu1 %v4314_v40  ;;  %v4469_v39 = vld [vmem:[%s4602_s17 + $0x910] sm:$0xff] }
  0xb4   : > { %2676 = vmatpush1.msra.mxu0 %v4311_v41  ;;  %2709 = vmatprep.mubr.f32.mxu0 %v4564_v0 }
  0xb5   : > { %2753 = vmatpush1.msra.mxu1 %v4313_v42  ;;  %2786 = vmatprep.mubr.f32.mxu1 %v4564_v0  ;;  %v4448_v42 = vld [vmem:[%s4602_s17 + $0x868] sm:$0xff] }
  0xb6   : > { %4405 = vmatmul.mubr.msk.f32.vlgmr.msra.gmra.mxu0 %vm253_vm1, %v5057_v46  ;;  %4409 = vmatmul.mubr.msk.f32.vlgmr.msra.gmra.mxu1 %vm253_vm1, %v5057_v46 }
  0xb7   : > { %4411 = vmatprep.subr.msk.mxu0 %vm260_vm0, %v4376_v43  ;;  %4415 = vmatprep.subr.msk.mxu1 %vm260_vm0, %v4378_v26  ;;  %v4450_v43 = vld [vmem:[%s4602_s17 + $0x878] sm:$0xff]  ;;  %v4447_v26 = vld [vmem:[%s4602_s17 + $0x860] sm:$0xff] }
  0xb8   : > { %4412 = vmatpush1.msk.msra.mxu0 %vm260_vm0, %v4375_v44  ;;  %4416 = vmatpush1.msk.msra.mxu1 %vm260_vm0, %v4377_v45  ;;  %v4449_v44 = vld [vmem:[%s4602_s17 + $0x870] sm:$0xff]  ;;  %v4428_v45 = vld [vmem:[%s4602_s17 + $0x7c8] sm:$0xff] }
  0xb9   : > { %2825 = vmatprep.subr.mxu0 %v4356_v47  ;;  %2902 = vmatprep.subr.mxu1 %v4358_v48  ;;  %v4430_v47 = vld [vmem:[%s4602_s17 + $0x7d8] sm:$0xff] }
  0xba   : > { %2715 = vmatprep.mubr.f32.mxu0 %v4564_v0  ;;  %2792 = vmatprep.mubr.f32.mxu1 %v4564_v0 }
  0xbb   : > { %2826 = vmatpush1.msra.mxu0 %v4355_v49  ;;  %2903 = vmatpush1.msra.mxu1 %v4357_v50  ;;  %v4427_v50 = vld [vmem:[%s4602_s17 + $0x7c0] sm:$0xff] }
  0xbc   : > { %4406 = vmatmul.mubr.msk.f32.gmra.mxu0 %vm253_vm1, %v5080_v55  ;;  %4410 = vmatmul.mubr.msk.f32.gmra.mxu1 %vm253_vm1, %v5080_v55 }
  0xbd   : > { %2827 = vmatprep.subr.mxu0 %v4336_v51  ;;  %2904 = vmatprep.subr.mxu1 %v4338_v52  ;;  %v4429_v51 = vld [vmem:[%s4602_s17 + $0x7d0] sm:$0xff] }
  0xbe   : > { %2828 = vmatpush1.msra.mxu0 %v4335_v53  ;;  %2905 = vmatpush1.msra.mxu1 %v4337_v54  ;;  %v4492_v54 = vld [vmem:[%s4602_s17 + $0x9c8] sm:$0x7] }
  0xbf   : > { %2829 = vmatprep.subr.mxu0 %v4316_v56  ;;  %2906 = vmatprep.subr.mxu1 %v4318_v57  ;;  %v4494_v56 = vld [vmem:[%s4602_s17 + $0x9d8] sm:$0x7]  ;;  %v4491_v57 = vld [vmem:[%s4602_s17 + $0x9c0] sm:$0x7] }
  0xc0   : > { %2830 = vmatpush1.msra.mxu0 %v4315_v58  ;;  %2863 = vmatprep.mubr.f32.mxu0 %v4564_v0  ;;  %v4493_v58 = vld [vmem:[%s4602_s17 + $0x9d0] sm:$0x7] }
  0xc1   : > { %2907 = vmatpush1.msra.mxu1 %v4317_v59  ;;  %2940 = vmatprep.mubr.f32.mxu1 %v4564_v0  ;;  %v4472_v59 = vld [vmem:[%s4602_s17 + $0x928] sm:$0xff] }
  0xc2   : > { %4413 = vmatmul.mubr.msk.f32.vlgmr.msra.gmra.mxu0 %vm253_vm1, %v5057_v46  ;;  %4417 = vmatmul.mubr.msk.f32.vlgmr.msra.gmra.mxu1 %vm253_vm1, %v5057_v46 }
  0xc3   : > { %4499 = vmatprep.subr.msk.mxu0 %vm260_vm0, %v4480_v60  ;;  %4503 = vmatprep.subr.msk.mxu1 %vm260_vm0, %v4482_v61  ;;  %v4474_v60 = vld [vmem:[%s4602_s17 + $0x938] sm:$0xff] }
  0xc4   : > { %4500 = vmatpush1.msk.msra.mxu0 %vm260_vm0, %v4479_v62  ;;  %4504 = vmatpush1.msk.msra.mxu1 %vm260_vm0, %v4481_v63  ;;  %v4471_v63 = vld [vmem:[%s4602_s17 + $0x920] sm:$0xff] }
  0xc5   : > { %3160 = vmatprep.subr.mxu0 %v4460_v1  ;;  %3237 = vmatprep.subr.mxu1 %v4462_v2  ;;  %v4473_v1 = vld [vmem:[%s4602_s17 + $0x930] sm:$0xff] }
  0xc6   : > { %2869 = vmatprep.mubr.f32.mxu0 %v4564_v0  ;;  %2946 = vmatprep.mubr.f32.mxu1 %v4564_v0 }
  0xc7   : > { %3161 = vmatpush1.msra.mxu0 %v4459_v3  ;;  %3238 = vmatpush1.msra.mxu1 %v4461_v4  ;;  %v4452_v4 = vld [vmem:[%s4602_s17 + $0x888] sm:$0xff] }
  0xc8   : > { %4414 = vmatmul.mubr.msk.f32.gmra.mxu0 %vm253_vm1, %v5080_v55  ;;  %4418 = vmatmul.mubr.msk.f32.gmra.mxu1 %vm253_vm1, %v5080_v55 }
  0xc9   : > { %3162 = vmatprep.subr.mxu0 %v4440_v5  ;;  %3239 = vmatprep.subr.mxu1 %v4442_v6  ;;  %v4454_v5 = vld [vmem:[%s4602_s17 + $0x898] sm:$0xff]  ;;  %v4451_v6 = vld [vmem:[%s4602_s17 + $0x880] sm:$0xff] }
  0xca   : > { %3163 = vmatpush1.msra.mxu0 %v4439_v7  ;;  %3240 = vmatpush1.msra.mxu1 %v4441_v8  ;;  %v4453_v7 = vld [vmem:[%s4602_s17 + $0x890] sm:$0xff]  ;;  %v4432_v8 = vld [vmem:[%s4602_s17 + $0x7e8] sm:$0xff] }
  0xcb   : > { %3164 = vmatprep.subr.mxu0 %v4420_v9  ;;  %3241 = vmatprep.subr.mxu1 %v4422_v10  ;;  %v4434_v9 = vld [vmem:[%s4602_s17 + $0x7f8] sm:$0xff] }
  0xcc   : > { %3165 = vmatpush1.msra.mxu0 %v4419_v11  ;;  %3198 = vmatprep.mubr.f32.mxu0 %v4564_v0 }
  0xcd   : > { %3242 = vmatpush1.msra.mxu1 %v4421_v12  ;;  %3275 = vmatprep.mubr.f32.mxu1 %v4564_v0  ;;  %v4431_v12 = vld [vmem:[%s4602_s17 + $0x7e0] sm:$0xff] }
  0xce   : > { %4501 = vmatmul.mubr.msk.f32.vlgmr.msra.gmra.mxu0 %vm253_vm1, %v5057_v46  ;;  %4505 = vmatmul.mubr.msk.f32.vlgmr.msra.gmra.mxu1 %vm253_vm1, %v5057_v46 }
  0xcf   : > { %4507 = vmatprep.subr.msk.mxu0 %vm260_vm0, %v4484_v13  ;;  %4511 = vmatprep.subr.msk.mxu1 %vm260_vm0, %v4486_v14  ;;  %v4433_v13 = vld [vmem:[%s4602_s17 + $0x7f0] sm:$0xff] }
  0xd0   : > { %4508 = vmatpush1.msk.msra.mxu0 %vm260_vm0, %v4483_v15  ;;  %4512 = vmatpush1.msk.msra.mxu1 %vm260_vm0, %v4485_v16  ;;  %v4496_v16 = vld [vmem:[%s4602_s17 + $0x9e8] sm:$0x7] }
  0xd1   : > { %3314 = vmatprep.subr.mxu0 %v4464_v18  ;;  %3391 = vmatprep.subr.mxu1 %v4466_v19  ;;  %v4498_v18 = vld [vmem:[%s4602_s17 + $0x9f8] sm:$0x7]  ;;  %v4495_v19 = vld [vmem:[%s4602_s17 + $0x9e0] sm:$0x7] }
  0xd2   : > { %3204 = vmatprep.mubr.f32.mxu0 %v4564_v0  ;;  %3281 = vmatprep.mubr.f32.mxu1 %v4564_v0 }
  0xd3   : > { %3315 = vmatpush1.msra.mxu0 %v4463_v20  ;;  %3392 = vmatpush1.msra.mxu1 %v4465_v21  ;;  %v4497_v20 = vld [vmem:[%s4602_s17 + $0x9f0] sm:$0x7]  ;;  %v4476_v21 = vld [vmem:[%s4602_s17 + $0x948] sm:$0xff] }
  0xd4   : > { %4502 = vmatmul.mubr.msk.f32.gmra.mxu0 %vm253_vm1, %v5080_v55  ;;  %4506 = vmatmul.mubr.msk.f32.gmra.mxu1 %vm253_vm1, %v5080_v55 }
  0xd5   : > { %3316 = vmatprep.subr.mxu0 %v4444_v22  ;;  %3393 = vmatprep.subr.mxu1 %v4446_v23  ;;  %v4478_v22 = vld [vmem:[%s4602_s17 + $0x958] sm:$0xff] }
  0xd6   : > { %3317 = vmatpush1.msra.mxu0 %v4443_v24  ;;  %3394 = vmatpush1.msra.mxu1 %v4445_v25  ;;  %v4475_v25 = vld [vmem:[%s4602_s17 + $0x940] sm:$0xff] }
  0xd7   : > { %3318 = vmatprep.subr.mxu0 %v4424_v27  ;;  %3395 = vmatprep.subr.mxu1 %v4426_v28  ;;  %v4477_v27 = vld [vmem:[%s4602_s17 + $0x950] sm:$0xff] }
  0xd8   : > { %3319 = vmatpush1.msra.mxu0 %v4423_v29  ;;  %3352 = vmatprep.mubr.f32.mxu0 %v4564_v0 }
  0xd9   : > { %3396 = vmatpush1.msra.mxu1 %v4425_v30  ;;  %3429 = vmatprep.mubr.f32.mxu1 %v4564_v0  ;;  %v4456_v30 = vld [vmem:[%s4602_s17 + $0x8a8] sm:$0xff] }
  0xda   : > { %4509 = vmatmul.mubr.msk.f32.vlgmr.msra.gmra.mxu0 %vm253_vm1, %v5057_v46  ;;  %4513 = vmatmul.mubr.msk.f32.vlgmr.msra.gmra.mxu1 %vm253_vm1, %v5057_v46  ;;  %v5166_v36 = vpop.f32.mrf.mxu0  ;;  %v5168_v37 = vpop.f32.mrf.mxu1 }
  0xdb   : > { %4515 = vmatprep.subr.msk.mxu0 %vm260_vm0, %v4488_v31  ;;  %4519 = vmatprep.subr.msk.mxu1 %vm260_vm0, %v4490_v32  ;;  %v4458_v31 = vld [vmem:[%s4602_s17 + $0x8b8] sm:$0xff]  ;;  %v4455_v32 = vld [vmem:[%s4602_s17 + $0x8a0] sm:$0xff] }
  0xdc   : > { %4516 = vmatpush1.msk.msra.mxu0 %vm260_vm0, %v4487_v33  ;;  %4520 = vmatpush1.msk.msra.mxu1 %vm260_vm0, %v4489_v34  ;;  %v5176_v40 = vpop.f32.mrf.mxu0  ;;  %v5178_v41 = vpop.f32.mrf.mxu1  ;;  %v4457_v33 = vld [vmem:[%s4602_s17 + $0x8b0] sm:$0xff]  ;;  %v4436_v34 = vld [vmem:[%s4602_s17 + $0x808] sm:$0xff] }
  0xdd   : > { %3468 = vmatprep.subr.mxu0 %v4468_v35  ;;  %3545 = vmatprep.subr.mxu1 %v4470_v17  ;;  %v4438_v35 = vld [vmem:[%s4602_s17 + $0x818] sm:$0xff] }
  0xde   : > { %3358 = vmatprep.mubr.f32.mxu0 %v4564_v0  ;;  %3435 = vmatprep.mubr.f32.mxu1 %v4564_v0 }
  0xdf   : > { %3469 = vmatpush1.msra.mxu0 %v4467_v38  ;;  %3546 = vmatpush1.msra.mxu1 %v4469_v39  ;;  %v4435_v39 = vld [vmem:[%s4602_s17 + $0x800] sm:$0xff] }
  0xe0   : > { %4510 = vmatmul.mubr.msk.f32.gmra.mxu0 %vm253_vm1, %v5080_v55  ;;  %4514 = vmatmul.mubr.msk.f32.gmra.mxu1 %vm253_vm1, %v5080_v55  ;;  %v5192_v48 = vpop.f32.mrf.mxu0  ;;  %v5194_v49 = vpop.f32.mrf.mxu1 }
  0xe1   : > { %3470 = vmatprep.subr.mxu0 %v4448_v42  ;;  %3547 = vmatprep.subr.mxu1 %v4450_v43  ;;  %v4437_v42 = vld [vmem:[%s4602_s17 + $0x810] sm:$0xff] }
  0xe2   : > { %3471 = vmatpush1.msra.mxu0 %v4447_v26  ;;  %3548 = vmatpush1.msra.mxu1 %v4449_v44  ;;  %v5198_v52 = vpop.f32.mrf.mxu0  ;;  %v5200_v53 = vpop.f32.mrf.mxu1  ;;  %v3944_v44 = vld [vmem:[%s5821_s2] sm:$0xff] }
  0xe3   : > { %3472 = vmatprep.subr.mxu0 %v4428_v45  ;;  %3549 = vmatprep.subr.mxu1 %v4430_v47 }
  0xe4   : > { %3473 = vmatpush1.msra.mxu0 %v4427_v50  ;;  %3506 = vmatprep.mubr.f32.mxu0 %v4564_v0  ;;  %v4565_v50 = vmov 0  }
  0xe5   : > { %3550 = vmatpush1.msra.mxu1 %v4429_v51  ;;  %3583 = vmatprep.mubr.f32.mxu1 %v4564_v0 }
  0xe6   : > { %4517 = vmatmul.mubr.msk.f32.vlgmr.msra.gmra.mxu0 %vm253_vm1, %v5057_v46  ;;  %4521 = vmatmul.mubr.msk.f32.vlgmr.msra.gmra.mxu1 %vm253_vm1, %v5057_v46  ;;  %v5214_v61 = vpop.f32.mrf.mxu0  ;;  %v5216_v62 = vpop.f32.mrf.mxu1 }
  0xe7   : > { %4523 = vmatprep.subr.msk.mxu0 %vm260_vm0, %v4492_v54  ;;  %4527 = vmatprep.subr.msk.mxu1 %vm260_vm0, %v4494_v56 }
  0xe8   : > { %4524 = vmatpush1.msk.msra.mxu0 %vm260_vm0, %v4491_v57  ;;  %4528 = vmatpush1.msk.msra.mxu1 %vm260_vm0, %v4493_v58  ;;  %v5224_v2 = vpop.f32.mrf.mxu0  ;;  %v5226_v3 = vpop.f32.mrf.mxu1 }
  0xe9   : > { %3622 = vmatprep.subr.mxu0 %v4472_v59  ;;  %3699 = vmatprep.subr.mxu1 %v4474_v60 }
  0xea   : > { %3512 = vmatprep.mubr.f32.mxu0 %v4564_v0  ;;  %3589 = vmatprep.mubr.f32.mxu1 %v4564_v0 }
  0xeb   : > { %3623 = vmatpush1.msra.mxu0 %v4471_v63  ;;  %3700 = vmatpush1.msra.mxu1 %v4473_v1 }
  0xec   : > { %4518 = vmatmul.mubr.msk.f32.gmra.mxu0 %vm253_vm1, %v5080_v55  ;;  %4522 = vmatmul.mubr.msk.f32.gmra.mxu1 %vm253_vm1, %v5080_v55  ;;  %v5240_v10 = vpop.f32.mrf.mxu0  ;;  %v5242_v11 = vpop.f32.mrf.mxu1 }
  0xed   : > { %3624 = vmatprep.subr.mxu0 %v4452_v4  ;;  %3701 = vmatprep.subr.mxu1 %v4454_v5 }
  0xee   : > { %3625 = vmatpush1.msra.mxu0 %v4451_v6  ;;  %3702 = vmatpush1.msra.mxu1 %v4453_v7  ;;  %v5246_v14 = vpop.f32.mrf.mxu0  ;;  %v5248_v15 = vpop.f32.mrf.mxu1 }
  0xef   : > { %5871 = vst [vmem:[#allocation2_spill] sm:$0xff] %v5248_v15  ;;  %3626 = vmatprep.subr.mxu0 %v4432_v8  ;;  %3703 = vmatprep.subr.mxu1 %v4434_v9 }
  0xf0   : > { %3627 = vmatpush1.msra.mxu0 %v4431_v12  ;;  %3660 = vmatprep.mubr.f32.mxu0 %v4564_v0 }
  0xf1   : > { %3704 = vmatpush1.msra.mxu1 %v4433_v13  ;;  %3737 = vmatprep.mubr.f32.mxu1 %v4564_v0 }
  0xf2   : > { %4525 = vmatmul.mubr.msk.f32.vlgmr.msra.gmra.mxu0 %vm253_vm1, %v5057_v46  ;;  %4529 = vmatmul.mubr.msk.f32.vlgmr.msra.gmra.mxu1 %vm253_vm1, %v5057_v46  ;;  %v5262_v23 = vpop.f32.mrf.mxu0  ;;  %v5264_v24 = vpop.f32.mrf.mxu1 }
  0xf3   : > { %5872 = vst [vmem:[#allocation3_spill] sm:$0xff] %v5264_v24  ;;  %4531 = vmatprep.subr.msk.mxu0 %vm260_vm0, %v4496_v16  ;;  %4535 = vmatprep.subr.msk.mxu1 %vm260_vm0, %v4498_v18 }
  0xf4   : > { %4532 = vmatpush1.msk.msra.mxu0 %vm260_vm0, %v4495_v19  ;;  %4536 = vmatpush1.msk.msra.mxu1 %vm260_vm0, %v4497_v20  ;;  %v5272_v28 = vpop.f32.mrf.mxu0  ;;  %v5274_v29 = vpop.f32.mrf.mxu1 }
  0xf5   : > { %5873 = vst [vmem:[#allocation4_spill] sm:$0xff] %v5272_v28  ;;  %5874 = vst [vmem:[#allocation5_spill] sm:$0xff] %v5274_v29  ;;  %3776 = vmatprep.subr.mxu0 %v4476_v21  ;;  %3853 = vmatprep.subr.mxu1 %v4478_v22 }
  0xf6   : > { %3666 = vmatprep.mubr.f32.mxu0 %v4564_v0  ;;  %3743 = vmatprep.mubr.f32.mxu1 %v4564_v0 }
  0xf7   : > { %3777 = vmatpush1.msra.mxu0 %v4475_v25  ;;  %3854 = vmatpush1.msra.mxu1 %v4477_v27 }
  0xf8   : > { %4526 = vmatmul.mubr.msk.f32.gmra.mxu0 %vm253_vm1, %v5080_v55  ;;  %4530 = vmatmul.mubr.msk.f32.gmra.mxu1 %vm253_vm1, %v5080_v55  ;;  %v5288_v17 = vpop.f32.mrf.mxu0  ;;  %v5290_v38 = vpop.f32.mrf.mxu1 }
  0xf9   : > { %5875 = vst [vmem:[#allocation6_spill] sm:$0xff] %v5288_v17  ;;  %5876 = vst [vmem:[#allocation7_spill] sm:$0xff] %v5290_v38  ;;  %3778 = vmatprep.subr.mxu0 %v4456_v30  ;;  %3855 = vmatprep.subr.mxu1 %v4458_v31 }
  0xfa   : > { %3779 = vmatpush1.msra.mxu0 %v4455_v32  ;;  %3856 = vmatpush1.msra.mxu1 %v4457_v33  ;;  %v5294_v43 = vpop.f32.mrf.mxu0  ;;  %v5296_v26 = vpop.f32.mrf.mxu1 }
  0xfb   : > { %5877 = vst [vmem:[#allocation8_spill] sm:$0xff] %v5294_v43  ;;  %5878 = vst [vmem:[#allocation9_spill] sm:$0xff] %v5296_v26  ;;  %3780 = vmatprep.subr.mxu0 %v4436_v34  ;;  %3857 = vmatprep.subr.mxu1 %v4438_v35 }
  0xfc   : > { %3781 = vmatpush1.msra.mxu0 %v4435_v39  ;;  %3814 = vmatprep.mubr.f32.mxu0 %v4564_v0 }
  0xfd   : > { %3858 = vmatpush1.msra.mxu1 %v4437_v42  ;;  %3891 = vmatprep.mubr.f32.mxu1 %v4564_v0 }
  0xfe   : > { %4533 = vmatmul.mubr.msk.f32.vlgmr.msra.gmra.mxu0 %vm253_vm1, %v5057_v46  ;;  %4537 = vmatmul.mubr.msk.f32.vlgmr.msra.gmra.mxu1 %vm253_vm1, %v5057_v46  ;;  %v5307_v45 = vpop.f32.mrf.mxu0  ;;  %v5309_v47 = vpop.f32.mrf.mxu1  ;;  %v3945_v46 = vld [vmem:[%s5821_s2 + $0x8] sm:$0xff] }
  0xff   : > { %5879 = vst [vmem:[#allocation10_spill] sm:$0xff] %v5307_v45  ;;  %5880 = vst [vmem:[#allocation11_spill] sm:$0xff] %v5309_v47  ;;  %3820 = vmatprep.mubr.f32.mxu0 %v4564_v0  ;;  %3897 = vmatprep.mubr.f32.mxu1 %v4564_v0 }
 0x100   : > { %4553 = vset.pattern.permute.xlu0 %v4565_v50  ;;  %v5313_v51 = vpop.f32.mrf.mxu0  ;;  %v5315_v54 = vpop.f32.mrf.mxu1 }
 0x101   : > { %5881 = vst [vmem:[#allocation12_spill] sm:$0xff] %v5313_v51  ;;  %5882 = vst [vmem:[#allocation13_spill] sm:$0xff] %v5315_v54  ;;  %3948 = vperm.xlu0 %4553, %v3944_v44  }
 0x102   : > { %4534 = vmatmul.mubr.msk.f32.gmra.mxu0 %vm253_vm1, %v5080_v55  ;;  %4538 = vmatmul.mubr.msk.f32.gmra.mxu1 %vm253_vm1, %v5080_v55 }
 0x104   : > { %v5324_v56 = vpop.f32.mrf.mxu0  ;;  %v5326_v0 = vpop.f32.mrf.mxu1 }
 0x105   : > { %5883 = vst [vmem:[#allocation14_spill] sm:$0xff] %v5324_v56  ;;  %5884 = vst [vmem:[#allocation15_spill] sm:$0xff] %v5326_v0  ;;  %3953 = vperm.xlu0 %4553, %v3945_v46  }
 0x106   : > { %v5328_v57 = vpop.f32.mrf.mxu0  ;;  %v5330_v58 = vpop.f32.mrf.mxu1 }
 0x107   : > { %5885 = vst [vmem:[#allocation16_spill] sm:$0xff] %v5328_v57  ;;  %5886 = vst [vmem:[#allocation17_spill] sm:$0xff] %v5330_v58 }
 0x10a   : > { %v5332_v59 = vpop.f32.mrf.mxu0  ;;  %v5334_v60 = vpop.f32.mrf.mxu1 }
 0x10b   : > { %5887 = vst [vmem:[#allocation18_spill] sm:$0xff] %v5332_v59  ;;  %5888 = vst [vmem:[#allocation19_spill] sm:$0xff] %v5334_v60 }
 0x10c   : > { %v5336_v63 = vpop.f32.mrf.mxu0  ;;  %v5338_v55 = vpop.f32.mrf.mxu1 }
 0x10d   : > { %5889 = vst [vmem:[#allocation20_spill] sm:$0xff] %v5336_v63  ;;  %5890 = vst [vmem:[#allocation21_spill] sm:$0xff] %v5338_v55 }
 0x110   : > { %v5340_v1 = vpop.f32.mrf.mxu0  ;;  %v5342_v4 = vpop.f32.mrf.mxu1 }
 0x111   : > { %5891 = vst [vmem:[#allocation22_spill] sm:$0xff] %v5340_v1  ;;  %5892 = vst [vmem:[#allocation23_spill] sm:$0xff] %v5342_v4 }
 0x112   : > { %v5344_v5 = vpop.f32.mrf.mxu0  ;;  %v5346_v6 = vpop.f32.mrf.mxu1 }
 0x113   : > { %5893 = vst [vmem:[#allocation24_spill] sm:$0xff] %v5344_v5  ;;  %5894 = vst [vmem:[#allocation25_spill] sm:$0xff] %v5346_v6 }
 0x116   : > { %v5348_v7 = vpop.f32.mrf.mxu0  ;;  %v5350_v8 = vpop.f32.mrf.mxu1 }
 0x118   : > { %v5356_v13 = vpop.f32.mrf.mxu0  ;;  %v5358_v16 = vpop.f32.mrf.mxu1 }
 0x11c   : > { %v5364_v20 = vpop.f32.mrf.mxu0  ;;  %v5366_v21 = vpop.f32.mrf.mxu1 }
 0x11e   : > { %v5372_v27 = vpop.f32.mrf.mxu0  ;;  %v5374_v30 = vpop.f32.mrf.mxu1 }
 0x122   : > { %v5380_v33 = vpop.f32.mrf.mxu0  ;;  %v5382_v34 = vpop.f32.mrf.mxu1 }
 0x124   : > { %v5388_v42 = vpop.f32.mrf.mxu0  ;;  %v5390_v44 = vpop.f32.mrf.mxu1 }
 0x128   : > { %v5396_v32 = vpop.f32.mrf.mxu0  ;;  %v5398_v31 = vpop.f32.mrf.mxu1 }
 0x12a   : > { %v5404_v25 = vpop.f32.mrf.mxu0  ;;  %v5406_v22 = vpop.f32.mrf.mxu1 }
 0x12b   : > { %5895 = vst [vmem:[#allocation26_spill] sm:$0xff] %v5406_v22 }
 0x12e   : > { %v5412_v19 = vpop.f32.mrf.mxu0  ;;  %v5414_v18 = vpop.f32.mrf.mxu1 }
 0x12f   : > { %5896 = vst [vmem:[#allocation27_spill] sm:$0xff] %v5414_v18 }
 0x130   : > { %v5420_v12 = vpop.f32.mrf.mxu0  ;;  %v5422_v9 = vpop.f32.mrf.mxu1 }
 0x131   : > { %5897 = vst [vmem:[#allocation28_spill] sm:$0xff] %v5420_v12  ;;  %5898 = vst [vmem:[#allocation29_spill] sm:$0xff] %v5422_v9 }
 0x134   : > { %v5428_v22 = vpop.f32.mrf.mxu0  ;;  %v5430_v15 = vpop.f32.mrf.mxu1 }
 0x135   : > { %5899 = vst [vmem:[#allocation30_spill] sm:$0xff] %v5428_v22  ;;  %5900 = vst [vmem:[#allocation31_spill] sm:$0xff] %v5430_v15 }
 0x136   : > { %v5436_v18 = vpop.f32.mrf.mxu0  ;;  %v5438_v24 = vpop.f32.mrf.mxu1 }
 0x137   : > { %5901 = vst [vmem:[#allocation32_spill] sm:$0xff] %v5436_v18  ;;  %5902 = vst [vmem:[#allocation33_spill] sm:$0xff] %v5438_v24 }
 0x13a   : > { %v5444_v9 = vpop.f32.mrf.mxu0  ;;  %v5446_v29 = vpop.f32.mrf.mxu1 }
 0x13b   : > { %5903 = vst [vmem:[#allocation34_spill] sm:$0xff] %v5444_v9  ;;  %5904 = vst [vmem:[#allocation35_spill] sm:$0xff] %v5446_v29 }
 0x13c   : > { %v5452_v15 = vpop.f32.mrf.mxu0  ;;  %v5454_v38 = vpop.f32.mrf.mxu1 }
 0x13d   : > { %5905 = vst [vmem:[#allocation36_spill] sm:$0xff] %v5452_v15  ;;  %5906 = vst [vmem:[#allocation37_spill] sm:$0xff] %v5454_v38 }
 0x140   : > { %v5460_v24 = vpop.f32.mrf.mxu0  ;;  %v5462_v26 = vpop.f32.mrf.mxu1 }
 0x141   : > { %5907 = vst [vmem:[#allocation38_spill] sm:$0xff] %v5460_v24  ;;  %5908 = vst [vmem:[#allocation39_spill] sm:$0xff] %v5462_v26 }
 0x142   : > { %v5468_v29 = vpop.f32.mrf.mxu0  ;;  %v5470_v47 = vpop.f32.mrf.mxu1 }
 0x143   : > { %5909 = vst [vmem:[#allocation40_spill] sm:$0xff] %v5468_v29  ;;  %5910 = vst [vmem:[#allocation41_spill] sm:$0xff] %v5470_v47 }
 0x146   : > { %v5476_v38 = vpop.f32.mrf.mxu0  ;;  %v5478_v54 = vpop.f32.mrf.mxu1 }
 0x147   : > { %5911 = vst [vmem:[#allocation42_spill] sm:$0xff] %v5476_v38  ;;  %5912 = vst [vmem:[#allocation43_spill] sm:$0xff] %v5478_v54 }
 0x148   : > { %v5484_v26 = vpop.f32.mrf.mxu0  ;;  %v5486_v0 = vpop.f32.mrf.mxu1 }
 0x149   : > { %5913 = vst [vmem:[#allocation44_spill] sm:$0xff] %v5484_v26  ;;  %5914 = vst [vmem:[#allocation45_spill] sm:$0xff] %v5486_v0 }
 0x14c   : > { %v5492_v47 = vpop.f32.mrf.mxu0  ;;  %v5494_v58 = vpop.f32.mrf.mxu1 }
 0x14d   : > { %5915 = vst [vmem:[#allocation46_spill] sm:$0xff] %v5492_v47  ;;  %5916 = vst [vmem:[#allocation47_spill] sm:$0xff] %v5494_v58 }
 0x14e   : > { %v5500_v54 = vpop.f32.mrf.mxu0  ;;  %v5502_v60 = vpop.f32.mrf.mxu1 }
 0x14f   : > { %5917 = vst [vmem:[#allocation48_spill] sm:$0xff] %v5500_v54  ;;  %5918 = vst [vmem:[#allocation49_spill] sm:$0xff] %v5502_v60 }
 0x152   : > { %v2249_v0 = vpop.f32.mrf.mxu0  ;;  %v2326_v55 = vpop.f32.mrf.mxu1 }
 0x154   : > { %v2251_v26 = vpop.f32.mrf.mxu0  ;;  %v2328_v63 = vpop.f32.mrf.mxu1 }
 0x158   : > { %v2255_v38 = vpop.f32.mrf.mxu0  ;;  %v2332_v59 = vpop.f32.mrf.mxu1 }
 0x15a   : > { %v2257_v35 = vpop.f32.mrf.mxu0  ;;  %v2334_v47 = vpop.f32.mrf.mxu1 }
 0x15e   : > { %v5508_v1 = vpop.f32.mrf.mxu0  ;;  %v5510_v39 = vpop.f32.mrf.mxu1 }
 0x160   : > { %v5512_v58 = vpop.f32.mrf.mxu0  ;;  %v5514_v4 = vpop.f32.mrf.mxu1 }
 0x164   : > { %v5516_v50 = vpop.f32.mrf.mxu0  ;;  %v5518_v54 = vpop.f32.mrf.mxu1 }
 0x166   : > { %v5520_v46 = vpop.f32.mrf.mxu0  ;;  %v5522_v60 = vpop.f32.mrf.mxu1 }
 0x16a   : > { %v5524_v6 = vpop.f32.mrf.mxu0  ;;  %v5526_v5 = vpop.f32.mrf.mxu1 }
 0x16c   : > { %v5528_v29 = vpop.f32.mrf.mxu0  ;;  %v5530_v57 = vpop.f32.mrf.mxu1 }
 0x16d   : > { %5919 = vst [vmem:[#allocation50_spill] sm:$0xff] %v5530_v57 }
 0x170   : > { %v5532_v24 = vpop.f32.mrf.mxu0  ;;  %v5534_v56 = vpop.f32.mrf.mxu1 }
 0x171   : > { %5920 = vst [vmem:[#allocation51_spill] sm:$0xff] %v5532_v24  ;;  %5921 = vst [vmem:[#allocation52_spill] sm:$0xff] %v5534_v56 }
 0x172   : > { %v5536_v15 = vpop.f32.mrf.mxu0  ;;  %v5538_v51 = vpop.f32.mrf.mxu1 }
 0x173   : > { %5922 = vst [vmem:[#allocation53_spill] sm:$0xff] %v5536_v15  ;;  %5923 = vst [vmem:[#allocation54_spill] sm:$0xff] %v5538_v51 }
 0x176   : > { %v5540_v9 = vpop.f32.mrf.mxu0  ;;  %v5542_v45 = vpop.f32.mrf.mxu1 }
 0x177   : > { %5924 = vst [vmem:[#allocation55_spill] sm:$0xff] %v5540_v9  ;;  %5925 = vst [vmem:[#allocation56_spill] sm:$0xff] %v5542_v45 }
 0x178   : > { %v5544_v18 = vpop.f32.mrf.mxu0  ;;  %v5546_v43 = vpop.f32.mrf.mxu1 }
 0x179   : > { %5926 = vst [vmem:[#allocation57_spill] sm:$0xff] %v5544_v18  ;;  %5927 = vst [vmem:[#allocation58_spill] sm:$0xff] %v5546_v43 }
 0x17c   : > { %v5548_v22 = vpop.f32.mrf.mxu0  ;;  %v5550_v17 = vpop.f32.mrf.mxu1 }
 0x17d   : > { %5928 = vst [vmem:[#allocation59_spill] sm:$0xff] %v5548_v22  ;;  %5929 = vst [vmem:[#allocation60_spill] sm:$0xff] %v5550_v17  ;;  %v5578_v57 = vpop.permute.xlu0 %3948 }
 0x17e   : > { %v5552_v24 = vpop.f32.mrf.mxu0  ;;  %v5554_v56 = vpop.f32.mrf.mxu1 }
 0x17f   : > { %5930 = vst [vmem:[#allocation61_spill] sm:$0xff] %v5552_v24  ;;  %5931 = vst [vmem:[#allocation62_spill] sm:$0xff] %v5554_v56  ;;  %v5940_v24 = vmax.f32 %v5166_v36, %v5348_v7 }
 0x181   : > { %v2953_v56 = vmax.f32 %v5940_v24, %v2249_v0 }
 0x182   : > { %v5556_v15 = vpop.f32.mrf.mxu0  ;;  %v5558_v51 = vpop.f32.mrf.mxu1 }
 0x183   : > { %5932 = vst [vmem:[#allocation63_spill] sm:$0xff] %v5556_v15  ;;  %5933 = vst [vmem:[#allocation64_spill] sm:$0xff] %v5558_v51  ;;  %v5941_v15 = vmax.f32 %v5168_v37, %v5350_v8  ;;  %v5944_v8 = vmax.f32 %v5192_v48, %v5364_v20 }
 0x184   : > { %v5560_v9 = vpop.f32.mrf.mxu0  ;;  %v5562_v45 = vpop.f32.mrf.mxu1 }
 0x185   : > { %5934 = vst [vmem:[#allocation65_spill] sm:$0xff] %v5560_v9  ;;  %5935 = vst [vmem:[#allocation66_spill] sm:$0xff] %v5562_v45  ;;  %v2955_v51 = vmax.f32 %v5941_v15, %v2326_v55  ;;  %v2973_v28 = vmax.f32 %v5944_v8, %v2255_v38  ;;  %v5602_v38 = vpop.permute.xlu0 %3953 }
 0x188   : > { %v5564_v18 = vpop.f32.mrf.mxu0  ;;  %v5566_v43 = vpop.f32.mrf.mxu1 }
 0x189   : > { %5936 = vst [vmem:[#allocation67_spill] sm:$0xff] %v5564_v18  ;;  %5937 = vst [vmem:[#allocation68_spill] sm:$0xff] %v5566_v43  ;;  %v5942_v43 = vmax.f32 %v5176_v40, %v5356_v13  ;;  %v5945_v40 = vmax.f32 %v5194_v49, %v5366_v21  ;;  %v5946_v49 = vmax.f32 %v5198_v52, %v5372_v27 }
 0x18a   : > { %v5568_v22 = vpop.f32.mrf.mxu0  ;;  %v5570_v17 = vpop.f32.mrf.mxu1 }
 0x18b   : > { %5938 = vst [vmem:[#allocation69_spill] sm:$0xff] %v5568_v22  ;;  %5939 = vst [vmem:[#allocation70_spill] sm:$0xff] %v5570_v17  ;;  %v2954_v18 = vmax.f32 %v5942_v43, %v2251_v26  ;;  %v5943_v17 = vmax.f32 %v5178_v41, %v5358_v16  ;;  %v2975_v43 = vmax.f32 %v5945_v40, %v2332_v59 }
 0x18d   : > { %v2956_v22 = vmax.f32 %v5943_v17, %v2328_v63 }
 0x18e   : > { %v3200_v9 = vpop.f32.mrf.mxu0  ;;  %v3277_v45 = vpop.f32.mrf.mxu1 }
 0x18f   : > { %v3904_v12 = vmax.f32 %v2953_v56, %v3200_v9  ;;  %v3906_v36 = vmax.f32 %v2955_v51, %v3277_v45  ;;  %v2974_v45 = vmax.f32 %v5946_v49, %v2257_v35  ;;  %v5947_v51 = vmax.f32 %v5200_v53, %v5374_v30 }
 0x190   : > { %v3202_v24 = vpop.f32.mrf.mxu0  ;;  %v3279_v0 = vpop.f32.mrf.mxu1 }
 0x191   : > { %v3956_v37 = vadd.f32 %v5578_v57, %v3904_v12  ;;  %v3958_v15 = vadd.f32 %v5578_v57, %v3906_v36  ;;  %v3905_v55 = vmax.f32 %v2954_v18, %v3202_v24  ;;  %v3907_v7 = vmax.f32 %v2956_v22, %v3279_v0 }
 0x192   : > { %v2976_v56 = vmax.f32 %v5947_v51, %v2334_v47  ;;  %v5948_v22 = vmax.f32 %v5214_v61, %v5380_v33  ;;  %v5951_v61 = vmax.f32 %v5226_v3, %v5390_v44 }
 0x193   : > { %v3996_v41 = vmax.f32 %v3956_v37, 0.0  ;;  %v3998_v17 = vmax.f32 %v3958_v15, 0.0  ;;  %v3957_v26 = vadd.f32 %v5578_v57, %v3905_v55  ;;  %v3959_v48 = vadd.f32 %v5578_v57, %v3907_v7 }
 0x194   : > { %v3206_v59 = vpop.f32.mrf.mxu0  ;;  %v3283_v63 = vpop.f32.mrf.mxu1  ;;  %v2957_v27 = vmax.f32 %v5948_v22, %v5508_v1  ;;  %v5950_v37 = vmax.f32 %v5224_v2, %v5388_v42  ;;  %v2960_v1 = vmax.f32 %v5951_v61, %v5514_v4  ;;  %v5952_v42 = vmax.f32 %v5240_v10, %v5396_v32  ;;  %v5955_v10 = vld [vmem:[#allocation2_spill] sm:$0xff] }
 0x195   : > { %4036 = vst [vmem:[%s5598_s6] sm:$0xff] %v3996_v41  ;;  %4038 = vst [vmem:[%s5598_s6 + $0x10] sm:$0xff] %v3998_v17  ;;  %v3997_v9 = vmax.f32 %v3957_v26, 0.0  ;;  %v3999_v12 = vmax.f32 %v3959_v48, 0.0  ;;  %v3924_v13 = vmax.f32 %v2973_v28, %v3206_v59  ;;  %v3926_v16 = vmax.f32 %v2975_v43, %v3283_v63  ;;  %v5956_v32 = vld [vmem:[#allocation26_spill] sm:$0xff] }
 0x196   : > { %v3208_v18 = vpop.f32.mrf.mxu0  ;;  %v3285_v20 = vpop.f32.mrf.mxu1  ;;  %v5949_v28 = vmax.f32 %v5216_v62, %v5382_v34  ;;  %v2958_v15 = vmax.f32 %v5950_v37, %v5512_v58  ;;  %v2977_v44 = vmax.f32 %v5952_v42, %v5516_v50  ;;  %v5953_v43 = vmax.f32 %v5242_v11, %v5398_v31  ;;  %v5973_v42 = vld [vmem:[#allocation52_spill] sm:$0xff] }
 0x197   : > { %4037 = vst [vmem:[%s5598_s6 + $0x8] sm:$0xff] %v3997_v9  ;;  %4039 = vst [vmem:[%s5598_s6 + $0x18] sm:$0xff] %v3999_v12  ;;  %v3976_v52 = vadd.f32 %v5602_v38, %v3924_v13  ;;  %v3978_v21 = vadd.f32 %v5602_v38, %v3926_v16  ;;  %v3925_v53 = vmax.f32 %v2974_v45, %v3208_v18 }
 0x198   : > { %v3927_v47 = vmax.f32 %v2976_v56, %v3285_v20  ;;  %v2959_v30 = vmax.f32 %v5949_v28, %v5510_v39  ;;  %v2979_v41 = vmax.f32 %v5953_v43, %v5518_v54  ;;  %v5954_v45 = vmax.f32 %v5246_v14, %v5404_v25  ;;  %v5959_v20 = vld [vmem:[#allocation3_spill] sm:$0xff] }
 0x199   : > { %v4016_v35 = vmax.f32 %v3976_v52, 0.0  ;;  %v4018_v36 = vmax.f32 %v3978_v21, 0.0  ;;  %v3977_v24 = vadd.f32 %v5602_v38, %v3925_v53  ;;  %v5957_v50 = vmax.f32 %v5955_v10, %v5956_v32  ;;  %v5960_v52 = vld [vmem:[#allocation27_spill] sm:$0xff]  ;;  %v5978_v10 = vld [vmem:[#allocation8_spill] sm:$0xff] }
 0x19a   : > { %v3979_v0 = vadd.f32 %v5602_v38, %v3927_v47  ;;  %v3354_v62 = vpop.f32.mrf.mxu0  ;;  %v3431_v33 = vpop.f32.mrf.mxu1  ;;  %v2978_v51 = vmax.f32 %v5954_v45, %v5520_v46  ;;  %v5958_v16 = vmax.f32 %v5262_v23, %v5412_v19  ;;  %v5961_v21 = vmax.f32 %v5959_v20, %v5960_v52  ;;  %v5965_v23 = vld [vmem:[#allocation50_spill] sm:$0xff]  ;;  %v5967_v19 = vld [vmem:[#allocation29_spill] sm:$0xff]  ;;  %v5975_v43 = vld [vmem:[#allocation31_spill] sm:$0xff] }
 0x19b   : > { %4057 = vst [vmem:[%s5598_s6 + $0xa0] sm:$0xff] %v4016_v35  ;;  %4059 = vst [vmem:[%s5598_s6 + $0xb0] sm:$0xff] %v4018_v36  ;;  %v4017_v34 = vmax.f32 %v3977_v24, 0.0  ;;  %v3908_v55 = vmax.f32 %v2957_v27, %v3354_v62  ;;  %v3910_v7 = vmax.f32 %v2959_v30, %v3431_v33  ;;  %v2980_v56 = vmax.f32 %v5957_v50, %v5522_v60  ;;  %v5962_v30 = vld [vmem:[#allocation4_spill] sm:$0xff] }
 0x19c   : > { %v4019_v39 = vmax.f32 %v3979_v0, 0.0  ;;  %v3356_v8 = vpop.f32.mrf.mxu0  ;;  %v3433_v40 = vpop.f32.mrf.mxu1  ;;  %v2961_v18 = vmax.f32 %v5958_v16, %v5524_v6  ;;  %v2963_v53 = vmax.f32 %v5961_v21, %v5526_v5  ;;  %v5963_v35 = vld [vmem:[#allocation28_spill] sm:$0xff]  ;;  %v5966_v6 = vld [vmem:[#allocation5_spill] sm:$0xff] }
 0x19d   : > { %4058 = vst [vmem:[%s5598_s6 + $0xa8] sm:$0xff] %v4017_v34  ;;  %v3960_v2 = vadd.f32 %v5578_v57, %v3908_v55  ;;  %v3962_v58 = vadd.f32 %v5578_v57, %v3910_v7  ;;  %v3909_v3 = vmax.f32 %v2958_v15, %v3356_v8  ;;  %v3911_v4 = vmax.f32 %v2960_v1, %v3433_v40  ;;  %v5969_v40 = vld [vmem:[#allocation51_spill] sm:$0xff]  ;;  %v5979_v32 = vld [vmem:[#allocation32_spill] sm:$0xff] }
 0x19e   : > { %4060 = vst [vmem:[%s5598_s6 + $0xb8] sm:$0xff] %v4019_v39  ;;  %v5964_v36 = vmax.f32 %v5962_v30, %v5963_v35  ;;  %v5968_v0 = vmax.f32 %v5966_v6, %v5967_v19  ;;  %v5980_v50 = vmax.f32 %v5978_v10, %v5979_v32  ;;  %v5989_v30 = vld [vmem:[#allocation56_spill] sm:$0xff]  ;;  %v5990_v35 = vld [vmem:[#allocation11_spill] sm:$0xff] }
 0x19f   : > { %v4000_v17 = vmax.f32 %v3960_v2, 0.0  ;;  %v4002_v26 = vmax.f32 %v3962_v58, 0.0  ;;  %v3961_v48 = vadd.f32 %v5578_v57, %v3909_v3  ;;  %v3963_v49 = vadd.f32 %v5578_v57, %v3911_v4  ;;  %v5970_v2 = vld [vmem:[#allocation6_spill] sm:$0xff]  ;;  %v6005_v10 = vld [vmem:[#allocation60_spill] sm:$0xff]  ;;  %v6006_v32 = vld [vmem:[#allocation15_spill] sm:$0xff] }
 0x1a0   : > { %v3360_v11 = vpop.f32.mrf.mxu0  ;;  %v3437_v54 = vpop.f32.mrf.mxu1  ;;  %v2962_v24 = vmax.f32 %v5964_v36, %v5528_v29  ;;  %v2964_v37 = vmax.f32 %v5968_v0, %v5965_v23  ;;  %v5971_v58 = vld [vmem:[#allocation30_spill] sm:$0xff]  ;;  %v5991_v36 = vld [vmem:[#allocation35_spill] sm:$0xff] }
 0x1a1   : > { %4040 = vst [vmem:[%s5598_s6 + $0x20] sm:$0xff] %v4000_v17  ;;  %4042 = vst [vmem:[%s5598_s6 + $0x30] sm:$0xff] %v4002_v26  ;;  %v4001_v31 = vmax.f32 %v3961_v48, 0.0  ;;  %v4003_v59 = vmax.f32 %v3963_v49, 0.0  ;;  %v3928_v63 = vmax.f32 %v2977_v44, %v3360_v11  ;;  %v3930_v9 = vmax.f32 %v2979_v41, %v3437_v54  ;;  %v5974_v44 = vld [vmem:[#allocation7_spill] sm:$0xff]  ;;  %v5981_v11 = vld [vmem:[#allocation54_spill] sm:$0xff] }
 0x1a2   : > { %v3362_v12 = vpop.f32.mrf.mxu0  ;;  %v3439_v13 = vpop.f32.mrf.mxu1  ;;  %v5972_v3 = vmax.f32 %v5970_v2, %v5971_v58  ;;  %v5976_v41 = vmax.f32 %v5974_v44, %v5975_v43  ;;  %v5982_v54 = vld [vmem:[#allocation9_spill] sm:$0xff] }
 0x1a3   : > { %4041 = vst [vmem:[%s5598_s6 + $0x28] sm:$0xff] %v4001_v31  ;;  %4043 = vst [vmem:[%s5598_s6 + $0x38] sm:$0xff] %v4003_v59  ;;  %v3980_v14 = vadd.f32 %v5602_v38, %v3928_v63  ;;  %v3982_v25 = vadd.f32 %v5602_v38, %v3930_v9  ;;  %v3929_v46 = vmax.f32 %v2978_v51, %v3362_v12  ;;  %v5977_v51 = vld [vmem:[#allocation53_spill] sm:$0xff] }
 0x1a4   : > { %v3931_v60 = vmax.f32 %v2980_v56, %v3439_v13  ;;  %v2981_v4 = vmax.f32 %v5972_v3, %v5969_v40  ;;  %v2983_v17 = vmax.f32 %v5976_v41, %v5973_v42  ;;  %v2982_v56 = vmax.f32 %v5980_v50, %v5977_v51  ;;  %v5983_v31 = vld [vmem:[#allocation33_spill] sm:$0xff]  ;;  %v6007_v50 = vld [vmem:[#allocation39_spill] sm:$0xff] }
 0x1a5   : > { %v4020_v47 = vmax.f32 %v3980_v14, 0.0  ;;  %v4022_v22 = vmax.f32 %v3982_v25, 0.0  ;;  %v3981_v27 = vadd.f32 %v5602_v38, %v3929_v46  ;;  %v5984_v59 = vmax.f32 %v5982_v54, %v5983_v31 }
 0x1a6   : > { %v3983_v28 = vadd.f32 %v5602_v38, %v3931_v60  ;;  %v3508_v15 = vpop.f32.mrf.mxu0  ;;  %v3585_v5 = vpop.f32.mrf.mxu1 }
 0x1a7   : > { %4061 = vst [vmem:[%s5598_s6 + $0xc0] sm:$0xff] %v4020_v47  ;;  %4063 = vst [vmem:[%s5598_s6 + $0xd0] sm:$0xff] %v4022_v22  ;;  %v4021_v61 = vmax.f32 %v3981_v27, 0.0  ;;  %v3912_v62 = vmax.f32 %v2961_v18, %v3508_v15  ;;  %v3914_v33 = vmax.f32 %v2963_v53, %v3585_v5  ;;  %v2984_v63 = vmax.f32 %v5984_v59, %v5981_v11  ;;  %v5985_v53 = vld [vmem:[#allocation55_spill] sm:$0xff]  ;;  %v5986_v47 = vld [vmem:[#allocation10_spill] sm:$0xff] }
 0x1a8   : > { %v4023_v1 = vmax.f32 %v3983_v28, 0.0  ;;  %v3510_v34 = vpop.f32.mrf.mxu0  ;;  %v3587_v39 = vpop.f32.mrf.mxu1  ;;  %v5987_v22 = vld [vmem:[#allocation34_spill] sm:$0xff]  ;;  %v5993_v15 = vld [vmem:[#allocation57_spill] sm:$0xff]  ;;  %v5994_v5 = vld [vmem:[#allocation12_spill] sm:$0xff] }
 0x1a9   : > { %4062 = vst [vmem:[%s5598_s6 + $0xc8] sm:$0xff] %v4021_v61  ;;  %v3964_v29 = vadd.f32 %v5578_v57, %v3912_v62  ;;  %v3966_v55 = vadd.f32 %v5578_v57, %v3914_v33  ;;  %v3913_v7 = vmax.f32 %v2962_v24, %v3510_v34  ;;  %v3915_v8 = vmax.f32 %v2964_v37, %v3587_v39  ;;  %v5995_v61 = vld [vmem:[#allocation36_spill] sm:$0xff]  ;;  %v5997_v33 = vld [vmem:[#allocation58_spill] sm:$0xff]  ;;  %v5998_v34 = vld [vmem:[#allocation13_spill] sm:$0xff] }
 0x1aa   : > { %4064 = vst [vmem:[%s5598_s6 + $0xd8] sm:$0xff] %v4023_v1  ;;  %v5988_v27 = vmax.f32 %v5986_v47, %v5987_v22  ;;  %v5992_v24 = vmax.f32 %v5990_v35, %v5991_v36  ;;  %v5996_v1 = vmax.f32 %v5994_v5, %v5995_v61  ;;  %v5999_v39 = vld [vmem:[#allocation37_spill] sm:$0xff]  ;;  %v6021_v5 = vld [vmem:[#allocation64_spill] sm:$0xff]  ;;  %v6022_v61 = vld [vmem:[#allocation19_spill] sm:$0xff] }
 0x1ab   : > { %v4004_v26 = vmax.f32 %v3964_v29, 0.0  ;;  %v4006_v48 = vmax.f32 %v3966_v55, 0.0  ;;  %v3965_v49 = vadd.f32 %v5578_v57, %v3913_v7  ;;  %v3967_v45 = vadd.f32 %v5578_v57, %v3915_v8 }
 0x1ac   : > { %v3514_v9 = vpop.f32.mrf.mxu0  ;;  %v3591_v12 = vpop.f32.mrf.mxu1  ;;  %v2965_v28 = vmax.f32 %v5988_v27, %v5985_v53  ;;  %v2967_v23 = vmax.f32 %v5992_v24, %v5989_v30  ;;  %v2966_v62 = vmax.f32 %v5996_v1, %v5993_v15  ;;  %v6000_v29 = vmax.f32 %v5998_v34, %v5999_v39  ;;  %v6023_v1 = vld [vmem:[#allocation43_spill] sm:$0xff] }
 0x1ad   : > { %4044 = vst [vmem:[%s5598_s6 + $0x40] sm:$0xff] %v4004_v26  ;;  %4046 = vst [vmem:[%s5598_s6 + $0x50] sm:$0xff] %v4006_v48  ;;  %v4005_v13 = vmax.f32 %v3965_v49, 0.0  ;;  %v4007_v14 = vmax.f32 %v3967_v45, 0.0  ;;  %v3932_v25 = vmax.f32 %v2981_v4, %v3514_v9  ;;  %v3934_v46 = vmax.f32 %v2983_v17, %v3591_v12  ;;  %v6001_v26 = vld [vmem:[#allocation59_spill] sm:$0xff]  ;;  %v6002_v48 = vld [vmem:[#allocation14_spill] sm:$0xff] }
 0x1ae   : > { %v3516_v60 = vpop.f32.mrf.mxu0  ;;  %v3593_v16 = vpop.f32.mrf.mxu1  ;;  %v2968_v55 = vmax.f32 %v6000_v29, %v5997_v33  ;;  %v6003_v49 = vld [vmem:[#allocation38_spill] sm:$0xff]  ;;  %v6009_v9 = vld [vmem:[#allocation61_spill] sm:$0xff]  ;;  %v6010_v12 = vld [vmem:[#allocation16_spill] sm:$0xff] }
 0x1af   : > { %4045 = vst [vmem:[%s5598_s6 + $0x48] sm:$0xff] %v4005_v13  ;;  %4047 = vst [vmem:[%s5598_s6 + $0x58] sm:$0xff] %v4007_v14  ;;  %v3984_v18 = vadd.f32 %v5602_v38, %v3932_v25  ;;  %v3986_v20 = vadd.f32 %v5602_v38, %v3934_v46  ;;  %v3933_v52 = vmax.f32 %v2982_v56, %v3516_v60  ;;  %v6011_v13 = vld [vmem:[#allocation40_spill] sm:$0xff]  ;;  %v6013_v46 = vld [vmem:[#allocation62_spill] sm:$0xff] }
 0x1b0   : > { %v3935_v21 = vmax.f32 %v2984_v63, %v3593_v16  ;;  %v6004_v45 = vmax.f32 %v6002_v48, %v6003_v49  ;;  %v6008_v56 = vmax.f32 %v6006_v32, %v6007_v50  ;;  %v6012_v14 = vmax.f32 %v6010_v12, %v6011_v13  ;;  %v6014_v60 = vld [vmem:[#allocation17_spill] sm:$0xff]  ;;  %v6037_v12 = vld [vmem:[#allocation68_spill] sm:$0xff]  ;;  %v6038_v13 = vld [vmem:[#allocation23_spill] sm:$0xff] }
 0x1b1   : > { %v4024_v6 = vmax.f32 %v3984_v18, 0.0  ;;  %v4026_v19 = vmax.f32 %v3986_v20, 0.0  ;;  %v3985_v0 = vadd.f32 %v5602_v38, %v3933_v52  ;;  %v6015_v16 = vld [vmem:[#allocation41_spill] sm:$0xff] }
 0x1b2   : > { %v3987_v37 = vadd.f32 %v5602_v38, %v3935_v21  ;;  %v3662_v7 = vpop.f32.mrf.mxu0  ;;  %v3739_v8 = vpop.f32.mrf.mxu1  ;;  %v2985_v51 = vmax.f32 %v6004_v45, %v6001_v26  ;;  %v2987_v11 = vmax.f32 %v6008_v56, %v6005_v10  ;;  %v2986_v25 = vmax.f32 %v6012_v14, %v6009_v9  ;;  %v6039_v14 = vld [vmem:[#allocation47_spill] sm:$0xff] }
 0x1b3   : > { %4065 = vst [vmem:[%s5598_s6 + $0xe0] sm:$0xff] %v4024_v6  ;;  %4067 = vst [vmem:[%s5598_s6 + $0xf0] sm:$0xff] %v4026_v19  ;;  %v4025_v40 = vmax.f32 %v3985_v0, 0.0  ;;  %v3916_v58 = vmax.f32 %v2965_v28, %v3662_v7  ;;  %v3918_v3 = vmax.f32 %v2967_v23, %v3739_v8  ;;  %v6016_v18 = vmax.f32 %v6014_v60, %v6015_v16  ;;  %v6017_v6 = vld [vmem:[#allocation63_spill] sm:$0xff]  ;;  %v6018_v19 = vld [vmem:[#allocation18_spill] sm:$0xff] }
 0x1b4   : > { %v4027_v2 = vmax.f32 %v3987_v37, 0.0  ;;  %v3664_v4 = vpop.f32.mrf.mxu0  ;;  %v3741_v42 = vpop.f32.mrf.mxu1  ;;  %v6019_v0 = vld [vmem:[#allocation42_spill] sm:$0xff]  ;;  %v6025_v7 = vld [vmem:[#allocation65_spill] sm:$0xff]  ;;  %v6026_v8 = vld [vmem:[#allocation20_spill] sm:$0xff] }
 0x1b5   : > { %4066 = vst [vmem:[%s5598_s6 + $0xe8] sm:$0xff] %v4025_v40  ;;  %v3968_v44 = vadd.f32 %v5578_v57, %v3916_v58  ;;  %v3970_v43 = vadd.f32 %v5578_v57, %v3918_v3  ;;  %v3917_v41 = vmax.f32 %v2966_v62, %v3664_v4  ;;  %v3919_v17 = vmax.f32 %v2968_v55, %v3741_v42  ;;  %v6027_v40 = vld [vmem:[#allocation44_spill] sm:$0xff]  ;;  %v6029_v3 = vld [vmem:[#allocation66_spill] sm:$0xff]  ;;  %v6030_v4 = vld [vmem:[#allocation21_spill] sm:$0xff] }
 0x1b6   : > { %4068 = vst [vmem:[%s5598_s6 + $0xf8] sm:$0xff] %v4027_v2  ;;  %v2988_v20 = vmax.f32 %v6016_v18, %v6013_v46  ;;  %v6020_v37 = vmax.f32 %v6018_v19, %v6019_v0  ;;  %v6024_v62 = vmax.f32 %v6022_v61, %v6023_v1  ;;  %v6028_v2 = vmax.f32 %v6026_v8, %v6027_v40  ;;  %v6031_v42 = vld [vmem:[#allocation45_spill] sm:$0xff]  ;;  %v6042_v16 = vld [vmem:[#allocation24_spill] sm:$0xff] }
 0x1b7   : > { %v4008_v54 = vmax.f32 %v3968_v44, 0.0  ;;  %v4010_v31 = vmax.f32 %v3970_v43, 0.0  ;;  %v3969_v59 = vadd.f32 %v5578_v57, %v3917_v41  ;;  %v3971_v63 = vadd.f32 %v5578_v57, %v3919_v17  ;;  %v6041_v60 = vld [vmem:[#allocation69_spill] sm:$0xff]  ;;  %v6043_v18 = vld [vmem:[#allocation48_spill] sm:$0xff] }
 0x1b8   : > { %v3668_v52 = vpop.f32.mrf.mxu0  ;;  %v3745_v21 = vpop.f32.mrf.mxu1  ;;  %v2969_v15 = vmax.f32 %v6020_v37, %v6017_v6  ;;  %v2971_v33 = vmax.f32 %v6024_v62, %v6021_v5  ;;  %v2970_v58 = vmax.f32 %v6028_v2, %v6025_v7  ;;  %v6032_v44 = vmax.f32 %v6030_v4, %v6031_v42 }
 0x1b9   : > { %4048 = vst [vmem:[%s5598_s6 + $0x60] sm:$0xff] %v4008_v54  ;;  %4050 = vst [vmem:[%s5598_s6 + $0x70] sm:$0xff] %v4010_v31  ;;  %v4009_v53 = vmax.f32 %v3969_v59, 0.0  ;;  %v4011_v47 = vmax.f32 %v3971_v63, 0.0  ;;  %v3936_v22 = vmax.f32 %v2985_v51, %v3668_v52  ;;  %v3938_v27 = vmax.f32 %v2987_v11, %v3745_v21  ;;  %v6033_v54 = vld [vmem:[#allocation67_spill] sm:$0xff]  ;;  %v6034_v31 = vld [vmem:[#allocation22_spill] sm:$0xff] }
 0x1ba   : > { %v3670_v28 = vpop.f32.mrf.mxu0  ;;  %v3747_v30 = vpop.f32.mrf.mxu1  ;;  %v2972_v43 = vmax.f32 %v6032_v44, %v6029_v3  ;;  %v6035_v59 = vld [vmem:[#allocation46_spill] sm:$0xff] }
 0x1bb   : > { %4049 = vst [vmem:[%s5598_s6 + $0x68] sm:$0xff] %v4009_v53  ;;  %4051 = vst [vmem:[%s5598_s6 + $0x78] sm:$0xff] %v4011_v47  ;;  %v3988_v35 = vadd.f32 %v5602_v38, %v3936_v22  ;;  %v3990_v36 = vadd.f32 %v5602_v38, %v3938_v27  ;;  %v3937_v24 = vmax.f32 %v2986_v25, %v3670_v28  ;;  %v6045_v21 = vld [vmem:[#allocation70_spill] sm:$0xff]  ;;  %v6046_v53 = vld [vmem:[#allocation25_spill] sm:$0xff] }
 0x1bc   : > { %v3939_v23 = vmax.f32 %v2988_v20, %v3747_v30  ;;  %v6036_v63 = vmax.f32 %v6034_v31, %v6035_v59  ;;  %v6040_v25 = vmax.f32 %v6038_v13, %v6039_v14  ;;  %v6044_v20 = vmax.f32 %v6042_v16, %v6043_v18  ;;  %v6047_v47 = vld [vmem:[#allocation49_spill] sm:$0xff] }
 0x1bd   : > { %v4028_v34 = vmax.f32 %v3988_v35, 0.0  ;;  %v4030_v39 = vmax.f32 %v3990_v36, 0.0  ;;  %v3989_v29 = vadd.f32 %v5602_v38, %v3937_v24  ;;  %v6048_v22 = vmax.f32 %v6046_v53, %v6047_v47 }
 0x1be   : > { %v3991_v55 = vadd.f32 %v5602_v38, %v3939_v23  ;;  %v3816_v41 = vpop.f32.mrf.mxu0  ;;  %v3893_v17 = vpop.f32.mrf.mxu1  ;;  %v2989_v9 = vmax.f32 %v6036_v63, %v6033_v54  ;;  %v2991_v46 = vmax.f32 %v6040_v25, %v6037_v12  ;;  %v2990_v52 = vmax.f32 %v6044_v20, %v6041_v60 }
 0x1bf   : > { %4069 = vst [vmem:[%s5598_s6 + $0x100] sm:$0xff] %v4028_v34  ;;  %4071 = vst [vmem:[%s5598_s6 + $0x110] sm:$0xff] %v4030_v39  ;;  %v4029_v26 = vmax.f32 %v3989_v29, 0.0  ;;  %v3920_v49 = vmax.f32 %v2969_v15, %v3816_v41  ;;  %v3922_v45 = vmax.f32 %v2971_v33, %v3893_v17  ;;  %v2992_v27 = vmax.f32 %v6048_v22, %v6045_v21 }
 0x1c0   : > { %v4031_v48 = vmax.f32 %v3991_v55, 0.0  ;;  %v3818_v51 = vpop.f32.mrf.mxu0  ;;  %v3895_v10 = vpop.f32.mrf.mxu1 }
 0x1c1   : > { %4070 = vst [vmem:[%s5598_s6 + $0x108] sm:$0xff] %v4029_v26  ;;  %v3972_v32 = vadd.f32 %v5578_v57, %v3920_v49  ;;  %v3974_v50 = vadd.f32 %v5578_v57, %v3922_v45  ;;  %v3921_v56 = vmax.f32 %v2970_v58, %v3818_v51  ;;  %v3923_v11 = vmax.f32 %v2972_v43, %v3895_v10 }
 0x1c2   : > { %4072 = vst [vmem:[%s5598_s6 + $0x118] sm:$0xff] %v4031_v48  ;;  %v3822_v28 = vpop.f32.mrf.mxu0  ;;  %v3899_v30 = vpop.f32.mrf.mxu1 }
 0x1c3   : > { %v4012_v35 = vmax.f32 %v3972_v32, 0.0  ;;  %v4014_v36 = vmax.f32 %v3974_v50, 0.0  ;;  %v3973_v24 = vadd.f32 %v5578_v57, %v3921_v56  ;;  %v3975_v23 = vadd.f32 %v5578_v57, %v3923_v11 }
 0x1c4   : > { %v3940_v6 = vmax.f32 %v2989_v9, %v3822_v28  ;;  %v3942_v19 = vmax.f32 %v2991_v46, %v3899_v30  ;;  %v3824_v0 = vpop.f32.mrf.mxu0  ;;  %v3901_v37 = vpop.f32.mrf.mxu1 }
 0x1c5   : > { %4052 = vst [vmem:[%s5598_s6 + $0x80] sm:$0xff] %v4012_v35  ;;  %4054 = vst [vmem:[%s5598_s6 + $0x90] sm:$0xff] %v4014_v36  ;;  %v4013_v15 = vmax.f32 %v3973_v24, 0.0  ;;  %v4015_v5 = vmax.f32 %v3975_v23, 0.0  ;;  %v3941_v61 = vmax.f32 %v2990_v52, %v3824_v0  ;;  %v3943_v1 = vmax.f32 %v2992_v27, %v3901_v37 }
 0x1c6   : > { %v3992_v62 = vadd.f32 %v5602_v38, %v3940_v6  ;;  %v3994_v33 = vadd.f32 %v5602_v38, %v3942_v19 }
 0x1c7   : > { %4053 = vst [vmem:[%s5598_s6 + $0x88] sm:$0xff] %v4013_v15  ;;  %4056 = vst.msk [vmem:[%s5598_s6 + $0x98] sm:$0xff] %vm4055_vm2, %v4015_v5  ;;  %v3993_v57 = vadd.f32 %v5602_v38, %v3941_v61  ;;  %v3995_v34 = vadd.f32 %v5602_v38, %v3943_v1 }
 0x1c8   : > { %v4032_v39 = vmax.f32 %v3992_v62, 0.0  ;;  %v4034_v29 = vmax.f32 %v3994_v33, 0.0 }
 0x1c9   : > { %v4033_v55 = vmax.f32 %v3993_v57, 0.0  ;;  %v4035_v7 = vmax.f32 %v3995_v34, 0.0 }
 0x1ca   : > { %4073 = vst [vmem:[%s5598_s6 + $0x120] sm:$0xff] %v4032_v39  ;;  %4075 = vst [vmem:[%s5598_s6 + $0x130] sm:$0xff] %v4034_v29 }
 0x1cb   : > { %4074 = vst [vmem:[%s5598_s6 + $0x128] sm:$0xff] %v4033_v55  ;;  %4076 = vst.msk [vmem:[%s5598_s6 + $0x138] sm:$0xff] %vm4055_vm2, %v4035_v7 }
 0x1cc PF: > { %s13_s12 = sadd.s32 1, %s4562_s12  }
 0x1cd   : > { %p10_p4 = scmp.ge.s32.totalorder %s13_s12, 4  }
 0x1cf   :  { %12 = sbr.rel (!%p10_p4) target bundleno = 1 (0x1), region = 65 }

// kernel: cnn_forward.3
= control target key start
LH: loop header
LB: loop body
LE: loop exit
PB: predicated region body
PF: predicated region fallthrough
CT: control target
= control target key end

     0   :  { %12 = vsyncpa [#allocation3], 0  ;;  %s8897_s0 = inlined_call_operand.vmem [shape: f32[2,4,144,625], index: 0, kind: input, shape index: {}]   ;;  %s8898_s1 = inlined_call_operand.vmem [shape: f32[8,144], index: 1, kind: input, shape index: {}]   ;;  %s8899_s2 = inlined_call_operand.vmem [shape: f32[8,1], index: 2, kind: input, shape index: {}]   ;;  %s8900_s3 = inlined_call_operand.vmem [shape: f32[8,625,64], index: 3, kind: input, shape index: {}]   ;;  %s8901_s4 = inlined_call_operand.vmem [shape: f32[1,64], index: 4, kind: input, shape index: {}]   ;;  %s8902_s5 = inlined_call_operand.vmem [shape: f32[64,2], index: 5, kind: input, shape index: {}]   ;;  %s8903_s6 = inlined_call_operand.vmem [shape: f32[1,2], index: 6, kind: input, shape index: {}]   ;;  %s8904_s7 = inlined_call_operand.hbm [shape: f32[2,1,2], index: 7, kind: output, shape index: {}]  }
   0x1   :  { %14 = vsyncpa [#allocation3 + $0x1], 0  ;;  %s6109_s24 = smov 0   ;;  %s6111_s25 = smov 0  }
   0x2   :  { %s6113_s26 = smov 0   ;;  %s6115_s27 = smov 0  }
   0x3 LB: > { %s6130_s28 = sadd.s32 4294967295, %s6063_s27   ;;  %s4117_s29 = sadd.s32 4294967294, %s6063_s27   ;;  %s6063_s27 = sphi %s6115_s27, %s8910_s27   ;;  %s6059_s26 = sphi %s6113_s26, %s8909_s26   ;;  %s6055_s25 = sphi %s6111_s25, %s8908_s25   ;;  %s6051_s24 = sphi %s6109_s24, %s8907_s24  }
   0x4   : > { %s6134_s30 = sadd.s32 1, %s6063_s27   ;;  %s179_s8 = sadd.s32 1, %s6059_s26 }
   0x5   : > { %s176_s9 = ssub.s32 %s6063_s27, %s6134_s30  ;;  %p189_p0 = scmp.ne.s32.totalorder %s6059_s26, %s6055_s25 }
   0x6   : > { %p177_p1 = scmp.eq.s32.totalorder %s176_s9, 0  ;;  %p190_p2 = scmp.eq.s32.totalorder %s6130_s28, 1 }
   0x7   : > { %p195_p3 = scmp.ne.s32.totalorder %s6055_s25, %s6051_s24  ;;  %p196_p4 = scmp.eq.s32.totalorder %s4117_s29, 1 }
   0x8   : > { %s6145_s10 = scalar_select %p177_p1, %s6059_s26, %s179_s8  }
   0x9   : > { %p6147_p5 = por %p190_p2, %p189_p0  ;;  %p6151_p6 = por %p196_p4, %p195_p3 }
   0xa   : > { %p4120_p7 = scmp.ge.s32.totalorder %s6063_s27, 1  ;;  %p240_p8 = scmp.lt.s32.totalorder %s6063_s27, 3 }
   0xc   : > { %p241_p9 = pnand %p4120_p7, %p240_p8 }
   0xd   : > { %p271_p10 = scmp.lt.s32.totalorder (!%p241_p9), %s6130_s28, 1  ;;  %s269_s22 = sand.u32 (!%p241_p9), 1, %s6055_s25  }
   0xe   : > { %244 = sbr.rel (%p241_p9) target bundleno = 1225 (0x4c9), region = 48  ;;  %s4974_s8 = sshll.u32 (!%p241_p9), %s6130_s28, 4 }
   0xf   : > { %s270_s9 = scalar_lea.vmem (!%p241_p9), [#allocation2], %s269_s22  ;;  %s4050_s17 = scalar_lea.sflag (!%p241_p9), [#allocation3], %s269_s22 }
  0x10   : > { %s4062_s13 = sshll.u32 (!%p241_p9), %s270_s9, 4  ;;  %s4063_s13 = int_to_ptr.vmem [resolvable:$true] %s4062_s13 }
  0x11   : > { %s6003_s18 = scalar_lea.vmem (!%p241_p9), %s4063_s13, 16 }
  0x12   : > { %p6004_p11 = scmp.ne.s32.totalorder (!%p241_p9), %s4063_s13, %s6003_s18 }
  0x13   : > { %v6161_v0 = vld [vmem:[%s8898_s1 + $0x8] sm:$0xff]  ;;  %vm368_vm0 = vcmask 130048   ;;  %s272_s15 = scalar_select %p271_p10, %s6130_s28, 1  ;;  %vm1608_vm1 = vcmask 1040384   ;;  %vm6067_vm2 = vmmov 0   ;;  %vm1604_vm3 = vcmask 924672  }
  0x14   : > { %4122 = vmatprep.mubr.msk.f32.mxu0 %vm368_vm0, %v6161_v0  ;;  %4123 = vmatprep.mubr.msk.f32.mxu1 %vm368_vm0, %v6161_v0  ;;  %vm3972_vm4 = vcmask 523264   ;;  %vm4047_vm5 = vcmask 8192   ;;  %p6005_p12 = pnand %p6004_p11, %p6147_p5 }
  0x15   : > { %s5957_s16 = smul.u32 2880, %s272_s15 }
  0x16   : > { %p6006_p13 = pneg %p6005_p12 }
  0x17   : > { %s6171_s19 = scalar_lea.vmem %s8897_s0, %s5957_s16  ;;  %s4060_s16 = scalar_lea.hbm %s8904_s7, %s4974_s8 }
  0x18   : > { %v354_v1 = vld [vmem:[%s6171_s19 + $0x260] sm:$0xff]  ;;  %v356_v2 = vld [vmem:[%s6171_s19 + $0x270] sm:$0xff]  ;;  %v353_v3 = vld [vmem:[%s6171_s19 + $0x258] sm:$0xff] }
  0x19   : > { %372 = vmatprep.subr.mxu0 %v354_v1  ;;  %443 = vmatprep.subr.mxu1 %v356_v2  ;;  %v355_v4 = vld [vmem:[%s6171_s19 + $0x268] sm:$0xff]  ;;  %v349_v5 = vld [vmem:[%s6171_s19 + $0x238] sm:$0xff]  ;;  %v348_v7 = vld [vmem:[%s6171_s19 + $0x230] sm:$0xff] }
  0x1a   : > { %v351_v6 = vld [vmem:[%s6171_s19 + $0x248] sm:$0xff]  ;;  %373 = vmatpush1.msra.mxu0 %v353_v3  ;;  %444 = vmatpush1.msra.mxu1 %v355_v4  ;;  %v350_v8 = vld [vmem:[%s6171_s19 + $0x240] sm:$0xff]  ;;  %v344_v9 = vld [vmem:[%s6171_s19 + $0x210] sm:$0xff] }
  0x1b   : > { %374 = vmatprep.subr.mxu0 %v349_v5  ;;  %445 = vmatprep.subr.mxu1 %v351_v6  ;;  %v346_v10 = vld [vmem:[%s6171_s19 + $0x220] sm:$0xff]  ;;  %v343_v11 = vld [vmem:[%s6171_s19 + $0x208] sm:$0xff]  ;;  %v345_v12 = vld [vmem:[%s6171_s19 + $0x218] sm:$0xff] }
  0x1c   : > { %375 = vmatpush1.msra.mxu0 %v348_v7  ;;  %446 = vmatpush1.msra.mxu1 %v350_v8  ;;  %v339_v13 = vld [vmem:[%s6171_s19 + $0x1e8] sm:$0xff]  ;;  %v341_v14 = vld [vmem:[%s6171_s19 + $0x1f8] sm:$0xff]  ;;  %v338_v15 = vld [vmem:[%s6171_s19 + $0x1e0] sm:$0xff] }
  0x1d   : > { %376 = vmatprep.subr.mxu0 %v344_v9  ;;  %447 = vmatprep.subr.mxu1 %v346_v10  ;;  %v340_v16 = vld [vmem:[%s6171_s19 + $0x1f0] sm:$0xff]  ;;  %v334_v17 = vld [vmem:[%s6171_s19 + $0x1c0] sm:$0xff]  ;;  %v333_v19 = vld [vmem:[%s6171_s19 + $0x1b8] sm:$0xff] }
  0x1e   : > { %377 = vmatpush1.msra.mxu0 %v343_v11  ;;  %448 = vmatpush1.msra.mxu1 %v345_v12  ;;  %v336_v18 = vld [vmem:[%s6171_s19 + $0x1d0] sm:$0xff]  ;;  %v335_v20 = vld [vmem:[%s6171_s19 + $0x1c8] sm:$0xff]  ;;  %v329_v21 = vld [vmem:[%s6171_s19 + $0x198] sm:$0xff] }
  0x1f   : > { %378 = vmatprep.subr.mxu0 %v339_v13  ;;  %449 = vmatprep.subr.mxu1 %v341_v14  ;;  %v331_v22 = vld [vmem:[%s6171_s19 + $0x1a8] sm:$0xff]  ;;  %v328_v23 = vld [vmem:[%s6171_s19 + $0x190] sm:$0xff]  ;;  %v330_v24 = vld [vmem:[%s6171_s19 + $0x1a0] sm:$0xff]  ;;  %v6065_v14 = vmov 0.0  }
  0x20   : > { %379 = vmatpush1.msra.mxu0 %v338_v15  ;;  %450 = vmatpush1.msra.mxu1 %v340_v16  ;;  %v324_v25 = vld [vmem:[%s6171_s19 + $0x170] sm:$0xff]  ;;  %v326_v26 = vld [vmem:[%s6171_s19 + $0x180] sm:$0xff]  ;;  %v323_v27 = vld [vmem:[%s6171_s19 + $0x168] sm:$0xff] }
  0x21   : > { %380 = vmatprep.subr.mxu0 %v334_v17  ;;  %451 = vmatprep.subr.mxu1 %v336_v18  ;;  %v325_v28 = vld [vmem:[%s6171_s19 + $0x178] sm:$0xff]  ;;  %v319_v29 = vld [vmem:[%s6171_s19 + $0x148] sm:$0xff]  ;;  %v318_v31 = vld [vmem:[%s6171_s19 + $0x140] sm:$0xff] }
  0x22   : > { %381 = vmatpush1.msra.mxu0 %v333_v19  ;;  %452 = vmatpush1.msra.mxu1 %v335_v20  ;;  %v321_v30 = vld [vmem:[%s6171_s19 + $0x158] sm:$0xff]  ;;  %v320_v32 = vld [vmem:[%s6171_s19 + $0x150] sm:$0xff]  ;;  %v314_v33 = vld [vmem:[%s6171_s19 + $0x120] sm:$0xff] }
  0x23   : > { %382 = vmatprep.subr.mxu0 %v329_v21  ;;  %453 = vmatprep.subr.mxu1 %v331_v22  ;;  %v316_v34 = vld [vmem:[%s6171_s19 + $0x130] sm:$0xff]  ;;  %v313_v35 = vld [vmem:[%s6171_s19 + $0x118] sm:$0xff]  ;;  %v315_v36 = vld [vmem:[%s6171_s19 + $0x128] sm:$0xff] }
  0x24   : > { %383 = vmatpush1.msra.mxu0 %v328_v23  ;;  %454 = vmatpush1.msra.mxu1 %v330_v24  ;;  %v309_v37 = vld [vmem:[%s6171_s19 + $0xf8] sm:$0xff]  ;;  %v311_v38 = vld [vmem:[%s6171_s19 + $0x108] sm:$0xff]  ;;  %v308_v39 = vld [vmem:[%s6171_s19 + $0xf0] sm:$0xff] }
  0x25   : > { %384 = vmatprep.subr.mxu0 %v324_v25  ;;  %455 = vmatprep.subr.mxu1 %v326_v26  ;;  %v310_v40 = vld [vmem:[%s6171_s19 + $0x100] sm:$0xff]  ;;  %v304_v41 = vld [vmem:[%s6171_s19 + $0xd0] sm:$0xff]  ;;  %v303_v43 = vld [vmem:[%s6171_s19 + $0xc8] sm:$0xff] }
  0x26   : > { %385 = vmatpush1.msra.mxu0 %v323_v27  ;;  %456 = vmatpush1.msra.mxu1 %v325_v28  ;;  %v306_v42 = vld [vmem:[%s6171_s19 + $0xe0] sm:$0xff]  ;;  %v305_v44 = vld [vmem:[%s6171_s19 + $0xd8] sm:$0xff]  ;;  %v299_v45 = vld [vmem:[%s6171_s19 + $0xa8] sm:$0xff] }
  0x27   : > { %386 = vmatprep.subr.mxu0 %v319_v29  ;;  %457 = vmatprep.subr.mxu1 %v321_v30  ;;  %v301_v46 = vld [vmem:[%s6171_s19 + $0xb8] sm:$0xff]  ;;  %v298_v47 = vld [vmem:[%s6171_s19 + $0xa0] sm:$0xff]  ;;  %v300_v48 = vld [vmem:[%s6171_s19 + $0xb0] sm:$0xff] }
  0x28   : > { %387 = vmatpush1.msra.mxu0 %v318_v31  ;;  %458 = vmatpush1.msra.mxu1 %v320_v32  ;;  %v294_v49 = vld [vmem:[%s6171_s19 + $0x80] sm:$0xff]  ;;  %v296_v50 = vld [vmem:[%s6171_s19 + $0x90] sm:$0xff]  ;;  %v293_v51 = vld [vmem:[%s6171_s19 + $0x78] sm:$0xff] }
  0x29   : > { %388 = vmatprep.subr.mxu0 %v314_v33  ;;  %459 = vmatprep.subr.mxu1 %v316_v34  ;;  %v295_v52 = vld [vmem:[%s6171_s19 + $0x88] sm:$0xff]  ;;  %v289_v53 = vld [vmem:[%s6171_s19 + $0x58] sm:$0xff]  ;;  %v288_v55 = vld [vmem:[%s6171_s19 + $0x50] sm:$0xff] }
  0x2a   : > { %389 = vmatpush1.msra.mxu0 %v313_v35  ;;  %460 = vmatpush1.msra.mxu1 %v315_v36  ;;  %v291_v54 = vld [vmem:[%s6171_s19 + $0x68] sm:$0xff]  ;;  %v290_v56 = vld [vmem:[%s6171_s19 + $0x60] sm:$0xff]  ;;  %v284_v57 = vld [vmem:[%s6171_s19 + $0x30] sm:$0xff] }
  0x2b   : > { %390 = vmatprep.subr.mxu0 %v309_v37  ;;  %461 = vmatprep.subr.mxu1 %v311_v38  ;;  %v286_v58 = vld [vmem:[%s6171_s19 + $0x40] sm:$0xff]  ;;  %v283_v59 = vld [vmem:[%s6171_s19 + $0x28] sm:$0xff]  ;;  %v285_v60 = vld [vmem:[%s6171_s19 + $0x38] sm:$0xff] }
  0x2c   : > { %391 = vmatpush1.msra.mxu0 %v308_v39  ;;  %462 = vmatpush1.msra.mxu1 %v310_v40  ;;  %v279_v61 = vld [vmem:[%s6171_s19 + $0x8] sm:$0xff]  ;;  %v281_v62 = vld [vmem:[%s6171_s19 + $0x18] sm:$0xff]  ;;  %v278_v63 = vld [vmem:[%s6171_s19] sm:$0xff] }
  0x2d   : > { %392 = vmatprep.subr.mxu0 %v304_v41  ;;  %463 = vmatprep.subr.mxu1 %v306_v42  ;;  %v280_v1 = vld [vmem:[%s6171_s19 + $0x10] sm:$0xff]  ;;  %v366_v3 = vld [vmem:[%s6171_s19 + $0x2c0] sm:$0xff]  ;;  %v363_v4 = vld [vmem:[%s6171_s19 + $0x2a8] sm:$0xff] }
  0x2e   : > { %393 = vmatpush1.msra.mxu0 %v303_v43  ;;  %464 = vmatpush1.msra.mxu1 %v305_v44  ;;  %v364_v2 = vld [vmem:[%s6171_s19 + $0x2b0] sm:$0xff]  ;;  %v365_v5 = vld [vmem:[%s6171_s19 + $0x2b8] sm:$0xff]  ;;  %v359_v6 = vld [vmem:[%s6171_s19 + $0x288] sm:$0xff] }
  0x2f   : > { %394 = vmatprep.subr.mxu0 %v299_v45  ;;  %465 = vmatprep.subr.mxu1 %v301_v46  ;;  %v361_v7 = vld [vmem:[%s6171_s19 + $0x298] sm:$0xff]  ;;  %v358_v8 = vld [vmem:[%s6171_s19 + $0x280] sm:$0xff]  ;;  %v360_v9 = vld [vmem:[%s6171_s19 + $0x290] sm:$0xff] }
  0x30   : > { %395 = vmatpush1.msra.mxu0 %v298_v47  ;;  %466 = vmatpush1.msra.mxu1 %v300_v48  ;;  %v6248_v10 = vld [vmem:[%s8898_s1] sm:$0xff]  ;;  %v4201_v11 = vld [vmem:[%s6171_s19 + $0x530] sm:$0xff]  ;;  %v357_v12 = vld [vmem:[%s6171_s19 + $0x278] sm:$0xff] }
  0x31   : > { %396 = vmatprep.subr.mxu0 %v294_v49  ;;  %467 = vmatprep.subr.mxu1 %v296_v50  ;;  %v4200_v13 = vld [vmem:[%s6171_s19 + $0x528] sm:$0xff]  ;;  %v352_v16 = vld [vmem:[%s6171_s19 + $0x250] sm:$0xff]  ;;  %v4195_v17 = vld [vmem:[%s6171_s19 + $0x500] sm:$0xff] }
  0x32   : > { %397 = vmatpush1.msra.mxu0 %v293_v51  ;;  %468 = vmatpush1.msra.mxu1 %v295_v52  ;;  %v4196_v15 = vld [vmem:[%s6171_s19 + $0x508] sm:$0xff]  ;;  %v4191_v18 = vld [vmem:[%s6171_s19 + $0x4e0] sm:$0xff]  ;;  %v4190_v20 = vld [vmem:[%s6171_s19 + $0x4d8] sm:$0xff] }
  0x33   : > { %398 = vmatprep.subr.mxu0 %v289_v53  ;;  %469 = vmatprep.subr.mxu1 %v291_v54  ;;  %v347_v19 = vld [vmem:[%s6171_s19 + $0x228] sm:$0xff]  ;;  %v4186_v21 = vld [vmem:[%s6171_s19 + $0x4b8] sm:$0xff]  ;;  %v342_v22 = vld [vmem:[%s6171_s19 + $0x200] sm:$0xff] }
  0x34   : > { %399 = vmatpush1.msra.mxu0 %v288_v55  ;;  %470 = vmatpush1.msra.mxu1 %v290_v56  ;;  %v4185_v23 = vld [vmem:[%s6171_s19 + $0x4b0] sm:$0xff]  ;;  %v337_v25 = vld [vmem:[%s6171_s19 + $0x1d8] sm:$0xff]  ;;  %v4180_v26 = vld [vmem:[%s6171_s19 + $0x488] sm:$0xff] }
  0x35   : > { %400 = vmatprep.subr.mxu0 %v284_v57  ;;  %471 = vmatprep.subr.mxu1 %v286_v58  ;;  %v4181_v24 = vld [vmem:[%s6171_s19 + $0x490] sm:$0xff]  ;;  %v4176_v27 = vld [vmem:[%s6171_s19 + $0x468] sm:$0xff]  ;;  %v4175_v29 = vld [vmem:[%s6171_s19 + $0x460] sm:$0xff] }
  0x36   : > { %401 = vmatpush1.msra.mxu0 %v283_v59  ;;  %472 = vmatpush1.msra.mxu1 %v285_v60  ;;  %v332_v28 = vld [vmem:[%s6171_s19 + $0x1b0] sm:$0xff]  ;;  %v4171_v30 = vld [vmem:[%s6171_s19 + $0x440] sm:$0xff]  ;;  %v327_v31 = vld [vmem:[%s6171_s19 + $0x188] sm:$0xff] }
  0x37   : > { %402 = vmatprep.subr.mxu0 %v279_v61  ;;  %473 = vmatprep.subr.mxu1 %v281_v62  ;;  %v4170_v32 = vld [vmem:[%s6171_s19 + $0x438] sm:$0xff]  ;;  %v322_v34 = vld [vmem:[%s6171_s19 + $0x160] sm:$0xff]  ;;  %v4165_v35 = vld [vmem:[%s6171_s19 + $0x410] sm:$0xff] }
  0x38   : > { %403 = vmatpush1.msra.mxu0 %v278_v63  ;;  %474 = vmatpush1.msra.mxu1 %v280_v1  ;;  %v4166_v33 = vld [vmem:[%s6171_s19 + $0x418] sm:$0xff]  ;;  %v4161_v36 = vld [vmem:[%s6171_s19 + $0x3f0] sm:$0xff]  ;;  %v4160_v38 = vld [vmem:[%s6171_s19 + $0x3e8] sm:$0xff] }
  0x39   : > { %432 = vmatprep.subr.mxu0 %v364_v2  ;;  %503 = vmatprep.subr.mxu1 %v366_v3  ;;  %v317_v37 = vld [vmem:[%s6171_s19 + $0x138] sm:$0xff]  ;;  %v4156_v39 = vld [vmem:[%s6171_s19 + $0x3c8] sm:$0xff]  ;;  %v312_v40 = vld [vmem:[%s6171_s19 + $0x110] sm:$0xff] }
  0x3a   : > { %433 = vmatpush2.msra.mxu0 %v363_v4  ;;  %504 = vmatpush2.msra.mxu1 %v365_v5  ;;  %v4155_v41 = vld [vmem:[%s6171_s19 + $0x3c0] sm:$0xff]  ;;  %v307_v43 = vld [vmem:[%s6171_s19 + $0xe8] sm:$0xff]  ;;  %v4150_v44 = vld [vmem:[%s6171_s19 + $0x398] sm:$0xff] }
  0x3b   : > { %434 = vmatprep.subr.mxu0 %v359_v6  ;;  %505 = vmatprep.subr.mxu1 %v361_v7  ;;  %v4151_v42 = vld [vmem:[%s6171_s19 + $0x3a0] sm:$0xff]  ;;  %v4146_v45 = vld [vmem:[%s6171_s19 + $0x378] sm:$0xff]  ;;  %v4145_v47 = vld [vmem:[%s6171_s19 + $0x370] sm:$0xff] }
  0x3c   : > { %435 = vmatpush2.msra.mxu0 %v358_v8  ;;  %506 = vmatpush2.msra.mxu1 %v360_v9  ;;  %v302_v46 = vld [vmem:[%s6171_s19 + $0xc0] sm:$0xff]  ;;  %v4141_v48 = vld [vmem:[%s6171_s19 + $0x350] sm:$0xff]  ;;  %v297_v49 = vld [vmem:[%s6171_s19 + $0x98] sm:$0xff] }
  0x3d   : > { %437 = vmatmul.mubr.f32.vlgmr.msra.gmra.mxu0 %v6248_v10  ;;  %514 = vmatprep.subr.mxu0 %v6065_v14  ;;  %v4140_v50 = vld [vmem:[%s6171_s19 + $0x348] sm:$0xff]  ;;  %v292_v52 = vld [vmem:[%s6171_s19 + $0x70] sm:$0xff]  ;;  %v4135_v53 = vld [vmem:[%s6171_s19 + $0x320] sm:$0xff] }
  0x3e   : > { %675 = vmatprep.subr.mxu1 %v4201_v11  ;;  %508 = vmatmul.mubr.f32.vlgmr.msra.gmra.mxu1 %v6248_v10  ;;  %v4136_v51 = vld [vmem:[%s6171_s19 + $0x328] sm:$0xff]  ;;  %v4131_v54 = vld [vmem:[%s6171_s19 + $0x300] sm:$0xff]  ;;  %v4130_v56 = vld [vmem:[%s6171_s19 + $0x2f8] sm:$0xff] }
  0x3f   : > { %515 = vmatpush1.msra.mxu0 %v357_v12  ;;  %676 = vmatpush1.msra.mxu1 %v4200_v13  ;;  %v287_v55 = vld [vmem:[%s6171_s19 + $0x48] sm:$0xff]  ;;  %v4126_v57 = vld [vmem:[%s6171_s19 + $0x2d8] sm:$0xff]  ;;  %v282_v58 = vld [vmem:[%s6171_s19 + $0x20] sm:$0xff] }
  0x40   : > { %516 = vmatprep.subr.mxu0 %v6065_v14  ;;  %677 = vmatprep.subr.mxu1 %v4196_v15  ;;  %v4125_v59 = vld [vmem:[%s6171_s19 + $0x2d0] sm:$0xff]  ;;  %v4211_v60 = vld [vmem:[%s6171_s19 + $0x580] sm:$0xff]  ;;  %v367_v61 = vld [vmem:[%s6171_s19 + $0x2c8] sm:$0xff] }
  0x41   : > { %517 = vmatpush1.msra.mxu0 %v352_v16  ;;  %678 = vmatpush1.msra.mxu1 %v4195_v17  ;;  %v4210_v62 = vld [vmem:[%s6171_s19 + $0x578] sm:$0xff]  ;;  %v362_v1 = vld [vmem:[%s6171_s19 + $0x2a0] sm:$0xff]  ;;  %v4205_v2 = vld [vmem:[%s6171_s19 + $0x550] sm:$0xff] }
  0x42   : > { %518 = vmatprep.subr.mxu0 %v6065_v14  ;;  %679 = vmatprep.subr.mxu1 %v4191_v18  ;;  %v4206_v63 = vld [vmem:[%s6171_s19 + $0x558] sm:$0xff]  ;;  %v4203_v3 = vld [vmem:[%s6171_s19 + $0x540] sm:$0xff]  ;;  %v4204_v5 = vld [vmem:[%s6171_s19 + $0x548] sm:$0xff] }
  0x43   : > { %519 = vmatpush1.msra.mxu0 %v347_v19  ;;  %680 = vmatpush1.msra.mxu1 %v4190_v20  ;;  %v4202_v4 = vld [vmem:[%s6171_s19 + $0x538] sm:$0xff]  ;;  %v4197_v7 = vld [vmem:[%s6171_s19 + $0x510] sm:$0xff]  ;;  %v4199_v8 = vld [vmem:[%s6171_s19 + $0x520] sm:$0xff] }
  0x44   : > { %520 = vmatprep.subr.mxu0 %v6065_v14  ;;  %681 = vmatprep.subr.mxu1 %v4186_v21  ;;  %v4198_v6 = vld [vmem:[%s6171_s19 + $0x518] sm:$0xff]  ;;  %v4193_v9 = vld [vmem:[%s6171_s19 + $0x4f0] sm:$0xff]  ;;  %v4192_v11 = vld [vmem:[%s6171_s19 + $0x4e8] sm:$0xff] }
  0x45   : > { %521 = vmatpush1.msra.mxu0 %v342_v22  ;;  %682 = vmatpush1.msra.mxu1 %v4185_v23  ;;  %v4194_v12 = vld [vmem:[%s6171_s19 + $0x4f8] sm:$0xff]  ;;  %v4188_v13 = vld [vmem:[%s6171_s19 + $0x4c8] sm:$0xff]  ;;  %v4187_v15 = vld [vmem:[%s6171_s19 + $0x4c0] sm:$0xff] }
  0x46   : > { %522 = vmatprep.subr.mxu0 %v6065_v14  ;;  %683 = vmatprep.subr.mxu1 %v4181_v24  ;;  %v4189_v16 = vld [vmem:[%s6171_s19 + $0x4d0] sm:$0xff]  ;;  %v4183_v17 = vld [vmem:[%s6171_s19 + $0x4a0] sm:$0xff]  ;;  %v4182_v18 = vld [vmem:[%s6171_s19 + $0x498] sm:$0xff] }
  0x47   : > { %523 = vmatpush1.msra.mxu0 %v337_v25  ;;  %684 = vmatpush1.msra.mxu1 %v4180_v26  ;;  %v4184_v19 = vld [vmem:[%s6171_s19 + $0x4a8] sm:$0xff]  ;;  %v4178_v20 = vld [vmem:[%s6171_s19 + $0x478] sm:$0xff]  ;;  %v4177_v21 = vld [vmem:[%s6171_s19 + $0x470] sm:$0xff] }
  0x48   : > { %524 = vmatprep.subr.mxu0 %v6065_v14  ;;  %685 = vmatprep.subr.mxu1 %v4176_v27  ;;  %v4179_v22 = vld [vmem:[%s6171_s19 + $0x480] sm:$0xff]  ;;  %v4173_v23 = vld [vmem:[%s6171_s19 + $0x450] sm:$0xff]  ;;  %v4172_v24 = vld [vmem:[%s6171_s19 + $0x448] sm:$0xff] }
  0x49   : > { %525 = vmatpush1.msra.mxu0 %v332_v28  ;;  %686 = vmatpush1.msra.mxu1 %v4175_v29  ;;  %v4174_v25 = vld [vmem:[%s6171_s19 + $0x458] sm:$0xff]  ;;  %v4168_v26 = vld [vmem:[%s6171_s19 + $0x428] sm:$0xff]  ;;  %v4167_v27 = vld [vmem:[%s6171_s19 + $0x420] sm:$0xff] }
  0x4a   : > { %526 = vmatprep.subr.mxu0 %v6065_v14  ;;  %687 = vmatprep.subr.mxu1 %v4171_v30  ;;  %v4169_v28 = vld [vmem:[%s6171_s19 + $0x430] sm:$0xff]  ;;  %v4163_v29 = vld [vmem:[%s6171_s19 + $0x400] sm:$0xff]  ;;  %v4162_v30 = vld [vmem:[%s6171_s19 + $0x3f8] sm:$0xff] }
  0x4b   : > { %527 = vmatpush1.msra.mxu0 %v327_v31  ;;  %688 = vmatpush1.msra.mxu1 %v4170_v32  ;;  %v4164_v31 = vld [vmem:[%s6171_s19 + $0x408] sm:$0xff]  ;;  %v4158_v32 = vld [vmem:[%s6171_s19 + $0x3d8] sm:$0xff] }
  0x4c   : > { %528 = vmatprep.subr.mxu0 %v6065_v14  ;;  %689 = vmatprep.subr.mxu1 %v4166_v33  ;;  %v4157_v33 = vld [vmem:[%s6171_s19 + $0x3d0] sm:$0xff] }
  0x4d   : > { %529 = vmatpush1.msra.mxu0 %v322_v34  ;;  %690 = vmatpush1.msra.mxu1 %v4165_v35  ;;  %v4159_v34 = vld [vmem:[%s6171_s19 + $0x3e0] sm:$0xff]  ;;  %v4153_v35 = vld [vmem:[%s6171_s19 + $0x3b0] sm:$0xff] }
  0x4e   : > { %530 = vmatprep.subr.mxu0 %v6065_v14  ;;  %691 = vmatprep.subr.mxu1 %v4161_v36  ;;  %v4152_v36 = vld [vmem:[%s6171_s19 + $0x3a8] sm:$0xff] }
  0x4f   : > { %531 = vmatpush1.msra.mxu0 %v317_v37  ;;  %692 = vmatpush1.msra.mxu1 %v4160_v38  ;;  %v4154_v37 = vld [vmem:[%s6171_s19 + $0x3b8] sm:$0xff]  ;;  %v4148_v38 = vld [vmem:[%s6171_s19 + $0x388] sm:$0xff] }
  0x50   : > { %532 = vmatprep.subr.mxu0 %v6065_v14  ;;  %693 = vmatprep.subr.mxu1 %v4156_v39  ;;  %v4147_v39 = vld [vmem:[%s6171_s19 + $0x380] sm:$0xff] }
  0x51   : > { %533 = vmatpush1.msra.mxu0 %v312_v40  ;;  %694 = vmatpush1.msra.mxu1 %v4155_v41  ;;  %v4149_v40 = vld [vmem:[%s6171_s19 + $0x390] sm:$0xff]  ;;  %v4143_v41 = vld [vmem:[%s6171_s19 + $0x360] sm:$0xff] }
  0x52   : > { %534 = vmatprep.subr.mxu0 %v6065_v14  ;;  %695 = vmatprep.subr.mxu1 %v4151_v42  ;;  %v4142_v42 = vld [vmem:[%s6171_s19 + $0x358] sm:$0xff] }
  0x53   : > { %535 = vmatpush1.msra.mxu0 %v307_v43  ;;  %696 = vmatpush1.msra.mxu1 %v4150_v44  ;;  %v4144_v43 = vld [vmem:[%s6171_s19 + $0x368] sm:$0xff]  ;;  %v4138_v44 = vld [vmem:[%s6171_s19 + $0x338] sm:$0xff] }
  0x54   : > { %536 = vmatprep.subr.mxu0 %v6065_v14  ;;  %697 = vmatprep.subr.mxu1 %v4146_v45  ;;  %v4137_v45 = vld [vmem:[%s6171_s19 + $0x330] sm:$0xff] }
  0x55   : > { %537 = vmatpush1.msra.mxu0 %v302_v46  ;;  %698 = vmatpush1.msra.mxu1 %v4145_v47  ;;  %v4139_v46 = vld [vmem:[%s6171_s19 + $0x340] sm:$0xff]  ;;  %v4133_v47 = vld [vmem:[%s6171_s19 + $0x310] sm:$0xff] }
  0x56   : > { %538 = vmatprep.subr.mxu0 %v6065_v14  ;;  %699 = vmatprep.subr.mxu1 %v4141_v48  ;;  %v4132_v48 = vld [vmem:[%s6171_s19 + $0x308] sm:$0xff] }
  0x57   : > { %539 = vmatpush1.msra.mxu0 %v297_v49  ;;  %700 = vmatpush1.msra.mxu1 %v4140_v50  ;;  %v4134_v49 = vld [vmem:[%s6171_s19 + $0x318] sm:$0xff]  ;;  %v4128_v50 = vld [vmem:[%s6171_s19 + $0x2e8] sm:$0xff] }
  0x58   : > { %540 = vmatprep.subr.mxu0 %v6065_v14  ;;  %701 = vmatprep.subr.mxu1 %v4136_v51  ;;  %v4127_v51 = vld [vmem:[%s6171_s19 + $0x2e0] sm:$0xff] }
  0x59   : > { %541 = vmatpush1.msra.mxu0 %v292_v52  ;;  %702 = vmatpush1.msra.mxu1 %v4135_v53  ;;  %v4129_v52 = vld [vmem:[%s6171_s19 + $0x2f0] sm:$0xff] }
  0x5a   : > { %542 = vmatprep.subr.mxu0 %v6065_v14  ;;  %703 = vmatprep.subr.mxu1 %v4131_v54  ;;  %v4213_v53 = vld [vmem:[%s6171_s19 + $0x590] sm:$0xff]  ;;  %v4212_v54 = vld [vmem:[%s6171_s19 + $0x588] sm:$0xff] }
  0x5b   : > { %543 = vmatpush1.msra.mxu0 %v287_v55  ;;  %704 = vmatpush1.msra.mxu1 %v4130_v56  ;;  %v4214_v55 = vld [vmem:[%s6171_s19 + $0x598] sm:$0xff]  ;;  %v4208_v56 = vld [vmem:[%s6171_s19 + $0x568] sm:$0xff] }
  0x5c   : > { %544 = vmatprep.subr.mxu0 %v6065_v14  ;;  %705 = vmatprep.subr.mxu1 %v4126_v57  ;;  %v4207_v57 = vld [vmem:[%s6171_s19 + $0x560] sm:$0xff] }
  0x5d   : > { %545 = vmatpush1.msra.mxu0 %v282_v58  ;;  %706 = vmatpush1.msra.mxu1 %v4125_v59  ;;  %v4209_v58 = vld [vmem:[%s6171_s19 + $0x570] sm:$0xff]  ;;  %v4294_v59 = vld [vmem:[%s6171_s19 + $0x800] sm:$0xff] }
  0x5e   : > { %574 = vmatprep.subr.mxu0 %v6065_v14  ;;  %735 = vmatprep.subr.mxu1 %v4211_v60  ;;  %v4296_v60 = vld [vmem:[%s6171_s19 + $0x810] sm:$0xff] }
  0x5f   : > { %575 = vmatpush2.msra.mxu0 %v367_v61  ;;  %736 = vmatpush2.msra.mxu1 %v4210_v62  ;;  %v4293_v61 = vld [vmem:[%s6171_s19 + $0x7f8] sm:$0xff]  ;;  %v4295_v62 = vld [vmem:[%s6171_s19 + $0x808] sm:$0xff] }
  0x60   : > { %576 = vmatprep.subr.mxu0 %v6065_v14  ;;  %737 = vmatprep.subr.mxu1 %v4206_v63  ;;  %v4289_v63 = vld [vmem:[%s6171_s19 + $0x7d8] sm:$0xff] }
  0x61   : > { %577 = vmatpush2.msra.mxu0 %v362_v1  ;;  %4124 = vmatprep.mubr.msk.f32.mxu0 %vm368_vm0, %v6161_v0  ;;  %v4291_v1 = vld [vmem:[%s6171_s19 + $0x7e8] sm:$0xff] }
  0x62   : > { %738 = vmatpush2.msra.mxu1 %v4205_v2  ;;  %4215 = vmatprep.mubr.msk.f32.mxu1 %vm368_vm0, %v6161_v0  ;;  %v4288_v2 = vld [vmem:[%s6171_s19 + $0x7d0] sm:$0xff] }
  0x63   : > { %579 = vmatmul.mubr.f32.vlgmr.msra.gmra.mxu0 %v6248_v10  ;;  %740 = vmatmul.mubr.f32.vlgmr.msra.gmra.mxu1 %v6248_v10 }
  0x64   : > { %746 = vmatprep.subr.mxu0 %v4203_v3  ;;  %817 = vmatprep.subr.mxu1 %v6065_v14  ;;  %v4290_v3 = vld [vmem:[%s6171_s19 + $0x7e0] sm:$0xff] }
  0x65   : > { %747 = vmatpush1.msra.mxu0 %v4202_v4  ;;  %818 = vmatpush1.msra.mxu1 %v4204_v5  ;;  %v4286_v4 = vld [vmem:[%s6171_s19 + $0x7c0] sm:$0xff]  ;;  %v4283_v5 = vld [vmem:[%s6171_s19 + $0x7a8] sm:$0xff] }
  0x66   : > { %748 = vmatprep.subr.mxu0 %v4198_v6  ;;  %819 = vmatprep.subr.mxu1 %v6065_v14  ;;  %v4285_v6 = vld [vmem:[%s6171_s19 + $0x7b8] sm:$0xff] }
  0x67   : > { %749 = vmatpush1.msra.mxu0 %v4197_v7  ;;  %820 = vmatpush1.msra.mxu1 %v4199_v8  ;;  %v4279_v7 = vld [vmem:[%s6171_s19 + $0x788] sm:$0xff]  ;;  %v4281_v8 = vld [vmem:[%s6171_s19 + $0x798] sm:$0xff] }
  0x68   : > { %750 = vmatprep.subr.mxu0 %v4193_v9  ;;  %821 = vmatprep.subr.mxu1 %v6065_v14  ;;  %v4278_v9 = vld [vmem:[%s6171_s19 + $0x780] sm:$0xff] }
  0x69   : > { %751 = vmatpush1.msra.mxu0 %v4192_v11  ;;  %822 = vmatpush1.msra.mxu1 %v4194_v12  ;;  %v4280_v11 = vld [vmem:[%s6171_s19 + $0x790] sm:$0xff]  ;;  %v4274_v12 = vld [vmem:[%s6171_s19 + $0x760] sm:$0xff] }
  0x6a   : > { %752 = vmatprep.subr.mxu0 %v4188_v13  ;;  %823 = vmatprep.subr.mxu1 %v6065_v14  ;;  %v4276_v13 = vld [vmem:[%s6171_s19 + $0x770] sm:$0xff] }
  0x6b   : > { %753 = vmatpush1.msra.mxu0 %v4187_v15  ;;  %824 = vmatpush1.msra.mxu1 %v4189_v16  ;;  %v4273_v15 = vld [vmem:[%s6171_s19 + $0x758] sm:$0xff]  ;;  %v4275_v16 = vld [vmem:[%s6171_s19 + $0x768] sm:$0xff] }
  0x6c   : > { %754 = vmatprep.subr.mxu0 %v4183_v17  ;;  %825 = vmatprep.subr.mxu1 %v6065_v14  ;;  %v4269_v17 = vld [vmem:[%s6171_s19 + $0x738] sm:$0xff] }
  0x6d   : > { %755 = vmatpush1.msra.mxu0 %v4182_v18  ;;  %826 = vmatpush1.msra.mxu1 %v4184_v19  ;;  %v4271_v18 = vld [vmem:[%s6171_s19 + $0x748] sm:$0xff]  ;;  %v4268_v19 = vld [vmem:[%s6171_s19 + $0x730] sm:$0xff] }
  0x6e   : > { %756 = vmatprep.subr.mxu0 %v4178_v20  ;;  %827 = vmatprep.subr.mxu1 %v6065_v14  ;;  %v4270_v20 = vld [vmem:[%s6171_s19 + $0x740] sm:$0xff] }
  0x6f   : > { %757 = vmatpush1.msra.mxu0 %v4177_v21  ;;  %828 = vmatpush1.msra.mxu1 %v4179_v22  ;;  %v4264_v21 = vld [vmem:[%s6171_s19 + $0x710] sm:$0xff]  ;;  %v4266_v22 = vld [vmem:[%s6171_s19 + $0x720] sm:$0xff] }
  0x70   : > { %758 = vmatprep.subr.mxu0 %v4173_v23  ;;  %829 = vmatprep.subr.mxu1 %v6065_v14  ;;  %v4263_v23 = vld [vmem:[%s6171_s19 + $0x708] sm:$0xff] }
  0x71   : > { %759 = vmatpush1.msra.mxu0 %v4172_v24  ;;  %830 = vmatpush1.msra.mxu1 %v4174_v25  ;;  %v4265_v24 = vld [vmem:[%s6171_s19 + $0x718] sm:$0xff]  ;;  %v4259_v25 = vld [vmem:[%s6171_s19 + $0x6e8] sm:$0xff] }
  0x72   : > { %760 = vmatprep.subr.mxu0 %v4168_v26  ;;  %831 = vmatprep.subr.mxu1 %v6065_v14  ;;  %v4261_v26 = vld [vmem:[%s6171_s19 + $0x6f8] sm:$0xff] }
  0x73   : > { %761 = vmatpush1.msra.mxu0 %v4167_v27  ;;  %832 = vmatpush1.msra.mxu1 %v4169_v28  ;;  %v4258_v27 = vld [vmem:[%s6171_s19 + $0x6e0] sm:$0xff]  ;;  %v4260_v28 = vld [vmem:[%s6171_s19 + $0x6f0] sm:$0xff] }
  0x74   : > { %762 = vmatprep.subr.mxu0 %v4163_v29  ;;  %833 = vmatprep.subr.mxu1 %v6065_v14  ;;  %v4254_v29 = vld [vmem:[%s6171_s19 + $0x6c0] sm:$0xff] }
  0x75   : > { %763 = vmatpush1.msra.mxu0 %v4162_v30  ;;  %834 = vmatpush1.msra.mxu1 %v4164_v31  ;;  %v4256_v30 = vld [vmem:[%s6171_s19 + $0x6d0] sm:$0xff]  ;;  %v4253_v31 = vld [vmem:[%s6171_s19 + $0x6b8] sm:$0xff] }
  0x76   : > { %764 = vmatprep.subr.mxu0 %v4158_v32  ;;  %835 = vmatprep.subr.mxu1 %v6065_v14  ;;  %v4255_v32 = vld [vmem:[%s6171_s19 + $0x6c8] sm:$0xff] }
  0x77   : > { %765 = vmatpush1.msra.mxu0 %v4157_v33  ;;  %836 = vmatpush1.msra.mxu1 %v4159_v34  ;;  %v4249_v33 = vld [vmem:[%s6171_s19 + $0x698] sm:$0xff]  ;;  %v4251_v34 = vld [vmem:[%s6171_s19 + $0x6a8] sm:$0xff] }
  0x78   : > { %766 = vmatprep.subr.mxu0 %v4153_v35  ;;  %837 = vmatprep.subr.mxu1 %v6065_v14  ;;  %v4248_v35 = vld [vmem:[%s6171_s19 + $0x690] sm:$0xff] }
  0x79   : > { %767 = vmatpush1.msra.mxu0 %v4152_v36  ;;  %838 = vmatpush1.msra.mxu1 %v4154_v37  ;;  %v4250_v36 = vld [vmem:[%s6171_s19 + $0x6a0] sm:$0xff]  ;;  %v4244_v37 = vld [vmem:[%s6171_s19 + $0x670] sm:$0xff] }
  0x7a   : > { %768 = vmatprep.subr.mxu0 %v4148_v38  ;;  %839 = vmatprep.subr.mxu1 %v6065_v14  ;;  %v4246_v38 = vld [vmem:[%s6171_s19 + $0x680] sm:$0xff] }
  0x7b   : > { %769 = vmatpush1.msra.mxu0 %v4147_v39  ;;  %840 = vmatpush1.msra.mxu1 %v4149_v40  ;;  %v4243_v39 = vld [vmem:[%s6171_s19 + $0x668] sm:$0xff]  ;;  %v4245_v40 = vld [vmem:[%s6171_s19 + $0x678] sm:$0xff] }
  0x7c   : > { %770 = vmatprep.subr.mxu0 %v4143_v41  ;;  %841 = vmatprep.subr.mxu1 %v6065_v14  ;;  %v4239_v41 = vld [vmem:[%s6171_s19 + $0x648] sm:$0xff] }
  0x7d   : > { %771 = vmatpush1.msra.mxu0 %v4142_v42  ;;  %842 = vmatpush1.msra.mxu1 %v4144_v43  ;;  %v4241_v42 = vld [vmem:[%s6171_s19 + $0x658] sm:$0xff]  ;;  %v4238_v43 = vld [vmem:[%s6171_s19 + $0x640] sm:$0xff] }
  0x7e   : > { %772 = vmatprep.subr.mxu0 %v4138_v44  ;;  %843 = vmatprep.subr.mxu1 %v6065_v14  ;;  %v4240_v44 = vld [vmem:[%s6171_s19 + $0x650] sm:$0xff] }
  0x7f   : > { %773 = vmatpush1.msra.mxu0 %v4137_v45  ;;  %844 = vmatpush1.msra.mxu1 %v4139_v46  ;;  %v4234_v45 = vld [vmem:[%s6171_s19 + $0x620] sm:$0xff]  ;;  %v4236_v46 = vld [vmem:[%s6171_s19 + $0x630] sm:$0xff] }
  0x80   : > { %774 = vmatprep.subr.mxu0 %v4133_v47  ;;  %845 = vmatprep.subr.mxu1 %v6065_v14  ;;  %v4233_v47 = vld [vmem:[%s6171_s19 + $0x618] sm:$0xff] }
  0x81   : > { %775 = vmatpush1.msra.mxu0 %v4132_v48  ;;  %846 = vmatpush1.msra.mxu1 %v4134_v49  ;;  %v4235_v48 = vld [vmem:[%s6171_s19 + $0x628] sm:$0xff]  ;;  %v4229_v49 = vld [vmem:[%s6171_s19 + $0x5f8] sm:$0xff] }
  0x82   : > { %776 = vmatprep.subr.mxu0 %v4128_v50  ;;  %847 = vmatprep.subr.mxu1 %v6065_v14  ;;  %v4231_v50 = vld [vmem:[%s6171_s19 + $0x608] sm:$0xff] }
  0x83   : > { %777 = vmatpush1.msra.mxu0 %v4127_v51  ;;  %848 = vmatpush1.msra.mxu1 %v4129_v52  ;;  %v4228_v51 = vld [vmem:[%s6171_s19 + $0x5f0] sm:$0xff]  ;;  %v4230_v52 = vld [vmem:[%s6171_s19 + $0x600] sm:$0xff] }
  0x84   : > { %806 = vmatprep.subr.mxu0 %v4213_v53  ;;  %877 = vmatprep.subr.mxu1 %v6065_v14  ;;  %v4224_v53 = vld [vmem:[%s6171_s19 + $0x5d0] sm:$0xff] }
  0x85   : > { %807 = vmatpush2.msra.mxu0 %v4212_v54  ;;  %878 = vmatpush2.msra.mxu1 %v4214_v55  ;;  %v4226_v54 = vld [vmem:[%s6171_s19 + $0x5e0] sm:$0xff]  ;;  %v4223_v55 = vld [vmem:[%s6171_s19 + $0x5c8] sm:$0xff] }
  0x86   : > { %808 = vmatprep.subr.mxu0 %v4208_v56  ;;  %879 = vmatprep.subr.mxu1 %v6065_v14  ;;  %v4225_v56 = vld [vmem:[%s6171_s19 + $0x5d8] sm:$0xff] }
  0x87   : > { %809 = vmatpush2.msra.mxu0 %v4207_v57  ;;  %4216 = vmatprep.mubr.msk.f32.mxu0 %vm368_vm0, %v6161_v0  ;;  %v4219_v57 = vld [vmem:[%s6171_s19 + $0x5a8] sm:$0xff] }
  0x88   : > { %880 = vmatpush2.msra.mxu1 %v4209_v58  ;;  %4217 = vmatprep.mubr.msk.f32.mxu1 %vm368_vm0, %v6161_v0  ;;  %v4284_v0 = vld [vmem:[%s6171_s19 + $0x7b0] sm:$0xff]  ;;  %v4221_v58 = vld [vmem:[%s6171_s19 + $0x5b8] sm:$0xff] }
  0x89   : > { %811 = vmatmul.mubr.f32.vlgmr.msra.gmra.mxu0 %v6248_v10  ;;  %882 = vmatmul.mubr.f32.vlgmr.msra.gmra.mxu1 %v6248_v10 }
  0x8a   : > { %983 = vmatprep.subr.mxu0 %v4294_v59  ;;  %1054 = vmatprep.subr.mxu1 %v4296_v60  ;;  %v4218_v59 = vld [vmem:[%s6171_s19 + $0x5a0] sm:$0xff]  ;;  %v4220_v60 = vld [vmem:[%s6171_s19 + $0x5b0] sm:$0xff] }
  0x8b   : > { %984 = vmatpush1.msra.mxu0 %v4293_v61  ;;  %1055 = vmatpush1.msra.mxu1 %v4295_v62  ;;  %v4304_v61 = vld [vmem:[%s6171_s19 + $0x850] sm:$0xff]  ;;  %v4306_v62 = vld [vmem:[%s6171_s19 + $0x860] sm:$0xff] }
  0x8c   : > { %985 = vmatprep.subr.mxu0 %v4289_v63  ;;  %1056 = vmatprep.subr.mxu1 %v4291_v1  ;;  %v4303_v63 = vld [vmem:[%s6171_s19 + $0x848] sm:$0xff]  ;;  %v4305_v1 = vld [vmem:[%s6171_s19 + $0x858] sm:$0xff] }
  0x8d   : > { %986 = vmatpush1.msra.mxu0 %v4288_v2  ;;  %1057 = vmatpush1.msra.mxu1 %v4290_v3  ;;  %v4299_v2 = vld [vmem:[%s6171_s19 + $0x828] sm:$0xff]  ;;  %v4301_v3 = vld [vmem:[%s6171_s19 + $0x838] sm:$0xff] }
  0x8e   : > { %987 = vmatprep.subr.mxu0 %v4284_v0  ;;  %1058 = vmatprep.subr.mxu1 %v4286_v4  ;;  %v4298_v0 = vld [vmem:[%s6171_s19 + $0x820] sm:$0xff]  ;;  %v4300_v4 = vld [vmem:[%s6171_s19 + $0x830] sm:$0xff] }
  0x8f   : > { %988 = vmatpush1.msra.mxu0 %v4283_v5  ;;  %1059 = vmatpush1.msra.mxu1 %v4285_v6  ;;  %v6483_v5 = vld [vmem:[%s8898_s1 + $0x8] sm:$0xff]  ;;  %v4387_v6 = vld [vmem:[%s6171_s19 + $0xad0] sm:$0xff] }
  0x90   : > { %989 = vmatprep.subr.mxu0 %v4279_v7  ;;  %1060 = vmatprep.subr.mxu1 %v4281_v8  ;;  %v4297_v7 = vld [vmem:[%s6171_s19 + $0x818] sm:$0xff]  ;;  %v4386_v8 = vld [vmem:[%s6171_s19 + $0xac8] sm:$0xff] }
  0x91   : > { %990 = vmatpush1.msra.mxu0 %v4278_v9  ;;  %1061 = vmatpush1.msra.mxu1 %v4280_v11  ;;  %v4382_v9 = vld [vmem:[%s6171_s19 + $0xaa8] sm:$0xff]  ;;  %v4292_v11 = vld [vmem:[%s6171_s19 + $0x7f0] sm:$0xff] }
  0x92   : > { %991 = vmatprep.subr.mxu0 %v4274_v12  ;;  %1062 = vmatprep.subr.mxu1 %v4276_v13  ;;  %v4381_v12 = vld [vmem:[%s6171_s19 + $0xaa0] sm:$0xff] }
  0x93   : > { %992 = vmatpush1.msra.mxu0 %v4273_v15  ;;  %1063 = vmatpush1.msra.mxu1 %v4275_v16  ;;  %v4377_v13 = vld [vmem:[%s6171_s19 + $0xa80] sm:$0xff]  ;;  %v4287_v15 = vld [vmem:[%s6171_s19 + $0x7c8] sm:$0xff]  ;;  %v4376_v16 = vld [vmem:[%s6171_s19 + $0xa78] sm:$0xff] }
  0x94   : > { %993 = vmatprep.subr.mxu0 %v4269_v17  ;;  %1064 = vmatprep.subr.mxu1 %v4271_v18  ;;  %v4282_v17 = vld [vmem:[%s6171_s19 + $0x7a0] sm:$0xff]  ;;  %v4371_v18 = vld [vmem:[%s6171_s19 + $0xa50] sm:$0xff] }
  0x95   : > { %994 = vmatpush1.msra.mxu0 %v4268_v19  ;;  %1065 = vmatpush1.msra.mxu1 %v4270_v20  ;;  %v4367_v19 = vld [vmem:[%s6171_s19 + $0xa30] sm:$0xff]  ;;  %v4277_v20 = vld [vmem:[%s6171_s19 + $0x778] sm:$0xff] }
  0x96   : > { %995 = vmatprep.subr.mxu0 %v4264_v21  ;;  %1066 = vmatprep.subr.mxu1 %v4266_v22  ;;  %v4366_v21 = vld [vmem:[%s6171_s19 + $0xa28] sm:$0xff] }
  0x97   : > { %996 = vmatpush1.msra.mxu0 %v4263_v23  ;;  %1067 = vmatpush1.msra.mxu1 %v4265_v24  ;;  %v4362_v22 = vld [vmem:[%s6171_s19 + $0xa08] sm:$0xff]  ;;  %v4272_v23 = vld [vmem:[%s6171_s19 + $0x750] sm:$0xff]  ;;  %v4361_v24 = vld [vmem:[%s6171_s19 + $0xa00] sm:$0xff] }
  0x98   : > { %997 = vmatprep.subr.mxu0 %v4259_v25  ;;  %1068 = vmatprep.subr.mxu1 %v4261_v26  ;;  %v4357_v25 = vld [vmem:[%s6171_s19 + $0x9e0] sm:$0xff]  ;;  %v4267_v26 = vld [vmem:[%s6171_s19 + $0x728] sm:$0xff] }
  0x99   : > { %998 = vmatpush1.msra.mxu0 %v4258_v27  ;;  %1069 = vmatpush1.msra.mxu1 %v4260_v28  ;;  %v4356_v27 = vld [vmem:[%s6171_s19 + $0x9d8] sm:$0xff] }
  0x9a   : > { %999 = vmatprep.subr.mxu0 %v4254_v29  ;;  %1070 = vmatprep.subr.mxu1 %v4256_v30  ;;  %v4352_v28 = vld [vmem:[%s6171_s19 + $0x9b8] sm:$0xff]  ;;  %v4262_v29 = vld [vmem:[%s6171_s19 + $0x700] sm:$0xff]  ;;  %v4351_v30 = vld [vmem:[%s6171_s19 + $0x9b0] sm:$0xff] }
  0x9b   : > { %1000 = vmatpush1.msra.mxu0 %v4253_v31  ;;  %1071 = vmatpush1.msra.mxu1 %v4255_v32  ;;  %v4347_v31 = vld [vmem:[%s6171_s19 + $0x990] sm:$0xff]  ;;  %v4257_v32 = vld [vmem:[%s6171_s19 + $0x6d8] sm:$0xff] }
  0x9c   : > { %1001 = vmatprep.subr.mxu0 %v4249_v33  ;;  %1072 = vmatprep.subr.mxu1 %v4251_v34  ;;  %v4346_v33 = vld [vmem:[%s6171_s19 + $0x988] sm:$0xff] }
  0x9d   : > { %1002 = vmatpush1.msra.mxu0 %v4248_v35  ;;  %1073 = vmatpush1.msra.mxu1 %v4250_v36  ;;  %v4342_v34 = vld [vmem:[%s6171_s19 + $0x968] sm:$0xff]  ;;  %v4252_v35 = vld [vmem:[%s6171_s19 + $0x6b0] sm:$0xff]  ;;  %v4341_v36 = vld [vmem:[%s6171_s19 + $0x960] sm:$0xff] }
  0x9e   : > { %1003 = vmatprep.subr.mxu0 %v4244_v37  ;;  %1074 = vmatprep.subr.mxu1 %v4246_v38  ;;  %v4337_v37 = vld [vmem:[%s6171_s19 + $0x940] sm:$0xff]  ;;  %v4247_v38 = vld [vmem:[%s6171_s19 + $0x688] sm:$0xff] }
  0x9f   : > { %1004 = vmatpush1.msra.mxu0 %v4243_v39  ;;  %1075 = vmatpush1.msra.mxu1 %v4245_v40  ;;  %v4336_v39 = vld [vmem:[%s6171_s19 + $0x938] sm:$0xff] }
  0xa0   : > { %1005 = vmatprep.subr.mxu0 %v4239_v41  ;;  %1076 = vmatprep.subr.mxu1 %v4241_v42  ;;  %v4332_v40 = vld [vmem:[%s6171_s19 + $0x918] sm:$0xff]  ;;  %v4242_v41 = vld [vmem:[%s6171_s19 + $0x660] sm:$0xff]  ;;  %v4331_v42 = vld [vmem:[%s6171_s19 + $0x910] sm:$0xff] }
  0xa1   : > { %1006 = vmatpush1.msra.mxu0 %v4238_v43  ;;  %1077 = vmatpush1.msra.mxu1 %v4240_v44  ;;  %v4327_v43 = vld [vmem:[%s6171_s19 + $0x8f0] sm:$0xff]  ;;  %v4237_v44 = vld [vmem:[%s6171_s19 + $0x638] sm:$0xff] }
  0xa2   : > { %1007 = vmatprep.subr.mxu0 %v4234_v45  ;;  %1078 = vmatprep.subr.mxu1 %v4236_v46  ;;  %v4326_v45 = vld [vmem:[%s6171_s19 + $0x8e8] sm:$0xff] }
  0xa3   : > { %1008 = vmatpush1.msra.mxu0 %v4233_v47  ;;  %1079 = vmatpush1.msra.mxu1 %v4235_v48  ;;  %v4322_v46 = vld [vmem:[%s6171_s19 + $0x8c8] sm:$0xff]  ;;  %v4232_v47 = vld [vmem:[%s6171_s19 + $0x610] sm:$0xff]  ;;  %v4321_v48 = vld [vmem:[%s6171_s19 + $0x8c0] sm:$0xff] }
  0xa4   : > { %1009 = vmatprep.subr.mxu0 %v4229_v49  ;;  %1080 = vmatprep.subr.mxu1 %v4231_v50  ;;  %v4317_v49 = vld [vmem:[%s6171_s19 + $0x8a0] sm:$0xff]  ;;  %v4227_v50 = vld [vmem:[%s6171_s19 + $0x5e8] sm:$0xff] }
  0xa5   : > { %1010 = vmatpush1.msra.mxu0 %v4228_v51  ;;  %1081 = vmatpush1.msra.mxu1 %v4230_v52  ;;  %v4316_v51 = vld [vmem:[%s6171_s19 + $0x898] sm:$0xff] }
  0xa6   : > { %1011 = vmatprep.subr.mxu0 %v4224_v53  ;;  %1082 = vmatprep.subr.mxu1 %v4226_v54  ;;  %v4312_v52 = vld [vmem:[%s6171_s19 + $0x878] sm:$0xff]  ;;  %v4222_v53 = vld [vmem:[%s6171_s19 + $0x5c0] sm:$0xff]  ;;  %v4311_v54 = vld [vmem:[%s6171_s19 + $0x870] sm:$0xff] }
  0xa7   : > { %1012 = vmatpush1.msra.mxu0 %v4223_v55  ;;  %1083 = vmatpush1.msra.mxu1 %v4225_v56  ;;  %v4397_v55 = vld [vmem:[%s6171_s19 + $0xb20] sm:$0xff]  ;;  %v4307_v56 = vld [vmem:[%s6171_s19 + $0x868] sm:$0xff] }
  0xa8   : > { %1013 = vmatprep.subr.mxu0 %v4219_v57  ;;  %1084 = vmatprep.subr.mxu1 %v4221_v58  ;;  %v4396_v57 = vld [vmem:[%s6171_s19 + $0xb18] sm:$0xff] }
  0xa9   : > { %1014 = vmatpush1.msra.mxu0 %v4218_v59  ;;  %1085 = vmatpush1.msra.mxu1 %v4220_v60  ;;  %v4392_v58 = vld [vmem:[%s6171_s19 + $0xaf8] sm:$0xff]  ;;  %v4302_v59 = vld [vmem:[%s6171_s19 + $0x840] sm:$0xff]  ;;  %v4391_v60 = vld [vmem:[%s6171_s19 + $0xaf0] sm:$0xff] }
  0xaa   : > { %1043 = vmatprep.subr.mxu0 %v4304_v61  ;;  %1114 = vmatprep.subr.mxu1 %v4306_v62  ;;  %v4389_v61 = vld [vmem:[%s6171_s19 + $0xae0] sm:$0xff]  ;;  %v4388_v62 = vld [vmem:[%s6171_s19 + $0xad8] sm:$0xff] }
  0xab   : > { %1044 = vmatpush2.msra.mxu0 %v4303_v63  ;;  %1115 = vmatpush2.msra.mxu1 %v4305_v1  ;;  %v4390_v63 = vld [vmem:[%s6171_s19 + $0xae8] sm:$0xff]  ;;  %v6573_v1 = vld [vmem:[%s8898_s1] sm:$0xff] }
  0xac   : > { %1045 = vmatprep.subr.mxu0 %v4299_v2  ;;  %1116 = vmatprep.subr.mxu1 %v4301_v3  ;;  %v4384_v2 = vld [vmem:[%s6171_s19 + $0xab8] sm:$0xff]  ;;  %v4383_v3 = vld [vmem:[%s6171_s19 + $0xab0] sm:$0xff] }
  0xad   : > { %1046 = vmatpush2.msra.mxu0 %v4298_v0  ;;  %4308 = vmatprep.mubr.msk.f32.mxu0 %vm368_vm0, %v6483_v5  ;;  %v4385_v0 = vld [vmem:[%s6171_s19 + $0xac0] sm:$0xff] }
  0xae   : > { %1117 = vmatpush2.msra.mxu1 %v4300_v4  ;;  %4309 = vmatprep.mubr.msk.f32.mxu1 %vm368_vm0, %v6483_v5  ;;  %v4379_v4 = vld [vmem:[%s6171_s19 + $0xa90] sm:$0xff] }
  0xaf   : > { %1048 = vmatmul.mubr.f32.vlgmr.msra.gmra.mxu0 %v6248_v10  ;;  %1119 = vmatmul.mubr.f32.vlgmr.msra.gmra.mxu1 %v6248_v10  ;;  %v4372_v10 = vld [vmem:[%s6171_s19 + $0xa58] sm:$0xff] }
  0xb0   : > { %1125 = vmatprep.subr.mxu0 %v6065_v14  ;;  %1291 = vmatprep.subr.mxu1 %v4387_v6  ;;  %v4378_v6 = vld [vmem:[%s6171_s19 + $0xa88] sm:$0xff] }
  0xb1   : > { %1126 = vmatpush1.msra.mxu0 %v4297_v7  ;;  %1292 = vmatpush1.msra.mxu1 %v4386_v8  ;;  %v4380_v7 = vld [vmem:[%s6171_s19 + $0xa98] sm:$0xff]  ;;  %v4374_v8 = vld [vmem:[%s6171_s19 + $0xa68] sm:$0xff] }
  0xb2   : > { %1127 = vmatprep.subr.mxu0 %v6065_v14  ;;  %1293 = vmatprep.subr.mxu1 %v4382_v9  ;;  %v4373_v9 = vld [vmem:[%s6171_s19 + $0xa60] sm:$0xff] }
  0xb3   : > { %1128 = vmatpush1.msra.mxu0 %v4292_v11  ;;  %1294 = vmatpush1.msra.mxu1 %v4381_v12  ;;  %v4375_v11 = vld [vmem:[%s6171_s19 + $0xa70] sm:$0xff]  ;;  %v4369_v12 = vld [vmem:[%s6171_s19 + $0xa40] sm:$0xff] }
  0xb4   : > { %1129 = vmatprep.subr.mxu0 %v6065_v14  ;;  %1295 = vmatprep.subr.mxu1 %v4377_v13  ;;  %v4368_v13 = vld [vmem:[%s6171_s19 + $0xa38] sm:$0xff] }
  0xb5   : > { %1130 = vmatpush1.msra.mxu0 %v4287_v15  ;;  %1296 = vmatpush1.msra.mxu1 %v4376_v16  ;;  %v4370_v15 = vld [vmem:[%s6171_s19 + $0xa48] sm:$0xff]  ;;  %v4364_v16 = vld [vmem:[%s6171_s19 + $0xa18] sm:$0xff] }
  0xb6   : > { %1131 = vmatprep.subr.mxu0 %v6065_v14  ;;  %1297 = vmatprep.subr.mxu1 %v4372_v10  ;;  %v4363_v10 = vld [vmem:[%s6171_s19 + $0xa10] sm:$0xff] }
  0xb7   : > { %1132 = vmatpush1.msra.mxu0 %v4282_v17  ;;  %1298 = vmatpush1.msra.mxu1 %v4371_v18  ;;  %v4365_v17 = vld [vmem:[%s6171_s19 + $0xa20] sm:$0xff]  ;;  %v4359_v18 = vld [vmem:[%s6171_s19 + $0x9f0] sm:$0xff] }
  0xb8   : > { %1133 = vmatprep.subr.mxu0 %v6065_v14  ;;  %1299 = vmatprep.subr.mxu1 %v4367_v19  ;;  %v4358_v19 = vld [vmem:[%s6171_s19 + $0x9e8] sm:$0xff] }
  0xb9   : > { %1134 = vmatpush1.msra.mxu0 %v4277_v20  ;;  %1300 = vmatpush1.msra.mxu1 %v4366_v21  ;;  %v4360_v20 = vld [vmem:[%s6171_s19 + $0x9f8] sm:$0xff]  ;;  %v4354_v21 = vld [vmem:[%s6171_s19 + $0x9c8] sm:$0xff] }
  0xba   : > { %1135 = vmatprep.subr.mxu0 %v6065_v14  ;;  %1301 = vmatprep.subr.mxu1 %v4362_v22  ;;  %v4353_v22 = vld [vmem:[%s6171_s19 + $0x9c0] sm:$0xff] }
  0xbb   : > { %1136 = vmatpush1.msra.mxu0 %v4272_v23  ;;  %1302 = vmatpush1.msra.mxu1 %v4361_v24  ;;  %v4355_v23 = vld [vmem:[%s6171_s19 + $0x9d0] sm:$0xff]  ;;  %v4349_v24 = vld [vmem:[%s6171_s19 + $0x9a0] sm:$0xff] }
  0xbc   : > { %1137 = vmatprep.subr.mxu0 %v6065_v14  ;;  %1303 = vmatprep.subr.mxu1 %v4357_v25  ;;  %v4348_v25 = vld [vmem:[%s6171_s19 + $0x998] sm:$0xff] }
  0xbd   : > { %1138 = vmatpush1.msra.mxu0 %v4267_v26  ;;  %1304 = vmatpush1.msra.mxu1 %v4356_v27  ;;  %v4350_v26 = vld [vmem:[%s6171_s19 + $0x9a8] sm:$0xff]  ;;  %v4344_v27 = vld [vmem:[%s6171_s19 + $0x978] sm:$0xff] }
  0xbe   : > { %1139 = vmatprep.subr.mxu0 %v6065_v14  ;;  %1305 = vmatprep.subr.mxu1 %v4352_v28  ;;  %v4343_v28 = vld [vmem:[%s6171_s19 + $0x970] sm:$0xff] }
  0xbf   : > { %1140 = vmatpush1.msra.mxu0 %v4262_v29  ;;  %1306 = vmatpush1.msra.mxu1 %v4351_v30  ;;  %v4345_v29 = vld [vmem:[%s6171_s19 + $0x980] sm:$0xff]  ;;  %v4339_v30 = vld [vmem:[%s6171_s19 + $0x950] sm:$0xff] }
  0xc0   : > { %1141 = vmatprep.subr.mxu0 %v6065_v14  ;;  %1307 = vmatprep.subr.mxu1 %v4347_v31  ;;  %v4338_v31 = vld [vmem:[%s6171_s19 + $0x948] sm:$0xff] }
  0xc1   : > { %1142 = vmatpush1.msra.mxu0 %v4257_v32  ;;  %1308 = vmatpush1.msra.mxu1 %v4346_v33  ;;  %v4340_v32 = vld [vmem:[%s6171_s19 + $0x958] sm:$0xff]  ;;  %v4334_v33 = vld [vmem:[%s6171_s19 + $0x928] sm:$0xff] }
  0xc2   : > { %1143 = vmatprep.subr.mxu0 %v6065_v14  ;;  %1309 = vmatprep.subr.mxu1 %v4342_v34  ;;  %v4333_v34 = vld [vmem:[%s6171_s19 + $0x920] sm:$0xff] }
  0xc3   : > { %1144 = vmatpush1.msra.mxu0 %v4252_v35  ;;  %1310 = vmatpush1.msra.mxu1 %v4341_v36  ;;  %v4335_v35 = vld [vmem:[%s6171_s19 + $0x930] sm:$0xff]  ;;  %v4329_v36 = vld [vmem:[%s6171_s19 + $0x900] sm:$0xff] }
  0xc4   : > { %1145 = vmatprep.subr.mxu0 %v6065_v14  ;;  %1311 = vmatprep.subr.mxu1 %v4337_v37  ;;  %v4328_v37 = vld [vmem:[%s6171_s19 + $0x8f8] sm:$0xff] }
  0xc5   : > { %1146 = vmatpush1.msra.mxu0 %v4247_v38  ;;  %1312 = vmatpush1.msra.mxu1 %v4336_v39  ;;  %v4330_v38 = vld [vmem:[%s6171_s19 + $0x908] sm:$0xff]  ;;  %v4324_v39 = vld [vmem:[%s6171_s19 + $0x8d8] sm:$0xff] }
  0xc6   : > { %1147 = vmatprep.subr.mxu0 %v6065_v14  ;;  %1313 = vmatprep.subr.mxu1 %v4332_v40  ;;  %v4323_v40 = vld [vmem:[%s6171_s19 + $0x8d0] sm:$0xff] }
  0xc7   : > { %1148 = vmatpush1.msra.mxu0 %v4242_v41  ;;  %1314 = vmatpush1.msra.mxu1 %v4331_v42  ;;  %v4325_v41 = vld [vmem:[%s6171_s19 + $0x8e0] sm:$0xff]  ;;  %v4319_v42 = vld [vmem:[%s6171_s19 + $0x8b0] sm:$0xff] }
  0xc8   : > { %1149 = vmatprep.subr.mxu0 %v6065_v14  ;;  %1315 = vmatprep.subr.mxu1 %v4327_v43  ;;  %v4318_v43 = vld [vmem:[%s6171_s19 + $0x8a8] sm:$0xff] }
  0xc9   : > { %1150 = vmatpush1.msra.mxu0 %v4237_v44  ;;  %1316 = vmatpush1.msra.mxu1 %v4326_v45  ;;  %v4320_v44 = vld [vmem:[%s6171_s19 + $0x8b8] sm:$0xff]  ;;  %v4314_v45 = vld [vmem:[%s6171_s19 + $0x888] sm:$0xff] }
  0xca   : > { %1151 = vmatprep.subr.mxu0 %v6065_v14  ;;  %1317 = vmatprep.subr.mxu1 %v4322_v46  ;;  %v4313_v46 = vld [vmem:[%s6171_s19 + $0x880] sm:$0xff] }
  0xcb   : > { %1152 = vmatpush1.msra.mxu0 %v4232_v47  ;;  %1318 = vmatpush1.msra.mxu1 %v4321_v48  ;;  %v4315_v47 = vld [vmem:[%s6171_s19 + $0x890] sm:$0xff] }
  0xcc   : > { %1153 = vmatprep.subr.mxu0 %v6065_v14  ;;  %1319 = vmatprep.subr.mxu1 %v4317_v49  ;;  %v4399_v48 = vld [vmem:[%s6171_s19 + $0xb30] sm:$0xff]  ;;  %v4398_v49 = vld [vmem:[%s6171_s19 + $0xb28] sm:$0xff] }
  0xcd   : > { %1154 = vmatpush1.msra.mxu0 %v4227_v50  ;;  %1320 = vmatpush1.msra.mxu1 %v4316_v51  ;;  %v4400_v50 = vld [vmem:[%s6171_s19 + $0xb38] sm:$0xff]  ;;  %v4394_v51 = vld [vmem:[%s6171_s19 + $0xb08] sm:$0xff] }
  0xce   : > { %1155 = vmatprep.subr.mxu0 %v6065_v14  ;;  %1321 = vmatprep.subr.mxu1 %v4312_v52  ;;  %v4393_v52 = vld [vmem:[%s6171_s19 + $0xb00] sm:$0xff] }
  0xcf   : > { %1156 = vmatpush1.msra.mxu0 %v4222_v53  ;;  %1322 = vmatpush1.msra.mxu1 %v4311_v54  ;;  %v4395_v53 = vld [vmem:[%s6171_s19 + $0xb10] sm:$0xff]  ;;  %v1556_v54 = vld [vmem:[%s8900_s3 + $0xf8] sm:$0xff]  ;;  %s6068_s19 = smov [#allocation2]  }
  0xd0   : > { %1185 = vmatprep.subr.mxu0 %v6065_v14  ;;  %1351 = vmatprep.subr.mxu1 %v4397_v55  ;;  %v1508_v55 = vld [vmem:[%s8899_s2] sm:$0xff]  ;;  %s6007_s28 = sshll.u32 %s6068_s19, 4  ;;  %s6008_s28 = int_to_ptr.vmem [resolvable:$false] %s6007_s28 }
  0xd1   : > { %1186 = vmatpush2.msra.mxu0 %v4307_v56  ;;  %1352 = vmatpush2.msra.mxu1 %v4396_v57  ;;  %v1540_v56 = vld [vmem:[%s8900_s3 + $0x78] sm:$0xff]  ;;  %v1555_v57 = vld [vmem:[%s8900_s3 + $0xf0] sm:$0xff]  ;;  %s6009_s20 = scalar_lea.vmem %s6008_s28, 32  ;;  %p6010_p0 = scmp.lt.s32.totalorder %s4063_s13, %s6008_s28 }
  0xd2   : > { %1187 = vmatprep.subr.mxu0 %v6065_v14  ;;  %1353 = vmatprep.subr.mxu1 %v4392_v58  ;;  %v6066_v58 = vmov 0   ;;  %p6011_p1 = scmp.lt.s32.totalorder %s6009_s20, %s6003_s18 }
  0xd3   : > { %1188 = vmatpush2.msra.mxu0 %v4302_v59  ;;  %4310 = vmatprep.mubr.msk.f32.mxu0 %vm368_vm0, %v6483_v5  ;;  %v1554_v59 = vld [vmem:[%s8900_s3 + $0xe8] sm:$0xff] }
  0xd4   : > { %1354 = vmatpush2.msra.mxu1 %v4391_v60  ;;  %4401 = vmatprep.mubr.msk.f32.mxu1 %vm368_vm0, %v6483_v5  ;;  %v1538_v60 = vld [vmem:[%s8900_s3 + $0x68] sm:$0xff]  ;;  %p6012_p2 = por %p6011_p1, %p6010_p0 }
  0xd5   : > { %1190 = vmatmul.mubr.f32.vlgmr.msra.gmra.mxu0 %v6573_v1  ;;  %1356 = vmatmul.mubr.f32.vlgmr.msra.gmra.mxu1 %v6573_v1 }
  0xd6   : > { %1362 = vmatprep.subr.mxu0 %v4389_v61  ;;  %1433 = vmatprep.subr.mxu1 %v6065_v14  ;;  %v1553_v61 = vld [vmem:[%s8900_s3 + $0xe0] sm:$0xff]  ;;  %p6013_p3 = pnand %p6012_p2, %p6006_p13 }
  0xd7   : > { %1363 = vmatpush1.msra.mxu0 %v4388_v62  ;;  %1434 = vmatpush1.msra.mxu1 %v4390_v63  ;;  %v1537_v62 = vld [vmem:[%s8900_s3 + $0x60] sm:$0xff]  ;;  %v1552_v63 = vld [vmem:[%s8900_s3 + $0xd8] sm:$0xff] }
  0xd8   : > { %1364 = vmatprep.subr.mxu0 %v4384_v2  ;;  %1435 = vmatprep.subr.mxu1 %v6065_v14  ;;  %v1551_v2 = vld [vmem:[%s8900_s3 + $0xd0] sm:$0xff] }
  0xd9   : > { %1365 = vmatpush1.msra.mxu0 %v4383_v3  ;;  %1436 = vmatpush1.msra.mxu1 %v4385_v0  ;;  %v1535_v3 = vld [vmem:[%s8900_s3 + $0x50] sm:$0xff]  ;;  %v1550_v0 = vld [vmem:[%s8900_s3 + $0xc8] sm:$0xff] }
  0xda   : > { %1366 = vmatprep.subr.mxu0 %v4379_v4  ;;  %1437 = vmatprep.subr.mxu1 %v6065_v14  ;;  %v1534_v4 = vld [vmem:[%s8900_s3 + $0x48] sm:$0xff] }
  0xdb   : > { %1367 = vmatpush1.msra.mxu0 %v4378_v6  ;;  %1438 = vmatpush1.msra.mxu1 %v4380_v7  ;;  %v1549_v6 = vld [vmem:[%s8900_s3 + $0xc0] sm:$0xff] }
  0xdc   : > { %1368 = vmatprep.subr.mxu0 %v4374_v8  ;;  %1439 = vmatprep.subr.mxu1 %v6065_v14  ;;  %v1533_v7 = vld [vmem:[%s8900_s3 + $0x40] sm:$0xff]  ;;  %v1548_v8 = vld [vmem:[%s8900_s3 + $0xb8] sm:$0xff] }
  0xdd   : > { %1369 = vmatpush1.msra.mxu0 %v4373_v9  ;;  %1440 = vmatpush1.msra.mxu1 %v4375_v11  ;;  %v1532_v9 = vld [vmem:[%s8900_s3 + $0x38] sm:$0xff]  ;;  %v1547_v11 = vld [vmem:[%s8900_s3 + $0xb0] sm:$0xff] }
  0xde   : > { %1370 = vmatprep.subr.mxu0 %v4369_v12  ;;  %1441 = vmatprep.subr.mxu1 %v6065_v14  ;;  %v1531_v12 = vld [vmem:[%s8900_s3 + $0x30] sm:$0xff] }
  0xdf   : > { %1371 = vmatpush1.msra.mxu0 %v4368_v13  ;;  %1442 = vmatpush1.msra.mxu1 %v4370_v15  ;;  %v1546_v13 = vld [vmem:[%s8900_s3 + $0xa8] sm:$0xff] }
  0xe0   : > { %1372 = vmatprep.subr.mxu0 %v4364_v16  ;;  %1443 = vmatprep.subr.mxu1 %v6065_v14  ;;  %v1530_v15 = vld [vmem:[%s8900_s3 + $0x28] sm:$0xff]  ;;  %v1545_v16 = vld [vmem:[%s8900_s3 + $0xa0] sm:$0xff] }
  0xe1   : > { %1373 = vmatpush1.msra.mxu0 %v4363_v10  ;;  %1444 = vmatpush1.msra.mxu1 %v4365_v17  ;;  %v1529_v10 = vld [vmem:[%s8900_s3 + $0x20] sm:$0xff]  ;;  %v1544_v17 = vld [vmem:[%s8900_s3 + $0x98] sm:$0xff] }
  0xe2   : > { %1374 = vmatprep.subr.mxu0 %v4359_v18  ;;  %1445 = vmatprep.subr.mxu1 %v6065_v14  ;;  %v1528_v18 = vld [vmem:[%s8900_s3 + $0x18] sm:$0xff] }
  0xe3   : > { %1375 = vmatpush1.msra.mxu0 %v4358_v19  ;;  %1446 = vmatpush1.msra.mxu1 %v4360_v20  ;;  %v1543_v19 = vld [vmem:[%s8900_s3 + $0x90] sm:$0xff] }
  0xe4   : > { %1376 = vmatprep.subr.mxu0 %v4354_v21  ;;  %1447 = vmatprep.subr.mxu1 %v6065_v14  ;;  %v1527_v20 = vld [vmem:[%s8900_s3 + $0x10] sm:$0xff]  ;;  %v1542_v21 = vld [vmem:[%s8900_s3 + $0x88] sm:$0xff] }
  0xe5   : > { %1377 = vmatpush1.msra.mxu0 %v4353_v22  ;;  %1448 = vmatpush1.msra.mxu1 %v4355_v23  ;;  %v1526_v22 = vld [vmem:[%s8900_s3 + $0x8] sm:$0xff]  ;;  %v1541_v23 = vld [vmem:[%s8900_s3 + $0x80] sm:$0xff] }
  0xe6   : > { %1378 = vmatprep.subr.mxu0 %v4349_v24  ;;  %1449 = vmatprep.subr.mxu1 %v6065_v14 }
  0xe7   : > { %1379 = vmatpush1.msra.mxu0 %v4348_v25  ;;  %1450 = vmatpush1.msra.mxu1 %v4350_v26  ;;  %v1525_v26 = vld [vmem:[%s8900_s3] sm:$0xff] }
  0xe8   : > { %1380 = vmatprep.subr.mxu0 %v4344_v27  ;;  %1451 = vmatprep.subr.mxu1 %v6065_v14  ;;  %v1588_v27 = vld [vmem:[%s8900_s3 + $0x1f8] sm:$0xff] }
  0xe9   : > { %1381 = vmatpush1.msra.mxu0 %v4343_v28  ;;  %1452 = vmatpush1.msra.mxu1 %v4345_v29  ;;  %v1572_v28 = vld [vmem:[%s8900_s3 + $0x178] sm:$0xff] }
  0xea   : > { %1382 = vmatprep.subr.mxu0 %v4339_v30  ;;  %1453 = vmatprep.subr.mxu1 %v6065_v14 }
  0xeb   : > { %1383 = vmatpush1.msra.mxu0 %v4338_v31  ;;  %1454 = vmatpush1.msra.mxu1 %v4340_v32  ;;  %v1587_v31 = vld [vmem:[%s8900_s3 + $0x1f0] sm:$0xff] }
  0xec   : > { %1384 = vmatprep.subr.mxu0 %v4334_v33  ;;  %1455 = vmatprep.subr.mxu1 %v6065_v14  ;;  %v1571_v32 = vld [vmem:[%s8900_s3 + $0x170] sm:$0xff] }
  0xed   : > { %1385 = vmatpush1.msra.mxu0 %v4333_v34  ;;  %1456 = vmatpush1.msra.mxu1 %v4335_v35  ;;  %v1586_v35 = vld [vmem:[%s8900_s3 + $0x1e8] sm:$0xff] }
  0xee   : > { %1386 = vmatprep.subr.mxu0 %v4329_v36  ;;  %1457 = vmatprep.subr.mxu1 %v6065_v14 }
  0xef   : > { %1387 = vmatpush1.msra.mxu0 %v4328_v37  ;;  %1458 = vmatpush1.msra.mxu1 %v4330_v38  ;;  %v1570_v37 = vld [vmem:[%s8900_s3 + $0x168] sm:$0xff] }
  0xf0   : > { %1388 = vmatprep.subr.mxu0 %v4324_v39  ;;  %1459 = vmatprep.subr.mxu1 %v6065_v14 }
  0xf1   : > { %1389 = vmatpush1.msra.mxu0 %v4323_v40  ;;  %1460 = vmatpush1.msra.mxu1 %v4325_v41  ;;  %v1585_v40 = vld [vmem:[%s8900_s3 + $0x1e0] sm:$0xff] }
  0xf2   : > { %1390 = vmatprep.subr.mxu0 %v4319_v42  ;;  %1461 = vmatprep.subr.mxu1 %v6065_v14  ;;  %v1569_v42 = vld [vmem:[%s8900_s3 + $0x160] sm:$0xff] }
  0xf3   : > { %1391 = vmatpush1.msra.mxu0 %v4318_v43  ;;  %1462 = vmatpush1.msra.mxu1 %v4320_v44  ;;  %v1584_v43 = vld [vmem:[%s8900_s3 + $0x1d8] sm:$0xff] }
  0xf4   : > { %1392 = vmatprep.subr.mxu0 %v4314_v45  ;;  %1463 = vmatprep.subr.mxu1 %v6065_v14  ;;  %v1568_v44 = vld [vmem:[%s8900_s3 + $0x158] sm:$0xff]  ;;  %v1583_v45 = vld [vmem:[%s8900_s3 + $0x1d0] sm:$0xff] }
  0xf5   : > { %1393 = vmatpush1.msra.mxu0 %v4313_v46  ;;  %1464 = vmatpush1.msra.mxu1 %v4315_v47  ;;  %v1567_v46 = vld [vmem:[%s8900_s3 + $0x150] sm:$0xff]  ;;  %v1582_v47 = vld [vmem:[%s8900_s3 + $0x1c8] sm:$0xff] }
  0xf6   : > { %1422 = vmatprep.subr.mxu0 %v4399_v48  ;;  %1493 = vmatprep.subr.mxu1 %v6065_v14  ;;  %v1566_v48 = vld [vmem:[%s8900_s3 + $0x148] sm:$0xff] }
  0xf7   : > { %1423 = vmatpush2.msra.mxu0 %v4398_v49  ;;  %1494 = vmatpush2.msra.mxu1 %v4400_v50  ;;  %v1581_v49 = vld [vmem:[%s8900_s3 + $0x1c0] sm:$0xff] }
  0xf8   : > { %1424 = vmatprep.subr.mxu0 %v4394_v51  ;;  %1495 = vmatprep.subr.mxu1 %v6065_v14  ;;  %v1565_v50 = vld [vmem:[%s8900_s3 + $0x140] sm:$0xff]  ;;  %v1580_v51 = vld [vmem:[%s8900_s3 + $0x1b8] sm:$0xff] }
  0xf9   : > { %1425 = vmatpush2.msra.mxu0 %v4393_v52  ;;  %4402 = vmatprep.mubr.msk.f32.mxu0 %vm368_vm0, %v6483_v5  ;;  %v1564_v52 = vld [vmem:[%s8900_s3 + $0x138] sm:$0xff] }
  0xfa   : > { %1496 = vmatpush2.msra.mxu1 %v4395_v53  ;;  %4403 = vmatprep.mubr.msk.f32.mxu1 %vm368_vm0, %v6483_v5  ;;  %v1539_v5 = vld [vmem:[%s8900_s3 + $0x70] sm:$0xff] }
  0xfb   : > { %1427 = vmatmul.mubr.f32.vlgmr.msra.gmra.mxu0 %v6573_v1  ;;  %1498 = vmatmul.mubr.f32.vlgmr.msra.gmra.mxu1 %v6573_v1  ;;  %v1536_v1 = vld [vmem:[%s8900_s3 + $0x58] sm:$0xff]  ;;  %v1579_v53 = vld [vmem:[%s8900_s3 + $0x1b0] sm:$0xff] }
  0xfc   : > { %6000 = vset.pattern.permute.xlu0 %v6066_v58  ;;  %4977 = vmatprep.subr.mxu0 %v1556_v54  ;;  %v1563_v54 = vld [vmem:[%s8900_s3 + $0x130] sm:$0xff]  ;;  %v1561_v58 = vld [vmem:[%s8900_s3 + $0x120] sm:$0xff] }
  0xfd   : > { %1511 = vperm.xlu0 %6000, %v1508_v55   ;;  %4978 = vmatpush3.msra.mxu0 %v1540_v56  ;;  %v6748_v24 = vpop.f32.mrf.mxu0  ;;  %v1578_v55 = vld [vmem:[%s8900_s3 + $0x1a8] sm:$0xff] }
  0xfe   : > { %4979 = vmatprep.subr.mxu0 %v1555_v57  ;;  %v6750_v25 = vpop.f32.mrf.mxu1  ;;  %5012 = vmatprep.subr.mxu1 %v1588_v27  ;;  %v1562_v56 = vld [vmem:[%s8900_s3 + $0x128] sm:$0xff]  ;;  %v1577_v57 = vld [vmem:[%s8900_s3 + $0x1a0] sm:$0xff] }
  0xff   : > { %4980 = vmatpush3.msra.mxu0 %v1539_v5  ;;  %v6761_v29 = vpop.f32.mrf.mxu0  ;;  %5013 = vmatpush3.msra.mxu1 %v1572_v28  ;;  %v1576_v5 = vld [vmem:[%s8900_s3 + $0x198] sm:$0xff]  ;;  %v1603_v28 = vld [vmem:[%s8900_s3 + $0x270] sm:$0x1] }
 0x100   : > { %4981 = vmatprep.subr.mxu0 %v1554_v59  ;;  %v6763_v30 = vpop.f32.mrf.mxu1  ;;  %5014 = vmatprep.subr.mxu1 %v1587_v31  ;;  %v1560_v59 = vld [vmem:[%s8900_s3 + $0x118] sm:$0xff]  ;;  %v1601_v31 = vld [vmem:[%s8900_s3 + $0x260] sm:$0xff] }
 0x101   : > { %4982 = vmatpush3.msra.mxu0 %v1538_v60  ;;  %5015 = vmatpush3.msra.mxu1 %v1571_v32  ;;  %v1575_v60 = vld [vmem:[%s8900_s3 + $0x190] sm:$0xff]  ;;  %v1600_v32 = vld [vmem:[%s8900_s3 + $0x258] sm:$0xff] }
 0x102   : > { %4983 = vmatprep.subr.mxu0 %v1553_v61  ;;  %5016 = vmatprep.subr.mxu1 %v1586_v35  ;;  %v1559_v61 = vld [vmem:[%s8900_s3 + $0x110] sm:$0xff]  ;;  %v1598_v35 = vld [vmem:[%s8900_s3 + $0x248] sm:$0xff] }
 0x103   : > { %4984 = vmatpush3.msra.mxu0 %v1537_v62  ;;  %5017 = vmatpush3.msra.mxu1 %v1570_v37  ;;  %v1574_v62 = vld [vmem:[%s8900_s3 + $0x188] sm:$0xff]  ;;  %v1596_v37 = vld [vmem:[%s8900_s3 + $0x238] sm:$0xff] }
 0x104   : > { %4985 = vmatprep.subr.mxu0 %v1552_v63  ;;  %5018 = vmatprep.subr.mxu1 %v1585_v40  ;;  %v1558_v63 = vld [vmem:[%s8900_s3 + $0x108] sm:$0xff]  ;;  %v1593_v40 = vld [vmem:[%s8900_s3 + $0x220] sm:$0xff] }
 0x105   : > { %4986 = vmatpush3.msra.mxu0 %v1536_v1  ;;  %5019 = vmatpush3.msra.mxu1 %v1569_v42  ;;  %v1573_v1 = vld [vmem:[%s8900_s3 + $0x180] sm:$0xff]  ;;  %v1591_v42 = vld [vmem:[%s8900_s3 + $0x210] sm:$0xff] }
 0x106   : > { %4987 = vmatprep.subr.mxu0 %v1551_v2  ;;  %5020 = vmatprep.subr.mxu1 %v1584_v43  ;;  %v1557_v2 = vld [vmem:[%s8900_s3 + $0x100] sm:$0xff]  ;;  %v1590_v43 = vld [vmem:[%s8900_s3 + $0x208] sm:$0xff] }
 0x107   : > { %4988 = vmatpush3.msra.mxu0 %v1535_v3  ;;  %5021 = vmatpush3.msra.mxu1 %v1568_v44  ;;  %v4437_v3 = vld [vmem:[%s8900_s3 + $0x370] sm:$0xff] }
 0x108   : > { %4989 = vmatprep.subr.mxu0 %v1550_v0  ;;  %5022 = vmatprep.subr.mxu1 %v1583_v45  ;;  %v1589_v45 = vld [vmem:[%s8900_s3 + $0x200] sm:$0xff] }
 0x109   : > { %4990 = vmatpush3.msra.mxu0 %v1534_v4  ;;  %5023 = vmatpush3.msra.mxu1 %v1567_v46 }
 0x10a   : > { %4991 = vmatprep.subr.mxu0 %v1549_v6  ;;  %5024 = vmatprep.subr.mxu1 %v1582_v47 }
 0x10b   : > { %4992 = vmatpush3.msra.mxu0 %v1533_v7  ;;  %5025 = vmatpush3.msra.mxu1 %v1566_v48 }
 0x10c   : > { %4993 = vmatprep.subr.mxu0 %v1548_v8  ;;  %5026 = vmatprep.subr.mxu1 %v1581_v49 }
 0x10d   : > { %4994 = vmatpush3.msra.mxu0 %v1532_v9  ;;  %5027 = vmatpush3.msra.mxu1 %v1565_v50 }
 0x10e   : > { %4995 = vmatprep.subr.mxu0 %v1547_v11  ;;  %5028 = vmatprep.subr.mxu1 %v1580_v51 }
 0x10f   : > { %4996 = vmatpush3.msra.mxu0 %v1531_v12  ;;  %5029 = vmatpush3.msra.mxu1 %v1564_v52 }
 0x110   : > { %4997 = vmatprep.subr.mxu0 %v1546_v13  ;;  %5030 = vmatprep.subr.mxu1 %v1579_v53 }
 0x111   : > { %4998 = vmatpush3.msra.mxu0 %v1530_v15  ;;  %5031 = vmatpush3.msra.mxu1 %v1563_v54 }
 0x112   : > { %4999 = vmatprep.subr.mxu0 %v1545_v16  ;;  %5032 = vmatprep.subr.mxu1 %v1578_v55 }
 0x113   : > { %5000 = vmatpush3.msra.mxu0 %v1529_v10  ;;  %5033 = vmatpush3.msra.mxu1 %v1562_v56 }
 0x114   : > { %5001 = vmatprep.subr.mxu0 %v1544_v17  ;;  %5034 = vmatprep.subr.mxu1 %v1577_v57 }
 0x115   : > { %5002 = vmatpush3.msra.mxu0 %v1528_v18  ;;  %5035 = vmatpush3.msra.mxu1 %v1561_v58 }
 0x116   : > { %5003 = vmatprep.subr.mxu0 %v1543_v19  ;;  %5036 = vmatprep.subr.mxu1 %v1576_v5  ;;  %v4453_v5 = vld [vmem:[%s8900_s3 + $0x3f0] sm:$0xff] }
 0x117   : > { %5004 = vmatpush3.msra.mxu0 %v1527_v20  ;;  %5037 = vmatpush3.msra.mxu1 %v1560_v59  ;;  %v4468_v59 = vld [vmem:[%s8900_s3 + $0x468] sm:$0xff] }
 0x118   : > { %5005 = vmatprep.subr.mxu0 %v1542_v21  ;;  %5038 = vmatprep.subr.mxu1 %v1575_v60 }
 0x119   : > { %5006 = vmatpush3.msra.mxu0 %v1526_v22  ;;  %5039 = vmatpush3.msra.mxu1 %v1559_v61  ;;  %v4452_v61 = vld [vmem:[%s8900_s3 + $0x3e8] sm:$0xff] }
 0x11a   : > { %5007 = vmatprep.subr.mxu0 %v1541_v23  ;;  %5040 = vmatprep.subr.mxu1 %v1574_v62 }
 0x11b   : > { %5008 = vmatpush3.msra.mxu0 %v1525_v26  ;;  %5041 = vmatpush3.msra.mxu1 %v1558_v63  ;;  %v4421_v63 = vld [vmem:[%s8900_s3 + $0x2f0] sm:$0xff] }
 0x11c   : > { %5674 = vmatprep.subr.mxu0 %v6065_v14  ;;  %5042 = vmatprep.subr.mxu1 %v1573_v1  ;;  %v4467_v1 = vld [vmem:[%s8900_s3 + $0x460] sm:$0xff] }
 0x11d   : > { %5043 = vmatpush3.msra.mxu1 %v1557_v2  ;;  %v4436_v2 = vld [vmem:[%s8900_s3 + $0x368] sm:$0xff] }
 0x11e   : > { %5063 = vmatprep.subr.mxu1 %v4437_v3 }
 0x123   : > { %v6772_v33 = vpop.f32.mrf.mxu0  ;;  %v6774_v34 = vpop.f32.mrf.mxu1 }
 0x124   : > { %v887_v36 = vmax.f32 %v6748_v24, %v6774_v34  ;;  %v1599_v34 = vld [vmem:[%s8900_s3 + $0x250] sm:$0xff] }
 0x125   : > { %v582_v38 = vpop.f32.mrf.mxu0  ;;  %v6784_v39 = vpop.f32.mrf.mxu1 }
 0x126   : > { %v888_v41 = vmax.f32 %v6761_v29, %v6784_v39  ;;  %v1602_v29 = vld [vmem:[%s8900_s3 + $0x268] sm:$0xff]  ;;  %v1595_v38 = vld [vmem:[%s8900_s3 + $0x230] sm:$0xff] }
 0x127   : > { %v1594_v39 = vld [vmem:[%s8900_s3 + $0x228] sm:$0xff] }
 0x149   : > { %v6869_v0 = vpop.f32.mrf.mxu1  ;;  %v6873_v7 = vpop.f32.mrf.mxu0 }
 0x14a   : > { %v891_v4 = vmax.f32 %v6772_v33, %v6869_v0  ;;  %v889_v44 = vmax.f32 %v6750_v25, %v6873_v7  ;;  %v4469_v25 = vld [vmem:[%s8900_s3 + $0x470] sm:$0xff]  ;;  %v4466_v7 = vld [vmem:[%s8900_s3 + $0x458] sm:$0xff] }
 0x14b   : > { %v885_v6 = vpop.f32.mrf.mxu1  ;;  %v6875_v8 = vpop.f32.mrf.mxu0 }
 0x14c   : > { %v890_v46 = vmax.f32 %v6763_v30, %v6875_v8  ;;  %v4420_v6 = vld [vmem:[%s8900_s3 + $0x2e8] sm:$0xff]  ;;  %v4435_v8 = vld [vmem:[%s8900_s3 + $0x360] sm:$0xff] }
 0x16f   : > { %v1049_v9 = vpop.f32.mrf.mxu0  ;;  %v6877_v11 = vpop.f32.mrf.mxu1 }
 0x170   : > { %v1195_v15 = vmax.f32 %v887_v36, %v1049_v9  ;;  %v1597_v36 = vld [vmem:[%s8900_s3 + $0x240] sm:$0xff]  ;;  %v1197_v47 = vmax.f32 %v889_v44, %v6877_v11  ;;  %v4450_v9 = vld [vmem:[%s8900_s3 + $0x3d8] sm:$0xff]  ;;  %v4412_v44 = vld [vmem:[%s8900_s3 + $0x2a8] sm:$0xff] }
 0x171   : > { %v1051_v12 = vpop.f32.mrf.mxu0  ;;  %v6879_v13 = vpop.f32.mrf.mxu1  ;;  %v4419_v11 = vld [vmem:[%s8900_s3 + $0x2e0] sm:$0xff] }
 0x172   : > { %v1196_v17 = vmax.f32 %v888_v41, %v1051_v12  ;;  %v1592_v41 = vld [vmem:[%s8900_s3 + $0x218] sm:$0xff]  ;;  %v1198_v51 = vmax.f32 %v890_v46, %v6879_v13  ;;  %v4465_v12 = vld [vmem:[%s8900_s3 + $0x450] sm:$0xff]  ;;  %v4427_v46 = vld [vmem:[%s8900_s3 + $0x320] sm:$0xff] }
 0x173   : > { %v4434_v13 = vld [vmem:[%s8900_s3 + $0x358] sm:$0xff] }
 0x178   : > { %v6887_v19 = vpop.permute.xlu0 %1511 }
 0x195   : > { %v1191_v16 = vpop.f32.mrf.mxu0  ;;  %v1357_v10 = vpop.f32.mrf.mxu1 }
 0x196   : > { %v1503_v18 = vmax.f32 %v1195_v15, %v1357_v10  ;;  %v1199_v48 = vmax.f32 %v891_v4, %v1191_v16  ;;  %v4451_v4 = vld [vmem:[%s8900_s3 + $0x3e0] sm:$0xff]  ;;  %v4449_v15 = vld [vmem:[%s8900_s3 + $0x3d0] sm:$0xff]  ;;  %v4418_v16 = vld [vmem:[%s8900_s3 + $0x2d8] sm:$0xff] }
 0x197   : > { %v1193_v20 = vpop.f32.mrf.mxu0  ;;  %v1359_v21 = vpop.f32.mrf.mxu1  ;;  %v4464_v10 = vld [vmem:[%s8900_s3 + $0x448] sm:$0xff] }
 0x198   : > { %v1504_v22 = vmax.f32 %v1196_v17, %v1359_v21  ;;  %v1514_v23 = vadd.f32 %v6887_v19, %v1503_v18  ;;  %v4433_v17 = vld [vmem:[%s8900_s3 + $0x350] sm:$0xff]  ;;  %v4448_v18 = vld [vmem:[%s8900_s3 + $0x3c8] sm:$0xff]  ;;  %v4463_v20 = vld [vmem:[%s8900_s3 + $0x440] sm:$0xff] }
 0x199   : > { %v4432_v21 = vld [vmem:[%s8900_s3 + $0x348] sm:$0xff] }
 0x19a   : > { %v1515_v26 = vadd.f32 %v6887_v19, %v1504_v22  ;;  %v6893_v24 = vmax.f32 %v1514_v23, 0.0  ;;  %v4447_v22 = vld [vmem:[%s8900_s3 + $0x3c0] sm:$0xff]  ;;  %v4416_v23 = vld [vmem:[%s8900_s3 + $0x2c8] sm:$0xff] }
 0x19c   : > { %v6891_v27 = vmax.f32 %v1515_v26, 0.0  ;;  %v4462_v26 = vld [vmem:[%s8900_s3 + $0x438] sm:$0xff] }
 0x19e   : > { %1676 = vmatprep.mubr.f32.mxu0 %v6891_v27  ;;  %v1908_v0 = vrot.slane %v6891_v27, 1 }
 0x19f   : > { %1677 = vmatmul.mubr.f32.vlgmr.msra.gmra.mxu0 %v6893_v24 }
 0x1a0   : > { %5675 = vmatpush3.msk.msra.mxu0 %vm1608_vm1, %v1603_v28  ;;  %5704 = vmatprep.mubr.msk.f32.mxu0 %vm6067_vm2, %v6065_v14  ;;  %v4431_v28 = vld [vmem:[%s8900_s3 + $0x340] sm:$0xff] }
 0x1a1   : > { %5676 = vmatprep.subr.mxu0 %v6065_v14 }
 0x1a2   : > { %5677 = vmatpush3.msra.mxu0 %v1602_v29  ;;  %v4446_v29 = vld [vmem:[%s8900_s3 + $0x3b8] sm:$0xff] }
 0x1a3   : > { %5678 = vmatprep.subr.mxu0 %v6065_v14 }
 0x1a4   : > { %5679 = vmatpush3.msra.mxu0 %v1601_v31  ;;  %v4415_v31 = vld [vmem:[%s8900_s3 + $0x2c0] sm:$0xff] }
 0x1a5   : > { %5680 = vmatprep.subr.mxu0 %v6065_v14 }
 0x1a6   : > { %5681 = vmatpush3.msra.mxu0 %v1600_v32  ;;  %v4461_v32 = vld [vmem:[%s8900_s3 + $0x430] sm:$0xff] }
 0x1a7   : > { %5682 = vmatprep.subr.mxu0 %v6065_v14 }
 0x1a8   : > { %5683 = vmatpush3.msra.mxu0 %v1599_v34  ;;  %v4430_v34 = vld [vmem:[%s8900_s3 + $0x338] sm:$0xff] }
 0x1a9   : > { %5684 = vmatprep.subr.mxu0 %v6065_v14 }
 0x1aa   : > { %5685 = vmatpush3.msra.mxu0 %v1598_v35  ;;  %v4445_v35 = vld [vmem:[%s8900_s3 + $0x3b0] sm:$0xff] }
 0x1ab   : > { %5686 = vmatprep.subr.mxu0 %v6065_v14 }
 0x1ac   : > { %5687 = vmatpush3.msra.mxu0 %v1597_v36  ;;  %v4414_v36 = vld [vmem:[%s8900_s3 + $0x2b8] sm:$0xff] }
 0x1ad   : > { %5688 = vmatprep.subr.mxu0 %v6065_v14 }
 0x1ae   : > { %5689 = vmatpush3.msra.mxu0 %v1596_v37  ;;  %v4460_v37 = vld [vmem:[%s8900_s3 + $0x428] sm:$0xff] }
 0x1af   : > { %5690 = vmatprep.subr.mxu0 %v6065_v14 }
 0x1b0   : > { %5691 = vmatpush3.msra.mxu0 %v1595_v38  ;;  %v4429_v38 = vld [vmem:[%s8900_s3 + $0x330] sm:$0xff] }
 0x1b1   : > { %5692 = vmatprep.subr.mxu0 %v6065_v14 }
 0x1b2   : > { %5693 = vmatpush3.msra.mxu0 %v1594_v39  ;;  %v4444_v39 = vld [vmem:[%s8900_s3 + $0x3a8] sm:$0xff] }
 0x1b3   : > { %5694 = vmatprep.subr.mxu0 %v6065_v14 }
 0x1b4   : > { %5695 = vmatpush3.msra.mxu0 %v1593_v40  ;;  %v4413_v40 = vld [vmem:[%s8900_s3 + $0x2b0] sm:$0xff] }
 0x1b5   : > { %5696 = vmatprep.subr.mxu0 %v6065_v14 }
 0x1b6   : > { %5697 = vmatpush3.msra.mxu0 %v1592_v41  ;;  %v4459_v41 = vld [vmem:[%s8900_s3 + $0x420] sm:$0xff] }
 0x1b7   : > { %5698 = vmatprep.subr.mxu0 %v6065_v14 }
 0x1b8   : > { %5699 = vmatpush3.msra.mxu0 %v1591_v42  ;;  %v4428_v42 = vld [vmem:[%s8900_s3 + $0x328] sm:$0xff] }
 0x1b9   : > { %5700 = vmatprep.subr.mxu0 %v6065_v14 }
 0x1ba   : > { %5701 = vmatpush3.msra.mxu0 %v1590_v43  ;;  %v4443_v43 = vld [vmem:[%s8900_s3 + $0x3a0] sm:$0xff] }
 0x1bb   : > { %v1428_v49 = vpop.f32.mrf.mxu0  ;;  %v1499_v50 = vpop.f32.mrf.mxu1  ;;  %5702 = vmatprep.subr.mxu0 %v6065_v14 }
 0x1bc   : > { %v1505_v52 = vmax.f32 %v1197_v47, %v1428_v49  ;;  %v1507_v53 = vmax.f32 %v1199_v48, %v1499_v50  ;;  %5703 = vmatpush3.msra.mxu0 %v1589_v45  ;;  %v4458_v45 = vld [vmem:[%s8900_s3 + $0x418] sm:$0xff]  ;;  %v4411_v48 = vld [vmem:[%s8900_s3 + $0x2a0] sm:$0xff]  ;;  %v4441_v50 = vld [vmem:[%s8900_s3 + $0x390] sm:$0xff] }
 0x1bd   : > { %v1430_v30 = vpop.f32.mrf.mxu0  ;;  %5098 = vmatprep.subr.mxu0 %v4469_v25  ;;  %v1501_v54 = vpop.f32.mrf.mxu1  ;;  %v4442_v47 = vld [vmem:[%s8900_s3 + $0x398] sm:$0xff]  ;;  %v4457_v25 = vld [vmem:[%s8900_s3 + $0x410] sm:$0xff] }
 0x1be   : > { %v1518_v33 = vadd.f32 %v6887_v19, %v1507_v53  ;;  %v1506_v55 = vmax.f32 %v1198_v51, %v1430_v30  ;;  %v1516_v56 = vadd.f32 %v6887_v19, %v1505_v52  ;;  %v4426_v49 = vld [vmem:[%s8900_s3 + $0x318] sm:$0xff]  ;;  %v4456_v52 = vld [vmem:[%s8900_s3 + $0x408] sm:$0xff]  ;;  %v4425_v53 = vld [vmem:[%s8900_s3 + $0x310] sm:$0xff] }
 0x1bf   : > { %v4410_v51 = vld [vmem:[%s8900_s3 + $0x298] sm:$0xff]  ;;  %v4440_v30 = vld [vmem:[%s8900_s3 + $0x388] sm:$0xff]  ;;  %v4409_v54 = vld [vmem:[%s8900_s3 + $0x290] sm:$0xff] }
 0x1c0   : > { %v6973_v57 = vmax.f32 %v1518_v33, 0.0  ;;  %v1517_v58 = vadd.f32 %v6887_v19, %v1506_v55  ;;  %v6989_v62 = vmax.f32 %v1516_v56, 0.0  ;;  %v4417_v19 = vld [vmem:[%s8900_s3 + $0x2d0] sm:$0xff]  ;;  %v4455_v33 = vld [vmem:[%s8900_s3 + $0x400] sm:$0xff]  ;;  %v4424_v55 = vld [vmem:[%s8900_s3 + $0x308] sm:$0xff] }
 0x1c1   : > { %v4439_v56 = vld [vmem:[%s8900_s3 + $0x380] sm:$0xff] }
 0x1c2   : > { %v6982_v60 = vmax.f32 %v1517_v58, 0.0  ;;  %5705 = vmatmul.mubr.msk.f32.vlgmr.msra.gmra.mxu0 %vm1604_vm3, %v6973_v57  ;;  %v4408_v58 = vld [vmem:[%s8900_s3 + $0x288] sm:$0xff] }
 0x1c3   : > { %5099 = vmatpush3.msra.mxu0 %v4453_v5  ;;  %v4454_v5 = vld [vmem:[%s8900_s3 + $0x3f8] sm:$0xff] }
 0x1c4   : > { %5100 = vmatprep.subr.mxu0 %v4468_v59  ;;  %1746 = vmatprep.mubr.f32.mxu1 %v6982_v60  ;;  %v1910_v3 = vrot.slane %v6982_v60, 1  ;;  %v4423_v59 = vld [vmem:[%s8900_s3 + $0x300] sm:$0xff] }
 0x1c5   : > { %5101 = vmatpush3.msra.mxu0 %v4452_v61  ;;  %1747 = vmatmul.mubr.f32.vlgmr.msra.gmra.mxu1 %v6989_v62  ;;  %v4438_v61 = vld [vmem:[%s8900_s3 + $0x378] sm:$0xff] }
 0x1c6   : > { %5064 = vmatpush3.msra.mxu1 %v4421_v63  ;;  %5102 = vmatprep.subr.mxu0 %v4467_v1  ;;  %v4407_v63 = vld [vmem:[%s8900_s3 + $0x280] sm:$0xff]  ;;  %v1909_v1 = vrot.slane %v6989_v62, 1 }
 0x1c7   : > { %5065 = vmatprep.subr.mxu1 %v4436_v2  ;;  %1985 = vmatprep.mubr.f32.mxu1 %v1908_v0  ;;  %v4518_v2 = vld [vmem:[%s8900_s3 + $0x5e8] sm:$0xff] }
 0x1c8   : > { %5103 = vmatpush3.msra.mxu0 %v4451_v4  ;;  %2055 = vmatprep.mubr.f32.mxu0 %v1910_v3  ;;  %v4422_v3 = vld [vmem:[%s8900_s3 + $0x2f8] sm:$0xff]  ;;  %v4502_v0 = vld [vmem:[%s8900_s3 + $0x568] sm:$0xff]  ;;  %v2213_v4 = vrot.slane %v6891_v27, 2 }
 0x1c9   : > { %5066 = vmatpush3.msra.mxu1 %v4420_v6  ;;  %5104 = vmatprep.subr.mxu0 %v4466_v7  ;;  %v4406_v6 = vld [vmem:[%s8900_s3 + $0x278] sm:$0xff]  ;;  %v4517_v7 = vld [vmem:[%s8900_s3 + $0x5e0] sm:$0xff] }
 0x1ca   : > { %5067 = vmatprep.subr.mxu1 %v4435_v8  ;;  %5105 = vmatpush3.msra.mxu0 %v4450_v9  ;;  %v1907_v8 = vrot.slane %v6893_v24, 1  ;;  %v4501_v9 = vld [vmem:[%s8900_s3 + $0x560] sm:$0xff] }
 0x1cb   : > { %5068 = vmatpush3.msra.mxu1 %v4419_v11  ;;  %5106 = vmatprep.subr.mxu0 %v4465_v12  ;;  %v4484_v11 = vld [vmem:[%s8900_s3 + $0x4e8] sm:$0x1]  ;;  %v4516_v12 = vld [vmem:[%s8900_s3 + $0x5d8] sm:$0xff] }
 0x1cc   : > { %5069 = vmatprep.subr.mxu1 %v4434_v13  ;;  %5107 = vmatpush3.msra.mxu0 %v4449_v15  ;;  %v4500_v13 = vld [vmem:[%s8900_s3 + $0x558] sm:$0xff]  ;;  %v4483_v15 = vld [vmem:[%s8900_s3 + $0x4e0] sm:$0xff] }
 0x1cd   : > { %5070 = vmatpush3.msra.mxu1 %v4418_v16  ;;  %5108 = vmatprep.subr.mxu0 %v4464_v10  ;;  %v4515_v16 = vld [vmem:[%s8900_s3 + $0x5d0] sm:$0xff] }
 0x1ce   : > { %5071 = vmatprep.subr.mxu1 %v4433_v17  ;;  %5109 = vmatpush3.msra.mxu0 %v4448_v18  ;;  %v4499_v10 = vld [vmem:[%s8900_s3 + $0x550] sm:$0xff]  ;;  %v4482_v17 = vld [vmem:[%s8900_s3 + $0x4d8] sm:$0xff]  ;;  %v4514_v18 = vld [vmem:[%s8900_s3 + $0x5c8] sm:$0xff] }
 0x1cf   : > { %5072 = vmatpush3.msra.mxu1 %v4417_v19  ;;  %5110 = vmatprep.subr.mxu0 %v4463_v20  ;;  %v4498_v19 = vld [vmem:[%s8900_s3 + $0x548] sm:$0xff]  ;;  %v4481_v20 = vld [vmem:[%s8900_s3 + $0x4d0] sm:$0xff] }
 0x1d0   : > { %5073 = vmatprep.subr.mxu1 %v4432_v21  ;;  %5111 = vmatpush3.msra.mxu0 %v4447_v22  ;;  %v4513_v21 = vld [vmem:[%s8900_s3 + $0x5c0] sm:$0xff] }
 0x1d1   : > { %5074 = vmatpush3.msra.mxu1 %v4416_v23  ;;  %5112 = vmatprep.subr.mxu0 %v4462_v26  ;;  %v4497_v22 = vld [vmem:[%s8900_s3 + $0x540] sm:$0xff]  ;;  %v4480_v23 = vld [vmem:[%s8900_s3 + $0x4c8] sm:$0xff]  ;;  %v4512_v26 = vld [vmem:[%s8900_s3 + $0x5b8] sm:$0xff] }
 0x1d2   : > { %5075 = vmatprep.subr.mxu1 %v4431_v28  ;;  %5113 = vmatpush3.msra.mxu0 %v4446_v29  ;;  %v4496_v28 = vld [vmem:[%s8900_s3 + $0x538] sm:$0xff]  ;;  %v4479_v29 = vld [vmem:[%s8900_s3 + $0x4c0] sm:$0xff] }
 0x1d3   : > { %5076 = vmatpush3.msra.mxu1 %v4415_v31  ;;  %5114 = vmatprep.subr.mxu0 %v4461_v32  ;;  %v4511_v31 = vld [vmem:[%s8900_s3 + $0x5b0] sm:$0xff] }
 0x1d4   : > { %5077 = vmatprep.subr.mxu1 %v4430_v34  ;;  %5115 = vmatpush3.msra.mxu0 %v4445_v35  ;;  %v4495_v32 = vld [vmem:[%s8900_s3 + $0x530] sm:$0xff]  ;;  %v4478_v34 = vld [vmem:[%s8900_s3 + $0x4b8] sm:$0xff]  ;;  %v4510_v35 = vld [vmem:[%s8900_s3 + $0x5a8] sm:$0xff] }
 0x1d5   : > { %5078 = vmatpush3.msra.mxu1 %v4414_v36  ;;  %5116 = vmatprep.subr.mxu0 %v4460_v37  ;;  %v4494_v36 = vld [vmem:[%s8900_s3 + $0x528] sm:$0xff]  ;;  %v4477_v37 = vld [vmem:[%s8900_s3 + $0x4b0] sm:$0xff] }
 0x1d6   : > { %5079 = vmatprep.subr.mxu1 %v4429_v38  ;;  %5117 = vmatpush3.msra.mxu0 %v4444_v39  ;;  %v4509_v38 = vld [vmem:[%s8900_s3 + $0x5a0] sm:$0xff] }
 0x1d7   : > { %5080 = vmatpush3.msra.mxu1 %v4413_v40  ;;  %5118 = vmatprep.subr.mxu0 %v4459_v41  ;;  %v4493_v39 = vld [vmem:[%s8900_s3 + $0x520] sm:$0xff]  ;;  %v4476_v40 = vld [vmem:[%s8900_s3 + $0x4a8] sm:$0xff]  ;;  %v4508_v41 = vld [vmem:[%s8900_s3 + $0x598] sm:$0xff] }
 0x1d8   : > { %5081 = vmatprep.subr.mxu1 %v4428_v42  ;;  %5119 = vmatpush3.msra.mxu0 %v4443_v43  ;;  %v4492_v42 = vld [vmem:[%s8900_s3 + $0x518] sm:$0xff]  ;;  %v4475_v43 = vld [vmem:[%s8900_s3 + $0x4a0] sm:$0xff] }
 0x1d9   : > { %5082 = vmatpush3.msra.mxu1 %v4412_v44  ;;  %5120 = vmatprep.subr.mxu0 %v4458_v45  ;;  %v4507_v44 = vld [vmem:[%s8900_s3 + $0x590] sm:$0xff] }
 0x1da   : > { %5083 = vmatprep.subr.mxu1 %v4427_v46  ;;  %5121 = vmatpush3.msra.mxu0 %v4442_v47  ;;  %v4491_v45 = vld [vmem:[%s8900_s3 + $0x510] sm:$0xff]  ;;  %v4474_v46 = vld [vmem:[%s8900_s3 + $0x498] sm:$0xff]  ;;  %v4506_v47 = vld [vmem:[%s8900_s3 + $0x588] sm:$0xff] }
 0x1db   : > { %5084 = vmatpush3.msra.mxu1 %v4411_v48  ;;  %5122 = vmatprep.subr.mxu0 %v4457_v25  ;;  %v4490_v48 = vld [vmem:[%s8900_s3 + $0x508] sm:$0xff]  ;;  %v4473_v25 = vld [vmem:[%s8900_s3 + $0x490] sm:$0xff] }
 0x1dc   : > { %5085 = vmatprep.subr.mxu1 %v4426_v49  ;;  %5123 = vmatpush3.msra.mxu0 %v4441_v50  ;;  %v4505_v49 = vld [vmem:[%s8900_s3 + $0x580] sm:$0xff] }
 0x1dd   : > { %5086 = vmatpush3.msra.mxu1 %v4410_v51  ;;  %5124 = vmatprep.subr.mxu0 %v4456_v52  ;;  %v4489_v50 = vld [vmem:[%s8900_s3 + $0x500] sm:$0xff]  ;;  %v4472_v51 = vld [vmem:[%s8900_s3 + $0x488] sm:$0xff]  ;;  %v4504_v52 = vld [vmem:[%s8900_s3 + $0x578] sm:$0xff] }
 0x1de   : > { %5087 = vmatprep.subr.mxu1 %v4425_v53  ;;  %5125 = vmatpush3.msra.mxu0 %v4440_v30  ;;  %v4488_v53 = vld [vmem:[%s8900_s3 + $0x4f8] sm:$0xff]  ;;  %v4471_v30 = vld [vmem:[%s8900_s3 + $0x480] sm:$0xff] }
 0x1df   : > { %5088 = vmatpush3.msra.mxu1 %v4409_v54  ;;  %5126 = vmatprep.subr.mxu0 %v4455_v33  ;;  %v4503_v54 = vld [vmem:[%s8900_s3 + $0x570] sm:$0xff] }
 0x1e0   : > { %5089 = vmatprep.subr.mxu1 %v4424_v55  ;;  %5127 = vmatpush3.msra.mxu0 %v4439_v56  ;;  %v4487_v33 = vld [vmem:[%s8900_s3 + $0x4f0] sm:$0xff]  ;;  %v4470_v55 = vld [vmem:[%s8900_s3 + $0x478] sm:$0xff]  ;;  %v2212_v56 = vrot.slane %v6893_v24, 2 }
 0x1e1   : > { %5090 = vmatpush3.msra.mxu1 %v4408_v58  ;;  %5128 = vmatprep.subr.mxu0 %v4454_v5  ;;  %v1911_v58 = vrot.slane %v6973_v57, 1  ;;  %v4550_v5 = vld [vmem:[%s8900_s3 + $0x6e8] sm:$0xff] }
 0x1e2   : > { %5091 = vmatprep.subr.mxu1 %v4423_v59  ;;  %5129 = vmatpush3.msra.mxu0 %v4438_v61  ;;  %v4565_v59 = vld [vmem:[%s8900_s3 + $0x760] sm:$0x1]  ;;  %v4534_v61 = vld [vmem:[%s8900_s3 + $0x668] sm:$0xff] }
 0x1e3   : > { %5092 = vmatpush3.msra.mxu1 %v4407_v63  ;;  %2056 = vmatmul.mubr.f32.vlgmr.msra.gmra.mxu0 %v1909_v1  ;;  %v2215_v63 = vrot.slane %v6982_v60, 2  ;;  %v4549_v1 = vld [vmem:[%s8900_s3 + $0x6e0] sm:$0xff] }
 0x1e4   : > { %5149 = vmatprep.subr.mxu0 %v4518_v2  ;;  %5093 = vmatprep.subr.mxu1 %v4422_v3  ;;  %v4564_v2 = vld [vmem:[%s8900_s3 + $0x758] sm:$0xff]  ;;  %v4533_v3 = vld [vmem:[%s8900_s3 + $0x660] sm:$0xff] }
 0x1e5   : > { %5150 = vmatpush3.msra.mxu0 %v4502_v0  ;;  %2290 = vmatprep.mubr.f32.mxu0 %v2213_v4  ;;  %v4548_v0 = vld [vmem:[%s8900_s3 + $0x6d8] sm:$0xff]  ;;  %v4563_v4 = vld [vmem:[%s8900_s3 + $0x750] sm:$0xff] }
 0x1e6   : > { %5094 = vmatpush3.msra.mxu1 %v4406_v6  ;;  %5151 = vmatprep.subr.mxu0 %v4517_v7  ;;  %v4532_v6 = vld [vmem:[%s8900_s3 + $0x658] sm:$0xff]  ;;  %v4547_v7 = vld [vmem:[%s8900_s3 + $0x6d0] sm:$0xff] }
 0x1e7   : > { %1986 = vmatmul.mubr.f32.vlgmr.msra.gmra.mxu1 %v1907_v8  ;;  %5707 = vmatprep.subr.mxu1 %v6065_v14  ;;  %v4562_v8 = vld [vmem:[%s8900_s3 + $0x748] sm:$0xff] }
 0x1e8   : > { %5152 = vmatpush3.msra.mxu0 %v4501_v9  ;;  %5708 = vmatpush3.msk.msra.mxu1 %vm1608_vm1, %v4484_v11  ;;  %v4531_v9 = vld [vmem:[%s8900_s3 + $0x650] sm:$0xff]  ;;  %v4546_v11 = vld [vmem:[%s8900_s3 + $0x6c8] sm:$0xff] }
 0x1e9   : > { %5153 = vmatprep.subr.mxu0 %v4516_v12  ;;  %5709 = vmatprep.subr.mxu1 %v6065_v14  ;;  %v4561_v12 = vld [vmem:[%s8900_s3 + $0x740] sm:$0xff] }
 0x1ea   : > { %5154 = vmatpush3.msra.mxu0 %v4500_v13  ;;  %5710 = vmatpush3.msra.mxu1 %v4483_v15  ;;  %v4530_v13 = vld [vmem:[%s8900_s3 + $0x648] sm:$0xff]  ;;  %v4545_v15 = vld [vmem:[%s8900_s3 + $0x6c0] sm:$0xff] }
 0x1eb   : > { %5155 = vmatprep.subr.mxu0 %v4515_v16  ;;  %5711 = vmatprep.subr.mxu1 %v6065_v14  ;;  %v4560_v16 = vld [vmem:[%s8900_s3 + $0x738] sm:$0xff] }
 0x1ec   : > { %5156 = vmatpush3.msra.mxu0 %v4499_v10  ;;  %5712 = vmatpush3.msra.mxu1 %v4482_v17  ;;  %v4529_v10 = vld [vmem:[%s8900_s3 + $0x640] sm:$0xff]  ;;  %v4544_v17 = vld [vmem:[%s8900_s3 + $0x6b8] sm:$0xff] }
 0x1ed   : > { %5157 = vmatprep.subr.mxu0 %v4514_v18  ;;  %5713 = vmatprep.subr.mxu1 %v6065_v14  ;;  %v4559_v18 = vld [vmem:[%s8900_s3 + $0x730] sm:$0xff] }
 0x1ee   : > { %5158 = vmatpush3.msra.mxu0 %v4498_v19  ;;  %5714 = vmatpush3.msra.mxu1 %v4481_v20  ;;  %v4528_v19 = vld [vmem:[%s8900_s3 + $0x638] sm:$0xff]  ;;  %v4543_v20 = vld [vmem:[%s8900_s3 + $0x6b0] sm:$0xff] }
 0x1ef   : > { %5159 = vmatprep.subr.mxu0 %v4513_v21  ;;  %5715 = vmatprep.subr.mxu1 %v6065_v14  ;;  %v4558_v21 = vld [vmem:[%s8900_s3 + $0x728] sm:$0xff] }
 0x1f0   : > { %5160 = vmatpush3.msra.mxu0 %v4497_v22  ;;  %5716 = vmatpush3.msra.mxu1 %v4480_v23  ;;  %v4527_v22 = vld [vmem:[%s8900_s3 + $0x630] sm:$0xff]  ;;  %v4542_v23 = vld [vmem:[%s8900_s3 + $0x6a8] sm:$0xff] }
 0x1f1   : > { %5161 = vmatprep.subr.mxu0 %v4512_v26  ;;  %5717 = vmatprep.subr.mxu1 %v6065_v14  ;;  %v4557_v26 = vld [vmem:[%s8900_s3 + $0x720] sm:$0xff] }
 0x1f2   : > { %5162 = vmatpush3.msra.mxu0 %v4496_v28  ;;  %5718 = vmatpush3.msra.mxu1 %v4479_v29  ;;  %v4526_v28 = vld [vmem:[%s8900_s3 + $0x628] sm:$0xff]  ;;  %v4541_v29 = vld [vmem:[%s8900_s3 + $0x6a0] sm:$0xff] }
 0x1f3   : > { %5163 = vmatprep.subr.mxu0 %v4511_v31  ;;  %5719 = vmatprep.subr.mxu1 %v6065_v14  ;;  %v4556_v31 = vld [vmem:[%s8900_s3 + $0x718] sm:$0xff] }
 0x1f4   : > { %5164 = vmatpush3.msra.mxu0 %v4495_v32  ;;  %5720 = vmatpush3.msra.mxu1 %v4478_v34  ;;  %v4525_v32 = vld [vmem:[%s8900_s3 + $0x620] sm:$0xff]  ;;  %v4540_v34 = vld [vmem:[%s8900_s3 + $0x698] sm:$0xff] }
 0x1f5   : > { %5165 = vmatprep.subr.mxu0 %v4510_v35  ;;  %5721 = vmatprep.subr.mxu1 %v6065_v14  ;;  %v4555_v35 = vld [vmem:[%s8900_s3 + $0x710] sm:$0xff] }
 0x1f6   : > { %5166 = vmatpush3.msra.mxu0 %v4494_v36  ;;  %5722 = vmatpush3.msra.mxu1 %v4477_v37  ;;  %v4524_v36 = vld [vmem:[%s8900_s3 + $0x618] sm:$0xff]  ;;  %v4539_v37 = vld [vmem:[%s8900_s3 + $0x690] sm:$0xff] }
 0x1f7   : > { %5167 = vmatprep.subr.mxu0 %v4509_v38  ;;  %5723 = vmatprep.subr.mxu1 %v6065_v14  ;;  %v4554_v38 = vld [vmem:[%s8900_s3 + $0x708] sm:$0xff] }
 0x1f8   : > { %5168 = vmatpush3.msra.mxu0 %v4493_v39  ;;  %5724 = vmatpush3.msra.mxu1 %v4476_v40  ;;  %v4523_v39 = vld [vmem:[%s8900_s3 + $0x610] sm:$0xff]  ;;  %v4538_v40 = vld [vmem:[%s8900_s3 + $0x688] sm:$0xff] }
 0x1f9   : > { %5169 = vmatprep.subr.mxu0 %v4508_v41  ;;  %5725 = vmatprep.subr.mxu1 %v6065_v14  ;;  %v4553_v41 = vld [vmem:[%s8900_s3 + $0x700] sm:$0xff] }
 0x1fa   : > { %5170 = vmatpush3.msra.mxu0 %v4492_v42  ;;  %5726 = vmatpush3.msra.mxu1 %v4475_v43  ;;  %v4522_v42 = vld [vmem:[%s8900_s3 + $0x608] sm:$0xff]  ;;  %v4537_v43 = vld [vmem:[%s8900_s3 + $0x680] sm:$0xff] }
 0x1fb   : > { %5171 = vmatprep.subr.mxu0 %v4507_v44  ;;  %5727 = vmatprep.subr.mxu1 %v6065_v14  ;;  %v4552_v44 = vld [vmem:[%s8900_s3 + $0x6f8] sm:$0xff] }
 0x1fc   : > { %5172 = vmatpush3.msra.mxu0 %v4491_v45  ;;  %5728 = vmatpush3.msra.mxu1 %v4474_v46  ;;  %v4521_v45 = vld [vmem:[%s8900_s3 + $0x600] sm:$0xff]  ;;  %v4536_v46 = vld [vmem:[%s8900_s3 + $0x678] sm:$0xff] }
 0x1fd   : > { %5173 = vmatprep.subr.mxu0 %v4506_v47  ;;  %5729 = vmatprep.subr.mxu1 %v6065_v14  ;;  %v4551_v47 = vld [vmem:[%s8900_s3 + $0x6f0] sm:$0xff] }
 0x1fe   : > { %5174 = vmatpush3.msra.mxu0 %v4490_v48  ;;  %5730 = vmatpush3.msra.mxu1 %v4473_v25  ;;  %v4520_v48 = vld [vmem:[%s8900_s3 + $0x5f8] sm:$0xff]  ;;  %v2216_v25 = vrot.slane %v6973_v57, 2 }
 0x1ff   : > { %5175 = vmatprep.subr.mxu0 %v4505_v49  ;;  %5731 = vmatprep.subr.mxu1 %v6065_v14  ;;  %v4631_v49 = vld [vmem:[%s8900_s3 + $0x960] sm:$0xff] }
 0x200   : > { %5176 = vmatpush3.msra.mxu0 %v4489_v50  ;;  %5732 = vmatpush3.msra.mxu1 %v4472_v51  ;;  %v4535_v50 = vld [vmem:[%s8900_s3 + $0x670] sm:$0xff]  ;;  %v4615_v51 = vld [vmem:[%s8900_s3 + $0x8e0] sm:$0xff] }
 0x201   : > { %5177 = vmatprep.subr.mxu0 %v4504_v52  ;;  %5733 = vmatprep.subr.mxu1 %v6065_v14  ;;  %v2520_v52 = vrot.slane %v6982_v60, 3 }
 0x202   : > { %5178 = vmatpush3.msra.mxu0 %v4488_v53  ;;  %5734 = vmatpush3.msra.mxu1 %v4471_v30  ;;  %v4519_v53 = vld [vmem:[%s8900_s3 + $0x5f0] sm:$0xff]  ;;  %v4630_v30 = vld [vmem:[%s8900_s3 + $0x958] sm:$0xff] }
 0x203   : > { %5179 = vmatprep.subr.mxu0 %v4503_v54  ;;  %5735 = vmatprep.subr.mxu1 %v6065_v14  ;;  %v4599_v54 = vld [vmem:[%s8900_s3 + $0x860] sm:$0xff] }
 0x204   : > { %5180 = vmatpush3.msra.mxu0 %v4487_v33  ;;  %5736 = vmatpush3.msra.mxu1 %v4470_v55  ;;  %v2214_v33 = vrot.slane %v6989_v62, 2  ;;  %v4614_v55 = vld [vmem:[%s8900_s3 + $0x8d8] sm:$0xff] }
 0x205   : > { %5737 = vmatprep.mubr.msk.f32.mxu1 %vm6067_vm2, %v6065_v14  ;;  %2291 = vmatmul.mubr.f32.vlgmr.msra.gmra.mxu0 %v2212_v56  ;;  %v4583_v56 = vld [vmem:[%s8900_s3 + $0x7e0] sm:$0xff] }
 0x206   : > { %5740 = vmatprep.subr.mxu0 %v6065_v14  ;;  %5738 = vmatmul.mubr.msk.f32.vlgmr.msra.gmra.mxu1 %vm1604_vm3, %v1911_v58  ;;  %v4629_v58 = vld [vmem:[%s8900_s3 + $0x950] sm:$0xff] }
 0x207   : > { %5184 = vmatprep.subr.mxu1 %v4550_v5  ;;  %5741 = vmatpush3.msk.msra.mxu0 %vm1608_vm1, %v4565_v59  ;;  %v2518_v5 = vrot.slane %v6891_v27, 3  ;;  %v4598_v59 = vld [vmem:[%s8900_s3 + $0x858] sm:$0xff] }
 0x208   : > { %5185 = vmatpush3.msra.mxu1 %v4534_v61  ;;  %2360 = vmatprep.mubr.f32.mxu1 %v2215_v63  ;;  %v4613_v61 = vld [vmem:[%s8900_s3 + $0x8d0] sm:$0xff]  ;;  %v4582_v63 = vld [vmem:[%s8900_s3 + $0x7d8] sm:$0xff] }
 0x209   : > { %5742 = vmatprep.subr.mxu0 %v6065_v14  ;;  %5186 = vmatprep.subr.mxu1 %v4549_v1  ;;  %v4628_v1 = vld [vmem:[%s8900_s3 + $0x948] sm:$0xff] }
 0x20a   : > { %5743 = vmatpush3.msra.mxu0 %v4564_v2  ;;  %5187 = vmatpush3.msra.mxu1 %v4533_v3  ;;  %v4597_v2 = vld [vmem:[%s8900_s3 + $0x850] sm:$0xff]  ;;  %v4612_v3 = vld [vmem:[%s8900_s3 + $0x8c8] sm:$0xff] }
 0x20b   : > { %5744 = vmatprep.subr.mxu0 %v6065_v14  ;;  %5188 = vmatprep.subr.mxu1 %v4548_v0  ;;  %v4581_v0 = vld [vmem:[%s8900_s3 + $0x7d0] sm:$0xff] }
 0x20c   : > { %5745 = vmatpush3.msra.mxu0 %v4563_v4  ;;  %5189 = vmatpush3.msra.mxu1 %v4532_v6  ;;  %v4627_v4 = vld [vmem:[%s8900_s3 + $0x940] sm:$0xff]  ;;  %v4596_v6 = vld [vmem:[%s8900_s3 + $0x848] sm:$0xff] }
 0x20d   : > { %5746 = vmatprep.subr.mxu0 %v6065_v14  ;;  %5190 = vmatprep.subr.mxu1 %v4547_v7  ;;  %v4611_v7 = vld [vmem:[%s8900_s3 + $0x8c0] sm:$0xff] }
 0x20e   : > { %5747 = vmatpush3.msra.mxu0 %v4562_v8  ;;  %5191 = vmatpush3.msra.mxu1 %v4531_v9  ;;  %v4580_v8 = vld [vmem:[%s8900_s3 + $0x7c8] sm:$0xff]  ;;  %v4626_v9 = vld [vmem:[%s8900_s3 + $0x938] sm:$0xff] }
 0x20f   : > { %5748 = vmatprep.subr.mxu0 %v6065_v14  ;;  %5192 = vmatprep.subr.mxu1 %v4546_v11  ;;  %v4595_v11 = vld [vmem:[%s8900_s3 + $0x840] sm:$0xff] }
 0x210   : > { %5749 = vmatpush3.msra.mxu0 %v4561_v12  ;;  %5193 = vmatpush3.msra.mxu1 %v4530_v13  ;;  %v4610_v12 = vld [vmem:[%s8900_s3 + $0x8b8] sm:$0xff]  ;;  %v4579_v13 = vld [vmem:[%s8900_s3 + $0x7c0] sm:$0xff] }
 0x211   : > { %5750 = vmatprep.subr.mxu0 %v6065_v14  ;;  %5194 = vmatprep.subr.mxu1 %v4545_v15  ;;  %v4625_v15 = vld [vmem:[%s8900_s3 + $0x930] sm:$0xff] }
 0x212   : > { %5751 = vmatpush3.msra.mxu0 %v4560_v16  ;;  %5195 = vmatpush3.msra.mxu1 %v4529_v10  ;;  %v4594_v16 = vld [vmem:[%s8900_s3 + $0x838] sm:$0xff]  ;;  %v4609_v10 = vld [vmem:[%s8900_s3 + $0x8b0] sm:$0xff] }
 0x213   : > { %5752 = vmatprep.subr.mxu0 %v6065_v14  ;;  %5196 = vmatprep.subr.mxu1 %v4544_v17  ;;  %v4578_v17 = vld [vmem:[%s8900_s3 + $0x7b8] sm:$0xff] }
 0x214   : > { %5753 = vmatpush3.msra.mxu0 %v4559_v18  ;;  %5197 = vmatpush3.msra.mxu1 %v4528_v19  ;;  %v4624_v18 = vld [vmem:[%s8900_s3 + $0x928] sm:$0xff]  ;;  %v4593_v19 = vld [vmem:[%s8900_s3 + $0x830] sm:$0xff] }
 0x215   : > { %5754 = vmatprep.subr.mxu0 %v6065_v14  ;;  %5198 = vmatprep.subr.mxu1 %v4543_v20  ;;  %v4608_v20 = vld [vmem:[%s8900_s3 + $0x8a8] sm:$0xff] }
 0x216   : > { %5755 = vmatpush3.msra.mxu0 %v4558_v21  ;;  %5199 = vmatpush3.msra.mxu1 %v4527_v22  ;;  %v4577_v21 = vld [vmem:[%s8900_s3 + $0x7b0] sm:$0xff]  ;;  %v4623_v22 = vld [vmem:[%s8900_s3 + $0x920] sm:$0xff] }
 0x217   : > { %5756 = vmatprep.subr.mxu0 %v6065_v14  ;;  %5200 = vmatprep.subr.mxu1 %v4542_v23  ;;  %v4592_v23 = vld [vmem:[%s8900_s3 + $0x828] sm:$0xff] }
 0x218   : > { %5757 = vmatpush3.msra.mxu0 %v4557_v26  ;;  %5201 = vmatpush3.msra.mxu1 %v4526_v28  ;;  %v4607_v26 = vld [vmem:[%s8900_s3 + $0x8a0] sm:$0xff]  ;;  %v4576_v28 = vld [vmem:[%s8900_s3 + $0x7a8] sm:$0xff] }
 0x219   : > { %5758 = vmatprep.subr.mxu0 %v6065_v14  ;;  %5202 = vmatprep.subr.mxu1 %v4541_v29  ;;  %v4622_v29 = vld [vmem:[%s8900_s3 + $0x918] sm:$0xff] }
 0x21a   : > { %5759 = vmatpush3.msra.mxu0 %v4556_v31  ;;  %5203 = vmatpush3.msra.mxu1 %v4525_v32  ;;  %v4591_v31 = vld [vmem:[%s8900_s3 + $0x820] sm:$0xff]  ;;  %v4606_v32 = vld [vmem:[%s8900_s3 + $0x898] sm:$0xff] }
 0x21b   : > { %5760 = vmatprep.subr.mxu0 %v6065_v14  ;;  %5204 = vmatprep.subr.mxu1 %v4540_v34  ;;  %v4575_v34 = vld [vmem:[%s8900_s3 + $0x7a0] sm:$0xff] }
 0x21c   : > { %5761 = vmatpush3.msra.mxu0 %v4555_v35  ;;  %5205 = vmatpush3.msra.mxu1 %v4524_v36  ;;  %v4621_v35 = vld [vmem:[%s8900_s3 + $0x910] sm:$0xff]  ;;  %v4590_v36 = vld [vmem:[%s8900_s3 + $0x818] sm:$0xff] }
 0x21d   : > { %5762 = vmatprep.subr.mxu0 %v6065_v14  ;;  %5206 = vmatprep.subr.mxu1 %v4539_v37  ;;  %v4605_v37 = vld [vmem:[%s8900_s3 + $0x890] sm:$0xff] }
 0x21e   : > { %5763 = vmatpush3.msra.mxu0 %v4554_v38  ;;  %5207 = vmatpush3.msra.mxu1 %v4523_v39  ;;  %v4574_v38 = vld [vmem:[%s8900_s3 + $0x798] sm:$0xff]  ;;  %v4620_v39 = vld [vmem:[%s8900_s3 + $0x908] sm:$0xff] }
 0x21f   : > { %5764 = vmatprep.subr.mxu0 %v6065_v14  ;;  %5208 = vmatprep.subr.mxu1 %v4538_v40  ;;  %v4589_v40 = vld [vmem:[%s8900_s3 + $0x810] sm:$0xff] }
 0x220   : > { %5765 = vmatpush3.msra.mxu0 %v4553_v41  ;;  %5209 = vmatpush3.msra.mxu1 %v4522_v42  ;;  %v4604_v41 = vld [vmem:[%s8900_s3 + $0x888] sm:$0xff]  ;;  %v4573_v42 = vld [vmem:[%s8900_s3 + $0x790] sm:$0xff] }
 0x221   : > { %5766 = vmatprep.subr.mxu0 %v6065_v14  ;;  %5210 = vmatprep.subr.mxu1 %v4537_v43  ;;  %v4619_v43 = vld [vmem:[%s8900_s3 + $0x900] sm:$0xff] }
 0x222   : > { %5767 = vmatpush3.msra.mxu0 %v4552_v44  ;;  %5211 = vmatpush3.msra.mxu1 %v4521_v45  ;;  %v4588_v44 = vld [vmem:[%s8900_s3 + $0x808] sm:$0xff]  ;;  %v4603_v45 = vld [vmem:[%s8900_s3 + $0x880] sm:$0xff] }
 0x223   : > { %5768 = vmatprep.subr.mxu0 %v6065_v14  ;;  %5212 = vmatprep.subr.mxu1 %v4536_v46  ;;  %v4572_v46 = vld [vmem:[%s8900_s3 + $0x788] sm:$0xff] }
 0x224   : > { %5769 = vmatpush3.msra.mxu0 %v4551_v47  ;;  %5770 = vmatprep.mubr.msk.f32.mxu0 %vm6067_vm2, %v6065_v14  ;;  %v4618_v47 = vld [vmem:[%s8900_s3 + $0x8f8] sm:$0xff] }
 0x225   : > { %5213 = vmatpush3.msra.mxu1 %v4520_v48  ;;  %5771 = vmatmul.mubr.msk.f32.vlgmr.msra.gmra.mxu0 %vm1604_vm3, %v2216_v25  ;;  %v4587_v48 = vld [vmem:[%s8900_s3 + $0x800] sm:$0xff]  ;;  %v4602_v25 = vld [vmem:[%s8900_s3 + $0x878] sm:$0xff] }
 0x226   : > { %5270 = vmatprep.subr.mxu0 %v4631_v49  ;;  %5214 = vmatprep.subr.mxu1 %v4535_v50  ;;  %v4571_v49 = vld [vmem:[%s8900_s3 + $0x780] sm:$0xff]  ;;  %v4617_v50 = vld [vmem:[%s8900_s3 + $0x8f0] sm:$0xff] }
 0x227   : > { %5271 = vmatpush3.msra.mxu0 %v4615_v51  ;;  %2665 = vmatprep.mubr.f32.mxu0 %v2520_v52  ;;  %v4586_v51 = vld [vmem:[%s8900_s3 + $0x7f8] sm:$0xff]  ;;  %v4601_v52 = vld [vmem:[%s8900_s3 + $0x870] sm:$0xff] }
 0x228   : > { %5215 = vmatpush3.msra.mxu1 %v4519_v53  ;;  %5272 = vmatprep.subr.mxu0 %v4630_v30  ;;  %v4570_v53 = vld [vmem:[%s8900_s3 + $0x778] sm:$0xff]  ;;  %v4616_v30 = vld [vmem:[%s8900_s3 + $0x8e8] sm:$0xff] }
 0x229   : > { %2361 = vmatmul.mubr.f32.vlgmr.msra.gmra.mxu1 %v2214_v33  ;;  %5235 = vmatprep.subr.mxu1 %v4599_v54  ;;  %v4585_v54 = vld [vmem:[%s8900_s3 + $0x7f0] sm:$0xff]  ;;  %v4600_v33 = vld [vmem:[%s8900_s3 + $0x868] sm:$0xff] }
 0x22a   : > { %5273 = vmatpush3.msra.mxu0 %v4614_v55  ;;  %5236 = vmatpush3.msra.mxu1 %v4583_v56  ;;  %v4569_v55 = vld [vmem:[%s8900_s3 + $0x770] sm:$0xff]  ;;  %v2519_v56 = vrot.slane %v6989_v62, 3 }
 0x22b   : > { %2595 = vmatprep.mubr.f32.mxu1 %v2518_v5  ;;  %5274 = vmatprep.subr.mxu0 %v4629_v58  ;;  %v4680_v58 = vld [vmem:[%s8900_s3 + $0xad8] sm:$0xff]  ;;  %v4584_v5 = vld [vmem:[%s8900_s3 + $0x7e8] sm:$0xff] }
 0x22c   : > { %5237 = vmatprep.subr.mxu1 %v4598_v59  ;;  %5275 = vmatpush3.msra.mxu0 %v4613_v61  ;;  %v4664_v59 = vld [vmem:[%s8900_s3 + $0xa58] sm:$0xff]  ;;  %v2823_v61 = vrot.slane %v6891_v27, 4 }
 0x22d   : > { %5238 = vmatpush3.msra.mxu1 %v4582_v63  ;;  %5276 = vmatprep.subr.mxu0 %v4628_v1  ;;  %v4568_v63 = vld [vmem:[%s8900_s3 + $0x768] sm:$0xff]  ;;  %v4679_v1 = vld [vmem:[%s8900_s3 + $0xad0] sm:$0xff] }
 0x22e   : > { %5239 = vmatprep.subr.mxu1 %v4597_v2  ;;  %5277 = vmatpush3.msra.mxu0 %v4612_v3  ;;  %v2517_v2 = vrot.slane %v6893_v24, 3  ;;  %v4663_v3 = vld [vmem:[%s8900_s3 + $0xa50] sm:$0xff] }
 0x22f   : > { %5240 = vmatpush3.msra.mxu1 %v4581_v0  ;;  %5278 = vmatprep.subr.mxu0 %v4627_v4  ;;  %v4646_v0 = vld [vmem:[%s8900_s3 + $0x9d8] sm:$0x1]  ;;  %v4678_v4 = vld [vmem:[%s8900_s3 + $0xac8] sm:$0xff] }
 0x230   : > { %5241 = vmatprep.subr.mxu1 %v4596_v6  ;;  %5279 = vmatpush3.msra.mxu0 %v4611_v7  ;;  %v4662_v6 = vld [vmem:[%s8900_s3 + $0xa48] sm:$0xff]  ;;  %v4645_v7 = vld [vmem:[%s8900_s3 + $0x9d0] sm:$0xff] }
 0x231   : > { %5242 = vmatpush3.msra.mxu1 %v4580_v8  ;;  %5280 = vmatprep.subr.mxu0 %v4626_v9  ;;  %v4677_v8 = vld [vmem:[%s8900_s3 + $0xac0] sm:$0xff] }
 0x232   : > { %5243 = vmatprep.subr.mxu1 %v4595_v11  ;;  %5281 = vmatpush3.msra.mxu0 %v4610_v12  ;;  %v4661_v9 = vld [vmem:[%s8900_s3 + $0xa40] sm:$0xff]  ;;  %v4644_v11 = vld [vmem:[%s8900_s3 + $0x9c8] sm:$0xff]  ;;  %v4676_v12 = vld [vmem:[%s8900_s3 + $0xab8] sm:$0xff] }
 0x233   : > { %5244 = vmatpush3.msra.mxu1 %v4579_v13  ;;  %5282 = vmatprep.subr.mxu0 %v4625_v15  ;;  %v4660_v13 = vld [vmem:[%s8900_s3 + $0xa38] sm:$0xff]  ;;  %v4643_v15 = vld [vmem:[%s8900_s3 + $0x9c0] sm:$0xff] }
 0x234   : > { %5245 = vmatprep.subr.mxu1 %v4594_v16  ;;  %5283 = vmatpush3.msra.mxu0 %v4609_v10  ;;  %v4675_v16 = vld [vmem:[%s8900_s3 + $0xab0] sm:$0xff] }
 0x235   : > { %5246 = vmatpush3.msra.mxu1 %v4578_v17  ;;  %5284 = vmatprep.subr.mxu0 %v4624_v18  ;;  %v4659_v10 = vld [vmem:[%s8900_s3 + $0xa30] sm:$0xff]  ;;  %v4642_v17 = vld [vmem:[%s8900_s3 + $0x9b8] sm:$0xff]  ;;  %v4674_v18 = vld [vmem:[%s8900_s3 + $0xaa8] sm:$0xff] }
 0x236   : > { %5247 = vmatprep.subr.mxu1 %v4593_v19  ;;  %5285 = vmatpush3.msra.mxu0 %v4608_v20  ;;  %v4658_v19 = vld [vmem:[%s8900_s3 + $0xa28] sm:$0xff]  ;;  %v4641_v20 = vld [vmem:[%s8900_s3 + $0x9b0] sm:$0xff] }
 0x237   : > { %5248 = vmatpush3.msra.mxu1 %v4577_v21  ;;  %5286 = vmatprep.subr.mxu0 %v4623_v22  ;;  %v4673_v21 = vld [vmem:[%s8900_s3 + $0xaa0] sm:$0xff] }
 0x238   : > { %5249 = vmatprep.subr.mxu1 %v4592_v23  ;;  %5287 = vmatpush3.msra.mxu0 %v4607_v26  ;;  %v4657_v22 = vld [vmem:[%s8900_s3 + $0xa20] sm:$0xff]  ;;  %v4640_v23 = vld [vmem:[%s8900_s3 + $0x9a8] sm:$0xff]  ;;  %v4672_v26 = vld [vmem:[%s8900_s3 + $0xa98] sm:$0xff] }
 0x239   : > { %5250 = vmatpush3.msra.mxu1 %v4576_v28  ;;  %5288 = vmatprep.subr.mxu0 %v4622_v29  ;;  %v4656_v28 = vld [vmem:[%s8900_s3 + $0xa18] sm:$0xff]  ;;  %v4639_v29 = vld [vmem:[%s8900_s3 + $0x9a0] sm:$0xff] }
 0x23a   : > { %5251 = vmatprep.subr.mxu1 %v4591_v31  ;;  %5289 = vmatpush3.msra.mxu0 %v4606_v32  ;;  %v4671_v31 = vld [vmem:[%s8900_s3 + $0xa90] sm:$0xff] }
 0x23b   : > { %5252 = vmatpush3.msra.mxu1 %v4575_v34  ;;  %5290 = vmatprep.subr.mxu0 %v4621_v35  ;;  %v4655_v32 = vld [vmem:[%s8900_s3 + $0xa10] sm:$0xff]  ;;  %v4638_v34 = vld [vmem:[%s8900_s3 + $0x998] sm:$0xff]  ;;  %v4670_v35 = vld [vmem:[%s8900_s3 + $0xa88] sm:$0xff] }
 0x23c   : > { %5253 = vmatprep.subr.mxu1 %v4590_v36  ;;  %5291 = vmatpush3.msra.mxu0 %v4605_v37  ;;  %v4654_v36 = vld [vmem:[%s8900_s3 + $0xa08] sm:$0xff]  ;;  %v4637_v37 = vld [vmem:[%s8900_s3 + $0x990] sm:$0xff] }
 0x23d   : > { %5254 = vmatpush3.msra.mxu1 %v4574_v38  ;;  %5292 = vmatprep.subr.mxu0 %v4620_v39  ;;  %v4669_v38 = vld [vmem:[%s8900_s3 + $0xa80] sm:$0xff] }
 0x23e   : > { %5255 = vmatprep.subr.mxu1 %v4589_v40  ;;  %5293 = vmatpush3.msra.mxu0 %v4604_v41  ;;  %v4653_v39 = vld [vmem:[%s8900_s3 + $0xa00] sm:$0xff]  ;;  %v4636_v40 = vld [vmem:[%s8900_s3 + $0x988] sm:$0xff]  ;;  %v4668_v41 = vld [vmem:[%s8900_s3 + $0xa78] sm:$0xff] }
 0x23f   : > { %5256 = vmatpush3.msra.mxu1 %v4573_v42  ;;  %5294 = vmatprep.subr.mxu0 %v4619_v43  ;;  %v4652_v42 = vld [vmem:[%s8900_s3 + $0x9f8] sm:$0xff]  ;;  %v4635_v43 = vld [vmem:[%s8900_s3 + $0x980] sm:$0xff] }
 0x240   : > { %5257 = vmatprep.subr.mxu1 %v4588_v44  ;;  %5295 = vmatpush3.msra.mxu0 %v4603_v45  ;;  %v4667_v45 = vld [vmem:[%s8900_s3 + $0xa70] sm:$0xff] }
 0x241   : > { %5258 = vmatpush3.msra.mxu1 %v4572_v46  ;;  %5296 = vmatprep.subr.mxu0 %v4618_v47  ;;  %v4651_v46 = vld [vmem:[%s8900_s3 + $0x9f0] sm:$0xff]  ;;  %v4634_v47 = vld [vmem:[%s8900_s3 + $0x978] sm:$0xff] }
 0x242   : > { %5259 = vmatprep.subr.mxu1 %v4587_v48  ;;  %5297 = vmatpush3.msra.mxu0 %v4602_v25  ;;  %v4666_v25 = vld [vmem:[%s8900_s3 + $0xa68] sm:$0xff] }
 0x243   : > { %5260 = vmatpush3.msra.mxu1 %v4571_v49  ;;  %5298 = vmatprep.subr.mxu0 %v4617_v50  ;;  %v4650_v50 = vld [vmem:[%s8900_s3 + $0x9e8] sm:$0xff] }
 0x244   : > { %5261 = vmatprep.subr.mxu1 %v4586_v51  ;;  %5299 = vmatpush3.msra.mxu0 %v4601_v52  ;;  %v4633_v51 = vld [vmem:[%s8900_s3 + $0x970] sm:$0xff]  ;;  %v4665_v52 = vld [vmem:[%s8900_s3 + $0xa60] sm:$0xff] }
 0x245   : > { %5262 = vmatpush3.msra.mxu1 %v4570_v53  ;;  %5300 = vmatprep.subr.mxu0 %v4616_v30  ;;  %v4649_v53 = vld [vmem:[%s8900_s3 + $0x9e0] sm:$0xff]  ;;  %v4632_v30 = vld [vmem:[%s8900_s3 + $0x968] sm:$0xff] }
 0x246   : > { %5263 = vmatprep.subr.mxu1 %v4585_v54  ;;  %5301 = vmatpush3.msra.mxu0 %v4600_v33  ;;  %v2822_v54 = vrot.slane %v6893_v24, 4  ;;  %v2521_v33 = vrot.slane %v6973_v57, 3 }
 0x247   : > { %5264 = vmatpush3.msra.mxu1 %v4569_v55  ;;  %2666 = vmatmul.mubr.f32.vlgmr.msra.gmra.mxu0 %v2519_v56  ;;  %v4712_v55 = vld [vmem:[%s8900_s3 + $0xbd8] sm:$0xff]  ;;  %v4727_v56 = vld [vmem:[%s8900_s3 + $0xc50] sm:$0x1] }
 0x248   : > { %5321 = vmatprep.subr.mxu0 %v4680_v58  ;;  %5265 = vmatprep.subr.mxu1 %v4584_v5  ;;  %v4696_v58 = vld [vmem:[%s8900_s3 + $0xb58] sm:$0xff]  ;;  %v2825_v5 = vrot.slane %v6982_v60, 4 }
 0x249   : > { %5322 = vmatpush3.msra.mxu0 %v4664_v59  ;;  %2900 = vmatprep.mubr.f32.mxu0 %v2823_v61  ;;  %v4711_v59 = vld [vmem:[%s8900_s3 + $0xbd0] sm:$0xff]  ;;  %v4726_v61 = vld [vmem:[%s8900_s3 + $0xc48] sm:$0xff] }
 0x24a   : > { %5266 = vmatpush3.msra.mxu1 %v4568_v63  ;;  %5323 = vmatprep.subr.mxu0 %v4679_v1  ;;  %v4695_v63 = vld [vmem:[%s8900_s3 + $0xb50] sm:$0xff]  ;;  %v4710_v1 = vld [vmem:[%s8900_s3 + $0xbc8] sm:$0xff] }
 0x24b   : > { %2596 = vmatmul.mubr.f32.vlgmr.msra.gmra.mxu1 %v2517_v2  ;;  %5773 = vmatprep.subr.mxu1 %v6065_v14  ;;  %v4725_v2 = vld [vmem:[%s8900_s3 + $0xc40] sm:$0xff] }
 0x24c   : > { %5324 = vmatpush3.msra.mxu0 %v4663_v3  ;;  %5774 = vmatpush3.msk.msra.mxu1 %vm1608_vm1, %v4646_v0  ;;  %v4694_v3 = vld [vmem:[%s8900_s3 + $0xb48] sm:$0xff]  ;;  %v4709_v0 = vld [vmem:[%s8900_s3 + $0xbc0] sm:$0xff] }
 0x24d   : > { %5325 = vmatprep.subr.mxu0 %v4678_v4  ;;  %5775 = vmatprep.subr.mxu1 %v6065_v14  ;;  %v4724_v4 = vld [vmem:[%s8900_s3 + $0xc38] sm:$0xff] }
 0x24e   : > { %5326 = vmatpush3.msra.mxu0 %v4662_v6  ;;  %5776 = vmatpush3.msra.mxu1 %v4645_v7  ;;  %v4693_v6 = vld [vmem:[%s8900_s3 + $0xb40] sm:$0xff]  ;;  %v4708_v7 = vld [vmem:[%s8900_s3 + $0xbb8] sm:$0xff] }
 0x24f   : > { %5327 = vmatprep.subr.mxu0 %v4677_v8  ;;  %5777 = vmatprep.subr.mxu1 %v6065_v14  ;;  %v4723_v8 = vld [vmem:[%s8900_s3 + $0xc30] sm:$0xff] }
 0x250   : > { %5328 = vmatpush3.msra.mxu0 %v4661_v9  ;;  %5778 = vmatpush3.msra.mxu1 %v4644_v11  ;;  %v4692_v9 = vld [vmem:[%s8900_s3 + $0xb38] sm:$0xff]  ;;  %v4707_v11 = vld [vmem:[%s8900_s3 + $0xbb0] sm:$0xff] }
 0x251   : > { %5329 = vmatprep.subr.mxu0 %v4676_v12  ;;  %5779 = vmatprep.subr.mxu1 %v6065_v14  ;;  %v4722_v12 = vld [vmem:[%s8900_s3 + $0xc28] sm:$0xff] }
 0x252   : > { %5330 = vmatpush3.msra.mxu0 %v4660_v13  ;;  %5780 = vmatpush3.msra.mxu1 %v4643_v15  ;;  %v4691_v13 = vld [vmem:[%s8900_s3 + $0xb30] sm:$0xff]  ;;  %v4706_v15 = vld [vmem:[%s8900_s3 + $0xba8] sm:$0xff] }
 0x253   : > { %5331 = vmatprep.subr.mxu0 %v4675_v16  ;;  %5781 = vmatprep.subr.mxu1 %v6065_v14  ;;  %v4721_v16 = vld [vmem:[%s8900_s3 + $0xc20] sm:$0xff] }
 0x254   : > { %5332 = vmatpush3.msra.mxu0 %v4659_v10  ;;  %5782 = vmatpush3.msra.mxu1 %v4642_v17  ;;  %v4690_v10 = vld [vmem:[%s8900_s3 + $0xb28] sm:$0xff]  ;;  %v4705_v17 = vld [vmem:[%s8900_s3 + $0xba0] sm:$0xff] }
 0x255   : > { %5333 = vmatprep.subr.mxu0 %v4674_v18  ;;  %5783 = vmatprep.subr.mxu1 %v6065_v14  ;;  %v4720_v18 = vld [vmem:[%s8900_s3 + $0xc18] sm:$0xff] }
 0x256   : > { %5334 = vmatpush3.msra.mxu0 %v4658_v19  ;;  %5784 = vmatpush3.msra.mxu1 %v4641_v20  ;;  %v4689_v19 = vld [vmem:[%s8900_s3 + $0xb20] sm:$0xff]  ;;  %v4704_v20 = vld [vmem:[%s8900_s3 + $0xb98] sm:$0xff] }
 0x257   : > { %5335 = vmatprep.subr.mxu0 %v4673_v21  ;;  %5785 = vmatprep.subr.mxu1 %v6065_v14  ;;  %v4719_v21 = vld [vmem:[%s8900_s3 + $0xc10] sm:$0xff] }
 0x258   : > { %5336 = vmatpush3.msra.mxu0 %v4657_v22  ;;  %5786 = vmatpush3.msra.mxu1 %v4640_v23  ;;  %v4688_v22 = vld [vmem:[%s8900_s3 + $0xb18] sm:$0xff]  ;;  %v4703_v23 = vld [vmem:[%s8900_s3 + $0xb90] sm:$0xff] }
 0x259   : > { %5337 = vmatprep.subr.mxu0 %v4672_v26  ;;  %5787 = vmatprep.subr.mxu1 %v6065_v14  ;;  %v4718_v26 = vld [vmem:[%s8900_s3 + $0xc08] sm:$0xff] }
 0x25a   : > { %5338 = vmatpush3.msra.mxu0 %v4656_v28  ;;  %5788 = vmatpush3.msra.mxu1 %v4639_v29  ;;  %v4687_v28 = vld [vmem:[%s8900_s3 + $0xb10] sm:$0xff]  ;;  %v4702_v29 = vld [vmem:[%s8900_s3 + $0xb88] sm:$0xff] }
 0x25b   : > { %5339 = vmatprep.subr.mxu0 %v4671_v31  ;;  %5789 = vmatprep.subr.mxu1 %v6065_v14  ;;  %v4717_v31 = vld [vmem:[%s8900_s3 + $0xc00] sm:$0xff] }
 0x25c   : > { %5340 = vmatpush3.msra.mxu0 %v4655_v32  ;;  %5790 = vmatpush3.msra.mxu1 %v4638_v34  ;;  %v4686_v32 = vld [vmem:[%s8900_s3 + $0xb08] sm:$0xff]  ;;  %v4701_v34 = vld [vmem:[%s8900_s3 + $0xb80] sm:$0xff] }
 0x25d   : > { %5341 = vmatprep.subr.mxu0 %v4670_v35  ;;  %5791 = vmatprep.subr.mxu1 %v6065_v14  ;;  %v4716_v35 = vld [vmem:[%s8900_s3 + $0xbf8] sm:$0xff] }
 0x25e   : > { %5342 = vmatpush3.msra.mxu0 %v4654_v36  ;;  %5792 = vmatpush3.msra.mxu1 %v4637_v37  ;;  %v4685_v36 = vld [vmem:[%s8900_s3 + $0xb00] sm:$0xff]  ;;  %v4700_v37 = vld [vmem:[%s8900_s3 + $0xb78] sm:$0xff] }
 0x25f   : > { %5343 = vmatprep.subr.mxu0 %v4669_v38  ;;  %5793 = vmatprep.subr.mxu1 %v6065_v14  ;;  %v5009_v44 = vpop.f32.mrf.mxu0  ;;  %v4715_v38 = vld [vmem:[%s8900_s3 + $0xbf0] sm:$0xff] }
 0x260   : > { %5344 = vmatpush3.msra.mxu0 %v4653_v39  ;;  %5794 = vmatpush3.msra.mxu1 %v4636_v40  ;;  %v4684_v39 = vld [vmem:[%s8900_s3 + $0xaf8] sm:$0xff]  ;;  %v4699_v40 = vld [vmem:[%s8900_s3 + $0xb70] sm:$0xff] }
 0x261   : > { %5345 = vmatprep.subr.mxu0 %v4668_v41  ;;  %5795 = vmatprep.subr.mxu1 %v6065_v14  ;;  %v5010_v48 = vpop.f32.mrf.mxu0 }
 0x262   : > { %5346 = vmatpush3.msra.mxu0 %v4652_v42  ;;  %5796 = vmatpush3.msra.mxu1 %v4635_v43  ;;  %v7836_v49 = vadd.f32 %v5010_v48, %v5009_v44  ;;  %v4714_v42 = vld [vmem:[%s8900_s3 + $0xbe8] sm:$0xff]  ;;  %v4683_v43 = vld [vmem:[%s8900_s3 + $0xaf0] sm:$0xff] }
 0x263   : > { %5347 = vmatprep.subr.mxu0 %v4667_v45  ;;  %5797 = vmatprep.subr.mxu1 %v6065_v14  ;;  %v4698_v44 = vld [vmem:[%s8900_s3 + $0xb68] sm:$0xff] }
 0x264   : > { %5348 = vmatpush3.msra.mxu0 %v4651_v46  ;;  %5798 = vmatpush3.msra.mxu1 %v4634_v47  ;;  %v4713_v46 = vld [vmem:[%s8900_s3 + $0xbe0] sm:$0xff]  ;;  %v4682_v48 = vld [vmem:[%s8900_s3 + $0xae8] sm:$0xff] }
 0x265   : > { %5349 = vmatprep.subr.mxu0 %v4666_v25  ;;  %5799 = vmatprep.subr.mxu1 %v6065_v14  ;;  %v2826_v25 = vrot.slane %v6973_v57, 4 }
 0x266   : > { %5350 = vmatpush3.msra.mxu0 %v4650_v50  ;;  %5800 = vmatpush3.msra.mxu1 %v4633_v51  ;;  %v4793_v50 = vld [vmem:[%s8900_s3 + $0xe50] sm:$0xff]  ;;  %v4697_v51 = vld [vmem:[%s8900_s3 + $0xb60] sm:$0xff] }
 0x267   : > { %5351 = vmatprep.subr.mxu0 %v4665_v52  ;;  %5801 = vmatprep.subr.mxu1 %v6065_v14 }
 0x268   : > { %5352 = vmatpush3.msra.mxu0 %v4649_v53  ;;  %5802 = vmatpush3.msra.mxu1 %v4632_v30  ;;  %v4777_v53 = vld [vmem:[%s8900_s3 + $0xdd0] sm:$0xff] }
 0x269   : > { %5803 = vmatprep.mubr.msk.f32.mxu1 %vm6067_vm2, %v6065_v14  ;;  %2901 = vmatmul.mubr.f32.vlgmr.msra.gmra.mxu0 %v2822_v54  ;;  %v3130_v54 = vrot.slane %v6982_v60, 5 }
 0x26a   : > { %5806 = vmatprep.subr.mxu0 %v6065_v14  ;;  %5804 = vmatmul.mubr.msk.f32.vlgmr.msra.gmra.mxu1 %vm1604_vm3, %v2521_v33  ;;  %v4681_v33 = vld [vmem:[%s8900_s3 + $0xae0] sm:$0xff] }
 0x26b   : > { %5356 = vmatprep.subr.mxu1 %v4712_v55  ;;  %5807 = vmatpush3.msk.msra.mxu0 %vm1608_vm1, %v4727_v56  ;;  %v4792_v55 = vld [vmem:[%s8900_s3 + $0xe48] sm:$0xff]  ;;  %v4761_v56 = vld [vmem:[%s8900_s3 + $0xd50] sm:$0xff] }
 0x26c   : > { %5357 = vmatpush3.msra.mxu1 %v4696_v58  ;;  %2970 = vmatprep.mubr.f32.mxu1 %v2825_v5  ;;  %v2824_v5 = vrot.slane %v6989_v62, 4 }
 0x26d   : > { %5808 = vmatprep.subr.mxu0 %v6065_v14  ;;  %5358 = vmatprep.subr.mxu1 %v4711_v59  ;;  %v4776_v59 = vld [vmem:[%s8900_s3 + $0xdc8] sm:$0xff] }
 0x26e   : > { %5809 = vmatpush3.msra.mxu0 %v4726_v61  ;;  %5359 = vmatpush3.msra.mxu1 %v4695_v63  ;;  %v4745_v61 = vld [vmem:[%s8900_s3 + $0xcd0] sm:$0xff]  ;;  %v4791_v63 = vld [vmem:[%s8900_s3 + $0xe40] sm:$0xff] }
 0x26f   : > { %5810 = vmatprep.subr.mxu0 %v6065_v14  ;;  %5360 = vmatprep.subr.mxu1 %v4710_v1 }
 0x270   : > { %5811 = vmatpush3.msra.mxu0 %v4725_v2  ;;  %5361 = vmatpush3.msra.mxu1 %v4694_v3  ;;  %v4760_v2 = vld [vmem:[%s8900_s3 + $0xd48] sm:$0xff]  ;;  %v4775_v3 = vld [vmem:[%s8900_s3 + $0xdc0] sm:$0xff] }
 0x271   : > { %5812 = vmatprep.subr.mxu0 %v6065_v14  ;;  %5362 = vmatprep.subr.mxu1 %v4709_v0  ;;  %v4744_v0 = vld [vmem:[%s8900_s3 + $0xcc8] sm:$0xff] }
 0x272   : > { %5813 = vmatpush3.msra.mxu0 %v4724_v4  ;;  %5363 = vmatpush3.msra.mxu1 %v4693_v6  ;;  %v4790_v4 = vld [vmem:[%s8900_s3 + $0xe38] sm:$0xff]  ;;  %v4759_v6 = vld [vmem:[%s8900_s3 + $0xd40] sm:$0xff] }
 0x273   : > { %5814 = vmatprep.subr.mxu0 %v6065_v14  ;;  %5364 = vmatprep.subr.mxu1 %v4708_v7  ;;  %v4774_v7 = vld [vmem:[%s8900_s3 + $0xdb8] sm:$0xff] }
 0x274   : > { %5815 = vmatpush3.msra.mxu0 %v4723_v8  ;;  %5365 = vmatpush3.msra.mxu1 %v4692_v9  ;;  %v4743_v8 = vld [vmem:[%s8900_s3 + $0xcc0] sm:$0xff]  ;;  %v4789_v9 = vld [vmem:[%s8900_s3 + $0xe30] sm:$0xff] }
 0x275   : > { %5816 = vmatprep.subr.mxu0 %v6065_v14  ;;  %5366 = vmatprep.subr.mxu1 %v4707_v11  ;;  %v4758_v11 = vld [vmem:[%s8900_s3 + $0xd38] sm:$0xff] }
 0x276   : > { %5817 = vmatpush3.msra.mxu0 %v4722_v12  ;;  %5367 = vmatpush3.msra.mxu1 %v4691_v13  ;;  %v4773_v12 = vld [vmem:[%s8900_s3 + $0xdb0] sm:$0xff]  ;;  %v4742_v13 = vld [vmem:[%s8900_s3 + $0xcb8] sm:$0xff] }
 0x277   : > { %5818 = vmatprep.subr.mxu0 %v6065_v14  ;;  %5368 = vmatprep.subr.mxu1 %v4706_v15  ;;  %v4788_v15 = vld [vmem:[%s8900_s3 + $0xe28] sm:$0xff] }
 0x278   : > { %5819 = vmatpush3.msra.mxu0 %v4721_v16  ;;  %5369 = vmatpush3.msra.mxu1 %v4690_v10  ;;  %v4757_v16 = vld [vmem:[%s8900_s3 + $0xd30] sm:$0xff]  ;;  %v4772_v10 = vld [vmem:[%s8900_s3 + $0xda8] sm:$0xff] }
 0x279   : > { %5820 = vmatprep.subr.mxu0 %v6065_v14  ;;  %5370 = vmatprep.subr.mxu1 %v4705_v17  ;;  %v4741_v17 = vld [vmem:[%s8900_s3 + $0xcb0] sm:$0xff] }
 0x27a   : > { %5821 = vmatpush3.msra.mxu0 %v4720_v18  ;;  %5371 = vmatpush3.msra.mxu1 %v4689_v19  ;;  %v4787_v18 = vld [vmem:[%s8900_s3 + $0xe20] sm:$0xff]  ;;  %v4756_v19 = vld [vmem:[%s8900_s3 + $0xd28] sm:$0xff] }
 0x27b   : > { %5822 = vmatprep.subr.mxu0 %v6065_v14  ;;  %5372 = vmatprep.subr.mxu1 %v4704_v20  ;;  %v4771_v20 = vld [vmem:[%s8900_s3 + $0xda0] sm:$0xff] }
 0x27c   : > { %5823 = vmatpush3.msra.mxu0 %v4719_v21  ;;  %5373 = vmatpush3.msra.mxu1 %v4688_v22  ;;  %v4740_v21 = vld [vmem:[%s8900_s3 + $0xca8] sm:$0xff]  ;;  %v4786_v22 = vld [vmem:[%s8900_s3 + $0xe18] sm:$0xff] }
 0x27d   : > { %5824 = vmatprep.subr.mxu0 %v6065_v14  ;;  %5374 = vmatprep.subr.mxu1 %v4703_v23  ;;  %v4755_v23 = vld [vmem:[%s8900_s3 + $0xd20] sm:$0xff] }
 0x27e   : > { %5825 = vmatpush3.msra.mxu0 %v4718_v26  ;;  %5375 = vmatpush3.msra.mxu1 %v4687_v28  ;;  %v4770_v26 = vld [vmem:[%s8900_s3 + $0xd98] sm:$0xff]  ;;  %v4739_v28 = vld [vmem:[%s8900_s3 + $0xca0] sm:$0xff] }
 0x27f   : > { %5826 = vmatprep.subr.mxu0 %v6065_v14  ;;  %5376 = vmatprep.subr.mxu1 %v4702_v29  ;;  %v4785_v29 = vld [vmem:[%s8900_s3 + $0xe10] sm:$0xff] }
 0x280   : > { %5827 = vmatpush3.msra.mxu0 %v4717_v31  ;;  %5377 = vmatpush3.msra.mxu1 %v4686_v32  ;;  %v4754_v31 = vld [vmem:[%s8900_s3 + $0xd18] sm:$0xff]  ;;  %v4769_v32 = vld [vmem:[%s8900_s3 + $0xd90] sm:$0xff] }
 0x281   : > { %5828 = vmatprep.subr.mxu0 %v6065_v14  ;;  %5378 = vmatprep.subr.mxu1 %v4701_v34  ;;  %v4738_v34 = vld [vmem:[%s8900_s3 + $0xc98] sm:$0xff] }
 0x282   : > { %5829 = vmatpush3.msra.mxu0 %v4716_v35  ;;  %5379 = vmatpush3.msra.mxu1 %v4685_v36  ;;  %v1818_v41 = vpop.f32.mrf.mxu0  ;;  %v4784_v35 = vld [vmem:[%s8900_s3 + $0xe08] sm:$0xff]  ;;  %v4753_v36 = vld [vmem:[%s8900_s3 + $0xd10] sm:$0xff] }
 0x283   : > { %5830 = vmatprep.subr.mxu0 %v6065_v14  ;;  %5380 = vmatprep.subr.mxu1 %v4700_v37  ;;  %v4768_v37 = vld [vmem:[%s8900_s3 + $0xd88] sm:$0xff] }
 0x284   : > { %5831 = vmatpush3.msra.mxu0 %v4715_v38  ;;  %5381 = vmatpush3.msra.mxu1 %v4684_v39  ;;  %v5706_v45 = vpop.f32.mrf.mxu0  ;;  %v4737_v38 = vld [vmem:[%s8900_s3 + $0xc90] sm:$0xff]  ;;  %v4783_v39 = vld [vmem:[%s8900_s3 + $0xe00] sm:$0xff] }
 0x285   : > { %5832 = vmatprep.subr.mxu0 %v6065_v14  ;;  %5382 = vmatprep.subr.mxu1 %v4699_v40  ;;  %v5044_v47 = vpop.f32.mrf.mxu1  ;;  %v4752_v40 = vld [vmem:[%s8900_s3 + $0xd08] sm:$0xff]  ;;  %v4766_v45 = vld [vmem:[%s8900_s3 + $0xd78] sm:$0xff] }
 0x286   : > { %5833 = vmatpush3.msra.mxu0 %v4714_v42  ;;  %5383 = vmatpush3.msra.mxu1 %v4683_v43  ;;  %v4736_v42 = vld [vmem:[%s8900_s3 + $0xc88] sm:$0xff]  ;;  %v4782_v43 = vld [vmem:[%s8900_s3 + $0xdf8] sm:$0xff] }
 0x287   : > { %5834 = vmatprep.subr.mxu0 %v6065_v14  ;;  %5384 = vmatprep.subr.mxu1 %v4698_v44  ;;  %v5045_v52 = vpop.f32.mrf.mxu1  ;;  %v4751_v44 = vld [vmem:[%s8900_s3 + $0xd00] sm:$0xff] }
 0x288   : > { %5835 = vmatpush3.msra.mxu0 %v4713_v46  ;;  %5836 = vmatprep.mubr.msk.f32.mxu0 %vm6067_vm2, %v6065_v14  ;;  %v5046_v30 = vadd.f32 %v5045_v52, %v5044_v47  ;;  %v4735_v46 = vld [vmem:[%s8900_s3 + $0xc80] sm:$0xff]  ;;  %v4781_v47 = vld [vmem:[%s8900_s3 + $0xdf0] sm:$0xff] }
 0x289   : > { %5385 = vmatpush3.msra.mxu1 %v4682_v48  ;;  %5837 = vmatmul.mubr.msk.f32.vlgmr.msra.gmra.mxu0 %vm1604_vm3, %v2826_v25  ;;  %v4750_v48 = vld [vmem:[%s8900_s3 + $0xcf8] sm:$0xff]  ;;  %v4765_v25 = vld [vmem:[%s8900_s3 + $0xd70] sm:$0xff] }
 0x28a   : > { %5442 = vmatprep.subr.mxu0 %v4793_v50  ;;  %5386 = vmatprep.subr.mxu1 %v4697_v51  ;;  %v1749_v58 = vadd.f32 %v5046_v30, %v7836_v49  ;;  %v3128_v49 = vrot.slane %v6891_v27, 5  ;;  %v4734_v50 = vld [vmem:[%s8900_s3 + $0xc78] sm:$0xff]  ;;  %v4780_v51 = vld [vmem:[%s8900_s3 + $0xde8] sm:$0xff]  ;;  %v4749_v52 = vld [vmem:[%s8900_s3 + $0xcf0] sm:$0xff] }
 0x28b   : > { %5443 = vmatpush3.msra.mxu0 %v4777_v53  ;;  %3275 = vmatprep.mubr.f32.mxu0 %v3130_v54  ;;  %v4764_v53 = vld [vmem:[%s8900_s3 + $0xd68] sm:$0xff]  ;;  %v4733_v54 = vld [vmem:[%s8900_s3 + $0xc70] sm:$0xff] }
 0x28c   : > { %5387 = vmatpush3.msra.mxu1 %v4681_v33  ;;  %5444 = vmatprep.subr.mxu0 %v4792_v55  ;;  %v8047_v1 = vadd.f32 %v1818_v41, %v1749_v58  ;;  %v4767_v41 = vld [vmem:[%s8900_s3 + $0xd80] sm:$0xff]  ;;  %v4748_v55 = vld [vmem:[%s8900_s3 + $0xce8] sm:$0xff] }
 0x28d   : > { %2971 = vmatmul.mubr.f32.vlgmr.msra.gmra.mxu1 %v2824_v5  ;;  %5407 = vmatprep.subr.mxu1 %v4761_v56  ;;  %v4779_v33 = vld [vmem:[%s8900_s3 + $0xde0] sm:$0xff]  ;;  %v4732_v5 = vld [vmem:[%s8900_s3 + $0xc68] sm:$0xff] }
 0x28e   : > { %5445 = vmatpush3.msra.mxu0 %v4776_v59  ;;  %5408 = vmatpush3.msra.mxu1 %v4745_v61  ;;  %v4763_v56 = vld [vmem:[%s8900_s3 + $0xd60] sm:$0xff]  ;;  %v4778_v59 = vld [vmem:[%s8900_s3 + $0xdd8] sm:$0xff] }
 0x28f   : > { %3205 = vmatprep.mubr.f32.mxu1 %v3128_v49  ;;  %5446 = vmatprep.subr.mxu0 %v4791_v63  ;;  %v4747_v63 = vld [vmem:[%s8900_s3 + $0xce0] sm:$0xff]  ;;  %v4762_v49 = vld [vmem:[%s8900_s3 + $0xd58] sm:$0xff] }
 0x290   : > { %5409 = vmatprep.subr.mxu1 %v4760_v2  ;;  %5447 = vmatpush3.msra.mxu0 %v4775_v3  ;;  %v4731_v3 = vld [vmem:[%s8900_s3 + $0xc60] sm:$0xff] }
 0x291   : > { %5410 = vmatpush3.msra.mxu1 %v4744_v0  ;;  %5448 = vmatprep.subr.mxu0 %v4790_v4  ;;  %v3129_v0 = vrot.slane %v6989_v62, 5  ;;  %v4842_v4 = vld [vmem:[%s8900_s3 + $0xfc8] sm:$0xff] }
 0x292   : > { %5411 = vmatprep.subr.mxu1 %v4759_v6  ;;  %5449 = vmatpush3.msra.mxu0 %v4774_v7  ;;  %v4746_v6 = vld [vmem:[%s8900_s3 + $0xcd8] sm:$0xff] }
 0x293   : > { %5412 = vmatpush3.msra.mxu1 %v4743_v8  ;;  %5450 = vmatprep.subr.mxu0 %v4789_v9  ;;  %v4826_v8 = vld [vmem:[%s8900_s3 + $0xf48] sm:$0xff] }
 0x294   : > { %5413 = vmatprep.subr.mxu1 %v4758_v11  ;;  %5451 = vmatpush3.msra.mxu0 %v4773_v12  ;;  %v3433_v11 = vrot.slane %v6891_v27, 6  ;;  %v4730_v12 = vld [vmem:[%s8900_s3 + $0xc58] sm:$0xff] }
 0x295   : > { %5414 = vmatpush3.msra.mxu1 %v4742_v13  ;;  %5452 = vmatprep.subr.mxu0 %v4788_v15  ;;  %v4841_v13 = vld [vmem:[%s8900_s3 + $0xfc0] sm:$0xff] }
 0x296   : > { %5415 = vmatprep.subr.mxu1 %v4757_v16  ;;  %5453 = vmatpush3.msra.mxu0 %v4772_v10  ;;  %v3127_v16 = vrot.slane %v6893_v24, 5  ;;  %v4825_v10 = vld [vmem:[%s8900_s3 + $0xf40] sm:$0xff] }
 0x297   : > { %5416 = vmatpush3.msra.mxu1 %v4741_v17  ;;  %5454 = vmatprep.subr.mxu0 %v4787_v18  ;;  %v4808_v17 = vld [vmem:[%s8900_s3 + $0xec8] sm:$0x1]  ;;  %v4840_v18 = vld [vmem:[%s8900_s3 + $0xfb8] sm:$0xff] }
 0x298   : > { %5417 = vmatprep.subr.mxu1 %v4756_v19  ;;  %5455 = vmatpush3.msra.mxu0 %v4771_v20  ;;  %v4824_v19 = vld [vmem:[%s8900_s3 + $0xf38] sm:$0xff]  ;;  %v4807_v20 = vld [vmem:[%s8900_s3 + $0xec0] sm:$0xff] }
 0x299   : > { %5418 = vmatpush3.msra.mxu1 %v4740_v21  ;;  %5456 = vmatprep.subr.mxu0 %v4786_v22  ;;  %v4839_v21 = vld [vmem:[%s8900_s3 + $0xfb0] sm:$0xff] }
 0x29a   : > { %5419 = vmatprep.subr.mxu1 %v4755_v23  ;;  %5457 = vmatpush3.msra.mxu0 %v4770_v26  ;;  %v4823_v22 = vld [vmem:[%s8900_s3 + $0xf30] sm:$0xff]  ;;  %v4806_v23 = vld [vmem:[%s8900_s3 + $0xeb8] sm:$0xff]  ;;  %v4838_v26 = vld [vmem:[%s8900_s3 + $0xfa8] sm:$0xff] }
 0x29b   : > { %5420 = vmatpush3.msra.mxu1 %v4739_v28  ;;  %5458 = vmatprep.subr.mxu0 %v4785_v29  ;;  %v4822_v28 = vld [vmem:[%s8900_s3 + $0xf28] sm:$0xff]  ;;  %v4805_v29 = vld [vmem:[%s8900_s3 + $0xeb0] sm:$0xff] }
 0x29c   : > { %5421 = vmatprep.subr.mxu1 %v4754_v31  ;;  %5459 = vmatpush3.msra.mxu0 %v4769_v32  ;;  %v4837_v31 = vld [vmem:[%s8900_s3 + $0xfa0] sm:$0xff] }
 0x29d   : > { %5422 = vmatpush3.msra.mxu1 %v4738_v34  ;;  %5460 = vmatprep.subr.mxu0 %v4784_v35  ;;  %v4821_v32 = vld [vmem:[%s8900_s3 + $0xf20] sm:$0xff]  ;;  %v4804_v34 = vld [vmem:[%s8900_s3 + $0xea8] sm:$0xff]  ;;  %v4836_v35 = vld [vmem:[%s8900_s3 + $0xf98] sm:$0xff] }
 0x29e   : > { %5423 = vmatprep.subr.mxu1 %v4753_v36  ;;  %5461 = vmatpush3.msra.mxu0 %v4768_v37  ;;  %v4820_v36 = vld [vmem:[%s8900_s3 + $0xf18] sm:$0xff]  ;;  %v4803_v37 = vld [vmem:[%s8900_s3 + $0xea0] sm:$0xff] }
 0x29f   : > { %5424 = vmatpush3.msra.mxu1 %v4737_v38  ;;  %5462 = vmatprep.subr.mxu0 %v4783_v39  ;;  %v4835_v38 = vld [vmem:[%s8900_s3 + $0xf90] sm:$0xff] }
 0x2a0   : > { %5425 = vmatprep.subr.mxu1 %v4752_v40  ;;  %5463 = vmatpush3.msra.mxu0 %v4767_v41  ;;  %v4819_v39 = vld [vmem:[%s8900_s3 + $0xf10] sm:$0xff]  ;;  %v4802_v40 = vld [vmem:[%s8900_s3 + $0xe98] sm:$0xff]  ;;  %v4834_v41 = vld [vmem:[%s8900_s3 + $0xf88] sm:$0xff] }
 0x2a1   : > { %5426 = vmatpush3.msra.mxu1 %v4736_v42  ;;  %5464 = vmatprep.subr.mxu0 %v4782_v43  ;;  %v4818_v42 = vld [vmem:[%s8900_s3 + $0xf08] sm:$0xff]  ;;  %v4801_v43 = vld [vmem:[%s8900_s3 + $0xe90] sm:$0xff] }
 0x2a2   : > { %5427 = vmatprep.subr.mxu1 %v4751_v44  ;;  %5465 = vmatpush3.msra.mxu0 %v4766_v45  ;;  %v4833_v44 = vld [vmem:[%s8900_s3 + $0xf80] sm:$0xff] }
 0x2a3   : > { %5428 = vmatpush3.msra.mxu1 %v4735_v46  ;;  %5466 = vmatprep.subr.mxu0 %v4781_v47  ;;  %v5130_v30 = vpop.f32.mrf.mxu0  ;;  %v4817_v45 = vld [vmem:[%s8900_s3 + $0xf00] sm:$0xff]  ;;  %v4800_v46 = vld [vmem:[%s8900_s3 + $0xe88] sm:$0xff]  ;;  %v4832_v47 = vld [vmem:[%s8900_s3 + $0xf78] sm:$0xff] }
 0x2a4   : > { %5429 = vmatprep.subr.mxu1 %v4750_v48  ;;  %5467 = vmatpush3.msra.mxu0 %v4765_v25  ;;  %v4816_v48 = vld [vmem:[%s8900_s3 + $0xef8] sm:$0xff]  ;;  %v4799_v25 = vld [vmem:[%s8900_s3 + $0xe80] sm:$0xff] }
 0x2a5   : > { %5430 = vmatpush3.msra.mxu1 %v4734_v50  ;;  %5468 = vmatprep.subr.mxu0 %v4780_v51  ;;  %v5131_v58 = vpop.f32.mrf.mxu0  ;;  %v4831_v50 = vld [vmem:[%s8900_s3 + $0xf70] sm:$0xff] }
 0x2a6   : > { %5431 = vmatprep.subr.mxu1 %v4749_v52  ;;  %5469 = vmatpush3.msra.mxu0 %v4764_v53  ;;  %v5132_v61 = vadd.f32 %v5131_v58, %v5130_v30  ;;  %v4815_v51 = vld [vmem:[%s8900_s3 + $0xef0] sm:$0xff]  ;;  %v4798_v52 = vld [vmem:[%s8900_s3 + $0xe78] sm:$0xff]  ;;  %v4830_v53 = vld [vmem:[%s8900_s3 + $0xf68] sm:$0xff] }
 0x2a7   : > { %5432 = vmatpush3.msra.mxu1 %v4733_v54  ;;  %5470 = vmatprep.subr.mxu0 %v4779_v33  ;;  %v5095_v2 = vpop.f32.mrf.mxu1  ;;  %v4814_v30 = vld [vmem:[%s8900_s3 + $0xee8] sm:$0xff]  ;;  %v4797_v54 = vld [vmem:[%s8900_s3 + $0xe70] sm:$0xff]  ;;  %v4829_v33 = vld [vmem:[%s8900_s3 + $0xf60] sm:$0xff] }
 0x2a8   : > { %5433 = vmatprep.subr.mxu1 %v4748_v55  ;;  %5471 = vmatpush3.msra.mxu0 %v4763_v56  ;;  %v1524_v55 = vld [vmem:[%s8901_s4] sm:$0x1]  ;;  %v4796_v58 = vld [vmem:[%s8900_s3 + $0xe68] sm:$0xff] }
 0x2a9   : > { %5434 = vmatpush3.msra.mxu1 %v4732_v5  ;;  %5472 = vmatprep.subr.mxu0 %v4778_v59  ;;  %v5096_v7 = vpop.f32.mrf.mxu1  ;;  %v4813_v56 = vld [vmem:[%s8900_s3 + $0xee0] sm:$0xff]  ;;  %v4828_v59 = vld [vmem:[%s8900_s3 + $0xf58] sm:$0xff] }
 0x2aa   : > { %5435 = vmatprep.subr.mxu1 %v4747_v63  ;;  %5473 = vmatpush3.msra.mxu0 %v4762_v49  ;;  %v5097_v9 = vadd.f32 %v5096_v7, %v5095_v2  ;;  %v4812_v63 = vld [vmem:[%s8900_s3 + $0xed8] sm:$0xff]  ;;  %v4795_v49 = vld [vmem:[%s8900_s3 + $0xe60] sm:$0xff]  ;;  %v1822_v2 = vadd.f32 %v8047_v1, %v1524_v55  ;;  %v4846_v55 = vld [vmem:[%s8900_s3 + $0xfe8] sm:$0xff] }
 0x2ab   : > { %5436 = vmatpush3.msra.mxu1 %v4731_v3  ;;  %3276 = vmatmul.mubr.f32.vlgmr.msra.gmra.mxu0 %v3129_v0  ;;  %v4794_v1 = vld [vmem:[%s8900_s3 + $0xe58] sm:$0xff] }
 0x2ac   : > { %5493 = vmatprep.subr.mxu0 %v4842_v4  ;;  %5437 = vmatprep.subr.mxu1 %v4746_v6  ;;  %v8232_v15 = vadd.f32 %v5132_v61, %v5097_v9  ;;  %v4827_v4 = vld [vmem:[%s8900_s3 + $0xf50] sm:$0xff] }
 0x2ad   : > { %5494 = vmatpush3.msra.mxu0 %v4826_v8  ;;  %3510 = vmatprep.mubr.f32.mxu0 %v3433_v11  ;;  %v4811_v8 = vld [vmem:[%s8900_s3 + $0xed0] sm:$0xff]  ;;  %v3432_v11 = vrot.slane %v6893_v24, 6 }
 0x2ae   : > { %5438 = vmatpush3.msra.mxu1 %v4730_v12  ;;  %5495 = vmatprep.subr.mxu0 %v4841_v13  ;;  %v3131_v12 = vrot.slane %v6973_v57, 5  ;;  %v4874_v13 = vld [vmem:[%s8900_s3 + $0x10c8] sm:$0xff] }
 0x2af   : > { %3206 = vmatmul.mubr.f32.vlgmr.msra.gmra.mxu1 %v3127_v16  ;;  %5839 = vmatprep.subr.mxu1 %v6065_v14  ;;  %v4858_v16 = vld [vmem:[%s8900_s3 + $0x1048] sm:$0xff] }
 0x2b0   : > { %5496 = vmatpush3.msra.mxu0 %v4825_v10  ;;  %5840 = vmatpush3.msk.msra.mxu1 %vm1608_vm1, %v4808_v17  ;;  %v3435_v10 = vrot.slane %v6982_v60, 6  ;;  %v4873_v17 = vld [vmem:[%s8900_s3 + $0x10c0] sm:$0xff] }
 0x2b1   : > { %5497 = vmatprep.subr.mxu0 %v4840_v18  ;;  %5841 = vmatprep.subr.mxu1 %v6065_v14  ;;  %v4888_v18 = vld [vmem:[%s8900_s3 + $0x1138] sm:$0xff] }
 0x2b2   : > { %5498 = vmatpush3.msra.mxu0 %v4824_v19  ;;  %5842 = vmatpush3.msra.mxu1 %v4807_v20  ;;  %v4857_v19 = vld [vmem:[%s8900_s3 + $0x1040] sm:$0xff]  ;;  %v4872_v20 = vld [vmem:[%s8900_s3 + $0x10b8] sm:$0xff] }
 0x2b3   : > { %5499 = vmatprep.subr.mxu0 %v4839_v21  ;;  %5843 = vmatprep.subr.mxu1 %v6065_v14  ;;  %v4887_v21 = vld [vmem:[%s8900_s3 + $0x1130] sm:$0xff] }
 0x2b4   : > { %5500 = vmatpush3.msra.mxu0 %v4823_v22  ;;  %5844 = vmatpush3.msra.mxu1 %v4806_v23  ;;  %v4856_v22 = vld [vmem:[%s8900_s3 + $0x1038] sm:$0xff]  ;;  %v4871_v23 = vld [vmem:[%s8900_s3 + $0x10b0] sm:$0xff] }
 0x2b5   : > { %5501 = vmatprep.subr.mxu0 %v4838_v26  ;;  %5845 = vmatprep.subr.mxu1 %v6065_v14  ;;  %v4886_v26 = vld [vmem:[%s8900_s3 + $0x1128] sm:$0xff] }
 0x2b6   : > { %5502 = vmatpush3.msra.mxu0 %v4822_v28  ;;  %5846 = vmatpush3.msra.mxu1 %v4805_v29  ;;  %v4855_v28 = vld [vmem:[%s8900_s3 + $0x1030] sm:$0xff]  ;;  %v4870_v29 = vld [vmem:[%s8900_s3 + $0x10a8] sm:$0xff] }
 0x2b7   : > { %5503 = vmatprep.subr.mxu0 %v4837_v31  ;;  %5847 = vmatprep.subr.mxu1 %v6065_v14  ;;  %v4885_v31 = vld [vmem:[%s8900_s3 + $0x1120] sm:$0xff] }
 0x2b8   : > { %5504 = vmatpush3.msra.mxu0 %v4821_v32  ;;  %5848 = vmatpush3.msra.mxu1 %v4804_v34  ;;  %v4854_v32 = vld [vmem:[%s8900_s3 + $0x1028] sm:$0xff]  ;;  %v4869_v34 = vld [vmem:[%s8900_s3 + $0x10a0] sm:$0xff] }
 0x2b9   : > { %5505 = vmatprep.subr.mxu0 %v4836_v35  ;;  %5849 = vmatprep.subr.mxu1 %v6065_v14  ;;  %v4884_v35 = vld [vmem:[%s8900_s3 + $0x1118] sm:$0xff] }
 0x2ba   : > { %5506 = vmatpush3.msra.mxu0 %v4820_v36  ;;  %5850 = vmatpush3.msra.mxu1 %v4803_v37  ;;  %v4853_v36 = vld [vmem:[%s8900_s3 + $0x1020] sm:$0xff]  ;;  %v4868_v37 = vld [vmem:[%s8900_s3 + $0x1098] sm:$0xff] }
 0x2bb   : > { %5507 = vmatprep.subr.mxu0 %v4835_v38  ;;  %5851 = vmatprep.subr.mxu1 %v6065_v14  ;;  %v4883_v38 = vld [vmem:[%s8900_s3 + $0x1110] sm:$0xff] }
 0x2bc   : > { %5508 = vmatpush3.msra.mxu0 %v4819_v39  ;;  %5852 = vmatpush3.msra.mxu1 %v4802_v40  ;;  %v4852_v39 = vld [vmem:[%s8900_s3 + $0x1018] sm:$0xff]  ;;  %v4867_v40 = vld [vmem:[%s8900_s3 + $0x1090] sm:$0xff] }
 0x2bd   : > { %5509 = vmatprep.subr.mxu0 %v4834_v41  ;;  %5853 = vmatprep.subr.mxu1 %v6065_v14  ;;  %v4882_v41 = vld [vmem:[%s8900_s3 + $0x1108] sm:$0xff] }
 0x2be   : > { %5510 = vmatpush3.msra.mxu0 %v4818_v42  ;;  %5854 = vmatpush3.msra.mxu1 %v4801_v43  ;;  %v4851_v42 = vld [vmem:[%s8900_s3 + $0x1010] sm:$0xff]  ;;  %v4866_v43 = vld [vmem:[%s8900_s3 + $0x1088] sm:$0xff] }
 0x2bf   : > { %5511 = vmatprep.subr.mxu0 %v4833_v44  ;;  %5855 = vmatprep.subr.mxu1 %v6065_v14  ;;  %v4881_v44 = vld [vmem:[%s8900_s3 + $0x1100] sm:$0xff] }
 0x2c0   : > { %5512 = vmatpush3.msra.mxu0 %v4817_v45  ;;  %5856 = vmatpush3.msra.mxu1 %v4800_v46  ;;  %v4850_v45 = vld [vmem:[%s8900_s3 + $0x1008] sm:$0xff]  ;;  %v4865_v46 = vld [vmem:[%s8900_s3 + $0x1080] sm:$0xff] }
 0x2c1   : > { %5513 = vmatprep.subr.mxu0 %v4832_v47  ;;  %5857 = vmatprep.subr.mxu1 %v6065_v14  ;;  %v4880_v47 = vld [vmem:[%s8900_s3 + $0x10f8] sm:$0xff] }
 0x2c2   : > { %5514 = vmatpush3.msra.mxu0 %v4816_v48  ;;  %5858 = vmatpush3.msra.mxu1 %v4799_v25  ;;  %v4849_v48 = vld [vmem:[%s8900_s3 + $0x1000] sm:$0xff]  ;;  %v4864_v25 = vld [vmem:[%s8900_s3 + $0x1078] sm:$0xff] }
 0x2c3   : > { %5515 = vmatprep.subr.mxu0 %v4831_v50  ;;  %5859 = vmatprep.subr.mxu1 %v6065_v14  ;;  %v4879_v50 = vld [vmem:[%s8900_s3 + $0x10f0] sm:$0xff] }
 0x2c4   : > { %5516 = vmatpush3.msra.mxu0 %v4815_v51  ;;  %5860 = vmatpush3.msra.mxu1 %v4798_v52  ;;  %v4848_v51 = vld [vmem:[%s8900_s3 + $0xff8] sm:$0xff]  ;;  %v4863_v52 = vld [vmem:[%s8900_s3 + $0x1070] sm:$0xff] }
 0x2c5   : > { %5517 = vmatprep.subr.mxu0 %v4830_v53  ;;  %5861 = vmatprep.subr.mxu1 %v6065_v14  ;;  %v5181_v5 = vpop.f32.mrf.mxu0  ;;  %v4878_v53 = vld [vmem:[%s8900_s3 + $0x10e8] sm:$0xff] }
 0x2c6   : > { %5518 = vmatpush3.msra.mxu0 %v4814_v30  ;;  %5862 = vmatpush3.msra.mxu1 %v4797_v54  ;;  %v2127_v61 = vpop.f32.mrf.mxu1  ;;  %v4847_v30 = vld [vmem:[%s8900_s3 + $0xff0] sm:$0xff]  ;;  %v4862_v54 = vld [vmem:[%s8900_s3 + $0x1068] sm:$0xff] }
 0x2c7   : > { %5519 = vmatprep.subr.mxu0 %v4829_v33  ;;  %5863 = vmatprep.subr.mxu1 %v6065_v14  ;;  %v2128_v3 = vadd.f32 %v2127_v61, %v8232_v15  ;;  %v5182_v0 = vpop.f32.mrf.mxu0  ;;  %v4889_v15 = vld [vmem:[%s8900_s3 + $0x1140] sm:$0x1] }
 0x2c8   : > { %5520 = vmatpush3.msra.mxu0 %v4813_v56  ;;  %5864 = vmatpush3.msra.mxu1 %v4796_v58  ;;  %v8380_v6 = vadd.f32 %v5182_v0, %v5181_v5  ;;  %v5739_v7 = vpop.f32.mrf.mxu1  ;;  %v4877_v33 = vld [vmem:[%s8900_s3 + $0x10e0] sm:$0xff]  ;;  %v4876_v5 = vld [vmem:[%s8900_s3 + $0x10d8] sm:$0xff]  ;;  %v3436_v0 = vrot.slane %v6973_v57, 6 }
 0x2c9   : > { %5521 = vmatprep.subr.mxu0 %v4828_v59  ;;  %5865 = vmatprep.subr.mxu1 %v6065_v14  ;;  %v8389_v9 = vadd.f32 %v2128_v3, %v1822_v2  ;;  %v4861_v58 = vld [vmem:[%s8900_s3 + $0x1060] sm:$0xff]  ;;  %v4844_v3 = vld [vmem:[%s8900_s3 + $0xfd8] sm:$0xff]  ;;  %v4859_v7 = vld [vmem:[%s8900_s3 + $0x1050] sm:$0xff] }
 0x2ca   : > { %5522 = vmatpush3.msra.mxu0 %v4812_v63  ;;  %5866 = vmatpush3.msra.mxu1 %v4795_v49  ;;  %v4845_v59 = vld [vmem:[%s8900_s3 + $0xfe0] sm:$0xff]  ;;  %v4860_v63 = vld [vmem:[%s8900_s3 + $0x1058] sm:$0xff]  ;;  %v4875_v49 = vld [vmem:[%s8900_s3 + $0x10d0] sm:$0xff] }
 0x2cb   : > { %5523 = vmatprep.subr.mxu0 %v4827_v4  ;;  %5867 = vmatprep.subr.mxu1 %v6065_v14  ;;  %v4955_v4 = vld [vmem:[%s8900_s3 + $0x1340] sm:$0xff] }
 0x2cc   : > { %5524 = vmatpush3.msra.mxu0 %v4811_v8  ;;  %5868 = vmatpush3.msra.mxu1 %v4794_v1  ;;  %v4939_v1 = vld [vmem:[%s8900_s3 + $0x12c0] sm:$0xff] }
 0x2cd   : > { %5869 = vmatprep.mubr.msk.f32.mxu1 %vm6067_vm2, %v6065_v14  ;;  %3511 = vmatmul.mubr.f32.vlgmr.msra.gmra.mxu0 %v3432_v11 }
 0x2ce   : > { %5872 = vmatprep.subr.mxu0 %v6065_v14  ;;  %5870 = vmatmul.mubr.msk.f32.vlgmr.msra.gmra.mxu1 %vm1604_vm3, %v3131_v12  ;;  %v3740_v12 = vrot.slane %v6982_v60, 7  ;;  %v3434_v60 = vrot.slane %v6989_v62, 6 }
 0x2cf   : > { %5528 = vmatprep.subr.mxu1 %v4874_v13  ;;  %5873 = vmatpush3.msk.msra.mxu0 %vm1608_vm1, %v4889_v15  ;;  %v4843_v13 = vld [vmem:[%s8900_s3 + $0xfd0] sm:$0xff]  ;;  %v4954_v15 = vld [vmem:[%s8900_s3 + $0x1338] sm:$0xff] }
 0x2d0   : > { %5529 = vmatpush3.msra.mxu1 %v4858_v16  ;;  %3580 = vmatprep.mubr.f32.mxu1 %v3435_v10  ;;  %v4923_v16 = vld [vmem:[%s8900_s3 + $0x1240] sm:$0xff] }
 0x2d1   : > { %5874 = vmatprep.subr.mxu0 %v6065_v14  ;;  %5530 = vmatprep.subr.mxu1 %v4873_v17  ;;  %v4938_v17 = vld [vmem:[%s8900_s3 + $0x12b8] sm:$0xff] }
 0x2d2   : > { %5875 = vmatpush3.msra.mxu0 %v4888_v18  ;;  %5531 = vmatpush3.msra.mxu1 %v4857_v19  ;;  %v4907_v18 = vld [vmem:[%s8900_s3 + $0x11c0] sm:$0xff]  ;;  %v4953_v19 = vld [vmem:[%s8900_s3 + $0x1330] sm:$0xff] }
 0x2d3   : > { %5876 = vmatprep.subr.mxu0 %v6065_v14  ;;  %5532 = vmatprep.subr.mxu1 %v4872_v20 }
 0x2d4   : > { %5877 = vmatpush3.msra.mxu0 %v4887_v21  ;;  %5533 = vmatpush3.msra.mxu1 %v4856_v22  ;;  %v4922_v21 = vld [vmem:[%s8900_s3 + $0x1238] sm:$0xff]  ;;  %v4937_v22 = vld [vmem:[%s8900_s3 + $0x12b0] sm:$0xff] }
 0x2d5   : > { %5878 = vmatprep.subr.mxu0 %v6065_v14  ;;  %5534 = vmatprep.subr.mxu1 %v4871_v23  ;;  %v4906_v23 = vld [vmem:[%s8900_s3 + $0x11b8] sm:$0xff] }
 0x2d6   : > { %5879 = vmatpush3.msra.mxu0 %v4886_v26  ;;  %5535 = vmatpush3.msra.mxu1 %v4855_v28  ;;  %v4952_v26 = vld [vmem:[%s8900_s3 + $0x1328] sm:$0xff]  ;;  %v4921_v28 = vld [vmem:[%s8900_s3 + $0x1230] sm:$0xff] }
 0x2d7   : > { %5880 = vmatprep.subr.mxu0 %v6065_v14  ;;  %5536 = vmatprep.subr.mxu1 %v4870_v29  ;;  %v4936_v29 = vld [vmem:[%s8900_s3 + $0x12a8] sm:$0xff] }
 0x2d8   : > { %5881 = vmatpush3.msra.mxu0 %v4885_v31  ;;  %5537 = vmatpush3.msra.mxu1 %v4854_v32  ;;  %v4905_v31 = vld [vmem:[%s8900_s3 + $0x11b0] sm:$0xff]  ;;  %v4920_v32 = vld [vmem:[%s8900_s3 + $0x1228] sm:$0xff] }
 0x2d9   : > { %5882 = vmatprep.subr.mxu0 %v6065_v14  ;;  %5538 = vmatprep.subr.mxu1 %v4869_v34  ;;  %v4935_v34 = vld [vmem:[%s8900_s3 + $0x12a0] sm:$0xff] }
 0x2da   : > { %5883 = vmatpush3.msra.mxu0 %v4884_v35  ;;  %5539 = vmatpush3.msra.mxu1 %v4853_v36  ;;  %v4904_v35 = vld [vmem:[%s8900_s3 + $0x11a8] sm:$0xff]  ;;  %v4950_v36 = vld [vmem:[%s8900_s3 + $0x1318] sm:$0xff] }
 0x2db   : > { %5884 = vmatprep.subr.mxu0 %v6065_v14  ;;  %5540 = vmatprep.subr.mxu1 %v4868_v37  ;;  %v4919_v37 = vld [vmem:[%s8900_s3 + $0x1220] sm:$0xff] }
 0x2dc   : > { %5885 = vmatpush3.msra.mxu0 %v4883_v38  ;;  %5541 = vmatpush3.msra.mxu1 %v4852_v39  ;;  %v4934_v38 = vld [vmem:[%s8900_s3 + $0x1298] sm:$0xff]  ;;  %v4903_v39 = vld [vmem:[%s8900_s3 + $0x11a0] sm:$0xff] }
 0x2dd   : > { %5886 = vmatprep.subr.mxu0 %v6065_v14  ;;  %5542 = vmatprep.subr.mxu1 %v4867_v40  ;;  %v4949_v40 = vld [vmem:[%s8900_s3 + $0x1310] sm:$0xff] }
 0x2de   : > { %5887 = vmatpush3.msra.mxu0 %v4882_v41  ;;  %5543 = vmatpush3.msra.mxu1 %v4851_v42  ;;  %v4918_v41 = vld [vmem:[%s8900_s3 + $0x1218] sm:$0xff]  ;;  %v4933_v42 = vld [vmem:[%s8900_s3 + $0x1290] sm:$0xff] }
 0x2df   : > { %5888 = vmatprep.subr.mxu0 %v6065_v14  ;;  %5544 = vmatprep.subr.mxu1 %v4866_v43  ;;  %v4902_v43 = vld [vmem:[%s8900_s3 + $0x1198] sm:$0xff] }
 0x2e0   : > { %5889 = vmatpush3.msra.mxu0 %v4881_v44  ;;  %5545 = vmatpush3.msra.mxu1 %v4850_v45  ;;  %v4948_v44 = vld [vmem:[%s8900_s3 + $0x1308] sm:$0xff]  ;;  %v4917_v45 = vld [vmem:[%s8900_s3 + $0x1210] sm:$0xff] }
 0x2e1   : > { %5890 = vmatprep.subr.mxu0 %v6065_v14  ;;  %5546 = vmatprep.subr.mxu1 %v4865_v46  ;;  %v4932_v46 = vld [vmem:[%s8900_s3 + $0x1288] sm:$0xff] }
 0x2e2   : > { %5891 = vmatpush3.msra.mxu0 %v4880_v47  ;;  %5547 = vmatpush3.msra.mxu1 %v4849_v48  ;;  %v4901_v47 = vld [vmem:[%s8900_s3 + $0x1190] sm:$0xff]  ;;  %v4947_v48 = vld [vmem:[%s8900_s3 + $0x1300] sm:$0xff] }
 0x2e3   : > { %5892 = vmatprep.subr.mxu0 %v6065_v14  ;;  %5548 = vmatprep.subr.mxu1 %v4864_v25  ;;  %v4916_v25 = vld [vmem:[%s8900_s3 + $0x1208] sm:$0xff] }
 0x2e4   : > { %5893 = vmatpush3.msra.mxu0 %v4879_v50  ;;  %5549 = vmatpush3.msra.mxu1 %v4848_v51  ;;  %v4931_v50 = vld [vmem:[%s8900_s3 + $0x1280] sm:$0xff]  ;;  %v4900_v51 = vld [vmem:[%s8900_s3 + $0x1188] sm:$0xff] }
 0x2e5   : > { %5894 = vmatprep.subr.mxu0 %v6065_v14  ;;  %5550 = vmatprep.subr.mxu1 %v4863_v52  ;;  %v2432_v56 = vpop.f32.mrf.mxu0  ;;  %v4946_v52 = vld [vmem:[%s8900_s3 + $0x12f8] sm:$0xff] }
 0x2e6   : > { %5895 = vmatpush3.msra.mxu0 %v4878_v53  ;;  %5551 = vmatpush3.msra.mxu1 %v4847_v30  ;;  %v4915_v53 = vld [vmem:[%s8900_s3 + $0x1200] sm:$0xff]  ;;  %v4930_v30 = vld [vmem:[%s8900_s3 + $0x1278] sm:$0xff] }
 0x2e7   : > { %5896 = vmatprep.subr.mxu0 %v6065_v14  ;;  %5552 = vmatprep.subr.mxu1 %v4862_v54  ;;  %v5772_v61 = vpop.f32.mrf.mxu0  ;;  %v4899_v54 = vld [vmem:[%s8900_s3 + $0x1180] sm:$0xff] }
 0x2e8   : > { %5897 = vmatpush3.msra.mxu0 %v4877_v33  ;;  %5553 = vmatpush3.msra.mxu1 %v4846_v55  ;;  %v4945_v33 = vld [vmem:[%s8900_s3 + $0x12f0] sm:$0xff]  ;;  %v4914_v55 = vld [vmem:[%s8900_s3 + $0x11f8] sm:$0xff]  ;;  %v4928_v61 = vld [vmem:[%s8900_s3 + $0x1268] sm:$0xff] }
 0x2e9   : > { %5898 = vmatprep.subr.mxu0 %v6065_v14  ;;  %5554 = vmatprep.subr.mxu1 %v4861_v58  ;;  %v5216_v2 = vpop.f32.mrf.mxu1  ;;  %v4898_v58 = vld [vmem:[%s8900_s3 + $0x1178] sm:$0xff] }
 0x2ea   : > { %5899 = vmatpush3.msra.mxu0 %v4876_v5  ;;  %5555 = vmatpush3.msra.mxu1 %v4845_v59  ;;  %v4944_v5 = vld [vmem:[%s8900_s3 + $0x12e8] sm:$0xff]  ;;  %v4913_v59 = vld [vmem:[%s8900_s3 + $0x11f0] sm:$0xff] }
 0x2eb   : > { %5900 = vmatprep.subr.mxu0 %v6065_v14  ;;  %5556 = vmatprep.subr.mxu1 %v4860_v63  ;;  %v5217_v8 = vpop.f32.mrf.mxu1  ;;  %v4897_v63 = vld [vmem:[%s8900_s3 + $0x1170] sm:$0xff] }
 0x2ec   : > { %5901 = vmatpush3.msra.mxu0 %v4875_v49  ;;  %5902 = vmatprep.mubr.msk.f32.mxu0 %vm6067_vm2, %v6065_v14  ;;  %v5218_v11 = vadd.f32 %v5217_v8, %v5216_v2  ;;  %v4943_v49 = vld [vmem:[%s8900_s3 + $0x12e0] sm:$0xff]  ;;  %v4912_v2 = vld [vmem:[%s8900_s3 + $0x11e8] sm:$0xff]  ;;  %v4926_v8 = vld [vmem:[%s8900_s3 + $0x1258] sm:$0xff] }
 0x2ed   : > { %5557 = vmatpush3.msra.mxu1 %v4844_v3  ;;  %5903 = vmatmul.mubr.msk.f32.vlgmr.msra.gmra.mxu0 %vm1604_vm3, %v3436_v0  ;;  %v4927_v3 = vld [vmem:[%s8900_s3 + $0x1260] sm:$0xff]  ;;  %v4896_v0 = vld [vmem:[%s8900_s3 + $0x1168] sm:$0xff] }
 0x2ee   : > { %5614 = vmatprep.subr.mxu0 %v4955_v4  ;;  %5558 = vmatprep.subr.mxu1 %v4859_v7  ;;  %v2363_v10 = vadd.f32 %v5218_v11, %v8380_v6  ;;  %v3738_v6 = vrot.slane %v6891_v27, 7  ;;  %v4942_v4 = vld [vmem:[%s8900_s3 + $0x12d8] sm:$0xff]  ;;  %v4911_v7 = vld [vmem:[%s8900_s3 + $0x11e0] sm:$0xff] }
 0x2ef   : > { %5615 = vmatpush3.msra.mxu0 %v4939_v1  ;;  %3885 = vmatprep.mubr.f32.mxu0 %v3740_v12  ;;  %v4895_v11 = vld [vmem:[%s8900_s3 + $0x1160] sm:$0xff]  ;;  %v4941_v12 = vld [vmem:[%s8900_s3 + $0x12d0] sm:$0xff] }
 0x2f0   : > { %5559 = vmatpush3.msra.mxu1 %v4843_v13  ;;  %5616 = vmatprep.subr.mxu0 %v4954_v15  ;;  %v2433_v20 = vadd.f32 %v2432_v56, %v2363_v10  ;;  %v4929_v56 = vld [vmem:[%s8900_s3 + $0x1270] sm:$0xff]  ;;  %v4910_v13 = vld [vmem:[%s8900_s3 + $0x11d8] sm:$0xff] }
 0x2f1   : > { %3581 = vmatmul.mubr.f32.vlgmr.msra.gmra.mxu1 %v3434_v60  ;;  %5579 = vmatprep.subr.mxu1 %v4923_v16  ;;  %v4925_v15 = vld [vmem:[%s8900_s3 + $0x1250] sm:$0xff]  ;;  %v4894_v10 = vld [vmem:[%s8900_s3 + $0x1158] sm:$0xff]  ;;  %v4940_v60 = vld [vmem:[%s8900_s3 + $0x12c8] sm:$0xff] }
 0x2f2   : > { %5617 = vmatpush3.msra.mxu0 %v4938_v17  ;;  %5580 = vmatpush3.msra.mxu1 %v4907_v18  ;;  %v8597_v27 = vadd.f32 %v2433_v20, %v8389_v9  ;;  %v4951_v9 = vld [vmem:[%s8900_s3 + $0x1320] sm:$0xff]  ;;  %v4909_v18 = vld [vmem:[%s8900_s3 + $0x11d0] sm:$0xff] }
 0x2f3   : > { %3815 = vmatprep.mubr.f32.mxu1 %v3738_v6  ;;  %5618 = vmatprep.subr.mxu0 %v4953_v19  ;;  %v4924_v19 = vld [vmem:[%s8900_s3 + $0x1248] sm:$0xff]  ;;  %v4893_v6 = vld [vmem:[%s8900_s3 + $0x1150] sm:$0xff] }
 0x2f4   : > { %5581 = vmatprep.subr.mxu1 %v4922_v21  ;;  %5619 = vmatpush3.msra.mxu0 %v4937_v22  ;;  %v3739_v21 = vrot.slane %v6989_v62, 7  ;;  %v4908_v22 = vld [vmem:[%s8900_s3 + $0x11c8] sm:$0xff]  ;;  %v4970_v62 = vld [vmem:[%s8900_s3 + $0x13b8] sm:$0x1] }
 0x2f5   : > { %5582 = vmatpush3.msra.mxu1 %v4906_v23  ;;  %5620 = vmatprep.subr.mxu0 %v4952_v26  ;;  %v4892_v26 = vld [vmem:[%s8900_s3 + $0x1148] sm:$0xff] }
 0x2f6   : > { %5583 = vmatprep.subr.mxu1 %v4921_v28  ;;  %5621 = vmatpush3.msra.mxu0 %v4936_v29  ;;  %v3737_v29 = vrot.slane %v6893_v24, 7  ;;  %v4968_v24 = vld [vmem:[%s8900_s3 + $0x13a8] sm:$0xff] }
 0x2f7   : > { %5584 = vmatpush3.msra.mxu1 %v4905_v31  ;;  %5622 = vmatprep.subr.mxu0 %v4951_v9  ;;  %v4969_v9 = vld [vmem:[%s8900_s3 + $0x13b0] sm:$0xff] }
 0x2f8   : > { %5585 = vmatprep.subr.mxu1 %v4920_v32  ;;  %5623 = vmatpush3.msra.mxu0 %v4935_v34  ;;  %v4967_v32 = vld [vmem:[%s8900_s3 + $0x13a0] sm:$0xff]  ;;  %v4966_v34 = vld [vmem:[%s8900_s3 + $0x1398] sm:$0xff] }
 0x2f9   : > { %5586 = vmatpush3.msra.mxu1 %v4904_v35  ;;  %5624 = vmatprep.subr.mxu0 %v4950_v36  ;;  %v4965_v35 = vld [vmem:[%s8900_s3 + $0x1390] sm:$0xff]  ;;  %v4964_v36 = vld [vmem:[%s8900_s3 + $0x1388] sm:$0xff] }
 0x2fa   : > { %5587 = vmatprep.subr.mxu1 %v4919_v37  ;;  %5625 = vmatpush3.msra.mxu0 %v4934_v38  ;;  %v4963_v37 = vld [vmem:[%s8900_s3 + $0x1380] sm:$0xff]  ;;  %v4962_v38 = vld [vmem:[%s8900_s3 + $0x1378] sm:$0xff] }
 0x2fb   : > { %5588 = vmatpush3.msra.mxu1 %v4903_v39  ;;  %5626 = vmatprep.subr.mxu0 %v4949_v40  ;;  %v4961_v39 = vld [vmem:[%s8900_s3 + $0x1370] sm:$0xff]  ;;  %v4960_v40 = vld [vmem:[%s8900_s3 + $0x1368] sm:$0xff] }
 0x2fc   : > { %5589 = vmatprep.subr.mxu1 %v4918_v41  ;;  %5627 = vmatpush3.msra.mxu0 %v4933_v42  ;;  %v4959_v41 = vld [vmem:[%s8900_s3 + $0x1360] sm:$0xff]  ;;  %v4958_v42 = vld [vmem:[%s8900_s3 + $0x1358] sm:$0xff] }
 0x2fd   : > { %5590 = vmatpush3.msra.mxu1 %v4902_v43  ;;  %5628 = vmatprep.subr.mxu0 %v4948_v44  ;;  %v4957_v44 = vld [vmem:[%s8900_s3 + $0x1350] sm:$0xff] }
 0x2fe   : > { %5591 = vmatprep.subr.mxu1 %v4917_v45  ;;  %5629 = vmatpush3.msra.mxu0 %v4932_v46 }
 0x2ff   : > { %5592 = vmatpush3.msra.mxu1 %v4901_v47  ;;  %5630 = vmatprep.subr.mxu0 %v4947_v48  ;;  %v4956_v48 = vld [vmem:[%s8900_s3 + $0x1348] sm:$0xff] }
 0x300   : > { %5593 = vmatprep.subr.mxu1 %v4916_v25  ;;  %5631 = vmatpush3.msra.mxu0 %v4931_v50 }
 0x301   : > { %5594 = vmatpush3.msra.mxu1 %v4900_v51  ;;  %5632 = vmatprep.subr.mxu0 %v4946_v52  ;;  %v3741_v52 = vrot.slane %v6973_v57, 7  ;;  %v3968_v57 = vld [vmem:[%s8902_s5 + $0x28] sm:$0xff] }
 0x302   : > { %5595 = vmatprep.subr.mxu1 %v4915_v53  ;;  %5633 = vmatpush3.msra.mxu0 %v4930_v30 }
 0x303   : > { %5596 = vmatpush3.msra.mxu1 %v4899_v54  ;;  %5634 = vmatprep.subr.mxu0 %v4945_v33 }
 0x304   : > { %5597 = vmatprep.subr.mxu1 %v4914_v55  ;;  %5635 = vmatpush3.msra.mxu0 %v4929_v56 }
 0x305   : > { %5598 = vmatpush3.msra.mxu1 %v4898_v58  ;;  %5636 = vmatprep.subr.mxu0 %v4944_v5  ;;  %v3970_v5 = vld [vmem:[%s8902_s5 + $0x38] sm:$0xff] }
 0x306   : > { %5599 = vmatprep.subr.mxu1 %v4913_v59  ;;  %5637 = vmatpush3.msra.mxu0 %v4928_v61  ;;  %v3967_v61 = vld [vmem:[%s8902_s5 + $0x20] sm:$0xff] }
 0x307   : > { %5600 = vmatpush3.msra.mxu1 %v4897_v63  ;;  %5638 = vmatprep.subr.mxu0 %v4943_v49  ;;  %v5302_v1 = vpop.f32.mrf.mxu0 }
 0x308   : > { %5601 = vmatprep.subr.mxu1 %v4912_v2  ;;  %5639 = vmatpush3.msra.mxu0 %v4927_v3 }
 0x309   : > { %5602 = vmatpush3.msra.mxu1 %v4896_v0  ;;  %5640 = vmatprep.subr.mxu0 %v4942_v4  ;;  %v5303_v16 = vpop.f32.mrf.mxu0  ;;  %v3966_v0 = vld [vmem:[%s8902_s5 + $0x18] sm:$0xff] }
 0x30a   : > { %5603 = vmatprep.subr.mxu1 %v4911_v7  ;;  %5641 = vmatpush3.msra.mxu0 %v4926_v8  ;;  %v5304_v17 = vadd.f32 %v5303_v16, %v5302_v1  ;;  %v3965_v7 = vld [vmem:[%s8902_s5 + $0x10] sm:$0xff]  ;;  %v3964_v1 = vld [vmem:[%s8902_s5 + $0x8] sm:$0xff] }
 0x30b   : > { %5604 = vmatpush3.msra.mxu1 %v4895_v11  ;;  %5642 = vmatprep.subr.mxu0 %v4941_v12  ;;  %v5267_v20 = vpop.f32.mrf.mxu1  ;;  %v3963_v12 = vld [vmem:[%s8902_s5] sm:$0xff] }
 0x30c   : > { %5605 = vmatprep.subr.mxu1 %v4910_v13  ;;  %5643 = vmatpush3.msra.mxu0 %v4925_v15 }
 0x30d   : > { %5606 = vmatpush3.msra.mxu1 %v4894_v10  ;;  %5644 = vmatprep.subr.mxu0 %v4940_v60  ;;  %v5268_v23 = vpop.f32.mrf.mxu1 }
 0x30e   : > { %5607 = vmatprep.subr.mxu1 %v4909_v18  ;;  %5645 = vmatpush3.msra.mxu0 %v4924_v19  ;;  %v5269_v28 = vadd.f32 %v5268_v23, %v5267_v20 }
 0x30f   : > { %5608 = vmatpush3.msra.mxu1 %v4893_v6  ;;  %3886 = vmatmul.mubr.f32.vlgmr.msra.gmra.mxu0 %v3739_v21 }
 0x310   : > { %5609 = vmatprep.subr.mxu1 %v4908_v22  ;;  %v2668_v31 = vadd.f32 %v5304_v17, %v5269_v28  ;;  %5938 = vmatprep.subr.mxu0 %v6065_v14 }
 0x311   : > { %5610 = vmatpush3.msra.mxu1 %v4892_v26  ;;  %5954 = vmatprep.mubr.msk.f32.mxu0 %vm6067_vm2, %v6065_v14 }
 0x312   : > { %3816 = vmatmul.mubr.f32.vlgmr.msra.gmra.mxu1 %v3737_v29  ;;  %5905 = vmatprep.subr.mxu1 %v6065_v14 }
 0x313   : > { %5906 = vmatpush3.msk.msra.mxu1 %vm1608_vm1, %v4970_v62  ;;  %5935 = vmatprep.mubr.msk.f32.mxu1 %vm6067_vm2, %v6065_v14 }
 0x314   : > { %5907 = vmatprep.subr.mxu1 %v6065_v14  ;;  %5939 = vmatpush3.msra.mxu0 %v3970_v5 }
 0x315   : > { %5908 = vmatpush3.msra.mxu1 %v4969_v9  ;;  %5940 = vmatprep.subr.mxu0 %v6065_v14 }
 0x316   : > { %5909 = vmatprep.subr.mxu1 %v6065_v14 }
 0x317   : > { %5910 = vmatpush3.msra.mxu1 %v4968_v24 }
 0x318   : > { %5911 = vmatprep.subr.mxu1 %v6065_v14 }
 0x319   : > { %5912 = vmatpush3.msra.mxu1 %v4967_v32 }
 0x31a   : > { %5913 = vmatprep.subr.mxu1 %v6065_v14 }
 0x31b   : > { %5914 = vmatpush3.msra.mxu1 %v4966_v34 }
 0x31c   : > { %5915 = vmatprep.subr.mxu1 %v6065_v14 }
 0x31d   : > { %5916 = vmatpush3.msra.mxu1 %v4965_v35 }
 0x31e   : > { %5917 = vmatprep.subr.mxu1 %v6065_v14 }
 0x31f   : > { %5918 = vmatpush3.msra.mxu1 %v4964_v36 }
 0x320   : > { %5919 = vmatprep.subr.mxu1 %v6065_v14 }
 0x321   : > { %5920 = vmatpush3.msra.mxu1 %v4963_v37 }
 0x322   : > { %5921 = vmatprep.subr.mxu1 %v6065_v14 }
 0x323   : > { %5922 = vmatpush3.msra.mxu1 %v4962_v38 }
 0x324   : > { %5923 = vmatprep.subr.mxu1 %v6065_v14 }
 0x325   : > { %5924 = vmatpush3.msra.mxu1 %v4961_v39  ;;  %v3971_v39 = vld [vmem:[%s8903_s6] sm:$0x1] }
 0x326   : > { %5925 = vmatprep.subr.mxu1 %v6065_v14 }
 0x327   : > { %5926 = vmatpush3.msra.mxu1 %v4960_v40 }
 0x328   : > { %5927 = vmatprep.subr.mxu1 %v6065_v14 }
 0x329   : > { %5928 = vmatpush3.msra.mxu1 %v4959_v41  ;;  %v5353_v43 = vpop.f32.mrf.mxu0 }
 0x32a   : > { %5929 = vmatprep.subr.mxu1 %v6065_v14  ;;  %v2737_v45 = vpop.f32.mrf.mxu1 }
 0x32b   : > { %5930 = vmatpush3.msra.mxu1 %v4958_v42  ;;  %v2738_v46 = vadd.f32 %v2737_v45, %v2668_v31  ;;  %v5354_v47 = vpop.f32.mrf.mxu0 }
 0x32c   : > { %5931 = vmatprep.subr.mxu1 %v6065_v14  ;;  %v5355_v25 = vadd.f32 %v5354_v47, %v5353_v43  ;;  %v5805_v50 = vpop.f32.mrf.mxu1 }
 0x32d   : > { %5932 = vmatpush3.msra.mxu1 %v4957_v44  ;;  %v2741_v51 = vadd.f32 %v2738_v46, %v8597_v27  ;;  %v3969_v27 = vld [vmem:[%s8902_s5 + $0x30] sm:$0xff] }
 0x32e   : > { %5933 = vmatprep.subr.mxu1 %v6065_v14  ;;  %5941 = vmatpush3.msra.mxu0 %v3969_v27 }
 0x32f   : > { %5934 = vmatpush3.msra.mxu1 %v4956_v48  ;;  %5942 = vmatprep.subr.mxu0 %v6065_v14 }
 0x330   : > { %5936 = vmatmul.mubr.msk.f32.vlgmr.msra.gmra.mxu1 %vm1604_vm3, %v3741_v52  ;;  %5943 = vmatpush3.msra.mxu0 %v3968_v57 }
 0x331   : > { %5944 = vmatprep.subr.mxu0 %v6065_v14 }
 0x332   : > { %5945 = vmatpush3.msra.mxu0 %v3967_v61 }
 0x333   : > { %5946 = vmatprep.subr.mxu0 %v6065_v14 }
 0x334   : > { %5947 = vmatpush3.msra.mxu0 %v3966_v0 }
 0x335   : > { %5948 = vmatprep.subr.mxu0 %v6065_v14 }
 0x336   : > { %5949 = vmatpush3.msra.mxu0 %v3965_v7 }
 0x337   : > { %5950 = vmatprep.subr.mxu0 %v6065_v14 }
 0x338   : > { %5951 = vmatpush3.msra.mxu0 %v3964_v1 }
 0x339   : > { %5952 = vmatprep.subr.mxu0 %v6065_v14 }
 0x33a   : > { %5953 = vmatpush3.msra.mxu0 %v3963_v12 }
 0x349   : > { %v3042_v53 = vpop.f32.mrf.mxu0 }
 0x34b   : > { %v5838_v30 = vpop.f32.mrf.mxu0 }
 0x34d   : > { %v5388_v54 = vpop.f32.mrf.mxu1 }
 0x34f   : > { %v5389_v33 = vpop.f32.mrf.mxu1 }
 0x350   : > { %v5390_v55 = vadd.f32 %v5389_v33, %v5388_v54 }
 0x352   : > { %v2973_v56 = vadd.f32 %v5390_v55, %v5355_v25 }
 0x354   : > { %v3043_v58 = vadd.f32 %v3042_v53, %v2973_v56 }
 0x356   : > { %v3046_v59 = vadd.f32 %v3043_v58, %v2741_v51 }
 0x36b   : > { %v5474_v63 = vpop.f32.mrf.mxu0 }
 0x36d   : > { %v5475_v49 = vpop.f32.mrf.mxu0 }
 0x36e   : > { %v5476_v2 = vadd.f32 %v5475_v49, %v5474_v63 }
 0x36f   : > { %v5439_v3 = vpop.f32.mrf.mxu1 }
 0x371   : > { %v5440_v4 = vpop.f32.mrf.mxu1 }
 0x372   : > { %v5441_v8 = vadd.f32 %v5440_v4, %v5439_v3 }
 0x374   : > { %v3278_v11 = vadd.f32 %v5476_v2, %v5441_v8 }
 0x38d   : > { %v5525_v60 = vpop.f32.mrf.mxu0 }
 0x38e   : > { %v3347_v13 = vpop.f32.mrf.mxu1 }
 0x38f   : > { %v3348_v15 = vadd.f32 %v3347_v13, %v3278_v11  ;;  %v5526_v17 = vpop.f32.mrf.mxu0 }
 0x390   : > { %v5871_v16 = vpop.f32.mrf.mxu1  ;;  %v5527_v21 = vadd.f32 %v5526_v17, %v5525_v60 }
 0x391   : > { %v3351_v10 = vadd.f32 %v3348_v15, %v3046_v59 }
 0x3ad   : > { %v3652_v18 = vpop.f32.mrf.mxu0 }
 0x3af   : > { %v5904_v19 = vpop.f32.mrf.mxu0 }
 0x3b1   : > { %v5560_v20 = vpop.f32.mrf.mxu1 }
 0x3b3   : > { %v5561_v6 = vpop.f32.mrf.mxu1 }
 0x3b4   : > { %v5562_v22 = vadd.f32 %v5561_v6, %v5560_v20 }
 0x3b6   : > { %v3583_v23 = vadd.f32 %v5562_v22, %v5527_v21 }
 0x3b8   : > { %v3653_v26 = vadd.f32 %v3652_v18, %v3583_v23 }
 0x3ba   : > { %v3656_v14 = vadd.f32 %v3653_v26, %v3351_v10 }
 0x3cf   : > { %v5646_v29 = vpop.f32.mrf.mxu0 }
 0x3d1   : > { %v5647_v31 = vpop.f32.mrf.mxu0 }
 0x3d2   : > { %v5611_v28 = vpop.f32.mrf.mxu1  ;;  %v5648_v24 = vadd.f32 %v5647_v31, %v5646_v29 }
 0x3d4   : > { %v5612_v62 = vpop.f32.mrf.mxu1 }
 0x3d5   : > { %v5613_v9 = vadd.f32 %v5612_v62, %v5611_v28 }
 0x3d7   : > { %v3888_v32 = vadd.f32 %v5648_v24, %v5613_v9 }
 0x3f0   : > { %v3957_v34 = vpop.f32.mrf.mxu1 }
 0x3f1   : > { %v3958_v35 = vadd.f32 %v3957_v34, %v3888_v32 }
 0x3f2   : > { %v5937_v36 = vpop.f32.mrf.mxu1 }
 0x3f3   : > { %v3961_v37 = vadd.f32 %v3958_v35, %v3656_v14 }
 0x3f5   : > { %v3962_v38 = vmax.f32 %v3961_v37, 0.0 }
 0x3f7   : > { %5955 = vmatmul.mubr.msk.f32.vlgmr.msra.gmra.mxu0 %vm3972_vm4, %v3962_v38 }
 0x4b7   : > { %v4042_v40 = vpop.f32.mrf.mxu0 }
 0x4b8   : > { %v4043_v41 = vadd.f32 %v4042_v40, %v3971_v39 }
 0x4b9   : > { %v5956_v42 = vpop.f32.mrf.mxu0 }
 0x4ba   : > { %v4046_v43 = vmax.f32 %v4043_v41, 0.0 }
 0x4bc   : > { %4048 = vst.msk [vmem:[%s270_s9] sm:$0x1] %vm4047_vm5, %v4046_v43 }
 0x4bd   : > { %6016 = shalt.err (!%p6013_p3)
}
 0x4be   : > { %s6017_s21 = scalar_lea.hbm %s4060_s16, 16  ;;  %s6021_s29 = scalar_lea.hbm %s8904_s7, 32 }
 0x4bf   : > { %p6018_p4 = scmp.ne.s32.totalorder %s4060_s16, %s6017_s21  ;;  %p6022_p9 = scmp.lt.s32.totalorder %s4060_s16, %s8904_s7 }
 0x4c0   : > { %p6023_p10 = scmp.lt.s32.totalorder %s6021_s29, %s6017_s21 }
 0x4c1   : > { %p6019_p7 = pnand %p6018_p4, %p6147_p5 }
 0x4c2   : > { %p6024_p11 = por %p6023_p10, %p6022_p9 }
 0x4c3   : > { %p6020_p8 = pneg %p6019_p7 }
 0x4c5   : > { %p6025_p12 = pnand %p6024_p11, %p6020_p8 }
 0x4c7   : > { %6028 = shalt.err (!%p6025_p12)
}
 0x4c8   : > { %5958 = dma.vmem_to_hbm [thread:$0]  (%p6147_p5), %s4063_s13, 16, %s4060_s16, %s4050_s17  }
 0x4c9 PF: > { %p5964_p13 = scmp.ge.s32.totalorder %s6063_s27, 2  ;;  %s4074_s14 = sand.u32 1, %s6051_s24  }
 0x4ca   : > { %s4075_s15 = scalar_lea.sflag [#allocation3], %s4074_s14 }
 0x4cb   : > { %p5961_p0 = pnand %p5964_p13, %p6151_p6 }
 0x4cd   : > { %p5962_p1 = pneg %p5961_p0 }
 0x4cf   : > { %6046 = dma.done.wait (%p5962_p1), %s4075_s15, 16  }
 0x4d0   : > { %6048 = vsyncadd (%p5962_p1), %s4075_s15, 4294967280  ;;  %p17_p2 = scmp.ge.s32.totalorder %s6134_s30, 4   ;;  %s8907_s24 = smov %s6055_s25 }
 0x4d1   : > { %s8908_s25 = smov %s6059_s26  ;;  %s8909_s26 = smov %s6145_s10 }
 0x4d2   : > { %s8910_s27 = smov %s6134_s30  ;;  %19 = sbr.rel (!%p17_p2) target bundleno = 3 (0x3), region = 93 }
 0x4d7   :  { %4079 = vsyncpa [#allocation3], 1 }
 0x4d8   :  { %4081 = vsyncpa [#allocation3 + $0x1], 1 }

</bundles_post_ra>
